<compile_context>
chip_gen: v7x
topology: tpu7x:2x2x1
jax: 0.10.0
libtpu: 0.0.40
codegen_flags: <defaults>
</compile_context>

<pallas_src>
import jax
import jax.numpy as jnp
from jax import lax
from jax.experimental import pallas as pl
from jax.experimental.pallas import tpu as pltpu


# ---------------------------------------------------------------------------
# Fused SKConv kernel: one program per batch element.
# ---------------------------------------------------------------------------
def make_skconv_kernel(H, W, C, M):
    HW = H * W
    inv_hw = 1.0 / float(HW)

    def kernel(xpad_ref, wconv_ref, scale_ref, shift_ref,
               wfc_ref, bfc_ref, wfcs_ref, bfcs_ref, out_ref):
        # xpad_ref : (1, H+2, W+2, C)  zero-padded NHWC input, one batch elem
        # wconv_ref: (M, C, 9*C)       block-diagonal im2col conv weights
        # scale_ref, shift_ref: (M, C, 1)  folded conv-bias + BN affine
        # wfc_ref  : (d, C),  bfc_ref : (d, 1)
        # wfcs_ref : (M, C, d), bfcs_ref : (M, C, 1)
        # out_ref  : (1, C, H*W)       NCHW (spatial flattened), lane-dense
        xp = xpad_ref[0]                                    # (H+2, W+2, C)

        # im2col: 9 shifted windows concatenated on the channel (lane) axis.
        cols = []
        for kh in range(3):
            for kw in range(3):
                cols.append(xp[kh:kh + H, kw:kw + W, :])    # (H, W, C)
        patches = jnp.concatenate(cols, axis=-1).reshape(HW, 9 * C)  # (HW, 9C)

        # Branch convs (one MXU matmul each, q@k^T style so the result is
        # channel-major) + BN + ReLU, with the GAP partial sums fused in.
        ys = []
        s_sum = None
        for m in range(M):
            y = lax.dot_general(
                wconv_ref[m], patches,
                dimension_numbers=(((1,), (1,)), ((), ())),
                preferred_element_type=jnp.float32)          # (C, HW)
            y = y * scale_ref[m] + shift_ref[m]              # BN (eval) + bias
            y = jnp.maximum(y, 0.0)                          # ReLU
            ys.append(y)
            sm = jnp.sum(y, axis=1, keepdims=True)           # (C, 1)
            s_sum = sm if s_sum is None else s_sum + sm

        # Global average pool of fea_U, then fc -> z.
        fea_s = s_sum * inv_hw                               # (C, 1)
        fea_z = jnp.dot(wfc_ref[...], fea_s,
                        preferred_element_type=jnp.float32) + bfc_ref[...]  # (d, 1)

        # Per-branch fc heads + softmax over the branch dimension.
        logits = [jnp.dot(wfcs_ref[m], fea_z,
                          preferred_element_type=jnp.float32) + bfcs_ref[m]
                  for m in range(M)]                          # each (C, 1)
        mx = logits[0]
        for m in range(1, M):
            mx = jnp.maximum(mx, logits[m])
        exps = [jnp.exp(l - mx) for l in logits]
        den = exps[0]
        for m in range(1, M):
            den = den + exps[m]
        inv_den = pl.reciprocal(den, approx=True)             # (C, 1)

        # Attention-weighted sum over branches (att broadcast over HW lanes).
        fea_v = ys[0] * (exps[0] * inv_den)
        for m in range(1, M):
            fea_v = fea_v + ys[m] * (exps[m] * inv_den)       # (C, HW)

        out_ref[0] = fea_v                                    # lane-dense store

    return kernel


# ---------------------------------------------------------------------------
# Wrapper: parameter folding + pallas_call
# ---------------------------------------------------------------------------
def skconv_pallas(x_nchw, params, M, G):
    N, C, H, W = x_nchw.shape
    Cg = C // G
    eps = 1e-5

    # NCHW -> NHWC + 1-pixel spatial zero pad (conv halo).
    x = jnp.transpose(x_nchw, (0, 2, 3, 1)).astype(jnp.float32)
    xpad = jnp.pad(x, ((0, 0), (1, 1), (1, 1), (0, 0)))

    # Fold conv bias + eval-mode BN into per-channel scale / shift (as columns).
    scale = params["bn_gamma"] / jnp.sqrt(params["bn_var"] + eps)          # (M, C)
    shift = (params["conv_b"] - params["bn_mean"]) * scale + params["bn_beta"]
    scale = scale.reshape(M, C, 1).astype(jnp.float32)
    shift = shift.reshape(M, C, 1).astype(jnp.float32)

    # Grouped conv weights -> block-diagonal im2col weights (M, C_out, 9*C_in):
    # column index = (kh*3+kw)*C + ci ; nonzero only when ci, co share a group.
    wk = params["conv_w"]                              # (M, C_out, Cg_in, 3, 3)
    wt = jnp.transpose(wk, (0, 1, 3, 4, 2))            # (M, C_out, 3, 3, Cg_in)
    w_full = jnp.zeros((M, C, 3, 3, C), jnp.float32)
    for g in range(G):
        w_full = w_full.at[:, g * Cg:(g + 1) * Cg, :, :,
                           g * Cg:(g + 1) * Cg].set(wt[:, g * Cg:(g + 1) * Cg])
    wconv = w_full.reshape(M, C, 9 * C)

    d = params["fc_w"].shape[0]
    wfc = params["fc_w"].astype(jnp.float32)                       # (d, C)
    bfc = params["fc_b"].reshape(d, 1).astype(jnp.float32)         # (d, 1)
    wfcs = params["fcs_w"].astype(jnp.float32)                     # (M, C, d)
    bfcs = params["fcs_b"].reshape(M, C, 1).astype(jnp.float32)    # (M, C, 1)

    kernel = make_skconv_kernel(H, W, C, M)
    out = pl.pallas_call(
        kernel,
        out_shape=jax.ShapeDtypeStruct((N, C, H * W), jnp.float32),
        grid=(N,),
        in_specs=[
            pl.BlockSpec((1, H + 2, W + 2, C), lambda n: (n, 0, 0, 0)),
            pl.BlockSpec((M, C, 9 * C), lambda n: (0, 0, 0)),
            pl.BlockSpec((M, C, 1), lambda n: (0, 0, 0)),
            pl.BlockSpec((M, C, 1), lambda n: (0, 0, 0)),
            pl.BlockSpec((d, C), lambda n: (0, 0)),
            pl.BlockSpec((d, 1), lambda n: (0, 0)),
            pl.BlockSpec((M, C, d), lambda n: (0, 0, 0)),
            pl.BlockSpec((M, C, 1), lambda n: (0, 0, 0)),
        ],
        out_specs=pl.BlockSpec((1, C, H * W), lambda n: (n, 0, 0)),
        compiler_params=pltpu.CompilerParams(
            dimension_semantics=("parallel",),
            vmem_limit_bytes=32 * 1024 * 1024),
    )(xpad, wconv, scale, shift, wfc, bfc, wfcs, bfcs)

    return out.reshape(N, C, H, W)            # NCHW, same layout as PyTorch


# ---------------------------------------------------------------------------
# Pure-JAX reference (mirrors the PyTorch forward, BN in eval mode)
# ---------------------------------------------------------------------------
def skconv_ref(x_nchw, params, M, G):
    eps = 1e-5
    feas = []
    for m in range(M):
        y = lax.conv_general_dilated(
            x_nchw, params["conv_w"][m], (1, 1), ((1, 1), (1, 1)),
            feature_group_count=G,
            dimension_numbers=("NCHW", "OIHW", "NCHW"),
            precision=lax.Precision.HIGHEST)
        y = y + params["conv_b"][m][None, :, None, None]
        y = ((y - params["bn_mean"][m][None, :, None, None])
             / jnp.sqrt(params["bn_var"][m][None, :, None, None] + eps)
             * params["bn_gamma"][m][None, :, None, None]
             + params["bn_beta"][m][None, :, None, None])
        y = jnp.maximum(y, 0.0)
        feas.append(y)
    feas = jnp.stack(feas, axis=1)                       # (N, M, C, H, W)
    fea_U = feas.sum(axis=1)                             # (N, C, H, W)
    fea_s = fea_U.mean(axis=(2, 3))                      # (N, C)
    fea_z = fea_s @ params["fc_w"].T + params["fc_b"]    # (N, d)
    vecs = jnp.stack(
        [fea_z @ params["fcs_w"][m].T + params["fcs_b"][m] for m in range(M)],
        axis=1)                                          # (N, M, C)
    att = jax.nn.softmax(vecs, axis=1)
    fea_v = (feas * att[:, :, :, None, None]).sum(axis=1)  # (N, C, H, W)
    return fea_v


# ---------------------------------------------------------------------------
def init_params(key, M, C, G, d):
    Cg = C // G
    ks = jax.random.split(key, 10)
    return {
        "conv_w": 0.1 * jax.random.normal(ks[0], (M, C, Cg, 3, 3), jnp.float32),
        "conv_b": 0.1 * jax.random.normal(ks[1], (M, C), jnp.float32),
        "bn_gamma": 1.0 + 0.1 * jax.random.normal(ks[2], (M, C), jnp.float32),
        "bn_beta": 0.1 * jax.random.normal(ks[3], (M, C), jnp.float32),
        "bn_mean": 0.05 * jax.random.normal(ks[4], (M, C), jnp.float32),
        "bn_var": 1.0 + 0.1 * jax.random.uniform(ks[5], (M, C), jnp.float32),
        "fc_w": 0.1 * jax.random.normal(ks[6], (d, C), jnp.float32),
        "fc_b": 0.1 * jax.random.normal(ks[7], (d,), jnp.float32),
        "fcs_w": 0.1 * jax.random.normal(ks[8], (M, C, d), jnp.float32),
        "fcs_b": 0.1 * jax.random.normal(ks[9], (M, C), jnp.float32),
    }


if __name__ == "__main__":
    # SKConv(features=24, WH=32, M=2, G=6, r=2, L=32) as used in dutcvcnet's
    # stem (SKUnit(24, 24, 32, 2, 6, 2)) -> d = max(24 // 2, 32) = 32.
    N, C, H, W = 2, 24, 32, 32
    M, G, r, L = 2, 6, 2, 32
    d = max(C // r, L)

    key = jax.random.PRNGKey(0)
    kx, kp = jax.random.split(key)
    x = jax.random.normal(kx, (N, C, H, W), jnp.float32)
    params = init_params(kp, M, C, G, d)

    out = jax.block_until_ready(skconv_pallas(x, params, M, G))
    ref = jax.block_until_ready(skconv_ref(x, params, M, G))

    assert out.shape == ref.shape == (N, C, H, W)
    max_err = float(jnp.max(jnp.abs(out - ref)))
    assert jnp.allclose(out, ref, rtol=1e-2, atol=1e-2), max_err
    print("KERNEL_OK")
</pallas_src>

<mosaic_0001>
module attributes {stable_mosaic.version = 11 : i64} {
  func.func @kernel(%arg0: i32, %arg1: memref<1x34x34x24xf32, #tpu.memory_space<vmem>>, %arg2: memref<2x24x216xf32, #tpu.memory_space<vmem>>, %arg3: memref<2x24x1xf32, #tpu.memory_space<vmem>>, %arg4: memref<2x24x1xf32, #tpu.memory_space<vmem>>, %arg5: memref<32x24xf32, #tpu.memory_space<vmem>>, %arg6: memref<32x1xf32, #tpu.memory_space<vmem>>, %arg7: memref<2x24x32xf32, #tpu.memory_space<vmem>>, %arg8: memref<2x24x1xf32, #tpu.memory_space<vmem>>, %arg9: memref<1x24x1024xf32, #tpu.memory_space<vmem>>) attributes {dimension_semantics = [#tpu.dimension_semantics<parallel>], iteration_bounds = array<i64: 2>, scalar_prefetch = 0 : i64, scratch_operands = 0 : i64, tpu.core_type = #tpu.core_type<tc>, window_params = [{transform_indices = @transform_0, window_bounds = array<i64: 1, 34, 34, 24>}, {pipeline_mode = #tpu.pipeline_mode<synchronous>, transform_indices = @transform_1, window_bounds = array<i64: 2, 24, 216>}, {pipeline_mode = #tpu.pipeline_mode<synchronous>, transform_indices = @transform_2, window_bounds = array<i64: 2, 24, 1>}, {pipeline_mode = #tpu.pipeline_mode<synchronous>, transform_indices = @transform_3, window_bounds = array<i64: 2, 24, 1>}, {pipeline_mode = #tpu.pipeline_mode<synchronous>, transform_indices = @transform_4, window_bounds = array<i64: 32, 24>}, {pipeline_mode = #tpu.pipeline_mode<synchronous>, transform_indices = @transform_5, window_bounds = array<i64: 32, 1>}, {pipeline_mode = #tpu.pipeline_mode<synchronous>, transform_indices = @transform_6, window_bounds = array<i64: 2, 24, 32>}, {pipeline_mode = #tpu.pipeline_mode<synchronous>, transform_indices = @transform_7, window_bounds = array<i64: 2, 24, 1>}, {transform_indices = @transform_8, window_bounds = array<i64: 1, 24, 1024>}]} {
    %c0 = arith.constant 0 : index
    %c0_0 = arith.constant 0 : index
    %c0_1 = arith.constant 0 : index
    %c0_2 = arith.constant 0 : index
    %0 = vector.load %arg1[%c0, %c0_0, %c0_1, %c0_2] : memref<1x34x34x24xf32, #tpu.memory_space<vmem>>, vector<1x34x34x24xf32>
    %1 = vector.shape_cast %0 : vector<1x34x34x24xf32> to vector<34x34x24xf32>
    %2 = vector.extract_strided_slice %1 {offsets = [0, 0, 0], sizes = [32, 32, 24], strides = [1, 1, 1]} : vector<34x34x24xf32> to vector<32x32x24xf32>
    %3 = vector.extract_strided_slice %1 {offsets = [0, 1, 0], sizes = [32, 32, 24], strides = [1, 1, 1]} : vector<34x34x24xf32> to vector<32x32x24xf32>
    %4 = vector.extract_strided_slice %1 {offsets = [0, 2, 0], sizes = [32, 32, 24], strides = [1, 1, 1]} : vector<34x34x24xf32> to vector<32x32x24xf32>
    %5 = vector.extract_strided_slice %1 {offsets = [1, 0, 0], sizes = [32, 32, 24], strides = [1, 1, 1]} : vector<34x34x24xf32> to vector<32x32x24xf32>
    %6 = vector.extract_strided_slice %1 {offsets = [1, 1, 0], sizes = [32, 32, 24], strides = [1, 1, 1]} : vector<34x34x24xf32> to vector<32x32x24xf32>
    %7 = vector.extract_strided_slice %1 {offsets = [1, 2, 0], sizes = [32, 32, 24], strides = [1, 1, 1]} : vector<34x34x24xf32> to vector<32x32x24xf32>
    %8 = vector.extract_strided_slice %1 {offsets = [2, 0, 0], sizes = [32, 32, 24], strides = [1, 1, 1]} : vector<34x34x24xf32> to vector<32x32x24xf32>
    %9 = vector.extract_strided_slice %1 {offsets = [2, 1, 0], sizes = [32, 32, 24], strides = [1, 1, 1]} : vector<34x34x24xf32> to vector<32x32x24xf32>
    %10 = vector.extract_strided_slice %1 {offsets = [2, 2, 0], sizes = [32, 32, 24], strides = [1, 1, 1]} : vector<34x34x24xf32> to vector<32x32x24xf32>
    %11 = tpu.concatenate %2, %3, %4, %5, %6, %7, %8, %9, %10 in 2 : vector<32x32x24xf32>, vector<32x32x24xf32>, vector<32x32x24xf32>, vector<32x32x24xf32>, vector<32x32x24xf32>, vector<32x32x24xf32>, vector<32x32x24xf32>, vector<32x32x24xf32>, vector<32x32x24xf32> -> vector<32x32x216xf32>
    %12 = vector.shape_cast %11 : vector<32x32x216xf32> to vector<1024x216xf32>
    %c0_3 = arith.constant 0 : index
    %c0_4 = arith.constant 0 : index
    %c0_5 = arith.constant 0 : index
    %13 = vector.load %arg2[%c0_3, %c0_4, %c0_5] : memref<2x24x216xf32, #tpu.memory_space<vmem>>, vector<1x24x216xf32>
    %14 = vector.shape_cast %13 : vector<1x24x216xf32> to vector<24x216xf32>
    %cst = arith.constant dense<0.000000e+00> : vector<24x1024xf32>
    %15 = tpu.matmul %14, %12, %cst {dimension_numbers = #tpu.dot_dimension_numbers<[1], [1], [0], [0], [0, 0, 1, 0], [], []>} : vector<24x216xf32>, vector<1024x216xf32>, vector<24x1024xf32> -> vector<24x1024xf32>
    %c0_6 = arith.constant 0 : index
    %c0_7 = arith.constant 0 : index
    %c0_8 = arith.constant 0 : index
    %16 = vector.load %arg3[%c0_6, %c0_7, %c0_8] : memref<2x24x1xf32, #tpu.memory_space<vmem>>, vector<1x24x1xf32>
    %17 = vector.shape_cast %16 : vector<1x24x1xf32> to vector<24x1xf32>
    %18 = vector.broadcast %17 : vector<24x1xf32> to vector<24x1024xf32>
    %19 = arith.mulf %15, %18 : vector<24x1024xf32>
    %c0_9 = arith.constant 0 : index
    %c0_10 = arith.constant 0 : index
    %c0_11 = arith.constant 0 : index
    %20 = vector.load %arg4[%c0_9, %c0_10, %c0_11] : memref<2x24x1xf32, #tpu.memory_space<vmem>>, vector<1x24x1xf32>
    %21 = vector.shape_cast %20 : vector<1x24x1xf32> to vector<24x1xf32>
    %22 = vector.broadcast %21 : vector<24x1xf32> to vector<24x1024xf32>
    %23 = arith.addf %19, %22 : vector<24x1024xf32>
    %cst_12 = arith.constant 0.000000e+00 : f32
    %24 = vector.broadcast %cst_12 : f32 to vector<24x1024xf32>
    %25 = arith.maximumf %23, %24 : vector<24x1024xf32>
    %cst_13 = arith.constant dense<0.000000e+00> : vector<24xf32>
    %26 = vector.multi_reduction <add>, %25, %cst_13 [1] : vector<24x1024xf32> to vector<24xf32>
    %27 = vector.shape_cast %26 : vector<24xf32> to vector<24x1xf32>
    %c1 = arith.constant 1 : index
    %c0_14 = arith.constant 0 : index
    %c0_15 = arith.constant 0 : index
    %28 = vector.load %arg2[%c1, %c0_14, %c0_15] : memref<2x24x216xf32, #tpu.memory_space<vmem>>, vector<1x24x216xf32>
    %29 = vector.shape_cast %28 : vector<1x24x216xf32> to vector<24x216xf32>
    %cst_16 = arith.constant dense<0.000000e+00> : vector<24x1024xf32>
    %30 = tpu.matmul %29, %12, %cst_16 {dimension_numbers = #tpu.dot_dimension_numbers<[1], [1], [0], [0], [0, 0, 1, 0], [], []>} : vector<24x216xf32>, vector<1024x216xf32>, vector<24x1024xf32> -> vector<24x1024xf32>
    %c1_17 = arith.constant 1 : index
    %c0_18 = arith.constant 0 : index
    %c0_19 = arith.constant 0 : index
    %31 = vector.load %arg3[%c1_17, %c0_18, %c0_19] : memref<2x24x1xf32, #tpu.memory_space<vmem>>, vector<1x24x1xf32>
    %32 = vector.shape_cast %31 : vector<1x24x1xf32> to vector<24x1xf32>
    %33 = vector.broadcast %32 : vector<24x1xf32> to vector<24x1024xf32>
    %34 = arith.mulf %30, %33 : vector<24x1024xf32>
    %c1_20 = arith.constant 1 : index
    %c0_21 = arith.constant 0 : index
    %c0_22 = arith.constant 0 : index
    %35 = vector.load %arg4[%c1_20, %c0_21, %c0_22] : memref<2x24x1xf32, #tpu.memory_space<vmem>>, vector<1x24x1xf32>
    %36 = vector.shape_cast %35 : vector<1x24x1xf32> to vector<24x1xf32>
    %37 = vector.broadcast %36 : vector<24x1xf32> to vector<24x1024xf32>
    %38 = arith.addf %34, %37 : vector<24x1024xf32>
    %cst_23 = arith.constant 0.000000e+00 : f32
    %39 = vector.broadcast %cst_23 : f32 to vector<24x1024xf32>
    %40 = arith.maximumf %38, %39 : vector<24x1024xf32>
    %cst_24 = arith.constant dense<0.000000e+00> : vector<24xf32>
    %41 = vector.multi_reduction <add>, %40, %cst_24 [1] : vector<24x1024xf32> to vector<24xf32>
    %42 = vector.shape_cast %41 : vector<24xf32> to vector<24x1xf32>
    %43 = arith.addf %27, %42 : vector<24x1xf32>
    %cst_25 = arith.constant 9.765625E-4 : f32
    %44 = vector.broadcast %cst_25 : f32 to vector<24x1xf32>
    %45 = arith.mulf %43, %44 : vector<24x1xf32>
    %c0_26 = arith.constant 0 : index
    %c0_27 = arith.constant 0 : index
    %46 = vector.load %arg5[%c0_26, %c0_27] : memref<32x24xf32, #tpu.memory_space<vmem>>, vector<32x24xf32>
    %cst_28 = arith.constant dense<0.000000e+00> : vector<32x1xf32>
    %47 = tpu.matmul %46, %45, %cst_28 {dimension_numbers = #tpu.dot_dimension_numbers<[1], [0], [0], [1], [0, 0, 1, 1], [], []>} : vector<32x24xf32>, vector<24x1xf32>, vector<32x1xf32> -> vector<32x1xf32>
    %c0_29 = arith.constant 0 : index
    %c0_30 = arith.constant 0 : index
    %48 = vector.load %arg6[%c0_29, %c0_30] : memref<32x1xf32, #tpu.memory_space<vmem>>, vector<32x1xf32>
    %49 = arith.addf %47, %48 : vector<32x1xf32>
    %c0_31 = arith.constant 0 : index
    %c0_32 = arith.constant 0 : index
    %c0_33 = arith.constant 0 : index
    %50 = vector.load %arg7[%c0_31, %c0_32, %c0_33] : memref<2x24x32xf32, #tpu.memory_space<vmem>>, vector<1x24x32xf32>
    %51 = vector.shape_cast %50 : vector<1x24x32xf32> to vector<24x32xf32>
    %cst_34 = arith.constant dense<0.000000e+00> : vector<24x1xf32>
    %52 = tpu.matmul %51, %49, %cst_34 {dimension_numbers = #tpu.dot_dimension_numbers<[1], [0], [0], [1], [0, 0, 1, 1], [], []>} : vector<24x32xf32>, vector<32x1xf32>, vector<24x1xf32> -> vector<24x1xf32>
    %c0_35 = arith.constant 0 : index
    %c0_36 = arith.constant 0 : index
    %c0_37 = arith.constant 0 : index
    %53 = vector.load %arg8[%c0_35, %c0_36, %c0_37] : memref<2x24x1xf32, #tpu.memory_space<vmem>>, vector<1x24x1xf32>
    %54 = vector.shape_cast %53 : vector<1x24x1xf32> to vector<24x1xf32>
    %55 = arith.addf %52, %54 : vector<24x1xf32>
    %c1_38 = arith.constant 1 : index
    %c0_39 = arith.constant 0 : index
    %c0_40 = arith.constant 0 : index
    %56 = vector.load %arg7[%c1_38, %c0_39, %c0_40] : memref<2x24x32xf32, #tpu.memory_space<vmem>>, vector<1x24x32xf32>
    %57 = vector.shape_cast %56 : vector<1x24x32xf32> to vector<24x32xf32>
    %cst_41 = arith.constant dense<0.000000e+00> : vector<24x1xf32>
    %58 = tpu.matmul %57, %49, %cst_41 {dimension_numbers = #tpu.dot_dimension_numbers<[1], [0], [0], [1], [0, 0, 1, 1], [], []>} : vector<24x32xf32>, vector<32x1xf32>, vector<24x1xf32> -> vector<24x1xf32>
    %c1_42 = arith.constant 1 : index
    %c0_43 = arith.constant 0 : index
    %c0_44 = arith.constant 0 : index
    %59 = vector.load %arg8[%c1_42, %c0_43, %c0_44] : memref<2x24x1xf32, #tpu.memory_space<vmem>>, vector<1x24x1xf32>
    %60 = vector.shape_cast %59 : vector<1x24x1xf32> to vector<24x1xf32>
    %61 = arith.addf %58, %60 : vector<24x1xf32>
    %62 = arith.maximumf %55, %61 : vector<24x1xf32>
    %63 = arith.subf %55, %62 : vector<24x1xf32>
    %64 = math.exp %63 : vector<24x1xf32>
    %65 = arith.subf %61, %62 : vector<24x1xf32>
    %66 = math.exp %65 : vector<24x1xf32>
    %67 = arith.addf %64, %66 : vector<24x1xf32>
    %68 = tpu.reciprocal %67 {approx = true} : vector<24x1xf32> -> vector<24x1xf32>
    %69 = arith.mulf %64, %68 : vector<24x1xf32>
    %70 = vector.broadcast %69 : vector<24x1xf32> to vector<24x1024xf32>
    %71 = arith.mulf %25, %70 : vector<24x1024xf32>
    %72 = arith.mulf %66, %68 : vector<24x1xf32>
    %73 = vector.broadcast %72 : vector<24x1xf32> to vector<24x1024xf32>
    %74 = arith.mulf %40, %73 : vector<24x1024xf32>
    %75 = arith.addf %71, %74 : vector<24x1024xf32>
    %c0_45 = arith.constant 0 : index
    %c0_46 = arith.constant 0 : index
    %c0_47 = arith.constant 0 : index
    %76 = vector.load %arg9[%c0_45, %c0_46, %c0_47] : memref<1x24x1024xf32, #tpu.memory_space<vmem>>, vector<1x24x1024xf32>
    %77 = vector.shape_cast %76 : vector<1x24x1024xf32> to vector<24x1024xf32>
    %78 = vector.shape_cast %75 : vector<24x1024xf32> to vector<1x24x1024xf32>
    tpu.vector_store %arg9[%c0_45, %c0_46, %c0_47], %78 {strides = array<i32>} : memref<1x24x1024xf32, #tpu.memory_space<vmem>>, vector<1x24x1024xf32>,
    return
  }
  func.func @transform_0(%arg0: i32) -> (i32, i32, i32, i32) {
    %c0_i32 = arith.constant 0 : i32
    %c0_i32_0 = arith.constant 0 : i32
    %c0_i32_1 = arith.constant 0 : i32
    %c0_i32_2 = arith.constant 0 : i32
    return %arg0, %c0_i32, %c0_i32_0, %c0_i32_1 : i32, i32, i32, i32
  }
  func.func @transform_1(%arg0: i32) -> (i32, i32, i32) {
    %c0_i32 = arith.constant 0 : i32
    %c0_i32_0 = arith.constant 0 : i32
    %c0_i32_1 = arith.constant 0 : i32
    %c0_i32_2 = arith.constant 0 : i32
    return %c0_i32, %c0_i32_0, %c0_i32_1 : i32, i32, i32
  }
  func.func @transform_2(%arg0: i32) -> (i32, i32, i32) {
    %c0_i32 = arith.constant 0 : i32
    %c0_i32_0 = arith.constant 0 : i32
    %c0_i32_1 = arith.constant 0 : i32
    %c0_i32_2 = arith.constant 0 : i32
    return %c0_i32, %c0_i32_0, %c0_i32_1 : i32, i32, i32
  }
  func.func @transform_3(%arg0: i32) -> (i32, i32, i32) {
    %c0_i32 = arith.constant 0 : i32
    %c0_i32_0 = arith.constant 0 : i32
    %c0_i32_1 = arith.constant 0 : i32
    %c0_i32_2 = arith.constant 0 : i32
    return %c0_i32, %c0_i32_0, %c0_i32_1 : i32, i32, i32
  }
  func.func @transform_4(%arg0: i32) -> (i32, i32) {
    %c0_i32 = arith.constant 0 : i32
    %c0_i32_0 = arith.constant 0 : i32
    %c0_i32_1 = arith.constant 0 : i32
    return %c0_i32, %c0_i32_0 : i32, i32
  }
  func.func @transform_5(%arg0: i32) -> (i32, i32) {
    %c0_i32 = arith.constant 0 : i32
    %c0_i32_0 = arith.constant 0 : i32
    %c0_i32_1 = arith.constant 0 : i32
    return %c0_i32, %c0_i32_0 : i32, i32
  }
  func.func @transform_6(%arg0: i32) -> (i32, i32, i32) {
    %c0_i32 = arith.constant 0 : i32
    %c0_i32_0 = arith.constant 0 : i32
    %c0_i32_1 = arith.constant 0 : i32
    %c0_i32_2 = arith.constant 0 : i32
    return %c0_i32, %c0_i32_0, %c0_i32_1 : i32, i32, i32
  }
  func.func @transform_7(%arg0: i32) -> (i32, i32, i32) {
    %c0_i32 = arith.constant 0 : i32
    %c0_i32_0 = arith.constant 0 : i32
    %c0_i32_1 = arith.constant 0 : i32
    %c0_i32_2 = arith.constant 0 : i32
    return %c0_i32, %c0_i32_0, %c0_i32_1 : i32, i32, i32
  }
  func.func @transform_8(%arg0: i32) -> (i32, i32, i32) {
    %c0_i32 = arith.constant 0 : i32
    %c0_i32_0 = arith.constant 0 : i32
    %c0_i32_1 = arith.constant 0 : i32
    return %arg0, %c0_i32, %c0_i32_0 : i32, i32, i32
  }
}

</mosaic_0001>

<bundles_post_ra>
// kernel: tpu_custom_call.1
= control target key start
LH: loop header
LB: loop body
LE: loop exit
PB: predicated region body
PF: predicated region fallthrough
CT: control target
= control target key end

     0   :  { %13 = vsyncpa [#allocation3], 0  ;;  %s17835_s0 = inlined_call_operand.vmem [shape: f32[2,34,34,24], index: 0, kind: input, shape index: {}]   ;;  %s17836_s1 = inlined_call_operand.vmem [shape: f32[2,24,216], index: 1, kind: input, shape index: {}]   ;;  %s17837_s2 = inlined_call_operand.vmem [shape: f32[2,24,1], index: 2, kind: input, shape index: {}]   ;;  %s17838_s3 = inlined_call_operand.vmem [shape: f32[2,24,1], index: 3, kind: input, shape index: {}]   ;;  %s17839_s4 = inlined_call_operand.vmem [shape: f32[32,24], index: 4, kind: input, shape index: {}]   ;;  %s17840_s5 = inlined_call_operand.vmem [shape: f32[32,1], index: 5, kind: input, shape index: {}]   ;;  %s17841_s6 = inlined_call_operand.vmem [shape: f32[2,24,32], index: 6, kind: input, shape index: {}]   ;;  %s17842_s7 = inlined_call_operand.vmem [shape: f32[2,24,1], index: 7, kind: input, shape index: {}]   ;;  %s17843_s8 = inlined_call_operand.hbm [shape: f32[2,24,1024], index: 8, kind: output, shape index: {}]  }
   0x1   :  { %15 = vsyncpa [#allocation3 + $0x1], 0  ;;  %s11450_s27 = smov 0   ;;  %s11452_s28 = smov 0  }
   0x2   :  { %s11454_s29 = smov 0   ;;  %s11456_s30 = smov 0  }
   0x3 LB: > { %s11471_s9 = sadd.s32 4294967295, %s11389_s30   ;;  %s7253_s10 = sadd.s32 4294967294, %s11389_s30   ;;  %s11389_s30 = sphi %s11456_s30, %s19508_s30   ;;  %s11385_s29 = sphi %s11454_s29, %s19507_s29   ;;  %s11381_s28 = sphi %s11452_s28, %s19506_s28   ;;  %s11377_s27 = sphi %s11450_s27, %s19505_s27  }
   0x4   : > { %s11475_s11 = sadd.s32 1, %s11389_s30   ;;  %s201_s12 = sadd.s32 1, %s11385_s29 }
   0x5   : > { %s198_s13 = ssub.s32 %s11389_s30, %s11475_s11  ;;  %p211_p0 = scmp.ne.s32.totalorder %s11385_s29, %s11381_s28 }
   0x6   : > { %p199_p1 = scmp.eq.s32.totalorder %s198_s13, 0  ;;  %p212_p2 = scmp.eq.s32.totalorder %s11471_s9, 1 }
   0x7   : > { %p217_p3 = scmp.ne.s32.totalorder %s11381_s28, %s11377_s27  ;;  %p218_p4 = scmp.eq.s32.totalorder %s7253_s10, 1 }
   0x8   : > { %s11486_s14 = scalar_select %p199_p1, %s11385_s29, %s201_s12  }
   0x9   : > { %p11488_p5 = por %p212_p2, %p211_p0  ;;  %p11492_p6 = por %p218_p4, %p217_p3 }
   0xa   : > { %p7256_p7 = scmp.ge.s32.totalorder %s11389_s30, 1  ;;  %p265_p8 = scmp.lt.s32.totalorder %s11389_s30, 3 }
   0xc   : > { %p266_p9 = pnand %p7256_p7, %p265_p8 }
   0xe   : > { %269 = sbr.rel (%p266_p9) target bundleno = 2462 (0x99e), region = 52 }
  0x15   : > { %p299_p10 = scmp.lt.s32.totalorder %s11471_s9, 1  ;;  %vm634_vm0 = vcmask 1046528   ;;  %s11391_s22 = smov 24   ;;  %vm1307_vm1 = vcmask 1045504   ;;  %vm4330_vm2 = vcmask 195584   ;;  %vm4459_vm3 = vcmask 392192  }
  0x16   : > { %s11392_s23 = smov 48   ;;  %s11393_s24 = smov 72   ;;  %vm4588_vm4 = vcmask 588800   ;;  %vm4975_vm5 = vcmask 130048   ;;  %vm5104_vm6 = vcmask 326656   ;;  %vm5233_vm7 = vcmask 523264  }
  0x17   : > { %s300_s17 = scalar_select %p299_p10, %s11471_s9, 1  ;;  %vm4717_vm8 = vcmask 785408   ;;  %vm5368_vm9 = vcmask 719872   ;;  %vm4846_vm10 = vcmask 982016   ;;  %vm11401_vm12 = vmmov 0  }
  0x18   : > { %s11394_s25 = smov 120   ;;  %s11395_s26 = smov 40   ;;  %vm13704_vm11 = vmpackc.low %vm5368_vm9, %vm5368_vm9  ;;  %vm6831_vm13 = vcmask 261120  }
  0x19   : > { %s8297_s18 = smul.u32 1360, %s300_s17  ;;  %s11396_s10 = smov 16  }
  0x1a   : > { %s11397_s12 = smov 64   ;;  %s11398_s13 = smov 96  }
  0x1b   : > { %s11503_s21 = scalar_lea.vmem %s17835_s0, %s8297_s18  ;;  %s8298_s20 = smul.u32 3072, %s11471_s9 }
  0x1c   : > { %v11506_v0 = vld [vmem:[%s11503_s21 + $0x28] sm:$0xff]  ;;  %v11509_v1 = vld [vmem:[%s11503_s21 + $0x30] sm:$0xff]  ;;  %v11512_v2 = vld [vmem:[%s11503_s21 + $0x38] sm:$0xff] }
  0x1d   : > { %v644_v3 = vrot.slane %v11506_v0, 1  ;;  %v645_v4 = vrot.slane %v11509_v1, 1  ;;  %v647_v5 = vrot.slane %v11512_v2, 1  ;;  %v304_v6 = vld [vmem:[%s11503_s21] sm:$0xff]  ;;  %v305_v7 = vld [vmem:[%s11503_s21 + $0x8] sm:$0xff]  ;;  %v306_v8 = vld [vmem:[%s11503_s21 + $0x10] sm:$0xff] }
  0x1e   : > { %v635_v9 = vrot.slane %v304_v6, 1  ;;  %v636_v10 = vrot.slane %v305_v7, 1  ;;  %v638_v11 = vrot.slane %v306_v8, 1  ;;  %v11521_v12 = vld [vmem:[%s11503_s21 + $0x40] sm:$0xff]  ;;  %v11524_v13 = vld [vmem:[%s11503_s21 + $0x48] sm:$0x3] }
  0x1f   : > { %v646_v14 = vsel %vm634_vm0, %v644_v3, %v645_v4  ;;  %v648_v15 = vsel %vm634_vm0, %v645_v4, %v647_v5  ;;  %v649_v16 = vrot.slane %v11521_v12, 1  ;;  %v651_v17 = vrot.slane %v11524_v13, 1  ;;  %v307_v18 = vld [vmem:[%s11503_s21 + $0x18] sm:$0xff]  ;;  %v308_v19 = vld [vmem:[%s11503_s21 + $0x20] sm:$0x3]  ;;  %v317_v24 = vld [vmem:[%s11503_s21 + $0x68] sm:$0xff] }
  0x20   : > { %v316_v20 = vld [vmem:[%s11503_s21 + $0x60] sm:$0xff]  ;;  %v11533_v21 = vpack.i.bf16 %v648_v15, %v646_v14  ;;  %v637_v22 = vsel %vm634_vm0, %v635_v9, %v636_v10  ;;  %v639_v23 = vsel %vm634_vm0, %v636_v10, %v638_v11  ;;  %v318_v25 = vld [vmem:[%s11503_s21 + $0x70] sm:$0x3]  ;;  %v640_v30 = vrot.slane %v307_v18, 1  ;;  %v315_v31 = vld [vmem:[%s11503_s21 + $0x58] sm:$0xff] }
  0x21   : > { %v314_v26 = vld [vmem:[%s11503_s21 + $0x50] sm:$0xff]  ;;  %v8351_v27 = vpack.i.bf16 %v639_v23, %v637_v22  ;;  %v650_v28 = vsel %vm634_vm0, %v647_v5, %v649_v16  ;;  %v652_v29 = vsel %vm634_vm0, %v649_v16, %v651_v17  ;;  %v321_v32 = vld [vmem:[%s11503_s21 + $0x88] sm:$0xff]  ;;  %v642_v35 = vrot.slane %v308_v19, 1  ;;  %v323_v37 = vld [vmem:[%s11503_s21 + $0x98] sm:$0x3] }
  0x22   : > { %18459 = vst [vmem:[#allocation5_spill] sm:$0xff] %v11533_v21  ;;  %v322_v33 = vld [vmem:[%s11503_s21 + $0x90] sm:$0xff]  ;;  %8362 = vrot.lane.b32.xlu1 %v11533_v21, %s11391_s22  ;;  %v11547_v34 = vpack.i.bf16 %v652_v29, %v650_v28  ;;  %v656_v36 = vrot.slane %v316_v20, 1  ;;  %v641_v38 = vsel %vm634_vm0, %v638_v11, %v640_v30  ;;  %v658_v39 = vrot.slane %v317_v24, 1  ;;  %v319_v46 = vld [vmem:[%s11503_s21 + $0x78] sm:$0xff]  ;;  %v320_v47 = vld [vmem:[%s11503_s21 + $0x80] sm:$0xff] }
  0x23   : > { %8352 = vrot.lane.b32.xlu0 %v8351_v27, %s11391_s22  ;;  %v660_v40 = vrot.slane %v318_v25, 1  ;;  %v653_v41 = vrot.slane %v314_v26, 1  ;;  %v643_v42 = vsel %vm634_vm0, %v640_v30, %v642_v35  ;;  %v654_v43 = vrot.slane %v315_v31, 1  ;;  %v326_v52 = vld [vmem:[%s11503_s21 + $0xb0] sm:$0xff]  ;;  %v327_v53 = vld [vmem:[%s11503_s21 + $0xb8] sm:$0xff]  ;;  %v324_v59 = vld [vmem:[%s11503_s21 + $0xa0] sm:$0xff] }
  0x24   : > { %18460 = vst [vmem:[#allocation6_spill] sm:$0xff] %v11547_v34  ;;  %v665_v44 = vrot.slane %v321_v32, 1  ;;  %v667_v45 = vrot.slane %v322_v33, 1  ;;  %v8356_v48 = vpack.i.bf16 %v643_v42, %v641_v38  ;;  %v659_v49 = vsel %vm634_vm0, %v656_v36, %v658_v39  ;;  %v328_v54 = vld [vmem:[%s11503_s21 + $0xc0] sm:$0x3]  ;;  %v325_v60 = vld [vmem:[%s11503_s21 + $0xa8] sm:$0xff] }
  0x25   : > { %v661_v50 = vsel %vm634_vm0, %v658_v39, %v660_v40  ;;  %v669_v51 = vrot.slane %v323_v37, 1  ;;  %v655_v56 = vsel %vm634_vm0, %v653_v41, %v654_v43  ;;  %v657_v57 = vsel %vm634_vm0, %v654_v43, %v656_v36  ;;  %v331_v4 = vld [vmem:[%s11503_s21 + $0xd8] sm:$0xff]  ;;  %v332_v8 = vld [vmem:[%s11503_s21 + $0xe0] sm:$0xff]  ;;  %v333_v15 = vld [vmem:[%s11503_s21 + $0xe8] sm:$0x3] }
  0x26   : > { %8367 = vrot.lane.b32.xlu1 %v11547_v34, %s11391_s22  ;;  %v11562_v55 = vpack.i.bf16 %v661_v50, %v659_v49  ;;  %v668_v58 = vsel %vm634_vm0, %v665_v44, %v667_v45  ;;  %v11570_v61 = vpack.i.bf16 %v657_v57, %v655_v56  ;;  %v662_v63 = vrot.slane %v319_v46, 1  ;;  %v329_v16 = vld [vmem:[%s11503_s21 + $0xc8] sm:$0xff]  ;;  %v330_v17 = vld [vmem:[%s11503_s21 + $0xd0] sm:$0xff]  ;;  %v336_v27 = vld [vmem:[%s11503_s21 + $0x100] sm:$0xff] }
  0x27   : > { %8357 = vrot.lane.b32.xlu0 %v8356_v48, %s11391_s22  ;;  %v670_v62 = vsel %vm634_vm0, %v667_v45, %v669_v51  ;;  %v663_v3 = vrot.slane %v320_v47, 1  ;;  %v674_v5 = vrot.slane %v326_v52, 1  ;;  %v676_v6 = vrot.slane %v327_v53, 1  ;;  %v337_v31 = vld [vmem:[%s11503_s21 + $0x108] sm:$0xff]  ;;  %v338_v32 = vld [vmem:[%s11503_s21 + $0x110] sm:$0x3] }
  0x28   : > { %18461 = vst [vmem:[#allocation7_spill] sm:$0xff] %v11562_v55  ;;  %18462 = vst [vmem:[#allocation8_spill] sm:$0xff] %v11570_v61  ;;  %v678_v7 = vrot.slane %v328_v54, 1  ;;  %v671_v11 = vrot.slane %v324_v59, 1  ;;  %v672_v14 = vrot.slane %v325_v60, 1  ;;  %v11582_v18 = vpack.i.bf16 %v670_v62, %v668_v58  ;;  %v334_v33 = vld [vmem:[%s11503_s21 + $0xf0] sm:$0xff] }
  0x29   : > { %v664_v9 = vsel %vm634_vm0, %v662_v63, %v663_v3  ;;  %v666_v10 = vsel %vm634_vm0, %v663_v3, %v665_v44  ;;  %v677_v20 = vsel %vm634_vm0, %v674_v5, %v676_v6  ;;  %v683_v22 = vrot.slane %v331_v4, 1  ;;  %v335_v35 = vld [vmem:[%s11503_s21 + $0xf8] sm:$0xff]  ;;  %v341_v43 = vld [vmem:[%s11503_s21 + $0x128] sm:$0xff]  ;;  %v342_v44 = vld [vmem:[%s11503_s21 + $0x130] sm:$0xff] }
  0x2a   : > { %8377 = vrot.lane.b32.xlu1 %v11562_v55, %s11391_s22  ;;  %18463 = vst [vmem:[#allocation9_spill] sm:$0xff] %v11582_v18  ;;  %v11584_v19 = vpack.i.bf16 %v666_v10, %v664_v9  ;;  %v679_v23 = vsel %vm634_vm0, %v676_v6, %v678_v7  ;;  %v673_v24 = vsel %vm634_vm0, %v671_v11, %v672_v14  ;;  %v685_v26 = vrot.slane %v332_v8, 1  ;;  %v343_v49 = vld [vmem:[%s11503_s21 + $0x138] sm:$0x3]  ;;  %v340_v51 = vld [vmem:[%s11503_s21 + $0x120] sm:$0xff]  ;;  %v346_v60 = vld [vmem:[%s11503_s21 + $0x150] sm:$0xff] }
  0x2b   : > { %8372 = vrot.lane.b32.xlu0 %v11570_v61, %s11391_s22  ;;  %v675_v25 = vsel %vm634_vm0, %v672_v14, %v674_v5  ;;  %v687_v28 = vrot.slane %v333_v15, 1  ;;  %v680_v29 = vrot.slane %v329_v16, 1  ;;  %v681_v30 = vrot.slane %v330_v17, 1  ;;  %v339_v50 = vld [vmem:[%s11503_s21 + $0x118] sm:$0xff]  ;;  %v348_v6 = vld [vmem:[%s11503_s21 + $0x160] sm:$0x3] }
  0x2c   : > { %18464 = vst [vmem:[#allocation10_spill] sm:$0xff] %v11584_v19  ;;  %v11599_v36 = vpack.i.bf16 %v679_v23, %v677_v20  ;;  %v11601_v37 = vpack.i.bf16 %v675_v25, %v673_v24  ;;  %v686_v38 = vsel %vm634_vm0, %v683_v22, %v685_v26  ;;  %v692_v40 = vrot.slane %v336_v27, 1  ;;  %v347_v5 = vld [vmem:[%s11503_s21 + $0x158] sm:$0xff]  ;;  %v344_v7 = vld [vmem:[%s11503_s21 + $0x140] sm:$0xff]  ;;  %v345_v8 = vld [vmem:[%s11503_s21 + $0x148] sm:$0xff] }
  0x2d   : > { %v688_v39 = vsel %vm634_vm0, %v685_v26, %v687_v28  ;;  %v694_v41 = vrot.slane %v337_v31, 1  ;;  %v696_v42 = vrot.slane %v338_v32, 1  ;;  %v682_v45 = vsel %vm634_vm0, %v680_v29, %v681_v30  ;;  %v351_v20 = vld [vmem:[%s11503_s21 + $0x178] sm:$0xff]  ;;  %v353_v23 = vld [vmem:[%s11503_s21 + $0x188] sm:$0x3]  ;;  %v350_v29 = vld [vmem:[%s11503_s21 + $0x170] sm:$0xff] }
  0x2e   : > { %8387 = vrot.lane.b32.xlu1 %v11582_v18, %s11391_s22  ;;  %18465 = vst [vmem:[#allocation11_spill] sm:$0xff] %v11599_v36  ;;  %18466 = vst [vmem:[#allocation12_spill] sm:$0xff] %v11601_v37  ;;  %v684_v46 = vsel %vm634_vm0, %v681_v30, %v683_v22  ;;  %v689_v47 = vrot.slane %v334_v33, 1  ;;  %v690_v48 = vrot.slane %v335_v35, 1  ;;  %v11616_v52 = vpack.i.bf16 %v688_v39, %v686_v38  ;;  %v352_v22 = vld [vmem:[%s11503_s21 + $0x180] sm:$0xff]  ;;  %v349_v28 = vld [vmem:[%s11503_s21 + $0x168] sm:$0xff] }
  0x2f   : > { %8382 = vrot.lane.b32.xlu0 %v11584_v19, %s11391_s22  ;;  %v701_v53 = vrot.slane %v341_v43, 1  ;;  %v703_v54 = vrot.slane %v342_v44, 1  ;;  %v11620_v56 = vpack.i.bf16 %v684_v46, %v682_v45  ;;  %v695_v57 = vsel %vm634_vm0, %v692_v40, %v694_v41  ;;  %v356_v35 = vld [vmem:[%s11503_s21 + $0x1a0] sm:$0xff]  ;;  %v357_v38 = vld [vmem:[%s11503_s21 + $0x1a8] sm:$0xff] }
  0x30   : > { %18467 = vst [vmem:[#allocation13_spill] sm:$0xff] %v11616_v52  ;;  %v697_v58 = vsel %vm634_vm0, %v694_v41, %v696_v42  ;;  %v705_v59 = vrot.slane %v343_v49, 1  ;;  %v691_v62 = vsel %vm634_vm0, %v689_v47, %v690_v48  ;;  %v693_v63 = vsel %vm634_vm0, %v690_v48, %v692_v40  ;;  %v358_v42 = vld [vmem:[%s11503_s21 + $0x1b0] sm:$0x3]  ;;  %v355_v48 = vld [vmem:[%s11503_s21 + $0x198] sm:$0xff] }
  0x31   : > { %18468 = vst [vmem:[#allocation14_spill] sm:$0xff] %v11620_v56  ;;  %v698_v3 = vrot.slane %v339_v50, 1  ;;  %v699_v4 = vrot.slane %v340_v51, 1  ;;  %v11633_v9 = vpack.i.bf16 %v697_v58, %v695_v57  ;;  %v704_v10 = vsel %vm634_vm0, %v701_v53, %v703_v54  ;;  %v354_v47 = vld [vmem:[%s11503_s21 + $0x190] sm:$0xff]  ;;  %v361_v58 = vld [vmem:[%s11503_s21 + $0x1c8] sm:$0xff] }
  0x32   : > { %8397 = vrot.lane.b32.xlu1 %v11599_v36, %s11391_s22  ;;  %v710_v11 = vrot.slane %v346_v60, 1  ;;  %v11638_v14 = vpack.i.bf16 %v693_v63, %v691_v62  ;;  %v706_v15 = vsel %vm634_vm0, %v703_v54, %v705_v59  ;;  %v712_v16 = vrot.slane %v347_v5, 1  ;;  %v362_v59 = vld [vmem:[%s11503_s21 + $0x1d0] sm:$0xff]  ;;  %v360_v5 = vld [vmem:[%s11503_s21 + $0x1c0] sm:$0xff] }
  0x33   : > { %8392 = vrot.lane.b32.xlu0 %v11601_v37, %s11391_s22  ;;  %18469 = vst [vmem:[#allocation15_spill] sm:$0xff] %v11633_v9  ;;  %v714_v17 = vrot.slane %v348_v6, 1  ;;  %v700_v24 = vsel %vm634_vm0, %v698_v3, %v699_v4  ;;  %v702_v25 = vsel %vm634_vm0, %v699_v4, %v701_v53  ;;  %v707_v26 = vrot.slane %v344_v7, 1  ;;  %v363_v3 = vld [vmem:[%s11503_s21 + $0x1d8] sm:$0x3] }
  0x34   : > { %18470 = vst [vmem:[#allocation16_spill] sm:$0xff] %v11638_v14  ;;  %v708_v27 = vrot.slane %v345_v8, 1  ;;  %v11650_v30 = vpack.i.bf16 %v706_v15, %v704_v10  ;;  %v719_v31 = vrot.slane %v351_v20, 1  ;;  %v721_v32 = vrot.slane %v352_v22, 1  ;;  %v359_v4 = vld [vmem:[%s11503_s21 + $0x1b8] sm:$0xff] }
  0x35   : > { %v723_v33 = vrot.slane %v353_v23, 1  ;;  %v11656_v39 = vpack.i.bf16 %v702_v25, %v700_v24  ;;  %v713_v40 = vsel %vm634_vm0, %v710_v11, %v712_v16  ;;  %v715_v41 = vsel %vm634_vm0, %v712_v16, %v714_v17  ;;  %v10933_v37 = vld [vmem:[%s11503_s21 + $0x20] sm:$0x3] }
  0x36   : > { %8407 = vrot.lane.b32.xlu1 %v11616_v52, %s11391_s22  ;;  %18471 = vst [vmem:[#allocation17_spill] sm:$0xff] %v11650_v30  ;;  %v709_v43 = vsel %vm634_vm0, %v707_v26, %v708_v27  ;;  %v711_v44 = vsel %vm634_vm0, %v708_v27, %v710_v11  ;;  %v716_v45 = vrot.slane %v349_v28, 1  ;;  %v717_v46 = vrot.slane %v350_v29, 1  ;;  %v366_v26 = vld [vmem:[%s11503_s21 + $0x1f0] sm:$0xff]  ;;  %v367_v27 = vld [vmem:[%s11503_s21 + $0x1f8] sm:$0xff] }
  0x37   : > { %8402 = vrot.lane.b32.xlu0 %v11620_v56, %s11391_s22  ;;  %18472 = vst [vmem:[#allocation18_spill] sm:$0xff] %v11656_v39  ;;  %v728_v49 = vrot.slane %v356_v35, 1  ;;  %v730_v50 = vrot.slane %v357_v38, 1  ;;  %v11667_v51 = vpack.i.bf16 %v715_v41, %v713_v40  ;;  %v722_v53 = vsel %vm634_vm0, %v719_v31, %v721_v32  ;;  %v368_v28 = vld [vmem:[%s11503_s21 + $0x200] sm:$0x3] }
  0x38   : > { %v724_v54 = vsel %vm634_vm0, %v721_v32, %v723_v33  ;;  %v732_v57 = vrot.slane %v358_v42, 1  ;;  %v11675_v60 = vpack.i.bf16 %v711_v44, %v709_v43  ;;  %v725_v62 = vrot.slane %v354_v47, 1  ;;  %v365_v32 = vld [vmem:[%s11503_s21 + $0x1e8] sm:$0xff]  ;;  %v12120_v56 = vld [vmem:[%s11503_s21 + $0x4e0] sm:$0xff] }
  0x39   : > { %18473 = vst [vmem:[#allocation19_spill] sm:$0xff] %v11667_v51  ;;  %v726_v63 = vrot.slane %v355_v48, 1  ;;  %v718_v6 = vsel %vm634_vm0, %v716_v45, %v717_v46  ;;  %v720_v7 = vsel %vm634_vm0, %v717_v46, %v719_v31  ;;  %v11682_v8 = vpack.i.bf16 %v724_v54, %v722_v53  ;;  %v364_v31 = vld [vmem:[%s11503_s21 + $0x1e0] sm:$0xff]  ;;  %v371_v45 = vld [vmem:[%s11503_s21 + $0x218] sm:$0xff]  ;;  %v370_v53 = vld [vmem:[%s11503_s21 + $0x210] sm:$0xff] }
  0x3a   : > { %8417 = vrot.lane.b32.xlu1 %v11633_v9, %s11391_s22  ;;  %18474 = vst [vmem:[#allocation20_spill] sm:$0xff] %v11675_v60  ;;  %v731_v10 = vsel %vm634_vm0, %v728_v49, %v730_v50  ;;  %v737_v11 = vrot.slane %v361_v58, 1  ;;  %v739_v15 = vrot.slane %v362_v59, 1  ;;  %v733_v16 = vsel %vm634_vm0, %v730_v50, %v732_v57  ;;  %v372_v48 = vld [vmem:[%s11503_s21 + $0x220] sm:$0xff]  ;;  %v369_v50 = vld [vmem:[%s11503_s21 + $0x208] sm:$0xff] }
  0x3b   : > { %8412 = vrot.lane.b32.xlu0 %v11638_v14, %s11391_s22  ;;  %18475 = vst [vmem:[#allocation21_spill] sm:$0xff] %v11682_v8  ;;  %v741_v17 = vrot.slane %v363_v3, 1  ;;  %v734_v20 = vrot.slane %v359_v4, 1  ;;  %v735_v22 = vrot.slane %v360_v5, 1  ;;  %v11690_v23 = vpack.i.bf16 %v720_v7, %v718_v6  ;;  %v376_v4 = vld [vmem:[%s11503_s21 + $0x240] sm:$0xff]  ;;  %v377_v5 = vld [vmem:[%s11503_s21 + $0x248] sm:$0xff] }
  0x3c   : > { %v727_v24 = vsel %vm634_vm0, %v725_v62, %v726_v63  ;;  %v729_v25 = vsel %vm634_vm0, %v726_v63, %v728_v49  ;;  %v11697_v29 = vpack.i.bf16 %v733_v16, %v731_v10  ;;  %v740_v35 = vsel %vm634_vm0, %v737_v11, %v739_v15  ;;  %v373_v49 = vld [vmem:[%s11503_s21 + $0x228] sm:$0x3]  ;;  %v378_v6 = vld [vmem:[%s11503_s21 + $0x250] sm:$0x3] }
  0x3d   : > { %18476 = vst [vmem:[#allocation22_spill] sm:$0xff] %v11690_v23  ;;  %v11703_v33 = vpack.i.bf16 %v729_v25, %v727_v24  ;;  %v742_v38 = vsel %vm634_vm0, %v739_v15, %v741_v17  ;;  %v736_v40 = vsel %vm634_vm0, %v734_v20, %v735_v22  ;;  %v738_v41 = vsel %vm634_vm0, %v735_v22, %v737_v11  ;;  %v374_v16 = vld [vmem:[%s11503_s21 + $0x230] sm:$0xff]  ;;  %v375_v17 = vld [vmem:[%s11503_s21 + $0x238] sm:$0xff] }
  0x3e   : > { %8427 = vrot.lane.b32.xlu1 %v11650_v30, %s11391_s22  ;;  %18477 = vst [vmem:[#allocation23_spill] sm:$0xff] %v11697_v29  ;;  %v746_v42 = vrot.slane %v366_v26, 1  ;;  %v748_v43 = vrot.slane %v367_v27, 1  ;;  %v750_v44 = vrot.slane %v368_v28, 1  ;;  %v743_v46 = vrot.slane %v364_v31, 1  ;;  %v381_v26 = vld [vmem:[%s11503_s21 + $0x268] sm:$0xff] }
  0x3f   : > { %8422 = vrot.lane.b32.xlu0 %v11656_v39, %s11391_s22  ;;  %18478 = vst [vmem:[#allocation24_spill] sm:$0xff] %v11703_v33  ;;  %v744_v47 = vrot.slane %v365_v32, 1  ;;  %v11718_v54 = vpack.i.bf16 %v742_v38, %v740_v35  ;;  %v11720_v57 = vpack.i.bf16 %v738_v41, %v736_v40  ;;  %v755_v58 = vrot.slane %v371_v45, 1  ;;  %v382_v27 = vld [vmem:[%s11503_s21 + $0x270] sm:$0xff]  ;;  %v383_v35 = vld [vmem:[%s11503_s21 + $0x278] sm:$0x3] }
  0x40   : > { %v749_v59 = vsel %vm634_vm0, %v746_v42, %v748_v43  ;;  %v751_v62 = vsel %vm634_vm0, %v748_v43, %v750_v44  ;;  %v757_v63 = vrot.slane %v372_v48, 1  ;;  %v759_v3 = vrot.slane %v373_v49, 1  ;;  %v379_v45 = vld [vmem:[%s11503_s21 + $0x258] sm:$0xff]  ;;  %v12046_v30 = vld [vmem:[%s11503_s21 + $0x4a8] sm:$0x3] }
  0x41   : > { %18479 = vst [vmem:[#allocation25_spill] sm:$0xff] %v11718_v54  ;;  %18480 = vst [vmem:[#allocation26_spill] sm:$0xff] %v11720_v57  ;;  %v745_v7 = vsel %vm634_vm0, %v743_v46, %v744_v47  ;;  %v747_v10 = vsel %vm634_vm0, %v744_v47, %v746_v42  ;;  %v752_v11 = vrot.slane %v369_v50, 1  ;;  %v753_v15 = vrot.slane %v370_v53, 1  ;;  %v380_v46 = vld [vmem:[%s11503_s21 + $0x260] sm:$0xff] }
  0x42   : > { %8437 = vrot.lane.b32.xlu1 %v11667_v51, %s11391_s22  ;;  %v11735_v20 = vpack.i.bf16 %v751_v62, %v749_v59  ;;  %v764_v22 = vrot.slane %v376_v4, 1  ;;  %v766_v24 = vrot.slane %v377_v5, 1  ;;  %v768_v25 = vrot.slane %v378_v6, 1  ;;  %v387_v59 = vld [vmem:[%s11503_s21 + $0x298] sm:$0xff]  ;;  %v388_v62 = vld [vmem:[%s11503_s21 + $0x2a0] sm:$0x3] }
  0x43   : > { %8432 = vrot.lane.b32.xlu0 %v11675_v60, %s11391_s22  ;;  %v11741_v28 = vpack.i.bf16 %v747_v10, %v745_v7  ;;  %v758_v31 = vsel %vm634_vm0, %v755_v58, %v757_v63  ;;  %v760_v32 = vsel %vm634_vm0, %v757_v63, %v759_v3  ;;  %v754_v38 = vsel %vm634_vm0, %v752_v11, %v753_v15  ;;  %v384_v10 = vld [vmem:[%s11503_s21 + $0x280] sm:$0xff]  ;;  %v385_v11 = vld [vmem:[%s11503_s21 + $0x288] sm:$0xff] }
  0x44   : > { %18481 = vst [vmem:[#allocation27_spill] sm:$0xff] %v11735_v20  ;;  %v756_v40 = vsel %vm634_vm0, %v753_v15, %v755_v58  ;;  %v761_v41 = vrot.slane %v374_v16, 1  ;;  %v762_v42 = vrot.slane %v375_v17, 1  ;;  %v773_v43 = vrot.slane %v381_v26, 1  ;;  %v386_v58 = vld [vmem:[%s11503_s21 + $0x290] sm:$0xff]  ;;  %v392_v26 = vld [vmem:[%s11503_s21 + $0x2c0] sm:$0xff] }
  0x45   : > { %18482 = vst [vmem:[#allocation28_spill] sm:$0xff] %v11741_v28  ;;  %v775_v44 = vrot.slane %v382_v27, 1  ;;  %v11752_v47 = vpack.i.bf16 %v760_v32, %v758_v31  ;;  %v767_v48 = vsel %vm634_vm0, %v764_v22, %v766_v24  ;;  %v769_v49 = vsel %vm634_vm0, %v766_v24, %v768_v25  ;;  %v393_v27 = vld [vmem:[%s11503_s21 + $0x2c8] sm:$0x3]  ;;  %v416_v51 = vld [vmem:[%s11503_s21 + $0x380] sm:$0xff] }
  0x46   : > { %8447 = vrot.lane.b32.xlu1 %v11682_v8, %s11391_s22  ;;  %v777_v50 = vrot.slane %v383_v35, 1  ;;  %v11758_v53 = vpack.i.bf16 %v756_v40, %v754_v38  ;;  %v763_v63 = vsel %vm634_vm0, %v761_v41, %v762_v42  ;;  %v765_v3 = vsel %vm634_vm0, %v762_v42, %v764_v22  ;;  %v391_v22 = vld [vmem:[%s11503_s21 + $0x2b8] sm:$0xff]  ;;  %v389_v42 = vld [vmem:[%s11503_s21 + $0x2a8] sm:$0xff]  ;;  %v12039_v60 = vld [vmem:[%s11503_s21 + $0x4a0] sm:$0xff] }
  0x47   : > { %8442 = vrot.lane.b32.xlu0 %v11690_v23, %s11391_s22  ;;  %18483 = vst [vmem:[#allocation29_spill] sm:$0xff] %v11752_v47  ;;  %v770_v4 = vrot.slane %v379_v45, 1  ;;  %v771_v5 = vrot.slane %v380_v46, 1  ;;  %v11765_v6 = vpack.i.bf16 %v769_v49, %v767_v48  ;;  %v776_v7 = vsel %vm634_vm0, %v773_v43, %v775_v44  ;;  %v10953_v23 = vld [vmem:[%s11503_s21 + $0xe8] sm:$0x3] }
  0x48   : > { %18484 = vst [vmem:[#allocation30_spill] sm:$0xff] %v11758_v53  ;;  %v778_v15 = vsel %vm634_vm0, %v775_v44, %v777_v50  ;;  %v782_v16 = vrot.slane %v386_v58, 1  ;;  %v784_v17 = vrot.slane %v387_v59, 1  ;;  %v786_v24 = vrot.slane %v388_v62, 1  ;;  %v390_v44 = vld [vmem:[%s11503_s21 + $0x2b0] sm:$0xff]  ;;  %v396_v50 = vld [vmem:[%s11503_s21 + $0x2e0] sm:$0xff] }
  0x49   : > { %18485 = vst [vmem:[#allocation31_spill] sm:$0xff] %v11765_v6  ;;  %v11776_v25 = vpack.i.bf16 %v765_v3, %v763_v63  ;;  %v772_v31 = vsel %vm634_vm0, %v770_v4, %v771_v5  ;;  %v774_v32 = vsel %vm634_vm0, %v771_v5, %v773_v43  ;;  %v779_v35 = vrot.slane %v384_v10, 1  ;;  %v397_v43 = vld [vmem:[%s11503_s21 + $0x2e8] sm:$0xff]  ;;  %v398_v58 = vld [vmem:[%s11503_s21 + $0x2f0] sm:$0x3]  ;;  %v395_v63 = vld [vmem:[%s11503_s21 + $0x2d8] sm:$0xff] }
  0x4a   : > { %8457 = vrot.lane.b32.xlu1 %v11697_v29, %s11391_s22  ;;  %v780_v38 = vrot.slane %v385_v11, 1  ;;  %v11782_v40 = vpack.i.bf16 %v778_v15, %v776_v7  ;;  %v791_v41 = vrot.slane %v391_v22, 1  ;;  %v785_v45 = vsel %vm634_vm0, %v782_v16, %v784_v17  ;;  %v394_v62 = vld [vmem:[%s11503_s21 + $0x2d0] sm:$0xff] }
  0x4b   : > { %8452 = vrot.lane.b32.xlu0 %v11703_v33, %s11391_s22  ;;  %18486 = vst [vmem:[#allocation32_spill] sm:$0xff] %v11776_v25  ;;  %v787_v46 = vsel %vm634_vm0, %v784_v17, %v786_v24  ;;  %v793_v48 = vrot.slane %v392_v26, 1  ;;  %v795_v49 = vrot.slane %v393_v27, 1  ;;  %v11795_v59 = vpack.i.bf16 %v774_v32, %v772_v31  ;;  %v402_v32 = vld [vmem:[%s11503_s21 + $0x310] sm:$0xff] }
  0x4c   : > { %18487 = vst [vmem:[#allocation33_spill] sm:$0xff] %v11782_v40  ;;  %v781_v3 = vsel %vm634_vm0, %v779_v35, %v780_v38  ;;  %v783_v4 = vsel %vm634_vm0, %v780_v38, %v782_v16  ;;  %v788_v5 = vrot.slane %v389_v42, 1  ;;  %v789_v7 = vrot.slane %v390_v44, 1  ;;  %v401_v16 = vld [vmem:[%s11503_s21 + $0x308] sm:$0xff]  ;;  %v403_v35 = vld [vmem:[%s11503_s21 + $0x318] sm:$0x3] }
  0x4d   : > { %18488 = vst [vmem:[#allocation34_spill] sm:$0xff] %v11795_v59  ;;  %v11801_v10 = vpack.i.bf16 %v787_v46, %v785_v45  ;;  %v800_v11 = vrot.slane %v396_v50, 1  ;;  %v802_v15 = vrot.slane %v397_v43, 1  ;;  %v804_v17 = vrot.slane %v398_v58, 1  ;;  %v399_v44 = vld [vmem:[%s11503_s21 + $0x2f8] sm:$0xff]  ;;  %v400_v45 = vld [vmem:[%s11503_s21 + $0x300] sm:$0xff] }
  0x4e   : > { %8467 = vrot.lane.b32.xlu1 %v11718_v54, %s11391_s22  ;;  %v794_v24 = vsel %vm634_vm0, %v791_v41, %v793_v48  ;;  %v796_v22 = vsel %vm634_vm0, %v793_v48, %v795_v49  ;;  %v797_v26 = vrot.slane %v394_v62, 1  ;;  %v798_v27 = vrot.slane %v395_v63, 1 }
  0x4f   : > { %8462 = vrot.lane.b32.xlu0 %v11720_v57, %s11391_s22  ;;  %18489 = vst [vmem:[#allocation35_spill] sm:$0xff] %v11801_v10  ;;  %v11810_v31 = vpack.i.bf16 %v783_v4, %v781_v3  ;;  %v790_v38 = vsel %vm634_vm0, %v788_v5, %v789_v7  ;;  %v792_v42 = vsel %vm634_vm0, %v789_v7, %v791_v41  ;;  %v809_v50 = vrot.slane %v401_v16, 1  ;;  %v406_v5 = vld [vmem:[%s11503_s21 + $0x330] sm:$0xff]  ;;  %v407_v7 = vld [vmem:[%s11503_s21 + $0x338] sm:$0xff]  ;;  %v413_v16 = vld [vmem:[%s11503_s21 + $0x368] sm:$0x3] }
  0x50   : > { %v11818_v46 = vpack.i.bf16 %v796_v22, %v794_v24  ;;  %v803_v48 = vsel %vm634_vm0, %v800_v11, %v802_v15  ;;  %v805_v49 = vsel %vm634_vm0, %v802_v15, %v804_v17  ;;  %v799_v41 = vsel %vm634_vm0, %v797_v26, %v798_v27  ;;  %v408_v15 = vld [vmem:[%s11503_s21 + $0x340] sm:$0x3]  ;;  %v405_v24 = vld [vmem:[%s11503_s21 + $0x328] sm:$0xff]  ;;  %v411_v26 = vld [vmem:[%s11503_s21 + $0x358] sm:$0xff] }
  0x51   : > { %18490 = vst [vmem:[#allocation36_spill] sm:$0xff] %v11810_v31  ;;  %v801_v43 = vsel %vm634_vm0, %v798_v27, %v800_v11  ;;  %v811_v58 = vrot.slane %v402_v32, 1  ;;  %v813_v62 = vrot.slane %v403_v35, 1  ;;  %v11828_v63 = vpack.i.bf16 %v792_v42, %v790_v38  ;;  %v404_v17 = vld [vmem:[%s11503_s21 + $0x320] sm:$0xff] }
  0x52   : > { %8477 = vrot.lane.b32.xlu1 %v11735_v20, %s11391_s22  ;;  %18491 = vst [vmem:[#allocation37_spill] sm:$0xff] %v11818_v46  ;;  %v806_v3 = vrot.slane %v399_v44, 1  ;;  %v807_v4 = vrot.slane %v400_v45, 1  ;;  %v11835_v22 = vpack.i.bf16 %v805_v49, %v803_v48  ;;  %v11837_v11 = vpack.i.bf16 %v801_v43, %v799_v41  ;;  %v412_v27 = vld [vmem:[%s11503_s21 + $0x360] sm:$0xff]  ;;  %v409_v44 = vld [vmem:[%s11503_s21 + $0x348] sm:$0xff]  ;;  %v410_v45 = vld [vmem:[%s11503_s21 + $0x350] sm:$0xff] }
  0x53   : > { %8472 = vrot.lane.b32.xlu0 %v11741_v28, %s11391_s22  ;;  %18492 = vst [vmem:[#allocation38_spill] sm:$0xff] %v11828_v63  ;;  %v812_v32 = vsel %vm634_vm0, %v809_v50, %v811_v58  ;;  %v814_v35 = vsel %vm634_vm0, %v811_v58, %v813_v62  ;;  %v818_v38 = vrot.slane %v406_v5, 1  ;;  %v820_v42 = vrot.slane %v407_v7, 1 }
  0x54   : > { %18493 = vst [vmem:[#allocation39_spill] sm:$0xff] %v11835_v22  ;;  %18494 = vst [vmem:[#allocation40_spill] sm:$0xff] %v11837_v11  ;;  %v808_v48 = vsel %vm634_vm0, %v806_v3, %v807_v4  ;;  %v822_v49 = vrot.slane %v408_v15, 1  ;;  %v815_v41 = vrot.slane %v404_v17, 1  ;;  %v816_v43 = vrot.slane %v405_v24, 1  ;;  %v414_v24 = vld [vmem:[%s11503_s21 + $0x370] sm:$0xff] }
  0x55   : > { %v829_v58 = vrot.slane %v412_v27, 1  ;;  %v831_v62 = vrot.slane %v413_v16, 1  ;;  %v824_v5 = vrot.slane %v409_v44, 1  ;;  %v825_v7 = vrot.slane %v410_v45, 1  ;;  %v418_v3 = vld [vmem:[%s11503_s21 + $0x390] sm:$0x3] }
  0x56   : > { %8487 = vrot.lane.b32.xlu1 %v11752_v47, %s11391_s22  ;;  %v817_v17 = vsel %vm634_vm0, %v815_v41, %v816_v43  ;;  %v819_v27 = vsel %vm634_vm0, %v816_v43, %v818_v38  ;;  %v840_v45 = vrot.slane %v418_v3, 1  ;;  %v421_v41 = vld [vmem:[%s11503_s21 + $0x3a8] sm:$0xff]  ;;  %v422_v43 = vld [vmem:[%s11503_s21 + $0x3b0] sm:$0xff]  ;;  %v427_v3 = vld [vmem:[%s11503_s21 + $0x3d8] sm:$0xff]  ;;  %v915_v36 = vrot.slane %v12120_v56, 1 }
  0x57   : > { %8482 = vrot.lane.b32.xlu0 %v11758_v53, %s11391_s22  ;;  %v12117_v53 = vld [vmem:[%s11503_s21 + $0x4d8] sm:$0xff]  ;;  %v1315_v54 = vrot.slane %v10933_v37, 2  ;;  %v1360_v21 = vrot.slane %v10953_v23, 2 }
  0x5a   : > { %8497 = vrot.lane.b32.xlu1 %v11765_v6, %s11391_s22 }
  0x5b   : > { %8492 = vrot.lane.b32.xlu0 %v11776_v25, %s11391_s22  ;;  %v12074_v25 = vld [vmem:[%s11503_s21 + $0x4c0] sm:$0xff] }
  0x5e   : > { %8507 = vrot.lane.b32.xlu1 %v11782_v40, %s11391_s22 }
  0x5f   : > { %8502 = vrot.lane.b32.xlu0 %v11795_v59, %s11391_s22  ;;  %v12054_v59 = vld [vmem:[%s11503_s21 + $0x490] sm:$0xff] }
  0x60   : > { %v897_v9 = vrot.slane %v12054_v59, 1 }
  0x62   : > { %8517 = vrot.lane.b32.xlu1 %v11801_v10, %s11391_s22  ;;  %v827_v10 = vrot.slane %v411_v26, 1  ;;  %v415_v26 = vld [vmem:[%s11503_s21 + $0x378] sm:$0xff] }
  0x63   : > { %8512 = vrot.lane.b32.xlu0 %v11810_v31, %s11391_s22  ;;  %v11855_v31 = vpack.i.bf16 %v814_v35, %v812_v32  ;;  %v832_v32 = vsel %vm634_vm0, %v829_v58, %v831_v62  ;;  %v826_v35 = vsel %vm634_vm0, %v824_v5, %v825_v7 }
  0x64   : > { %v830_v16 = vsel %vm634_vm0, %v827_v10, %v829_v58  ;;  %v420_v58 = vld [vmem:[%s11503_s21 + $0x3a0] sm:$0xff] }
  0x65   : > { %18495 = vst [vmem:[#allocation41_spill] sm:$0xff] %v11855_v31  ;;  %v11888_v62 = vpack.i.bf16 %v832_v32, %v830_v16 }
  0x66   : > { %8527 = vrot.lane.b32.xlu1 %v11818_v46, %s11391_s22  ;;  %v810_v46 = vsel %vm634_vm0, %v807_v4, %v809_v50  ;;  %v821_v50 = vsel %vm634_vm0, %v818_v38, %v820_v42  ;;  %v823_v4 = vsel %vm634_vm0, %v820_v42, %v822_v49  ;;  %v828_v42 = vsel %vm634_vm0, %v825_v7, %v827_v10  ;;  %v11884_v10 = vld [vmem:[%s11503_s21 + $0x3b8] sm:$0x3]  ;;  %v426_v7 = vld [vmem:[%s11503_s21 + $0x3d0] sm:$0xff] }
  0x67   : > { %8522 = vrot.lane.b32.xlu0 %v11828_v63, %s11391_s22  ;;  %v417_v63 = vld [vmem:[%s11503_s21 + $0x388] sm:$0xff]  ;;  %v11861_v15 = vpack.i.bf16 %v810_v46, %v808_v48  ;;  %v836_v46 = vrot.slane %v416_v51, 1  ;;  %v11875_v38 = vpack.i.bf16 %v823_v4, %v821_v50  ;;  %v833_v48 = vrot.slane %v414_v24, 1  ;;  %18499 = vst [vmem:[#allocation45_spill] sm:$0xff] %v11888_v62  ;;  %v428_v50 = vld [vmem:[%s11503_s21 + $0x3e0] sm:$0x3] }
  0x68   : > { %v838_v44 = vrot.slane %v417_v63, 1  ;;  %v834_v49 = vrot.slane %v415_v26, 1  ;;  %v11881_v51 = vpack.i.bf16 %v819_v27, %v817_v17  ;;  %v419_v63 = vld [vmem:[%s11503_s21 + $0x398] sm:$0xff]  ;;  %v11890_v5 = vpack.i.bf16 %v828_v42, %v826_v35  ;;  %v424_v17 = vld [vmem:[%s11503_s21 + $0x3c0] sm:$0xff]  ;;  %v425_v27 = vld [vmem:[%s11503_s21 + $0x3c8] sm:$0xff] }
  0x69   : > { %18496 = vst [vmem:[#allocation42_spill] sm:$0xff] %v11861_v15  ;;  %18497 = vst [vmem:[#allocation43_spill] sm:$0xff] %v11875_v38  ;;  %v845_v26 = vrot.slane %v421_v41, 1  ;;  %v849_v35 = vrot.slane %v11884_v10, 1  ;;  %v842_v42 = vrot.slane %v419_v63, 1  ;;  %v856_v41 = vrot.slane %v427_v3, 1 }
  0x6a   : > { %8537 = vrot.lane.b32.xlu1 %v11835_v22, %s11391_s22  ;;  %18498 = vst [vmem:[#allocation44_spill] sm:$0xff] %v11881_v51  ;;  %18500 = vst [vmem:[#allocation46_spill] sm:$0xff] %v11890_v5  ;;  %v839_v4 = vsel %vm634_vm0, %v836_v46, %v838_v44  ;;  %v841_v24 = vsel %vm634_vm0, %v838_v44, %v840_v45  ;;  %v835_v16 = vsel %vm634_vm0, %v833_v48, %v834_v49 }
  0x6b   : > { %8532 = vrot.lane.b32.xlu0 %v11837_v11, %s11391_s22  ;;  %v837_v32 = vsel %vm634_vm0, %v834_v49, %v836_v46  ;;  %v843_v44 = vrot.slane %v420_v58, 1  ;;  %v854_v45 = vrot.slane %v426_v7, 1  ;;  %v852_v22 = vrot.slane %v425_v27, 1  ;;  %v432_v11 = vld [vmem:[%s11503_s21 + $0x400] sm:$0xff]  ;;  %v11917_v58 = vld [vmem:[%s11503_s21 + $0x408] sm:$0x3] }
  0x6c   : > { %v11910_v46 = vpack.i.bf16 %v841_v24, %v839_v4  ;;  %v11912_v48 = vpack.i.bf16 %v837_v32, %v835_v16  ;;  %v429_v24 = vld [vmem:[%s11503_s21 + $0x3e8] sm:$0xff]  ;;  %v865_v32 = vrot.slane %v432_v11, 1 }
  0x6d   : > { %v844_v7 = vsel %vm634_vm0, %v842_v42, %v843_v44  ;;  %v846_v3 = vsel %vm634_vm0, %v843_v44, %v845_v26  ;;  %v437_v42 = vld [vmem:[%s11503_s21 + $0x428] sm:$0xff]  ;;  %v860_v44 = vrot.slane %v429_v24, 1 }
  0x6e   : > { %8547 = vrot.lane.b32.xlu1 %v11855_v31, %s11391_s22  ;;  %v847_v31 = vrot.slane %v422_v43, 1  ;;  %v858_v43 = vrot.slane %v428_v50, 1  ;;  %18501 = vst [vmem:[#allocation47_spill] sm:$0xff] %v11910_v46  ;;  %18502 = vst [vmem:[#allocation48_spill] sm:$0xff] %v11912_v48  ;;  %v857_v50 = vsel %vm634_vm0, %v854_v45, %v856_v41  ;;  %v874_v24 = vrot.slane %v437_v42, 1 }
  0x6f   : > { %8542 = vrot.lane.b32.xlu0 %v11861_v15, %s11391_s22  ;;  %v851_v15 = vrot.slane %v424_v17, 1  ;;  %v430_v17 = vld [vmem:[%s11503_s21 + $0x3f0] sm:$0xff] }
  0x70   : > { %v848_v49 = vsel %vm634_vm0, %v845_v26, %v847_v31  ;;  %v850_v63 = vsel %vm634_vm0, %v847_v31, %v849_v35  ;;  %v859_v4 = vsel %vm634_vm0, %v856_v41, %v858_v43  ;;  %v855_v31 = vsel %vm634_vm0, %v852_v22, %v854_v45  ;;  %v11948_v45 = vld [vmem:[%s11503_s21 + $0x410] sm:$0xff] }
  0x71   : > { %v853_v27 = vsel %vm634_vm0, %v851_v15, %v852_v22  ;;  %v867_v35 = vrot.slane %v11917_v58, 1  ;;  %v11934_v26 = vpack.i.bf16 %v850_v63, %v848_v49  ;;  %v861_v41 = vrot.slane %v430_v17, 1 }
  0x72   : > { %8557 = vrot.lane.b32.xlu1 %v11875_v38, %s11391_s22  ;;  %v431_v38 = vld [vmem:[%s11503_s21 + $0x3f8] sm:$0xff]  ;;  %v11938_v15 = vpack.i.bf16 %v846_v3, %v844_v7  ;;  %v11940_v22 = vpack.i.bf16 %v859_v4, %v857_v50  ;;  %v11942_v11 = vpack.i.bf16 %v855_v31, %v853_v27  ;;  %v1320_v43 = vrot.slane %v11512_v2, 2 }
  0x73   : > { %8552 = vrot.lane.b32.xlu0 %v11881_v51, %s11391_s22  ;;  %v863_v16 = vrot.slane %v431_v38, 1  ;;  %18503 = vst [vmem:[#allocation49_spill] sm:$0xff] %v11934_v26  ;;  %v11945_v38 = vld [vmem:[%s11503_s21 + $0x430] sm:$0x3]  ;;  %v1322_v7 = vrot.slane %v11521_v12, 2  ;;  %v868_v3 = vsel %vm634_vm0, %v865_v32, %v867_v35  ;;  %v11955_v50 = vld [vmem:[%s11503_s21 + $0x418] sm:$0xff]  ;;  %v862_v2 = vsel %vm634_vm0, %v860_v44, %v861_v41 }
  0x74   : > { %18504 = vst [vmem:[#allocation50_spill] sm:$0xff] %v11938_v15  ;;  %18505 = vst [vmem:[#allocation51_spill] sm:$0xff] %v11940_v22  ;;  %v1324_v4 = vrot.slane %v11524_v13, 2  ;;  %v1317_v17 = vrot.slane %v11506_v0, 2  ;;  %v1318_v27 = vrot.slane %v11509_v1, 2  ;;  %v869_v31 = vrot.slane %v11948_v45, 1 }
  0x75   : > { %18506 = vst [vmem:[#allocation52_spill] sm:$0xff] %v11942_v11  ;;  %v866_v49 = vsel %vm634_vm0, %v863_v16, %v865_v32  ;;  %v11966_v12 = vld [vmem:[%s11503_s21 + $0x448] sm:$0xff]  ;;  %v11969_v32 = vld [vmem:[%s11503_s21 + $0x450] sm:$0xff]  ;;  %v11974_v0 = vld [vmem:[%s11503_s21 + $0x458] sm:$0x3]  ;;  %v1323_v1 = vsel %vm1307_vm1, %v1320_v43, %v1322_v7  ;;  %v864_v44 = vsel %vm634_vm0, %v861_v41, %v863_v16 }
  0x76   : > { %8567 = vrot.lane.b32.xlu1 %v11888_v62, %s11391_s22  ;;  %v436_v62 = vld [vmem:[%s11503_s21 + $0x420] sm:$0xff]  ;;  %v1325_v13 = vsel %vm1307_vm1, %v1322_v7, %v1324_v4  ;;  %v1319_v35 = vsel %vm1307_vm1, %v1317_v17, %v1318_v27  ;;  %v1321_v42 = vsel %vm1307_vm1, %v1318_v27, %v1320_v43  ;;  %v883_v7 = vrot.slane %v11969_v32, 1  ;;  %v11989_v4 = vld [vmem:[%s11503_s21 + $0x438] sm:$0xff] }
  0x77   : > { %8562 = vrot.lane.b32.xlu0 %v11890_v5, %s11391_s22  ;;  %v872_v63 = vrot.slane %v436_v62, 1  ;;  %v876_v62 = vrot.slane %v11945_v38, 1  ;;  %v11992_v17 = vld [vmem:[%s11503_s21 + $0x440] sm:$0xff]  ;;  %v11996_v16 = vpack.i.bf16 %v868_v3, %v866_v49  ;;  %v885_v27 = vrot.slane %v11974_v0, 1  ;;  %v12018_v3 = vld [vmem:[%s11503_s21 + $0x468] sm:$0xff] }
  0x78   : > { %v12015_v49 = vld [vmem:[%s11503_s21 + $0x460] sm:$0xff]  ;;  %v879_v5 = vrot.slane %v11992_v17, 1 }
  0x79   : > { %18509 = vst [vmem:[#allocation55_spill] sm:$0xff] %v11996_v16  ;;  %v875_v41 = vsel %vm634_vm0, %v872_v63, %v874_v24  ;;  %v877_v43 = vsel %vm634_vm0, %v874_v24, %v876_v62 }
  0x7a   : > { %8577 = vrot.lane.b32.xlu1 %v11910_v46, %s11391_s22  ;;  %v11982_v46 = vpack.i.bf16 %v1325_v13, %v1323_v1  ;;  %v12002_v1 = vld [vmem:[%s11503_s21 + $0x470] sm:$0xff]  ;;  %v12005_v13 = vld [vmem:[%s11503_s21 + $0x478] sm:$0xff] }
  0x7b   : > { %8572 = vrot.lane.b32.xlu0 %v11912_v48, %s11391_s22  ;;  %v881_v48 = vrot.slane %v11966_v12, 1  ;;  %v892_v51 = vrot.slane %v12005_v13, 1 }
  0x7c   : > { %18507 = vst [vmem:[#allocation53_spill] sm:$0xff] %v11982_v46 }
  0x7e   : > { %8587 = vrot.lane.b32.xlu1 %v11934_v26, %s11391_s22  ;;  %v870_v26 = vrot.slane %v11955_v50, 1 }
  0x7f   : > { %8582 = vrot.lane.b32.xlu0 %v11938_v15, %s11391_s22  ;;  %v11984_v15 = vpack.i.bf16 %v1321_v42, %v1319_v35  ;;  %v12009_v35 = vpack.i.bf16 %v864_v44, %v862_v2  ;;  %v12012_v42 = vld [vmem:[%s11503_s21 + $0x480] sm:$0x3]  ;;  %v884_v2 = vsel %vm634_vm0, %v881_v48, %v883_v7  ;;  %v890_v44 = vrot.slane %v12002_v1, 1 }
  0x80   : > { %v871_v24 = vsel %vm634_vm0, %v869_v31, %v870_v26  ;;  %v873_v62 = vsel %vm634_vm0, %v870_v26, %v872_v63  ;;  %v886_v26 = vsel %vm634_vm0, %v883_v7, %v885_v27  ;;  %v894_v63 = vrot.slane %v12012_v42, 1  ;;  %v12051_v27 = vld [vmem:[%s11503_s21 + $0x488] sm:$0xff] }
  0x81   : > { %18508 = vst [vmem:[#allocation54_spill] sm:$0xff] %v11984_v15  ;;  %18510 = vst [vmem:[#allocation56_spill] sm:$0xff] %v12009_v35  ;;  %v887_v31 = vrot.slane %v12015_v49, 1  ;;  %v12043_v40 = vpack.i.bf16 %v873_v62, %v871_v24  ;;  %v882_v7 = vsel %vm634_vm0, %v879_v5, %v881_v48  ;;  %v12056_v39 = vpack.i.bf16 %v886_v26, %v884_v2 }
  0x82   : > { %8597 = vrot.lane.b32.xlu1 %v11940_v22, %s11391_s22  ;;  %v878_v22 = vrot.slane %v11989_v4, 1  ;;  %v901_v62 = vrot.slane %v12039_v60, 1  ;;  %v903_v2 = vrot.slane %v12046_v30, 1  ;;  %v896_v6 = vrot.slane %v12051_v27, 1 }
  0x83   : > { %8592 = vrot.lane.b32.xlu0 %v11942_v11, %s11391_s22  ;;  %v12024_v11 = vpack.i.bf16 %v877_v43, %v875_v41  ;;  %v888_v41 = vrot.slane %v12018_v3, 1  ;;  %v12036_v43 = vld [vmem:[%s11503_s21 + $0x498] sm:$0xff]  ;;  %18512 = vst [vmem:[#allocation58_spill] sm:$0xff] %v12043_v40  ;;  %18513 = vst [vmem:[#allocation59_spill] sm:$0xff] %v12056_v39 }
  0x84   : > { %v899_v24 = vrot.slane %v12036_v43, 1 }
  0x85   : > { %18511 = vst [vmem:[#allocation57_spill] sm:$0xff] %v12024_v11  ;;  %v889_v48 = vsel %vm634_vm0, %v887_v31, %v888_v41 }
  0x86   : > { %8607 = vrot.lane.b32.xlu1 %v11996_v16, %s11391_s22  ;;  %v880_v16 = vsel %vm634_vm0, %v878_v22, %v879_v5  ;;  %v895_v5 = vsel %vm634_vm0, %v892_v51, %v894_v63  ;;  %v891_v22 = vsel %vm634_vm0, %v888_v41, %v890_v44  ;;  %v12083_v63 = vld [vmem:[%s11503_s21 + $0x4b0] sm:$0xff]  ;;  %v902_v41 = vsel %vm634_vm0, %v899_v24, %v901_v62 }
  0x87   : > { %8602 = vrot.lane.b32.xlu0 %v12009_v35, %s11391_s22  ;;  %v893_v35 = vsel %vm634_vm0, %v890_v44, %v892_v51  ;;  %v12069_v26 = vpack.i.bf16 %v882_v7, %v880_v16  ;;  %v12080_v51 = vld [vmem:[%s11503_s21 + $0x4d0] sm:$0x3]  ;;  %v12086_v44 = vld [vmem:[%s11503_s21 + $0x4b8] sm:$0xff]  ;;  %v12090_v16 = vpack.i.bf16 %v891_v22, %v889_v48  ;;  %v904_v7 = vsel %vm634_vm0, %v901_v62, %v903_v2 }
  0x88   : > { %v12088_v31 = vpack.i.bf16 %v895_v5, %v893_v35  ;;  %v912_v47 = vrot.slane %v12080_v51, 1  ;;  %v898_v35 = vsel %vm634_vm0, %v896_v6, %v897_v9  ;;  %v900_v5 = vsel %vm634_vm0, %v897_v9, %v899_v24  ;;  %v12109_v62 = vld [vmem:[%s11503_s21 + $0x4f0] sm:$0xff]  ;;  %v12112_v2 = vld [vmem:[%s11503_s21 + $0x4f8] sm:$0x3] }
  0x89   : > { %18514 = vst [vmem:[#allocation60_spill] sm:$0xff] %v12069_v26  ;;  %18516 = vst [vmem:[#allocation62_spill] sm:$0xff] %v12090_v16  ;;  %v905_v48 = vrot.slane %v12083_v63, 1  ;;  %v906_v22 = vrot.slane %v12086_v44, 1  ;;  %v12114_v52 = vpack.i.bf16 %v904_v7, %v902_v41  ;;  %v12124_v9 = vpack.i.bf16 %v900_v5, %v898_v35 }
  0x8a   : > { %8617 = vrot.lane.b32.xlu1 %v12024_v11, %s11391_s22  ;;  %v12077_v11 = vld [vmem:[%s11503_s21 + $0x4c8] sm:$0xff]  ;;  %18515 = vst [vmem:[#allocation61_spill] sm:$0xff] %v12088_v31  ;;  %v921_v35 = vrot.slane %v12112_v2, 1 }
  0x8b   : > { %8612 = vrot.lane.b32.xlu0 %v12043_v40, %s11391_s22  ;;  %v908_v40 = vrot.slane %v12074_v25, 1  ;;  %v910_v14 = vrot.slane %v12077_v11, 1  ;;  %18517 = vst [vmem:[#allocation63_spill] sm:$0xff] %v12114_v52  ;;  %18518 = vst [vmem:[#allocation64_spill] sm:$0xff] %v12124_v9  ;;  %v907_v7 = vsel %vm634_vm0, %v905_v48, %v906_v22 }
  0x8d   : > { %v911_v6 = vsel %vm634_vm0, %v908_v40, %v910_v14  ;;  %v913_v41 = vsel %vm634_vm0, %v910_v14, %v912_v47  ;;  %v909_v20 = vsel %vm634_vm0, %v906_v22, %v908_v40  ;;  %v10931_v22 = vld [vmem:[%s11503_s21 + $0x10] sm:$0xff] }
  0x8e   : > { %8627 = vrot.lane.b32.xlu1 %v12056_v39, %s11391_s22  ;;  %v12106_v39 = vld [vmem:[%s11503_s21 + $0x4e8] sm:$0xff]  ;;  %v12143_v14 = vpack.i.bf16 %v913_v41, %v911_v6  ;;  %v12145_v47 = vpack.i.bf16 %v909_v20, %v907_v7  ;;  %v10934_v41 = vld [vmem:[%s11503_s21] sm:$0xff] }
  0x8f   : > { %8622 = vrot.lane.b32.xlu0 %v12069_v26, %s11391_s22  ;;  %v917_v24 = vrot.slane %v12106_v39, 1  ;;  %v919_v26 = vrot.slane %v12109_v62, 1  ;;  %v1308_v7 = vrot.slane %v10934_v41, 2 }
  0x90   : > { %18521 = vst [vmem:[#allocation67_spill] sm:$0xff] %v12143_v14  ;;  %18522 = vst [vmem:[#allocation68_spill] sm:$0xff] %v12145_v47 }
  0x91   : > { %v920_v40 = vsel %vm634_vm0, %v917_v24, %v919_v26  ;;  %v922_v48 = vsel %vm634_vm0, %v919_v26, %v921_v35  ;;  %v918_v20 = vsel %vm634_vm0, %v915_v36, %v917_v24 }
  0x92   : > { %8637 = vrot.lane.b32.xlu1 %v12088_v31, %s11391_s22  ;;  %v914_v31 = vrot.slane %v12117_v53, 1  ;;  %v12164_v26 = vpack.i.bf16 %v922_v48, %v920_v40  ;;  %v12179_v40 = vld [vmem:[%s11503_s21 + $0x60] sm:$0xff] }
  0x93   : > { %8632 = vrot.lane.b32.xlu0 %v12090_v16, %s11391_s22  ;;  %v1311_v16 = vrot.slane %v10931_v22, 2  ;;  %v1329_v48 = vrot.slane %v12179_v40, 2  ;;  %v12183_v22 = vld [vmem:[%s11503_s21 + $0x68] sm:$0xff] }
  0x94   : > { %v12135_v5 = vpop.permute.xlu1 %8362  ;;  %v916_v6 = vsel %vm634_vm0, %v914_v31, %v915_v36  ;;  %18525 = vst [vmem:[#allocation71_spill] sm:$0xff] %v12164_v26 }
  0x95   : > { %18519 = vst [vmem:[#allocation65_spill] sm:$0xff] %v12135_v5  ;;  %v12139_v28 = vpop.permute.xlu0 %8352  ;;  %v10932_v5 = vld [vmem:[%s11503_s21 + $0x18] sm:$0xff]  ;;  %v12168_v37 = vpack.i.bf16 %v918_v20, %v916_v6  ;;  %v1331_v6 = vrot.slane %v12183_v22, 2 }
  0x96   : > { %18520 = vst [vmem:[#allocation66_spill] sm:$0xff] %v12139_v28  ;;  %8647 = vrot.lane.b32.xlu1 %v12114_v52, %s11391_s22  ;;  %v1313_v28 = vrot.slane %v10932_v5, 2  ;;  %v10935_v52 = vld [vmem:[%s11503_s21 + $0x8] sm:$0xff] }
  0x97   : > { %8642 = vrot.lane.b32.xlu0 %v12124_v9, %s11391_s22  ;;  %v1309_v9 = vrot.slane %v10935_v52, 2  ;;  %18526 = vst [vmem:[#allocation72_spill] sm:$0xff] %v12168_v37 }
  0x98   : > { %v12154_v18 = vpop.permute.xlu1 %8367  ;;  %v1314_v36 = vsel %vm1307_vm1, %v1311_v16, %v1313_v28  ;;  %v1316_v31 = vsel %vm1307_vm1, %v1313_v28, %v1315_v54  ;;  %v10938_v28 = vld [vmem:[%s11503_s21 + $0x70] sm:$0x3] }
  0x99   : > { %18523 = vst [vmem:[#allocation69_spill] sm:$0xff] %v12154_v18  ;;  %v12160_v57 = vpop.permute.xlu0 %8357  ;;  %v1310_v52 = vsel %vm1307_vm1, %v1308_v7, %v1309_v9  ;;  %v1312_v35 = vsel %vm1307_vm1, %v1309_v9, %v1311_v16  ;;  %v8676_v54 = vpack.i.bf16 %v1316_v31, %v1314_v36  ;;  %v1333_v20 = vrot.slane %v10938_v28, 2  ;;  %v12192_v9 = vld [vmem:[%s11503_s21 + $0x50] sm:$0xff]  ;;  %v12196_v7 = vld [vmem:[%s11503_s21 + $0x58] sm:$0xff] }
  0x9a   : > { %18524 = vst [vmem:[#allocation70_spill] sm:$0xff] %v12160_v57  ;;  %8657 = vrot.lane.b32.xlu1 %v12143_v14, %s11391_s22  ;;  %v8671_v16 = vpack.i.bf16 %v1312_v35, %v1310_v52  ;;  %v1326_v41 = vrot.slane %v12192_v9, 2  ;;  %v1327_v14 = vrot.slane %v12196_v7, 2  ;;  %v1332_v31 = vsel %vm1307_vm1, %v1329_v48, %v1331_v6  ;;  %v12207_v35 = vld [vmem:[%s11503_s21 + $0x88] sm:$0xff] }
  0x9b   : > { %8652 = vrot.lane.b32.xlu0 %v12145_v47, %s11391_s22  ;;  %v1334_v52 = vsel %vm1307_vm1, %v1331_v6, %v1333_v20  ;;  %v1338_v28 = vrot.slane %v12207_v35, 2  ;;  %v12219_v6 = vld [vmem:[%s11503_s21 + $0x78] sm:$0xff] }
  0x9c   : > { %v12172_v24 = vpop.permute.xlu1 %8377  ;;  %v1335_v20 = vrot.slane %v12219_v6, 2 }
  0x9d   : > { %18527 = vst [vmem:[#allocation73_spill] sm:$0xff] %v12172_v24  ;;  %v12176_v5 = vpop.permute.xlu0 %8372  ;;  %v1328_v24 = vsel %vm1307_vm1, %v1326_v41, %v1327_v14  ;;  %v12235_v41 = vld [vmem:[%s11503_s21 + $0xb8] sm:$0xff] }
  0x9e   : > { %18528 = vst [vmem:[#allocation74_spill] sm:$0xff] %v12176_v5  ;;  %8667 = vrot.lane.b32.xlu1 %v12164_v26, %s11391_s22  ;;  %v12223_v5 = vld [vmem:[%s11503_s21 + $0x80] sm:$0xff] }
  0x9f   : > { %8662 = vrot.lane.b32.xlu0 %v12168_v37, %s11391_s22  ;;  %v12211_v37 = vld [vmem:[%s11503_s21 + $0x90] sm:$0xff]  ;;  %v1336_v18 = vrot.slane %v12223_v5, 2 }
  0xa0   : > { %v12199_v26 = vpop.permute.xlu1 %8387  ;;  %v1340_v47 = vrot.slane %v12211_v37, 2 }
  0xa1   : > { %18529 = vst [vmem:[#allocation75_spill] sm:$0xff] %v12199_v26  ;;  %v12201_v36 = vpop.permute.xlu0 %8382  ;;  %v10943_v26 = vld [vmem:[%s11503_s21 + $0x98] sm:$0x3]  ;;  %v1337_v55 = vsel %vm1307_vm1, %v1335_v20, %v1336_v18 }
  0xa2   : > { %18530 = vst [vmem:[#allocation76_spill] sm:$0xff] %v12201_v36  ;;  %8677 = vrot.lane.b32.xlu1 %v8676_v54, %s11392_s23  ;;  %v1342_v36 = vrot.slane %v10943_v26, 2  ;;  %v1330_v54 = vsel %vm1307_vm1, %v1327_v14, %v1329_v48  ;;  %v12231_v26 = vld [vmem:[%s11503_s21 + $0xb0] sm:$0xff]  ;;  %v1349_v14 = vrot.slane %v12235_v41, 2  ;;  %v10948_v48 = vld [vmem:[%s11503_s21 + $0xc0] sm:$0x3]  ;;  %v1341_v8 = vsel %vm1307_vm1, %v1338_v28, %v1340_v47 }
  0xa3   : > { %8672 = vrot.lane.b32.xlu0 %v8671_v16, %s11392_s23  ;;  %v1347_v16 = vrot.slane %v12231_v26, 2  ;;  %v1351_v29 = vrot.slane %v10948_v48, 2  ;;  %v1339_v48 = vsel %vm1307_vm1, %v1336_v18, %v1338_v28 }
  0xa4   : > { %v12226_v57 = vpop.permute.xlu1 %8397  ;;  %v1343_v34 = vsel %vm1307_vm1, %v1340_v47, %v1342_v36  ;;  %v12266_v36 = vld [vmem:[%s11503_s21 + $0xe0] sm:$0xff]  ;;  %v12288_v23 = vpack.i.bf16 %v1339_v48, %v1337_v55  ;;  %v12305_v48 = vld [vmem:[%s11503_s21 + $0x108] sm:$0xff] }
  0xa5   : > { %18531 = vst [vmem:[#allocation77_spill] sm:$0xff] %v12226_v57  ;;  %v12228_v19 = vpop.permute.xlu0 %8392  ;;  %v12241_v57 = vpack.i.bf16 %v1334_v52, %v1332_v31  ;;  %v12258_v31 = vld [vmem:[%s11503_s21 + $0xa8] sm:$0xff]  ;;  %18538 = vst [vmem:[#allocation84_spill] sm:$0xff] %v12266_v36  ;;  %v1358_v18 = vrot.slane %v12266_v36, 2  ;;  %v1350_v20 = vsel %vm1307_vm1, %v1347_v16, %v1349_v14  ;;  %v12276_v61 = vpack.i.bf16 %v1343_v34, %v1341_v8  ;;  %v12283_v36 = vld [vmem:[%s11503_s21 + $0xd0] sm:$0xff] }
  0xa6   : > { %18532 = vst [vmem:[#allocation78_spill] sm:$0xff] %v12228_v19  ;;  %8687 = vrot.lane.b32.xlu1 %v11982_v46, %s11392_s23  ;;  %v12243_v19 = vpack.i.bf16 %v1330_v54, %v1328_v24  ;;  %v12254_v46 = vld [vmem:[%s11503_s21 + $0xa0] sm:$0xff]  ;;  %18536 = vst [vmem:[#allocation82_spill] sm:$0xff] %v12258_v31  ;;  %v1345_v52 = vrot.slane %v12258_v31, 2  ;;  %v12262_v54 = vld [vmem:[%s11503_s21 + $0xd8] sm:$0xff] }
  0xa7   : > { %18533 = vst [vmem:[#allocation79_spill] sm:$0xff] %v12241_v57  ;;  %8682 = vrot.lane.b32.xlu0 %v11984_v15, %s11392_s23  ;;  %v1344_v24 = vrot.slane %v12254_v46, 2  ;;  %18537 = vst [vmem:[#allocation83_spill] sm:$0xff] %v12262_v54  ;;  %v1356_v47 = vrot.slane %v12262_v54, 2  ;;  %v12279_v15 = vld [vmem:[%s11503_s21 + $0xc8] sm:$0xff]  ;;  %v12301_v31 = vld [vmem:[%s11503_s21 + $0x100] sm:$0xff] }
  0xa8   : > { %18534 = vst [vmem:[#allocation80_spill] sm:$0xff] %v12243_v19  ;;  %v12251_v33 = vpop.permute.xlu1 %8407  ;;  %18540 = vst [vmem:[#allocation86_spill] sm:$0xff] %v12276_v61  ;;  %v1353_v54 = vrot.slane %v12279_v15, 2  ;;  %v1365_v55 = vrot.slane %v12301_v31, 2 }
  0xa9   : > { %18535 = vst [vmem:[#allocation81_spill] sm:$0xff] %v12251_v33  ;;  %v12269_v28 = vpop.permute.xlu0 %8402  ;;  %v1352_v33 = vsel %vm1307_vm1, %v1349_v14, %v1351_v29  ;;  %18541 = vst [vmem:[#allocation87_spill] sm:$0xff] %v12279_v15  ;;  %v1346_v8 = vsel %vm1307_vm1, %v1344_v24, %v1345_v52  ;;  %v1348_v14 = vsel %vm1307_vm1, %v1345_v52, %v1347_v16  ;;  %v12314_v52 = vld [vmem:[%s11503_s21 + $0xf0] sm:$0xff] }
  0xaa   : > { %18539 = vst [vmem:[#allocation85_spill] sm:$0xff] %v12269_v28  ;;  %8697 = vrot.lane.b32.xlu1 %v12241_v57, %s11392_s23  ;;  %18542 = vst [vmem:[#allocation88_spill] sm:$0xff] %v12283_v36  ;;  %v1354_v28 = vrot.slane %v12283_v36, 2  ;;  %v12292_v34 = vpack.i.bf16 %v1352_v33, %v1350_v20  ;;  %v1359_v57 = vsel %vm1307_vm1, %v1356_v47, %v1358_v18  ;;  %v1367_v33 = vrot.slane %v12305_v48, 2  ;;  %v10958_v20 = vld [vmem:[%s11503_s21 + $0x110] sm:$0x3] }
  0xab   : > { %8692 = vrot.lane.b32.xlu0 %v12243_v19, %s11392_s23  ;;  %18543 = vst [vmem:[#allocation89_spill] sm:$0xff] %v12288_v23  ;;  %v1361_v36 = vsel %vm1307_vm1, %v1358_v18, %v1360_v21  ;;  %18547 = vst [vmem:[#allocation93_spill] sm:$0xff] %v12301_v31  ;;  %v1362_v21 = vrot.slane %v12314_v52, 2  ;;  %v12318_v18 = vld [vmem:[%s11503_s21 + $0xf8] sm:$0xff]  ;;  %v12429_v31 = vld [vmem:[%s11503_s21 + $0x1a0] sm:$0xff] }
  0xac   : > { %v12290_v29 = vpop.permute.xlu1 %8417  ;;  %18545 = vst [vmem:[#allocation91_spill] sm:$0xff] %v12292_v34  ;;  %18548 = vst [vmem:[#allocation94_spill] sm:$0xff] %v12305_v48  ;;  %v1355_v16 = vsel %vm1307_vm1, %v1353_v54, %v1354_v28  ;;  %v1357_v24 = vsel %vm1307_vm1, %v1354_v28, %v1356_v47  ;;  %v12329_v47 = vpack.i.bf16 %v1361_v36, %v1359_v57  ;;  %v12343_v57 = vld [vmem:[%s11503_s21 + $0x130] sm:$0xff]  ;;  %v12407_v48 = vld [vmem:[%s11503_s21 + $0x168] sm:$0xff] }
  0xad   : > { %18544 = vst [vmem:[#allocation90_spill] sm:$0xff] %v12290_v29  ;;  %v12297_v15 = vpop.permute.xlu0 %8412  ;;  %v1369_v29 = vrot.slane %v10958_v20, 2  ;;  %18549 = vst [vmem:[#allocation95_spill] sm:$0xff] %v12314_v52  ;;  %v12323_v20 = vpack.i.bf16 %v1348_v14, %v1346_v8  ;;  %v12331_v28 = vpack.i.bf16 %v1357_v24, %v1355_v16  ;;  %v1368_v19 = vsel %vm1307_vm1, %v1365_v55, %v1367_v33  ;;  %v12339_v14 = vld [vmem:[%s11503_s21 + $0x128] sm:$0xff]  ;;  %v10963_v24 = vld [vmem:[%s11503_s21 + $0x138] sm:$0x3] }
  0xae   : > { %18546 = vst [vmem:[#allocation92_spill] sm:$0xff] %v12297_v15  ;;  %8707 = vrot.lane.b32.xlu1 %v12276_v61, %s11392_s23  ;;  %18550 = vst [vmem:[#allocation96_spill] sm:$0xff] %v12318_v18  ;;  %v1363_v15 = vrot.slane %v12318_v18, 2  ;;  %v1376_v36 = vrot.slane %v12343_v57, 2  ;;  %v12361_v18 = vld [vmem:[%s11503_s21 + $0x150] sm:$0xff] }
  0xaf   : > { %8702 = vrot.lane.b32.xlu0 %v12288_v23, %s11392_s23  ;;  %18551 = vst [vmem:[#allocation97_spill] sm:$0xff] %v12323_v20  ;;  %18554 = vst [vmem:[#allocation100_spill] sm:$0xff] %v12329_v47  ;;  %v1370_v23 = vsel %vm1307_vm1, %v1367_v33, %v1369_v29  ;;  %v12351_v29 = vld [vmem:[%s11503_s21 + $0x118] sm:$0xff] }
  0xb0   : > { %v12325_v61 = vpop.permute.xlu1 %8427  ;;  %18555 = vst [vmem:[#allocation101_spill] sm:$0xff] %v12331_v28  ;;  %v1364_v8 = vsel %vm1307_vm1, %v1362_v21, %v1363_v15  ;;  %18556 = vst [vmem:[#allocation102_spill] sm:$0xff] %v12339_v14  ;;  %v1366_v16 = vsel %vm1307_vm1, %v1363_v15, %v1365_v55  ;;  %v1371_v33 = vrot.slane %v12351_v29, 2  ;;  %v12355_v21 = vld [vmem:[%s11503_s21 + $0x120] sm:$0xff] }
  0xb1   : > { %18552 = vst [vmem:[#allocation98_spill] sm:$0xff] %v12325_v61  ;;  %v12327_v54 = vpop.permute.xlu0 %8422  ;;  %18557 = vst [vmem:[#allocation103_spill] sm:$0xff] %v12343_v57  ;;  %v1378_v61 = vrot.slane %v10963_v24, 2  ;;  %v1383_v57 = vrot.slane %v12361_v18, 2  ;;  %v10968_v55 = vld [vmem:[%s11503_s21 + $0x160] sm:$0x3] }
  0xb2   : > { %18553 = vst [vmem:[#allocation99_spill] sm:$0xff] %v12327_v54  ;;  %8717 = vrot.lane.b32.xlu1 %v12292_v34, %s11392_s23  ;;  %v1374_v54 = vrot.slane %v12339_v14, 2  ;;  %18558 = vst [vmem:[#allocation104_spill] sm:$0xff] %v12351_v29  ;;  %v1372_v34 = vrot.slane %v12355_v21, 2  ;;  %v1387_v24 = vrot.slane %v10968_v55, 2  ;;  %v12384_v29 = vld [vmem:[%s11503_s21 + $0x140] sm:$0xff] }
  0xb3   : > { %8712 = vrot.lane.b32.xlu0 %v12323_v20, %s11392_s23  ;;  %18559 = vst [vmem:[#allocation105_spill] sm:$0xff] %v12355_v21  ;;  %18561 = vst [vmem:[#allocation107_spill] sm:$0xff] %v12361_v18  ;;  %v12365_v20 = vld [vmem:[%s11503_s21 + $0x158] sm:$0xff]  ;;  %v12373_v21 = vpack.i.bf16 %v1370_v23, %v1368_v19  ;;  %v1380_v19 = vrot.slane %v12384_v29, 2 }
  0xb4   : > { %v12358_v14 = vpop.permute.xlu1 %8437  ;;  %18562 = vst [vmem:[#allocation108_spill] sm:$0xff] %v12365_v20  ;;  %v1385_v15 = vrot.slane %v12365_v20, 2  ;;  %v1377_v18 = vsel %vm1307_vm1, %v1374_v54, %v1376_v36  ;;  %v1379_v20 = vsel %vm1307_vm1, %v1376_v36, %v1378_v61  ;;  %v1373_v55 = vsel %vm1307_vm1, %v1371_v33, %v1372_v34  ;;  %18566 = vst [vmem:[#allocation112_spill] sm:$0xff] %v12384_v29  ;;  %v12396_v36 = vld [vmem:[%s11503_s21 + $0x178] sm:$0xff] }
  0xb5   : > { %18560 = vst [vmem:[#allocation106_spill] sm:$0xff] %v12358_v14  ;;  %v12369_v52 = vpop.permute.xlu0 %8432  ;;  %18564 = vst [vmem:[#allocation110_spill] sm:$0xff] %v12373_v21  ;;  %v12375_v14 = vpack.i.bf16 %v1366_v16, %v1364_v8  ;;  %v1392_v33 = vrot.slane %v12396_v36, 2 }
  0xb6   : > { %18563 = vst [vmem:[#allocation109_spill] sm:$0xff] %v12369_v52  ;;  %8727 = vrot.lane.b32.xlu1 %v12329_v47, %s11392_s23  ;;  %v1375_v52 = vsel %vm1307_vm1, %v1372_v34, %v1374_v54  ;;  %v1386_v8 = vsel %vm1307_vm1, %v1383_v57, %v1385_v15  ;;  %v1388_v16 = vsel %vm1307_vm1, %v1385_v15, %v1387_v24  ;;  %v12392_v47 = vld [vmem:[%s11503_s21 + $0x148] sm:$0xff]  ;;  %18569 = vst [vmem:[#allocation115_spill] sm:$0xff] %v12396_v36  ;;  %v12402_v54 = vld [vmem:[%s11503_s21 + $0x180] sm:$0xff] }
  0xb7   : > { %18565 = vst [vmem:[#allocation111_spill] sm:$0xff] %v12375_v14  ;;  %8722 = vrot.lane.b32.xlu0 %v12331_v28, %s11392_s23  ;;  %18568 = vst [vmem:[#allocation114_spill] sm:$0xff] %v12392_v47  ;;  %v1381_v61 = vrot.slane %v12392_v47, 2  ;;  %v1394_v28 = vrot.slane %v12402_v54, 2  ;;  %v1389_v15 = vrot.slane %v12407_v48, 2  ;;  %v12411_v24 = vld [vmem:[%s11503_s21 + $0x170] sm:$0xff] }
  0xb8   : > { %v12387_v23 = vpop.permute.xlu1 %8447  ;;  %18571 = vst [vmem:[#allocation117_spill] sm:$0xff] %v12402_v54  ;;  %18572 = vst [vmem:[#allocation118_spill] sm:$0xff] %v12407_v48  ;;  %v1390_v47 = vrot.slane %v12411_v24, 2  ;;  %v12420_v54 = vpack.i.bf16 %v1375_v52, %v1373_v55  ;;  %v12424_v48 = vpack.i.bf16 %v1388_v16, %v1386_v8 }
  0xb9   : > { %18567 = vst [vmem:[#allocation113_spill] sm:$0xff] %v12387_v23  ;;  %v12399_v34 = vpop.permute.xlu0 %8442  ;;  %v10973_v23 = vld [vmem:[%s11503_s21 + $0x188] sm:$0x3]  ;;  %18573 = vst [vmem:[#allocation119_spill] sm:$0xff] %v12411_v24  ;;  %v1382_v36 = vsel %vm1307_vm1, %v1380_v19, %v1381_v61  ;;  %v1384_v24 = vsel %vm1307_vm1, %v1381_v61, %v1383_v57  ;;  %v10978_v19 = vld [vmem:[%s11503_s21 + $0x1b0] sm:$0x3] }
  0xba   : > { %18570 = vst [vmem:[#allocation116_spill] sm:$0xff] %v12399_v34  ;;  %v1396_v29 = vrot.slane %v10973_v23, 2  ;;  %8737 = vrot.lane.b32.xlu1 %v12373_v21, %s11392_s23  ;;  %v12416_v34 = vpack.i.bf16 %v1379_v20, %v1377_v18  ;;  %18575 = vst [vmem:[#allocation121_spill] sm:$0xff] %v12420_v54  ;;  %v1401_v18 = vrot.slane %v12429_v31, 2  ;;  %v1395_v21 = vsel %vm1307_vm1, %v1392_v33, %v1394_v28  ;;  %v12446_v61 = vld [vmem:[%s11503_s21 + $0x190] sm:$0xff] }
  0xbb   : > { %8732 = vrot.lane.b32.xlu0 %v12375_v14, %s11392_s23  ;;  %18577 = vst [vmem:[#allocation123_spill] sm:$0xff] %v12424_v48  ;;  %v1391_v55 = vsel %vm1307_vm1, %v1389_v15, %v1390_v47  ;;  %v1393_v57 = vsel %vm1307_vm1, %v1390_v47, %v1392_v33  ;;  %v1405_v16 = vrot.slane %v10978_v19, 2  ;;  %18579 = vst [vmem:[#allocation125_spill] sm:$0xff] %v12446_v61 }
  0xbc   : > { %18574 = vst [vmem:[#allocation120_spill] sm:$0xff] %v12416_v34  ;;  %v12422_v23 = vpop.permute.xlu1 %8457  ;;  %v1397_v52 = vsel %vm1307_vm1, %v1394_v28, %v1396_v29  ;;  %v12450_v28 = vld [vmem:[%s11503_s21 + $0x198] sm:$0xff]  ;;  %v12455_v15 = vpack.i.bf16 %v1384_v24, %v1382_v36  ;;  %v12463_v19 = vpack.i.bf16 %v1393_v57, %v1391_v55  ;;  %v12471_v24 = vld [vmem:[%s11503_s21 + $0x1c8] sm:$0xff] }
  0xbd   : > { %18576 = vst [vmem:[#allocation122_spill] sm:$0xff] %v12422_v23  ;;  %v12432_v20 = vpop.permute.xlu0 %8452  ;;  %v12438_v23 = vld [vmem:[%s11503_s21 + $0x1a8] sm:$0xff]  ;;  %18580 = vst [vmem:[#allocation126_spill] sm:$0xff] %v12450_v28  ;;  %v1399_v29 = vrot.slane %v12450_v28, 2  ;;  %v12461_v33 = vpack.i.bf16 %v1397_v52, %v1395_v21  ;;  %v12475_v28 = vld [vmem:[%s11503_s21 + $0x1d0] sm:$0xff] }
  0xbe   : > { %18578 = vst [vmem:[#allocation124_spill] sm:$0xff] %v12432_v20  ;;  %v1403_v8 = vrot.slane %v12438_v23, 2  ;;  %8747 = vrot.lane.b32.xlu1 %v12416_v34, %s11392_s23  ;;  %v1398_v20 = vrot.slane %v12446_v61, 2  ;;  %18581 = vst [vmem:[#allocation127_spill] sm:$0xff] %v12455_v15  ;;  %v1412_v21 = vrot.slane %v12475_v28, 2  ;;  %v12588_v61 = vld [vmem:[%s11503_s21 + $0x238] sm:$0xff] }
  0xbf   : > { %8742 = vrot.lane.b32.xlu0 %v12420_v54, %s11392_s23  ;;  %18584 = vst [vmem:[#allocation130_spill] sm:$0xff] %v12461_v33  ;;  %18585 = vst [vmem:[#allocation131_spill] sm:$0xff] %v12463_v19  ;;  %v1402_v52 = vsel %vm1307_vm1, %v1399_v29, %v1401_v18  ;;  %v10983_v55 = vld [vmem:[%s11503_s21 + $0x1d8] sm:$0x3] }
  0xc0   : > { %v12457_v34 = vpop.permute.xlu1 %8467  ;;  %v1404_v14 = vsel %vm1307_vm1, %v1401_v18, %v1403_v8  ;;  %v1406_v54 = vsel %vm1307_vm1, %v1403_v8, %v1405_v16  ;;  %v1400_v36 = vsel %vm1307_vm1, %v1398_v20, %v1399_v29  ;;  %18586 = vst [vmem:[#allocation132_spill] sm:$0xff] %v12471_v24  ;;  %18587 = vst [vmem:[#allocation133_spill] sm:$0xff] %v12475_v28  ;;  %v1414_v57 = vrot.slane %v10983_v55, 2  ;;  %v12483_v8 = vld [vmem:[%s11503_s21 + $0x1b8] sm:$0xff]  ;;  %v12487_v16 = vld [vmem:[%s11503_s21 + $0x1c0] sm:$0xff] }
  0xc1   : > { %18582 = vst [vmem:[#allocation128_spill] sm:$0xff] %v12457_v34  ;;  %v12459_v47 = vpop.permute.xlu0 %8462  ;;  %v1410_v34 = vrot.slane %v12471_v24, 2  ;;  %18588 = vst [vmem:[#allocation134_spill] sm:$0xff] %v12483_v8  ;;  %v1407_v20 = vrot.slane %v12483_v8, 2  ;;  %v12498_v18 = vpack.i.bf16 %v1402_v52, %v1400_v36  ;;  %v12502_v55 = vld [vmem:[%s11503_s21 + $0x1f0] sm:$0xff]  ;;  %v12522_v24 = vld [vmem:[%s11503_s21 + $0x1e8] sm:$0xff] }
  0xc2   : > { %18583 = vst [vmem:[#allocation129_spill] sm:$0xff] %v12459_v47  ;;  %8757 = vrot.lane.b32.xlu1 %v12424_v48, %s11392_s23  ;;  %18589 = vst [vmem:[#allocation135_spill] sm:$0xff] %v12487_v16  ;;  %v1408_v48 = vrot.slane %v12487_v16, 2  ;;  %v1419_v8 = vrot.slane %v12502_v55, 2  ;;  %v12506_v16 = vld [vmem:[%s11503_s21 + $0x1f8] sm:$0xff] }
  0xc3   : > { %8752 = vrot.lane.b32.xlu0 %v12455_v15, %s11392_s23  ;;  %v12494_v15 = vpack.i.bf16 %v1406_v54, %v1404_v14  ;;  %18593 = vst [vmem:[#allocation139_spill] sm:$0xff] %v12498_v18  ;;  %v1413_v29 = vsel %vm1307_vm1, %v1410_v34, %v1412_v21  ;;  %18594 = vst [vmem:[#allocation140_spill] sm:$0xff] %v12502_v55  ;;  %v1415_v14 = vsel %vm1307_vm1, %v1412_v21, %v1414_v57  ;;  %v10988_v52 = vld [vmem:[%s11503_s21 + $0x200] sm:$0x3] }
  0xc4   : > { %v12490_v47 = vpop.permute.xlu1 %8477  ;;  %18595 = vst [vmem:[#allocation141_spill] sm:$0xff] %v12506_v16  ;;  %v1409_v54 = vsel %vm1307_vm1, %v1407_v20, %v1408_v48  ;;  %v1411_v36 = vsel %vm1307_vm1, %v1408_v48, %v1410_v34  ;;  %v12518_v55 = vld [vmem:[%s11503_s21 + $0x1e0] sm:$0xff]  ;;  %18598 = vst [vmem:[#allocation144_spill] sm:$0xff] %v12522_v24  ;;  %v12529_v48 = vpack.i.bf16 %v1415_v14, %v1413_v29  ;;  %v10993_v14 = vld [vmem:[%s11503_s21 + $0x228] sm:$0x3] }
  0xc5   : > { %18590 = vst [vmem:[#allocation136_spill] sm:$0xff] %v12490_v47  ;;  %v12492_v28 = vpop.permute.xlu0 %8472  ;;  %18592 = vst [vmem:[#allocation138_spill] sm:$0xff] %v12494_v15  ;;  %v1421_v47 = vrot.slane %v12506_v16, 2  ;;  %v1416_v16 = vrot.slane %v12518_v55, 2  ;;  %v12531_v34 = vpack.i.bf16 %v1411_v36, %v1409_v54  ;;  %v1432_v54 = vrot.slane %v10993_v14, 2 }
  0xc6   : > { %18591 = vst [vmem:[#allocation137_spill] sm:$0xff] %v12492_v28  ;;  %8767 = vrot.lane.b32.xlu1 %v12461_v33, %s11392_s23  ;;  %v1423_v28 = vrot.slane %v10988_v52, 2  ;;  %18597 = vst [vmem:[#allocation143_spill] sm:$0xff] %v12518_v55  ;;  %v12538_v52 = vld [vmem:[%s11503_s21 + $0x218] sm:$0xff] }
  0xc7   : > { %8762 = vrot.lane.b32.xlu0 %v12463_v19, %s11392_s23  ;;  %v1417_v19 = vrot.slane %v12522_v24, 2  ;;  %18600 = vst [vmem:[#allocation146_spill] sm:$0xff] %v12529_v48  ;;  %18601 = vst [vmem:[#allocation147_spill] sm:$0xff] %v12531_v34  ;;  %v1422_v57 = vsel %vm1307_vm1, %v1419_v8, %v1421_v47  ;;  %v12555_v24 = vld [vmem:[%s11503_s21 + $0x210] sm:$0xff] }
  0xc8   : > { %v12515_v33 = vpop.permute.xlu1 %8487  ;;  %v1424_v20 = vsel %vm1307_vm1, %v1421_v47, %v1423_v28  ;;  %18602 = vst [vmem:[#allocation148_spill] sm:$0xff] %v12538_v52  ;;  %v12551_v28 = vld [vmem:[%s11503_s21 + $0x208] sm:$0xff]  ;;  %18606 = vst [vmem:[#allocation152_spill] sm:$0xff] %v12555_v24 }
  0xc9   : > { %18596 = vst [vmem:[#allocation142_spill] sm:$0xff] %v12515_v33  ;;  %v12525_v21 = vpop.permute.xlu0 %8482  ;;  %v1428_v33 = vrot.slane %v12538_v52, 2  ;;  %18605 = vst [vmem:[#allocation151_spill] sm:$0xff] %v12551_v28  ;;  %v1425_v47 = vrot.slane %v12551_v28, 2  ;;  %v1426_v52 = vrot.slane %v12555_v24, 2  ;;  %v12562_v14 = vpack.i.bf16 %v1424_v20, %v1422_v57 }
  0xca   : > { %18599 = vst [vmem:[#allocation145_spill] sm:$0xff] %v12525_v21  ;;  %8777 = vrot.lane.b32.xlu1 %v12494_v15, %s11392_s23  ;;  %v12542_v21 = vld [vmem:[%s11503_s21 + $0x220] sm:$0xff]  ;;  %v1418_v15 = vsel %vm1307_vm1, %v1416_v16, %v1417_v19  ;;  %v10998_v28 = vld [vmem:[%s11503_s21 + $0x250] sm:$0x3]  ;;  %18614 = vst [vmem:[#allocation160_spill] sm:$0xff] %v12588_v61 }
  0xcb   : > { %8772 = vrot.lane.b32.xlu0 %v12498_v18, %s11392_s23  ;;  %18603 = vst [vmem:[#allocation149_spill] sm:$0xff] %v12542_v21  ;;  %v1430_v29 = vrot.slane %v12542_v21, 2  ;;  %v1420_v18 = vsel %vm1307_vm1, %v1417_v19, %v1419_v8  ;;  %18608 = vst [vmem:[#allocation154_spill] sm:$0xff] %v12562_v14  ;;  %v12565_v16 = vld [vmem:[%s11503_s21 + $0x240] sm:$0xff]  ;;  %v12569_v8 = vld [vmem:[%s11503_s21 + $0x248] sm:$0xff]  ;;  %v1441_v24 = vrot.slane %v10998_v28, 2  ;;  %v1429_v21 = vsel %vm1307_vm1, %v1426_v52, %v1428_v33 }
  0xcc   : > { %v12546_v36 = vpop.permute.xlu1 %8497  ;;  %18609 = vst [vmem:[#allocation155_spill] sm:$0xff] %v12565_v16  ;;  %v1437_v19 = vrot.slane %v12565_v16, 2  ;;  %18610 = vst [vmem:[#allocation156_spill] sm:$0xff] %v12569_v8  ;;  %v1427_v16 = vsel %vm1307_vm1, %v1425_v47, %v1426_v52 }
  0xcd   : > { %18604 = vst [vmem:[#allocation150_spill] sm:$0xff] %v12546_v36  ;;  %v12558_v55 = vpop.permute.xlu0 %8492  ;;  %v1439_v36 = vrot.slane %v12569_v8, 2  ;;  %v1431_v57 = vsel %vm1307_vm1, %v1428_v33, %v1430_v29  ;;  %v1433_v20 = vsel %vm1307_vm1, %v1430_v29, %v1432_v54  ;;  %v12584_v8 = vld [vmem:[%s11503_s21 + $0x230] sm:$0xff] }
  0xce   : > { %18607 = vst [vmem:[#allocation153_spill] sm:$0xff] %v12558_v55  ;;  %8787 = vrot.lane.b32.xlu1 %v12529_v48, %s11392_s23  ;;  %v12575_v55 = vpack.i.bf16 %v1420_v18, %v1418_v15  ;;  %18613 = vst [vmem:[#allocation159_spill] sm:$0xff] %v12584_v8  ;;  %v1434_v28 = vrot.slane %v12584_v8, 2  ;;  %v1435_v15 = vrot.slane %v12588_v61, 2  ;;  %v12598_v54 = vld [vmem:[%s11503_s21 + $0x270] sm:$0xff]  ;;  %v12603_v52 = vpack.i.bf16 %v1433_v20, %v1431_v57  ;;  %v12617_v20 = vld [vmem:[%s11503_s21 + $0x258] sm:$0xff] }
  0xcf   : > { %8782 = vrot.lane.b32.xlu0 %v12531_v34, %s11392_s23  ;;  %v12594_v34 = vld [vmem:[%s11503_s21 + $0x268] sm:$0xff]  ;;  %18617 = vst [vmem:[#allocation163_spill] sm:$0xff] %v12598_v54  ;;  %v1448_v33 = vrot.slane %v12598_v54, 2  ;;  %v1440_v47 = vsel %vm1307_vm1, %v1437_v19, %v1439_v36  ;;  %18621 = vst [vmem:[#allocation167_spill] sm:$0xff] %v12617_v20 }
  0xd0   : > { %18611 = vst [vmem:[#allocation157_spill] sm:$0xff] %v12575_v55  ;;  %v12579_v48 = vpop.permute.xlu1 %8507  ;;  %18616 = vst [vmem:[#allocation162_spill] sm:$0xff] %v12594_v34  ;;  %v1446_v29 = vrot.slane %v12594_v34, 2  ;;  %v12610_v34 = vpack.i.bf16 %v1429_v21, %v1427_v16  ;;  %v1438_v57 = vsel %vm1307_vm1, %v1435_v15, %v1437_v19 }
  0xd1   : > { %18612 = vst [vmem:[#allocation158_spill] sm:$0xff] %v12579_v48  ;;  %v12591_v18 = vpop.permute.xlu0 %8502  ;;  %18618 = vst [vmem:[#allocation164_spill] sm:$0xff] %v12603_v52  ;;  %v1442_v48 = vsel %vm1307_vm1, %v1439_v36, %v1441_v24  ;;  %v1443_v24 = vrot.slane %v12617_v20, 2  ;;  %v12621_v36 = vld [vmem:[%s11503_s21 + $0x260] sm:$0xff]  ;;  %v11011_v20 = vld [vmem:[%s11503_s21 + $0x2c8] sm:$0x3] }
  0xd2   : > { %18615 = vst [vmem:[#allocation161_spill] sm:$0xff] %v12591_v18  ;;  %8797 = vrot.lane.b32.xlu1 %v12562_v14, %s11392_s23  ;;  %v11003_v18 = vld [vmem:[%s11503_s21 + $0x278] sm:$0x3]  ;;  %18619 = vst [vmem:[#allocation165_spill] sm:$0xff] %v12610_v34  ;;  %v1436_v14 = vsel %vm1307_vm1, %v1434_v28, %v1435_v15  ;;  %v12626_v21 = vpack.i.bf16 %v1442_v48, %v1440_v47  ;;  %v1449_v16 = vsel %vm1307_vm1, %v1446_v29, %v1448_v33  ;;  %v12633_v28 = vld [vmem:[%s11503_s21 + $0x290] sm:$0xff] }
  0xd3   : > { %v1450_v61 = vrot.slane %v11003_v18, 2  ;;  %8792 = vrot.lane.b32.xlu0 %v12575_v55, %s11392_s23  ;;  %18622 = vst [vmem:[#allocation168_spill] sm:$0xff] %v12621_v36  ;;  %v1444_v18 = vrot.slane %v12621_v36, 2  ;;  %18625 = vst [vmem:[#allocation171_spill] sm:$0xff] %v12633_v28  ;;  %v1455_v15 = vrot.slane %v12633_v28, 2  ;;  %v12643_v47 = vpack.i.bf16 %v1438_v57, %v1436_v14  ;;  %v12650_v28 = vld [vmem:[%s11503_s21 + $0x280] sm:$0xff] }
  0xd4   : > { %v12612_v8 = vpop.permute.xlu1 %8517  ;;  %18624 = vst [vmem:[#allocation170_spill] sm:$0xff] %v12626_v21  ;;  %v11008_v55 = vld [vmem:[%s11503_s21 + $0x2a0] sm:$0x3]  ;;  %18629 = vst [vmem:[#allocation175_spill] sm:$0xff] %v12650_v28  ;;  %v1452_v36 = vrot.slane %v12650_v28, 2 }
  0xd5   : > { %18620 = vst [vmem:[#allocation166_spill] sm:$0xff] %v12612_v8  ;;  %v12624_v54 = vpop.permute.xlu0 %8512  ;;  %v1451_v19 = vsel %vm1307_vm1, %v1448_v33, %v1450_v61  ;;  %v12637_v8 = vld [vmem:[%s11503_s21 + $0x298] sm:$0xff]  ;;  %v1459_v48 = vrot.slane %v11008_v55, 2  ;;  %18627 = vst [vmem:[#allocation173_spill] sm:$0xff] %v12643_v47  ;;  %v1445_v61 = vsel %vm1307_vm1, %v1443_v24, %v1444_v18  ;;  %v1447_v33 = vsel %vm1307_vm1, %v1444_v18, %v1446_v29  ;;  %v11016_v28 = vld [vmem:[%s11503_s21 + $0x2f0] sm:$0x3] }
  0xd6   : > { %18623 = vst [vmem:[#allocation169_spill] sm:$0xff] %v12624_v54  ;;  %8807 = vrot.lane.b32.xlu1 %v12603_v52, %s11392_s23  ;;  %18626 = vst [vmem:[#allocation172_spill] sm:$0xff] %v12637_v8  ;;  %v1457_v54 = vrot.slane %v12637_v8, 2  ;;  %v12654_v8 = vld [vmem:[%s11503_s21 + $0x288] sm:$0xff]  ;;  %v12660_v57 = vpack.i.bf16 %v1451_v19, %v1449_v16  ;;  %v12667_v18 = vld [vmem:[%s11503_s21 + $0x2b8] sm:$0xff]  ;;  %v12676_v16 = vpack.i.bf16 %v1447_v33, %v1445_v61 }
  0xd7   : > { %8802 = vrot.lane.b32.xlu0 %v12610_v34, %s11392_s23  ;;  %18630 = vst [vmem:[#allocation176_spill] sm:$0xff] %v12654_v8  ;;  %v1453_v55 = vrot.slane %v12654_v8, 2  ;;  %v1468_v34 = vrot.slane %v11011_v20, 2  ;;  %18633 = vst [vmem:[#allocation179_spill] sm:$0xff] %v12667_v18  ;;  %v12671_v8 = vld [vmem:[%s11503_s21 + $0x2c0] sm:$0xff] }
  0xd8   : > { %v12645_v52 = vpop.permute.xlu1 %8527  ;;  %18632 = vst [vmem:[#allocation178_spill] sm:$0xff] %v12660_v57  ;;  %v1458_v29 = vsel %vm1307_vm1, %v1455_v15, %v1457_v54  ;;  %v1460_v24 = vsel %vm1307_vm1, %v1457_v54, %v1459_v48  ;;  %18634 = vst [vmem:[#allocation180_spill] sm:$0xff] %v12671_v8  ;;  %v1466_v20 = vrot.slane %v12671_v8, 2  ;;  %v12683_v48 = vld [vmem:[%s11503_s21 + $0x2a8] sm:$0xff] }
  0xd9   : > { %18628 = vst [vmem:[#allocation174_spill] sm:$0xff] %v12645_v52  ;;  %v12658_v14 = vpop.permute.xlu0 %8522  ;;  %v1464_v52 = vrot.slane %v12667_v18, 2  ;;  %18635 = vst [vmem:[#allocation181_spill] sm:$0xff] %v12676_v16  ;;  %v1456_v54 = vsel %vm1307_vm1, %v1453_v55, %v1455_v15  ;;  %v12687_v18 = vld [vmem:[%s11503_s21 + $0x2b0] sm:$0xff]  ;;  %v12693_v33 = vpack.i.bf16 %v1460_v24, %v1458_v29 }
  0xda   : > { %18631 = vst [vmem:[#allocation177_spill] sm:$0xff] %v12658_v14  ;;  %8817 = vrot.lane.b32.xlu1 %v12626_v21, %s11392_s23  ;;  %v1454_v14 = vsel %vm1307_vm1, %v1452_v36, %v1453_v55  ;;  %18637 = vst [vmem:[#allocation183_spill] sm:$0xff] %v12683_v48  ;;  %v1461_v21 = vrot.slane %v12683_v48, 2  ;;  %v1462_v8 = vrot.slane %v12687_v18, 2  ;;  %v1469_v15 = vsel %vm1307_vm1, %v1466_v20, %v1468_v34  ;;  %v12700_v55 = vld [vmem:[%s11503_s21 + $0x2e0] sm:$0xff] }
  0xdb   : > { %8812 = vrot.lane.b32.xlu0 %v12643_v47, %s11392_s23  ;;  %18638 = vst [vmem:[#allocation184_spill] sm:$0xff] %v12687_v18  ;;  %v1477_v47 = vrot.slane %v11016_v28, 2  ;;  %18640 = vst [vmem:[#allocation186_spill] sm:$0xff] %v12693_v33  ;;  %v1467_v36 = vsel %vm1307_vm1, %v1464_v52, %v1466_v20  ;;  %v12704_v18 = vld [vmem:[%s11503_s21 + $0x2e8] sm:$0xff]  ;;  %v12709_v29 = vpack.i.bf16 %v1456_v54, %v1454_v14  ;;  %v12716_v20 = vld [vmem:[%s11503_s21 + $0x2d0] sm:$0xff] }
  0xdc   : > { %v12678_v19 = vpop.permute.xlu1 %8537  ;;  %18641 = vst [vmem:[#allocation187_spill] sm:$0xff] %v12700_v55  ;;  %18642 = vst [vmem:[#allocation188_spill] sm:$0xff] %v12704_v18  ;;  %v1475_v28 = vrot.slane %v12704_v18, 2  ;;  %v1465_v34 = vsel %vm1307_vm1, %v1462_v8, %v1464_v52  ;;  %v11021_v48 = vld [vmem:[%s11503_s21 + $0x318] sm:$0x3]  ;;  %v12726_v54 = vpack.i.bf16 %v1469_v15, %v1467_v36 }
  0xdd   : > { %18636 = vst [vmem:[#allocation182_spill] sm:$0xff] %v12678_v19  ;;  %v12691_v61 = vpop.permute.xlu0 %8532  ;;  %v1473_v19 = vrot.slane %v12700_v55, 2  ;;  %18643 = vst [vmem:[#allocation189_spill] sm:$0xff] %v12709_v29  ;;  %v12720_v55 = vld [vmem:[%s11503_s21 + $0x2d8] sm:$0xff] }
  0xde   : > { %18639 = vst [vmem:[#allocation185_spill] sm:$0xff] %v12691_v61  ;;  %8827 = vrot.lane.b32.xlu1 %v12660_v57, %s11392_s23  ;;  %v1463_v61 = vsel %vm1307_vm1, %v1461_v21, %v1462_v8  ;;  %18645 = vst [vmem:[#allocation191_spill] sm:$0xff] %v12716_v20  ;;  %v1470_v57 = vrot.slane %v12716_v20, 2  ;;  %v1471_v18 = vrot.slane %v12720_v55, 2  ;;  %v1478_v52 = vsel %vm1307_vm1, %v1475_v28, %v1477_v47  ;;  %v12733_v21 = vld [vmem:[%s11503_s21 + $0x308] sm:$0xff] }
  0xdf   : > { %8822 = vrot.lane.b32.xlu0 %v12676_v16, %s11392_s23  ;;  %18646 = vst [vmem:[#allocation192_spill] sm:$0xff] %v12720_v55  ;;  %v1486_v16 = vrot.slane %v11021_v48, 2  ;;  %18648 = vst [vmem:[#allocation194_spill] sm:$0xff] %v12726_v54  ;;  %v1476_v8 = vsel %vm1307_vm1, %v1473_v19, %v1475_v28  ;;  %v12737_v55 = vld [vmem:[%s11503_s21 + $0x310] sm:$0xff]  ;;  %v12742_v36 = vpack.i.bf16 %v1465_v34, %v1463_v61  ;;  %v12749_v28 = vld [vmem:[%s11503_s21 + $0x2f8] sm:$0xff] }
  0xe0   : > { %v12711_v24 = vpop.permute.xlu1 %8547  ;;  %18649 = vst [vmem:[#allocation195_spill] sm:$0xff] %v12733_v21  ;;  %18650 = vst [vmem:[#allocation196_spill] sm:$0xff] %v12737_v55  ;;  %v1484_v48 = vrot.slane %v12737_v55, 2  ;;  %v1474_v47 = vsel %vm1307_vm1, %v1471_v18, %v1473_v19  ;;  %v11026_v20 = vld [vmem:[%s11503_s21 + $0x340] sm:$0x3]  ;;  %v12759_v34 = vpack.i.bf16 %v1478_v52, %v1476_v8  ;;  %v12766_v19 = vld [vmem:[%s11503_s21 + $0x330] sm:$0xff] }
  0xe1   : > { %18644 = vst [vmem:[#allocation190_spill] sm:$0xff] %v12711_v24  ;;  %v12724_v14 = vpop.permute.xlu0 %8542  ;;  %v1482_v24 = vrot.slane %v12733_v21, 2  ;;  %18651 = vst [vmem:[#allocation197_spill] sm:$0xff] %v12742_v36  ;;  %v12753_v21 = vld [vmem:[%s11503_s21 + $0x300] sm:$0xff] }
  0xe2   : > { %18647 = vst [vmem:[#allocation193_spill] sm:$0xff] %v12724_v14  ;;  %8837 = vrot.lane.b32.xlu1 %v12693_v33, %s11392_s23  ;;  %v1472_v14 = vsel %vm1307_vm1, %v1470_v57, %v1471_v18  ;;  %18653 = vst [vmem:[#allocation199_spill] sm:$0xff] %v12749_v28  ;;  %v1479_v33 = vrot.slane %v12749_v28, 2  ;;  %v1480_v55 = vrot.slane %v12753_v21, 2  ;;  %v1487_v18 = vsel %vm1307_vm1, %v1484_v48, %v1486_v16  ;;  %v11031_v28 = vld [vmem:[%s11503_s21 + $0x368] sm:$0x3] }
  0xe3   : > { %8832 = vrot.lane.b32.xlu0 %v12709_v29, %s11392_s23  ;;  %18654 = vst [vmem:[#allocation200_spill] sm:$0xff] %v12753_v21  ;;  %v1495_v29 = vrot.slane %v11026_v20, 2  ;;  %18656 = vst [vmem:[#allocation202_spill] sm:$0xff] %v12759_v34  ;;  %v1485_v57 = vsel %vm1307_vm1, %v1482_v24, %v1484_v48  ;;  %v12770_v21 = vld [vmem:[%s11503_s21 + $0x338] sm:$0xff]  ;;  %v12775_v8 = vpack.i.bf16 %v1474_v47, %v1472_v14  ;;  %v12782_v48 = vld [vmem:[%s11503_s21 + $0x320] sm:$0xff] }
  0xe4   : > { %v12744_v15 = vpop.permute.xlu1 %8557  ;;  %18657 = vst [vmem:[#allocation203_spill] sm:$0xff] %v12766_v19  ;;  %18658 = vst [vmem:[#allocation204_spill] sm:$0xff] %v12770_v21  ;;  %v1493_v20 = vrot.slane %v12770_v21, 2  ;;  %v1483_v16 = vsel %vm1307_vm1, %v1480_v55, %v1482_v24  ;;  %v12792_v47 = vpack.i.bf16 %v1487_v18, %v1485_v57  ;;  %v12799_v24 = vld [vmem:[%s11503_s21 + $0x358] sm:$0xff] }
  0xe5   : > { %18652 = vst [vmem:[#allocation198_spill] sm:$0xff] %v12744_v15  ;;  %v12757_v61 = vpop.permute.xlu0 %8552  ;;  %v1491_v15 = vrot.slane %v12766_v19, 2  ;;  %18659 = vst [vmem:[#allocation205_spill] sm:$0xff] %v12775_v8  ;;  %v12786_v19 = vld [vmem:[%s11503_s21 + $0x328] sm:$0xff] }
  0xe6   : > { %18655 = vst [vmem:[#allocation201_spill] sm:$0xff] %v12757_v61  ;;  %8847 = vrot.lane.b32.xlu1 %v12726_v54, %s11392_s23  ;;  %v1481_v61 = vsel %vm1307_vm1, %v1479_v33, %v1480_v55  ;;  %18661 = vst [vmem:[#allocation207_spill] sm:$0xff] %v12782_v48  ;;  %v1488_v54 = vrot.slane %v12782_v48, 2  ;;  %v1489_v21 = vrot.slane %v12786_v19, 2  ;;  %v1496_v55 = vsel %vm1307_vm1, %v1493_v20, %v1495_v29  ;;  %v11036_v48 = vld [vmem:[%s11503_s21 + $0x390] sm:$0x3] }
  0xe7   : > { %8842 = vrot.lane.b32.xlu0 %v12742_v36, %s11392_s23  ;;  %18662 = vst [vmem:[#allocation208_spill] sm:$0xff] %v12786_v19  ;;  %v1504_v36 = vrot.slane %v11031_v28, 2  ;;  %18664 = vst [vmem:[#allocation210_spill] sm:$0xff] %v12792_v47  ;;  %v1494_v33 = vsel %vm1307_vm1, %v1491_v15, %v1493_v20  ;;  %v12803_v19 = vld [vmem:[%s11503_s21 + $0x360] sm:$0xff]  ;;  %v12808_v57 = vpack.i.bf16 %v1483_v16, %v1481_v61  ;;  %v12815_v20 = vld [vmem:[%s11503_s21 + $0x348] sm:$0xff] }
  0xe8   : > { %v12777_v52 = vpop.permute.xlu1 %8567  ;;  %18665 = vst [vmem:[#allocation211_spill] sm:$0xff] %v12799_v24  ;;  %18666 = vst [vmem:[#allocation212_spill] sm:$0xff] %v12803_v19  ;;  %v1502_v28 = vrot.slane %v12803_v19, 2  ;;  %v1492_v29 = vsel %vm1307_vm1, %v1489_v21, %v1491_v15  ;;  %v12825_v16 = vpack.i.bf16 %v1496_v55, %v1494_v33  ;;  %v12832_v15 = vld [vmem:[%s11503_s21 + $0x380] sm:$0xff] }
  0xe9   : > { %18660 = vst [vmem:[#allocation206_spill] sm:$0xff] %v12777_v52  ;;  %v12790_v14 = vpop.permute.xlu0 %8562  ;;  %v1500_v52 = vrot.slane %v12799_v24, 2  ;;  %18667 = vst [vmem:[#allocation213_spill] sm:$0xff] %v12808_v57  ;;  %v12819_v24 = vld [vmem:[%s11503_s21 + $0x350] sm:$0xff] }
  0xea   : > { %18663 = vst [vmem:[#allocation209_spill] sm:$0xff] %v12790_v14  ;;  %8857 = vrot.lane.b32.xlu1 %v12759_v34, %s11392_s23  ;;  %v1490_v14 = vsel %vm1307_vm1, %v1488_v54, %v1489_v21  ;;  %v1497_v34 = vrot.slane %v12815_v20, 2  ;;  %18669 = vst [vmem:[#allocation215_spill] sm:$0xff] %v12819_v24  ;;  %v1498_v19 = vrot.slane %v12819_v24, 2  ;;  %v1505_v21 = vsel %vm1307_vm1, %v1502_v28, %v1504_v36  ;;  %v12836_v24 = vld [vmem:[%s11503_s21 + $0x388] sm:$0xff] }
  0xeb   : > { %8852 = vrot.lane.b32.xlu0 %v12775_v8, %s11392_s23  ;;  %v1513_v8 = vrot.slane %v11036_v48, 2  ;;  %18671 = vst [vmem:[#allocation217_spill] sm:$0xff] %v12825_v16  ;;  %v1503_v54 = vsel %vm1307_vm1, %v1500_v52, %v1502_v28  ;;  %18672 = vst [vmem:[#allocation218_spill] sm:$0xff] %v12832_v15  ;;  %v1511_v48 = vrot.slane %v12836_v24, 2  ;;  %v12841_v33 = vpack.i.bf16 %v1492_v29, %v1490_v14  ;;  %v12848_v28 = vld [vmem:[%s11503_s21 + $0x370] sm:$0xff] }
  0xec   : > { %v12810_v18 = vpop.permute.xlu1 %8577  ;;  %18673 = vst [vmem:[#allocation219_spill] sm:$0xff] %v12836_v24  ;;  %v1501_v36 = vsel %vm1307_vm1, %v1498_v19, %v1500_v52  ;;  %18676 = vst [vmem:[#allocation222_spill] sm:$0xff] %v12848_v28  ;;  %v12858_v29 = vpack.i.bf16 %v1505_v21, %v1503_v54  ;;  %v12865_v52 = vld [vmem:[%s11503_s21 + $0x3a8] sm:$0xff] }
  0xed   : > { %18668 = vst [vmem:[#allocation214_spill] sm:$0xff] %v12810_v18  ;;  %v12823_v61 = vpop.permute.xlu0 %8572  ;;  %v1509_v18 = vrot.slane %v12832_v15, 2  ;;  %18674 = vst [vmem:[#allocation220_spill] sm:$0xff] %v12841_v33  ;;  %v12852_v15 = vld [vmem:[%s11503_s21 + $0x378] sm:$0xff] }
  0xee   : > { %18670 = vst [vmem:[#allocation216_spill] sm:$0xff] %v12823_v61  ;;  %8867 = vrot.lane.b32.xlu1 %v12792_v47, %s11392_s23  ;;  %v1499_v61 = vsel %vm1307_vm1, %v1497_v34, %v1498_v19  ;;  %v1506_v47 = vrot.slane %v12848_v28, 2  ;;  %18677 = vst [vmem:[#allocation223_spill] sm:$0xff] %v12852_v15  ;;  %v1507_v24 = vrot.slane %v12852_v15, 2  ;;  %v1514_v19 = vsel %vm1307_vm1, %v1511_v48, %v1513_v8  ;;  %v12869_v15 = vld [vmem:[%s11503_s21 + $0x3b0] sm:$0xff] }
  0xef   : > { %8862 = vrot.lane.b32.xlu0 %v12808_v57, %s11392_s23  ;;  %v1522_v57 = vrot.slane %v11884_v10, 2  ;;  %18679 = vst [vmem:[#allocation225_spill] sm:$0xff] %v12858_v29  ;;  %v1512_v34 = vsel %vm1307_vm1, %v1509_v18, %v1511_v48  ;;  %18680 = vst [vmem:[#allocation226_spill] sm:$0xff] %v12865_v52  ;;  %v1520_v10 = vrot.slane %v12869_v15, 2  ;;  %v12874_v54 = vpack.i.bf16 %v1501_v36, %v1499_v61  ;;  %v12881_v48 = vld [vmem:[%s11503_s21 + $0x398] sm:$0xff] }
  0xf0   : > { %v12843_v55 = vpop.permute.xlu1 %8587  ;;  %18681 = vst [vmem:[#allocation227_spill] sm:$0xff] %v12869_v15  ;;  %v1510_v8 = vsel %vm1307_vm1, %v1507_v24, %v1509_v18  ;;  %v11045_v28 = vld [vmem:[%s11503_s21 + $0x3e0] sm:$0x3]  ;;  %v12891_v36 = vpack.i.bf16 %v1514_v19, %v1512_v34  ;;  %v12898_v18 = vld [vmem:[%s11503_s21 + $0x3d0] sm:$0xff] }
  0xf1   : > { %18675 = vst [vmem:[#allocation221_spill] sm:$0xff] %v12843_v55  ;;  %v12856_v14 = vpop.permute.xlu0 %8582  ;;  %v1518_v55 = vrot.slane %v12865_v52, 2  ;;  %18682 = vst [vmem:[#allocation228_spill] sm:$0xff] %v12874_v54  ;;  %v12885_v52 = vld [vmem:[%s11503_s21 + $0x3a0] sm:$0xff] }
  0xf2   : > { %18678 = vst [vmem:[#allocation224_spill] sm:$0xff] %v12856_v14  ;;  %8877 = vrot.lane.b32.xlu1 %v12825_v16, %s11392_s23  ;;  %v1508_v14 = vsel %vm1307_vm1, %v1506_v47, %v1507_v24  ;;  %v1515_v16 = vrot.slane %v12881_v48, 2  ;;  %18684 = vst [vmem:[#allocation230_spill] sm:$0xff] %v12885_v52  ;;  %v1516_v15 = vrot.slane %v12885_v52, 2  ;;  %v1523_v24 = vsel %vm1307_vm1, %v1520_v10, %v1522_v57  ;;  %v12902_v52 = vld [vmem:[%s11503_s21 + $0x3d8] sm:$0xff] }
  0xf3   : > { %8872 = vrot.lane.b32.xlu0 %v12841_v33, %s11392_s23  ;;  %v1531_v33 = vrot.slane %v11045_v28, 2  ;;  %18686 = vst [vmem:[#allocation232_spill] sm:$0xff] %v12891_v36  ;;  %v1521_v47 = vsel %vm1307_vm1, %v1518_v55, %v1520_v10  ;;  %18687 = vst [vmem:[#allocation233_spill] sm:$0xff] %v12898_v18  ;;  %v1529_v28 = vrot.slane %v12902_v52, 2  ;;  %v12907_v34 = vpack.i.bf16 %v1510_v8, %v1508_v14  ;;  %v12914_v10 = vld [vmem:[%s11503_s21 + $0x3c0] sm:$0xff] }
  0xf4   : > { %v12876_v21 = vpop.permute.xlu1 %8597  ;;  %18688 = vst [vmem:[#allocation234_spill] sm:$0xff] %v12902_v52  ;;  %v1519_v57 = vsel %vm1307_vm1, %v1516_v15, %v1518_v55  ;;  %18691 = vst [vmem:[#allocation237_spill] sm:$0xff] %v12914_v10  ;;  %v12924_v8 = vpack.i.bf16 %v1523_v24, %v1521_v47  ;;  %v12931_v55 = vld [vmem:[%s11503_s21 + $0x3f8] sm:$0xff] }
  0xf5   : > { %18683 = vst [vmem:[#allocation229_spill] sm:$0xff] %v12876_v21  ;;  %v12889_v61 = vpop.permute.xlu0 %8592  ;;  %v1527_v21 = vrot.slane %v12898_v18, 2  ;;  %18689 = vst [vmem:[#allocation235_spill] sm:$0xff] %v12907_v34  ;;  %v12918_v18 = vld [vmem:[%s11503_s21 + $0x3c8] sm:$0xff] }
  0xf6   : > { %18685 = vst [vmem:[#allocation231_spill] sm:$0xff] %v12889_v61  ;;  %8887 = vrot.lane.b32.xlu1 %v12858_v29, %s11392_s23  ;;  %v1517_v29 = vsel %vm1307_vm1, %v1515_v16, %v1516_v15  ;;  %v1524_v61 = vrot.slane %v12914_v10, 2  ;;  %18692 = vst [vmem:[#allocation238_spill] sm:$0xff] %v12918_v18  ;;  %v1525_v52 = vrot.slane %v12918_v18, 2  ;;  %v1532_v15 = vsel %vm1307_vm1, %v1529_v28, %v1531_v33  ;;  %v12935_v18 = vld [vmem:[%s11503_s21 + $0x400] sm:$0xff] }
  0xf7   : > { %8882 = vrot.lane.b32.xlu0 %v12874_v54, %s11392_s23  ;;  %v1540_v54 = vrot.slane %v11917_v58, 2  ;;  %18694 = vst [vmem:[#allocation240_spill] sm:$0xff] %v12924_v8  ;;  %v1530_v16 = vsel %vm1307_vm1, %v1527_v21, %v1529_v28  ;;  %18695 = vst [vmem:[#allocation241_spill] sm:$0xff] %v12931_v55  ;;  %v1538_v58 = vrot.slane %v12935_v18, 2  ;;  %v12940_v47 = vpack.i.bf16 %v1519_v57, %v1517_v29  ;;  %v12947_v28 = vld [vmem:[%s11503_s21 + $0x3e8] sm:$0xff] }
  0xf8   : > { %v12909_v19 = vpop.permute.xlu1 %8607  ;;  %18696 = vst [vmem:[#allocation242_spill] sm:$0xff] %v12935_v18  ;;  %v1528_v33 = vsel %vm1307_vm1, %v1525_v52, %v1527_v21  ;;  %v1549_v10 = vrot.slane %v11945_v38, 2  ;;  %v12957_v29 = vpack.i.bf16 %v1532_v15, %v1530_v16  ;;  %v12964_v21 = vld [vmem:[%s11503_s21 + $0x420] sm:$0xff] }
  0xf9   : > { %18690 = vst [vmem:[#allocation236_spill] sm:$0xff] %v12909_v19  ;;  %v12922_v14 = vpop.permute.xlu0 %8602  ;;  %v1536_v19 = vrot.slane %v12931_v55, 2  ;;  %18697 = vst [vmem:[#allocation243_spill] sm:$0xff] %v12940_v47  ;;  %v12951_v55 = vld [vmem:[%s11503_s21 + $0x3f0] sm:$0xff]  ;;  %v1545_v57 = vrot.slane %v12964_v21, 2 }
  0xfa   : > { %18693 = vst [vmem:[#allocation239_spill] sm:$0xff] %v12922_v14  ;;  %8897 = vrot.lane.b32.xlu1 %v12891_v36, %s11392_s23  ;;  %v1526_v36 = vsel %vm1307_vm1, %v1524_v61, %v1525_v52  ;;  %v1533_v14 = vrot.slane %v12947_v28, 2  ;;  %18699 = vst [vmem:[#allocation245_spill] sm:$0xff] %v12951_v55  ;;  %v1534_v18 = vrot.slane %v12951_v55, 2  ;;  %v1541_v52 = vsel %vm1307_vm1, %v1538_v58, %v1540_v54 }
  0xfb   : > { %8892 = vrot.lane.b32.xlu0 %v12907_v34, %s11392_s23  ;;  %18701 = vst [vmem:[#allocation247_spill] sm:$0xff] %v12957_v29  ;;  %v1539_v61 = vsel %vm1307_vm1, %v1536_v19, %v1538_v58  ;;  %18702 = vst [vmem:[#allocation248_spill] sm:$0xff] %v12964_v21  ;;  %v12973_v38 = vpack.i.bf16 %v1528_v33, %v1526_v36  ;;  %v1542_v54 = vrot.slane %v11948_v45, 2  ;;  %v1543_v58 = vrot.slane %v11955_v50, 2 }
  0xfc   : > { %v12942_v24 = vpop.permute.xlu1 %8617  ;;  %v1535_v15 = vsel %vm1307_vm1, %v1533_v14, %v1534_v18  ;;  %v1556_v36 = vrot.slane %v11969_v32, 2  ;;  %v1551_v45 = vrot.slane %v11989_v4, 2  ;;  %v1552_v50 = vrot.slane %v11992_v17, 2 }
  0xfd   : > { %18698 = vst [vmem:[#allocation244_spill] sm:$0xff] %v12942_v24  ;;  %v12955_v34 = vpop.permute.xlu0 %8612  ;;  %v12968_v24 = vld [vmem:[%s11503_s21 + $0x428] sm:$0xff]  ;;  %18704 = vst [vmem:[#allocation250_spill] sm:$0xff] %v12973_v38  ;;  %v1546_v32 = vsel %vm1307_vm1, %v1543_v58, %v1545_v57  ;;  %v1567_v33 = vrot.slane %v12012_v42, 2 }
  0xfe   : > { %18700 = vst [vmem:[#allocation246_spill] sm:$0xff] %v12955_v34  ;;  %8907 = vrot.lane.b32.xlu1 %v12924_v8, %s11392_s23  ;;  %18703 = vst [vmem:[#allocation249_spill] sm:$0xff] %v12968_v24  ;;  %v1547_v55 = vrot.slane %v12968_v24, 2  ;;  %v1537_v8 = vsel %vm1307_vm1, %v1534_v18, %v1536_v19  ;;  %v1558_v34 = vrot.slane %v11974_v0, 2  ;;  %v12984_v24 = vpack.i.bf16 %v1541_v52, %v1539_v61 }
  0xff   : > { %8902 = vrot.lane.b32.xlu0 %v12940_v47, %s11392_s23  ;;  %v1554_v47 = vrot.slane %v11966_v12, 2  ;;  %v12996_v0 = vpack.i.bf16 %v1537_v8, %v1535_v15  ;;  %v1544_v12 = vsel %vm1307_vm1, %v1542_v54, %v1543_v58  ;;  %v1553_v8 = vsel %vm1307_vm1, %v1551_v45, %v1552_v50 }
 0x100   : > { %v12975_v16 = vpop.permute.xlu1 %8627  ;;  %18707 = vst [vmem:[#allocation253_spill] sm:$0xff] %v12984_v24  ;;  %v1548_v14 = vsel %vm1307_vm1, %v1545_v57, %v1547_v55  ;;  %v1550_v18 = vsel %vm1307_vm1, %v1547_v55, %v1549_v10  ;;  %v1559_v17 = vsel %vm1307_vm1, %v1556_v36, %v1558_v34  ;;  %v1563_v52 = vrot.slane %v12002_v1, 2 }
 0x101   : > { %18705 = vst [vmem:[#allocation251_spill] sm:$0xff] %v12975_v16  ;;  %v12982_v21 = vpop.permute.xlu0 %8622  ;;  %18708 = vst [vmem:[#allocation254_spill] sm:$0xff] %v12996_v0  ;;  %v13005_v10 = vpack.i.bf16 %v1550_v18, %v1548_v14  ;;  %v1557_v4 = vsel %vm1307_vm1, %v1554_v47, %v1556_v36  ;;  %v1555_v55 = vsel %vm1307_vm1, %v1552_v50, %v1554_v47  ;;  %v1565_v57 = vrot.slane %v12005_v13, 2 }
 0x102   : > { %18706 = vst [vmem:[#allocation252_spill] sm:$0xff] %v12982_v21  ;;  %8917 = vrot.lane.b32.xlu1 %v12957_v29, %s11392_s23  ;;  %v13017_v42 = vpack.i.bf16 %v1546_v32, %v1544_v12  ;;  %v1560_v15 = vrot.slane %v12015_v49, 2  ;;  %v1561_v34 = vrot.slane %v12018_v3, 2  ;;  %v1576_v58 = vrot.slane %v12046_v30, 2  ;;  %v18776_v29 = vld [vmem:[#allocation152_spill] sm:$0xff] }
 0x103   : > { %8912 = vrot.lane.b32.xlu0 %v12973_v38, %s11392_s23  ;;  %18711 = vst [vmem:[#allocation257_spill] sm:$0xff] %v13005_v10  ;;  %v13026_v47 = vpack.i.bf16 %v1559_v17, %v1557_v4  ;;  %v13028_v1 = vpack.i.bf16 %v1555_v55, %v1553_v8  ;;  %v1566_v13 = vsel %vm1307_vm1, %v1563_v52, %v1565_v57  ;;  %v1572_v49 = vrot.slane %v12036_v43, 2  ;;  %v18794_v21 = vld [vmem:[#allocation176_spill] sm:$0xff] }
 0x104   : > { %v12998_v19 = vpop.permute.xlu1 %8637  ;;  %18712 = vst [vmem:[#allocation258_spill] sm:$0xff] %v13017_v42  ;;  %v1568_v14 = vsel %vm1307_vm1, %v1565_v57, %v1567_v33  ;;  %v1574_v3 = vrot.slane %v12039_v60, 2  ;;  %v1562_v30 = vsel %vm1307_vm1, %v1560_v15, %v1561_v34  ;;  %v1564_v18 = vsel %vm1307_vm1, %v1561_v34, %v1563_v52 }
 0x105   : > { %18709 = vst [vmem:[#allocation255_spill] sm:$0xff] %v12998_v19  ;;  %v13003_v61 = vpop.permute.xlu0 %8632  ;;  %18715 = vst [vmem:[#allocation261_spill] sm:$0xff] %v13026_v47  ;;  %v1569_v45 = vrot.slane %v12051_v27, 2  ;;  %v1570_v50 = vrot.slane %v12054_v59, 2  ;;  %v1585_v32 = vrot.slane %v12080_v51, 2  ;;  %v13049_v60 = vpack.i.bf16 %v1568_v14, %v1566_v13  ;;  %v18788_v19 = vld [vmem:[#allocation168_spill] sm:$0xff] }
 0x106   : > { %18710 = vst [vmem:[#allocation256_spill] sm:$0xff] %v13003_v61  ;;  %8927 = vrot.lane.b32.xlu1 %v12984_v24, %s11392_s23  ;;  %18716 = vst [vmem:[#allocation262_spill] sm:$0xff] %v13028_v1  ;;  %v13051_v43 = vpack.i.bf16 %v1564_v18, %v1562_v30  ;;  %v1575_v4 = vsel %vm1307_vm1, %v1572_v49, %v1574_v3  ;;  %v1577_v17 = vsel %vm1307_vm1, %v1574_v3, %v1576_v58  ;;  %v18883_v24 = vld [vmem:[#allocation10_spill] sm:$0xff] }
 0x107   : > { %8922 = vrot.lane.b32.xlu0 %v12996_v0, %s11392_s23  ;;  %18719 = vst [vmem:[#allocation265_spill] sm:$0xff] %v13049_v60  ;;  %v1571_v59 = vsel %vm1307_vm1, %v1569_v45, %v1570_v50  ;;  %v1573_v27 = vsel %vm1307_vm1, %v1570_v50, %v1572_v49  ;;  %v1581_v51 = vrot.slane %v12074_v25, 2  ;;  %v1583_v8 = vrot.slane %v12077_v11, 2 }
 0x108   : > { %v13021_v54 = vpop.permute.xlu1 %8647  ;;  %18720 = vst [vmem:[#allocation266_spill] sm:$0xff] %v13051_v43  ;;  %v1578_v52 = vrot.slane %v12083_v63, 2  ;;  %v1579_v57 = vrot.slane %v12086_v44, 2  ;;  %v1594_v34 = vrot.slane %v12112_v2, 2  ;;  %v13070_v58 = vpack.i.bf16 %v1577_v17, %v1575_v4 }
 0x109   : > { %18713 = vst [vmem:[#allocation259_spill] sm:$0xff] %v13021_v54  ;;  %v13024_v36 = vpop.permute.xlu0 %8642  ;;  %v13072_v13 = vpack.i.bf16 %v1573_v27, %v1571_v59  ;;  %v1584_v25 = vsel %vm1307_vm1, %v1581_v51, %v1583_v8  ;;  %v1586_v11 = vsel %vm1307_vm1, %v1583_v8, %v1585_v32  ;;  %v1590_v63 = vrot.slane %v12106_v39, 2  ;;  %v11056_v8 = vld [vmem:[%s11503_s21 + $0x38] sm:$0xff] }
 0x10a   : > { %18714 = vst [vmem:[#allocation260_spill] sm:$0xff] %v13024_v36  ;;  %8937 = vrot.lane.b32.xlu1 %v13005_v10, %s11392_s23  ;;  %18723 = vst [vmem:[#allocation269_spill] sm:$0xff] %v13070_v58  ;;  %v1592_v44 = vrot.slane %v12109_v62, 2  ;;  %v1580_v2 = vsel %vm1307_vm1, %v1578_v52, %v1579_v57  ;;  %v1582_v49 = vsel %vm1307_vm1, %v1579_v57, %v1581_v51  ;;  %v1587_v3 = vrot.slane %v12117_v53, 2  ;;  %v11057_v52 = vld [vmem:[%s11503_s21 + $0x40] sm:$0xff]  ;;  %v18770_v54 = vld [vmem:[#allocation144_spill] sm:$0xff] }
 0x10b   : > { %8932 = vrot.lane.b32.xlu0 %v13017_v42, %s11392_s23  ;;  %18724 = vst [vmem:[#allocation270_spill] sm:$0xff] %v13072_v13  ;;  %v1588_v30 = vrot.slane %v12120_v56, 2  ;;  %v13090_v45 = vpack.i.bf16 %v1586_v11, %v1584_v25  ;;  %v13094_v39 = vpack.i.bf16 %v1582_v49, %v1580_v2  ;;  %v8996_v57 = vpack.i.bf16 %v11057_v52, %v11056_v8  ;;  %v11059_v25 = vld [vmem:[%s11503_s21 + $0x30] sm:$0xff]  ;;  %v18738_v52 = vld [vmem:[#allocation88_spill] sm:$0xff] }
 0x10c   : > { %v13042_v12 = vpop.permute.xlu1 %8657  ;;  %v1593_v62 = vsel %vm1307_vm1, %v1590_v63, %v1592_v44  ;;  %v1595_v53 = vsel %vm1307_vm1, %v1592_v44, %v1594_v34  ;;  %v11058_v34 = vld [vmem:[%s11503_s21 + $0x28] sm:$0xff]  ;;  %v9006_v2 = vpack.i.bf16 %v12183_v22, %v12179_v40  ;;  %v9001_v49 = vpack.i.bf16 %v12196_v7, %v12192_v9  ;;  %v18737_v8 = vld [vmem:[#allocation87_spill] sm:$0xff] }
 0x10d   : > { %18717 = vst [vmem:[#allocation263_spill] sm:$0xff] %v13042_v12  ;;  %v13045_v33 = vpop.permute.xlu0 %8652  ;;  %18725 = vst [vmem:[#allocation271_spill] sm:$0xff] %v13090_v45  ;;  %v1589_v50 = vsel %vm1307_vm1, %v1587_v3, %v1588_v30  ;;  %v1591_v32 = vsel %vm1307_vm1, %v1588_v30, %v1590_v63  ;;  %v13106_v17 = vpack.i.bf16 %v1595_v53, %v1593_v62  ;;  %v18732_v7 = vld [vmem:[#allocation82_spill] sm:$0xff]  ;;  %v18764_v12 = vld [vmem:[#allocation135_spill] sm:$0xff] }
 0x10e   : > { %18718 = vst [vmem:[#allocation264_spill] sm:$0xff] %v13045_v33  ;;  %8947 = vrot.lane.b32.xlu1 %v13026_v47, %s11392_s23  ;;  %18726 = vst [vmem:[#allocation272_spill] sm:$0xff] %v13094_v39  ;;  %v13110_v59 = vpack.i.bf16 %v1591_v32, %v1589_v50  ;;  %v8991_v11 = vpack.i.bf16 %v11059_v25, %v11058_v34  ;;  %v9016_v62 = vpack.i.bf16 %v12211_v37, %v12207_v35  ;;  %v18742_v34 = vld [vmem:[#allocation94_spill] sm:$0xff]  ;;  %v11086_v47 = vld [vmem:[%s11503_s21 + $0x1a0] sm:$0xff] }
 0x10f   : > { %8942 = vrot.lane.b32.xlu0 %v13028_v1, %s11392_s23  ;;  %18727 = vst [vmem:[#allocation273_spill] sm:$0xff] %v13106_v17  ;;  %v9011_v53 = vpack.i.bf16 %v12223_v5, %v12219_v6  ;;  %v9026_v9 = vpack.i.bf16 %v12235_v41, %v12231_v26  ;;  %v9021_v50 = vpack.i.bf16 %v18732_v7, %v12254_v46  ;;  %v18735_v5 = vld [vmem:[#allocation83_spill] sm:$0xff]  ;;  %v18736_v6 = vld [vmem:[#allocation84_spill] sm:$0xff]  ;;  %v18741_v46 = vld [vmem:[#allocation93_spill] sm:$0xff] }
 0x110   : > { %v13061_v55 = vpop.permute.xlu1 %8667  ;;  %18728 = vst [vmem:[#allocation274_spill] sm:$0xff] %v13110_v59  ;;  %v9036_v32 = vpack.i.bf16 %v18736_v6, %v18735_v5  ;;  %v9046_v25 = vpack.i.bf16 %v18742_v34, %v18741_v46  ;;  %v18746_v7 = vld [vmem:[#allocation103_spill] sm:$0xff]  ;;  %v18747_v5 = vld [vmem:[#allocation104_spill] sm:$0xff]  ;;  %v18748_v6 = vld [vmem:[#allocation105_spill] sm:$0xff] }
 0x111   : > { %18721 = vst [vmem:[#allocation267_spill] sm:$0xff] %v13061_v55  ;;  %v13065_v15 = vpop.permute.xlu0 %8662  ;;  %v18750_v46 = vld [vmem:[#allocation108_spill] sm:$0xff]  ;;  %v18756_v55 = vld [vmem:[#allocation119_spill] sm:$0xff] }
 0x112   : > { %18722 = vst [vmem:[#allocation268_spill] sm:$0xff] %v13065_v15  ;;  %8957 = vrot.lane.b32.xlu1 %v13049_v60, %s11392_s23 }
 0x113   : > { %8952 = vrot.lane.b32.xlu0 %v13051_v43, %s11392_s23  ;;  %v18874_v43 = vld [vmem:[#allocation7_spill] sm:$0xff] }
 0x114   : > { %v13080_v14 = vpop.permute.xlu1 %8677 }
 0x115   : > { %v13086_v18 = vpop.permute.xlu0 %8672 }
 0x116   : > { %8967 = vrot.lane.b32.xlu1 %v13070_v58, %s11392_s23 }
 0x117   : > { %8962 = vrot.lane.b32.xlu0 %v13072_v13, %s11392_s23  ;;  %v18871_v13 = vld [vmem:[#allocation139_spill] sm:$0xff] }
 0x118   : > { %v13098_v56 = vpop.permute.xlu1 %8687 }
 0x119   : > { %v13102_v4 = vpop.permute.xlu0 %8682 }
 0x11a   : > { %8977 = vrot.lane.b32.xlu1 %v13090_v45, %s11392_s23  ;;  %v18800_v45 = vld [vmem:[#allocation184_spill] sm:$0xff] }
 0x11b   : > { %8972 = vrot.lane.b32.xlu0 %v13094_v39, %s11392_s23 }
 0x11c   : > { %v13112_v27 = vpop.permute.xlu1 %8697 }
 0x11d   : > { %v13114_v51 = vpop.permute.xlu0 %8692 }
 0x11e   : > { %8987 = vrot.lane.b32.xlu1 %v13106_v17, %s11392_s23  ;;  %v18782_v17 = vld [vmem:[#allocation160_spill] sm:$0xff] }
 0x11f   : > { %8982 = vrot.lane.b32.xlu0 %v13110_v59, %s11392_s23  ;;  %s17779_s23 = scalar_lea.hbm %s17843_s8, %s8298_s20 }
 0x120   : > { %v13124_v63 = vpop.permute.xlu1 %8707 }
 0x121   : > { %v13126_v44 = vpop.permute.xlu0 %8702 }
 0x122   : > { %8997 = vrot.lane.b32.xlu1 %v8996_v57, %s11393_s24  ;;  %v9031_v57 = vpack.i.bf16 %v18738_v52, %v18737_v8 }
 0x123   : > { %8992 = vrot.lane.b32.xlu0 %v8991_v11, %s11393_s24  ;;  %v18743_v11 = vld [vmem:[#allocation95_spill] sm:$0xff] }
 0x124   : > { %v13134_v3 = vpop.permute.xlu1 %8717 }
 0x125   : > { %18729 = vst [vmem:[#allocation275_spill] sm:$0xff] %v13134_v3  ;;  %v13136_v30 = vpop.permute.xlu0 %8712 }
 0x126   : > { %9007 = vrot.lane.b32.xlu1 %v9006_v2, %s11393_s24  ;;  %v18744_v2 = vld [vmem:[#allocation96_spill] sm:$0xff] }
 0x127   : > { %9002 = vrot.lane.b32.xlu0 %v9001_v49, %s11393_s24  ;;  %v9041_v49 = vpack.i.bf16 %v18744_v2, %v18743_v11  ;;  %v18752_v11 = vld [vmem:[#allocation114_spill] sm:$0xff] }
 0x128   : > { %v13144_v40 = vpop.permute.xlu1 %8727 }
 0x129   : > { %18730 = vst [vmem:[#allocation276_spill] sm:$0xff] %v13144_v40  ;;  %v13146_v22 = vpop.permute.xlu0 %8722  ;;  %v11091_v40 = vld [vmem:[%s11503_s21 + $0x1c0] sm:$0xff] }
 0x12a   : > { %18731 = vst [vmem:[#allocation277_spill] sm:$0xff] %v13146_v22  ;;  %9017 = vrot.lane.b32.xlu1 %v9016_v62, %s11393_s24  ;;  %v18933_v22 = vld [vmem:[#allocation109_spill] sm:$0xff] }
 0x12b   : > { %9012 = vrot.lane.b32.xlu0 %v9011_v53, %s11393_s24 }
 0x12c   : > { %v13154_v37 = vpop.permute.xlu1 %8737 }
 0x12d   : > { %18733 = vst [vmem:[#allocation82_spill] sm:$0xff] %v13154_v37  ;;  %v13156_v35 = vpop.permute.xlu0 %8732  ;;  %v11088_v37 = vld [vmem:[%s11503_s21 + $0x78] sm:$0xff] }
 0x12e   : > { %18734 = vst [vmem:[#allocation278_spill] sm:$0xff] %v13156_v35  ;;  %9027 = vrot.lane.b32.xlu1 %v9026_v9, %s11393_s24  ;;  %v18745_v9 = vld [vmem:[#allocation102_spill] sm:$0xff] }
 0x12f   : > { %9022 = vrot.lane.b32.xlu0 %v9021_v50, %s11393_s24  ;;  %v9056_v50 = vpack.i.bf16 %v18746_v7, %v18745_v9  ;;  %v18753_v7 = vld [vmem:[#allocation115_spill] sm:$0xff] }
 0x130   : > { %v13164_v26 = vpop.permute.xlu1 %8747 }
 0x131   : > { %18739 = vst [vmem:[#allocation83_spill] sm:$0xff] %v13164_v26  ;;  %v13166_v41 = vpop.permute.xlu0 %8742 }
 0x132   : > { %18740 = vst [vmem:[#allocation84_spill] sm:$0xff] %v13166_v41  ;;  %9037 = vrot.lane.b32.xlu1 %v9036_v32, %s11393_s24  ;;  %v9051_v32 = vpack.i.bf16 %v18748_v6, %v18747_v5  ;;  %v18754_v5 = vld [vmem:[#allocation117_spill] sm:$0xff]  ;;  %v11087_v41 = vld [vmem:[%s11503_s21 + $0x1a8] sm:$0xff] }
 0x133   : > { %9032 = vrot.lane.b32.xlu0 %v9031_v57, %s11393_s24  ;;  %v18749_v57 = vld [vmem:[#allocation107_spill] sm:$0xff]  ;;  %v9076_v6 = vpack.i.bf16 %v18754_v5, %v18753_v7  ;;  %v18762_v5 = vld [vmem:[#allocation133_spill] sm:$0xff] }
 0x134   : > { %v13174_v62 = vpop.permute.xlu1 %8757  ;;  %v9066_v34 = vpack.i.bf16 %v18750_v46, %v18749_v57  ;;  %v9086_v46 = vpack.i.bf16 %v12438_v23, %v12429_v31 }
 0x135   : > { %v13176_v53 = vpop.permute.xlu0 %8752 }
 0x136   : > { %9047 = vrot.lane.b32.xlu1 %v9046_v25, %s11393_s24  ;;  %v18751_v25 = vld [vmem:[#allocation112_spill] sm:$0xff] }
 0x137   : > { %9042 = vrot.lane.b32.xlu0 %v9041_v49, %s11393_s24  ;;  %v9061_v2 = vpack.i.bf16 %v18752_v11, %v18751_v25  ;;  %v18758_v25 = vld [vmem:[#allocation126_spill] sm:$0xff] }
 0x138   : > { %v13184_v8 = vpop.permute.xlu1 %8767 }
 0x139   : > { %v13186_v52 = vpop.permute.xlu0 %8762 }
 0x13a   : > { %9057 = vrot.lane.b32.xlu1 %v9056_v50, %s11393_s24  ;;  %v18755_v50 = vld [vmem:[#allocation118_spill] sm:$0xff] }
 0x13b   : > { %9052 = vrot.lane.b32.xlu0 %v9051_v32, %s11393_s24  ;;  %v9071_v15 = vpack.i.bf16 %v18756_v55, %v18755_v50  ;;  %v18761_v55 = vld [vmem:[#allocation132_spill] sm:$0xff] }
 0x13c   : > { %v13194_v9 = vpop.permute.xlu1 %8777  ;;  %v9096_v50 = vpack.i.bf16 %v18762_v5, %v18761_v55  ;;  %v18774_v5 = vld [vmem:[#allocation149_spill] sm:$0xff] }
 0x13d   : > { %v13196_v49 = vpop.permute.xlu0 %8772 }
 0x13e   : > { %9067 = vrot.lane.b32.xlu1 %v9066_v34, %s11393_s24  ;;  %v18757_v34 = vld [vmem:[#allocation125_spill] sm:$0xff] }
 0x13f   : > { %9062 = vrot.lane.b32.xlu0 %v9061_v2, %s11393_s24  ;;  %v9081_v11 = vpack.i.bf16 %v18758_v25, %v18757_v34  ;;  %v18768_v34 = vld [vmem:[#allocation141_spill] sm:$0xff] }
 0x140   : > { %v13204_v57 = vpop.permute.xlu1 %8787 }
 0x141   : > { %v13206_v32 = vpop.permute.xlu0 %8782 }
 0x142   : > { %9077 = vrot.lane.b32.xlu1 %v9076_v6, %s11393_s24  ;;  %v18763_v6 = vld [vmem:[#allocation134_spill] sm:$0xff] }
 0x143   : > { %9072 = vrot.lane.b32.xlu0 %v9071_v15, %s11393_s24  ;;  %v9091_v33 = vpack.i.bf16 %v18764_v12, %v18763_v6  ;;  %v18767_v15 = vld [vmem:[#allocation140_spill] sm:$0xff] }
 0x144   : > { %v13214_v7 = vpop.permute.xlu1 %8797  ;;  %v9106_v25 = vpack.i.bf16 %v18768_v34, %v18767_v15  ;;  %v18773_v12 = vld [vmem:[#allocation148_spill] sm:$0xff] }
 0x145   : > { %18759 = vst [vmem:[#allocation87_spill] sm:$0xff] %v13214_v7  ;;  %v13216_v2 = vpop.permute.xlu0 %8792  ;;  %v9116_v6 = vpack.i.bf16 %v18774_v5, %v18773_v12  ;;  %v18780_v34 = vld [vmem:[#allocation156_spill] sm:$0xff]  ;;  %v18786_v5 = vld [vmem:[#allocation163_spill] sm:$0xff] }
 0x146   : > { %18760 = vst [vmem:[#allocation88_spill] sm:$0xff] %v13216_v2  ;;  %9087 = vrot.lane.b32.xlu1 %v9086_v46, %s11393_s24  ;;  %v18769_v46 = vld [vmem:[#allocation143_spill] sm:$0xff] }
 0x147   : > { %9082 = vrot.lane.b32.xlu0 %v9081_v11, %s11393_s24  ;;  %v9101_v36 = vpack.i.bf16 %v18770_v54, %v18769_v46  ;;  %v18779_v54 = vld [vmem:[#allocation155_spill] sm:$0xff] }
 0x148   : > { %v13224_v31 = vpop.permute.xlu1 %8807  ;;  %v9126_v46 = vpack.i.bf16 %v18780_v34, %v18779_v54  ;;  %v18792_v34 = vld [vmem:[#allocation172_spill] sm:$0xff] }
 0x149   : > { %18765 = vst [vmem:[#allocation93_spill] sm:$0xff] %v13224_v31  ;;  %v13226_v23 = vpop.permute.xlu0 %8802 }
 0x14a   : > { %18766 = vst [vmem:[#allocation94_spill] sm:$0xff] %v13226_v23  ;;  %9097 = vrot.lane.b32.xlu1 %v9096_v50, %s11393_s24  ;;  %v18775_v50 = vld [vmem:[#allocation151_spill] sm:$0xff] }
 0x14b   : > { %9092 = vrot.lane.b32.xlu0 %v9091_v33, %s11393_s24  ;;  %v9111_v38 = vpack.i.bf16 %v18776_v29, %v18775_v50  ;;  %v18785_v29 = vld [vmem:[#allocation162_spill] sm:$0xff]  ;;  %v11095_v23 = vld [vmem:[%s11503_s21 + $0x1d0] sm:$0xff] }
 0x14c   : > { %v13234_v55 = vpop.permute.xlu1 %8817  ;;  %v9136_v50 = vpack.i.bf16 %v18786_v5, %v18785_v29  ;;  %v18798_v5 = vld [vmem:[#allocation180_spill] sm:$0xff] }
 0x14d   : > { %18771 = vst [vmem:[#allocation95_spill] sm:$0xff] %v13234_v55  ;;  %v13236_v11 = vpop.permute.xlu0 %8812 }
 0x14e   : > { %18772 = vst [vmem:[#allocation96_spill] sm:$0xff] %v13236_v11  ;;  %9107 = vrot.lane.b32.xlu1 %v9106_v25, %s11393_s24  ;;  %v18781_v25 = vld [vmem:[#allocation159_spill] sm:$0xff]  ;;  %v11089_v11 = vld [vmem:[%s11503_s21 + $0x80] sm:$0xff] }
 0x14f   : > { %9102 = vrot.lane.b32.xlu0 %v9101_v36, %s11393_s24  ;;  %v9121_v61 = vpack.i.bf16 %v18782_v17, %v18781_v25  ;;  %v18791_v17 = vld [vmem:[#allocation171_spill] sm:$0xff]  ;;  %v9401_v10 = vpack.i.bf16 %v11089_v11, %v11088_v37 }
 0x150   : > { %v13244_v15 = vpop.permute.xlu1 %8827  ;;  %v9146_v25 = vpack.i.bf16 %v18792_v34, %v18791_v17  ;;  %v18804_v34 = vld [vmem:[#allocation188_spill] sm:$0xff] }
 0x151   : > { %18777 = vst [vmem:[#allocation102_spill] sm:$0xff] %v13244_v15  ;;  %v13246_v33 = vpop.permute.xlu0 %8822 }
 0x152   : > { %18778 = vst [vmem:[#allocation103_spill] sm:$0xff] %v13246_v33  ;;  %9117 = vrot.lane.b32.xlu1 %v9116_v6, %s11393_s24  ;;  %v18787_v6 = vld [vmem:[#allocation167_spill] sm:$0xff] }
 0x153   : > { %9112 = vrot.lane.b32.xlu0 %v9111_v38, %s11393_s24  ;;  %v9131_v59 = vpack.i.bf16 %v18788_v19, %v18787_v6  ;;  %v18797_v19 = vld [vmem:[#allocation179_spill] sm:$0xff] }
 0x154   : > { %v13254_v12 = vpop.permute.xlu1 %8837  ;;  %v9156_v6 = vpack.i.bf16 %v18798_v5, %v18797_v19  ;;  %v18810_v5 = vld [vmem:[#allocation196_spill] sm:$0xff] }
 0x155   : > { %18783 = vst [vmem:[#allocation104_spill] sm:$0xff] %v13254_v12  ;;  %v13256_v36 = vpop.permute.xlu0 %8832  ;;  %v11084_v12 = vld [vmem:[%s11503_s21 + $0x60] sm:$0xff] }
 0x156   : > { %18784 = vst [vmem:[#allocation105_spill] sm:$0xff] %v13256_v36  ;;  %9127 = vrot.lane.b32.xlu1 %v9126_v46, %s11393_s24  ;;  %v18793_v46 = vld [vmem:[#allocation175_spill] sm:$0xff] }
 0x157   : > { %9122 = vrot.lane.b32.xlu0 %v9121_v61, %s11393_s24  ;;  %v9141_v16 = vpack.i.bf16 %v18794_v21, %v18793_v46  ;;  %v18803_v21 = vld [vmem:[#allocation187_spill] sm:$0xff] }
 0x158   : > { %v13264_v54 = vpop.permute.xlu1 %8847  ;;  %v9166_v46 = vpack.i.bf16 %v18804_v34, %v18803_v21  ;;  %v18816_v34 = vld [vmem:[#allocation204_spill] sm:$0xff] }
 0x159   : > { %18789 = vst [vmem:[#allocation107_spill] sm:$0xff] %v13264_v54  ;;  %v13266_v38 = vpop.permute.xlu0 %8842 }
 0x15a   : > { %18790 = vst [vmem:[#allocation108_spill] sm:$0xff] %v13266_v38  ;;  %9137 = vrot.lane.b32.xlu1 %v9136_v50, %s11393_s24  ;;  %v18799_v50 = vld [vmem:[#allocation183_spill] sm:$0xff] }
 0x15b   : > { %9132 = vrot.lane.b32.xlu0 %v9131_v59, %s11393_s24  ;;  %v9151_v39 = vpack.i.bf16 %v18800_v45, %v18799_v50  ;;  %v18809_v45 = vld [vmem:[#allocation195_spill] sm:$0xff] }
 0x15c   : > { %v13274_v29 = vpop.permute.xlu1 %8857  ;;  %v9176_v50 = vpack.i.bf16 %v18810_v5, %v18809_v45  ;;  %v18822_v5 = vld [vmem:[#allocation212_spill] sm:$0xff] }
 0x15d   : > { %18795 = vst [vmem:[#allocation112_spill] sm:$0xff] %v13274_v29  ;;  %v13276_v61 = vpop.permute.xlu0 %8852  ;;  %v18806_v29 = vld [vmem:[#allocation192_spill] sm:$0xff] }
 0x15e   : > { %18796 = vst [vmem:[#allocation114_spill] sm:$0xff] %v13276_v61  ;;  %9147 = vrot.lane.b32.xlu1 %v9146_v25, %s11393_s24  ;;  %v18805_v25 = vld [vmem:[#allocation191_spill] sm:$0xff] }
 0x15f   : > { %9142 = vrot.lane.b32.xlu0 %v9141_v16, %s11393_s24  ;;  %v9161_v61 = vpack.i.bf16 %v18806_v29, %v18805_v25  ;;  %v18815_v29 = vld [vmem:[#allocation203_spill] sm:$0xff] }
 0x160   : > { %v13284_v17 = vpop.permute.xlu1 %8867  ;;  %v9186_v25 = vpack.i.bf16 %v18816_v34, %v18815_v29  ;;  %v18827_v34 = vld [vmem:[#allocation219_spill] sm:$0xff] }
 0x161   : > { %18801 = vst [vmem:[#allocation115_spill] sm:$0xff] %v13284_v17  ;;  %v13286_v59 = vpop.permute.xlu0 %8862  ;;  %v18812_v17 = vld [vmem:[#allocation200_spill] sm:$0xff] }
 0x162   : > { %18802 = vst [vmem:[#allocation117_spill] sm:$0xff] %v13286_v59  ;;  %9157 = vrot.lane.b32.xlu1 %v9156_v6, %s11393_s24  ;;  %v18811_v6 = vld [vmem:[#allocation199_spill] sm:$0xff] }
 0x163   : > { %9152 = vrot.lane.b32.xlu0 %v9151_v39, %s11393_s24  ;;  %v9171_v59 = vpack.i.bf16 %v18812_v17, %v18811_v6  ;;  %v18821_v17 = vld [vmem:[#allocation211_spill] sm:$0xff] }
 0x164   : > { %v13294_v19 = vpop.permute.xlu1 %8877  ;;  %v9196_v6 = vpack.i.bf16 %v18822_v5, %v18821_v17  ;;  %v18833_v5 = vld [vmem:[#allocation227_spill] sm:$0xff] }
 0x165   : > { %18807 = vst [vmem:[#allocation118_spill] sm:$0xff] %v13294_v19  ;;  %v13296_v16 = vpop.permute.xlu0 %8872 }
 0x166   : > { %18808 = vst [vmem:[#allocation119_spill] sm:$0xff] %v13296_v16  ;;  %9167 = vrot.lane.b32.xlu1 %v9166_v46, %s11393_s24  ;;  %v18817_v46 = vld [vmem:[#allocation207_spill] sm:$0xff]  ;;  %v18818_v16 = vld [vmem:[#allocation208_spill] sm:$0xff] }
 0x167   : > { %9162 = vrot.lane.b32.xlu0 %v9161_v61, %s11393_s24  ;;  %v9181_v19 = vpack.i.bf16 %v18818_v16, %v18817_v46  ;;  %v18826_v16 = vld [vmem:[#allocation218_spill] sm:$0xff] }
 0x168   : > { %v13304_v21 = vpop.permute.xlu1 %8887  ;;  %v9206_v46 = vpack.i.bf16 %v18827_v34, %v18826_v16  ;;  %v18838_v34 = vld [vmem:[#allocation234_spill] sm:$0xff] }
 0x169   : > { %18813 = vst [vmem:[#allocation125_spill] sm:$0xff] %v13304_v21  ;;  %v13306_v39 = vpop.permute.xlu0 %8882 }
 0x16a   : > { %18814 = vst [vmem:[#allocation126_spill] sm:$0xff] %v13306_v39  ;;  %9177 = vrot.lane.b32.xlu1 %v9176_v50, %s11393_s24  ;;  %v18823_v50 = vld [vmem:[#allocation215_spill] sm:$0xff]  ;;  %v18849_v39 = vld [vmem:[#allocation249_spill] sm:$0xff] }
 0x16b   : > { %9172 = vrot.lane.b32.xlu0 %v9171_v59, %s11393_s24  ;;  %v9191_v21 = vpack.i.bf16 %v18823_v50, %v12815_v20  ;;  %v18832_v20 = vld [vmem:[#allocation226_spill] sm:$0xff] }
 0x16c   : > { %v13314_v45 = vpop.permute.xlu1 %8897  ;;  %v9216_v50 = vpack.i.bf16 %v18833_v5, %v18832_v20  ;;  %v18840_v20 = vld [vmem:[#allocation238_spill] sm:$0xff] }
 0x16d   : > { %18819 = vst [vmem:[#allocation132_spill] sm:$0xff] %v13314_v45  ;;  %v13316_v61 = vpop.permute.xlu0 %8892  ;;  %v18829_v45 = vld [vmem:[#allocation223_spill] sm:$0xff] }
 0x16e   : > { %18820 = vst [vmem:[#allocation133_spill] sm:$0xff] %v13316_v61  ;;  %9187 = vrot.lane.b32.xlu1 %v9186_v25, %s11393_s24  ;;  %v18828_v25 = vld [vmem:[#allocation222_spill] sm:$0xff] }
 0x16f   : > { %9182 = vrot.lane.b32.xlu0 %v9181_v19, %s11393_s24  ;;  %v9201_v61 = vpack.i.bf16 %v18829_v45, %v18828_v25  ;;  %v18837_v45 = vld [vmem:[#allocation233_spill] sm:$0xff] }
 0x170   : > { %v13324_v29 = vpop.permute.xlu1 %8907  ;;  %v9226_v25 = vpack.i.bf16 %v18838_v34, %v18837_v45  ;;  %v18845_v45 = vld [vmem:[#allocation245_spill] sm:$0xff] }
 0x171   : > { %18824 = vst [vmem:[#allocation134_spill] sm:$0xff] %v13324_v29  ;;  %v13326_v59 = vpop.permute.xlu0 %8902  ;;  %v9231_v34 = vpack.i.bf16 %v18845_v45, %v12947_v28  ;;  %v11062_v45 = vld [vmem:[%s11503_s21 + $0x448] sm:$0xff] }
 0x172   : > { %18825 = vst [vmem:[#allocation135_spill] sm:$0xff] %v13326_v59  ;;  %9197 = vrot.lane.b32.xlu1 %v9196_v6, %s11393_s24  ;;  %v18834_v6 = vld [vmem:[#allocation230_spill] sm:$0xff] }
 0x173   : > { %9192 = vrot.lane.b32.xlu0 %v9191_v21, %s11393_s24  ;;  %v9211_v29 = vpack.i.bf16 %v18834_v6, %v12881_v48  ;;  %v18843_v48 = vld [vmem:[#allocation241_spill] sm:$0xff]  ;;  %v18844_v6 = vld [vmem:[#allocation242_spill] sm:$0xff] }
 0x174   : > { %v13334_v17 = vpop.permute.xlu1 %8917 }
 0x175   : > { %18830 = vst [vmem:[#allocation140_spill] sm:$0xff] %v13334_v17  ;;  %v13336_v19 = vpop.permute.xlu0 %8912 }
 0x176   : > { %18831 = vst [vmem:[#allocation141_spill] sm:$0xff] %v13336_v19  ;;  %9207 = vrot.lane.b32.xlu1 %v9206_v46, %s11393_s24  ;;  %v18839_v46 = vld [vmem:[#allocation237_spill] sm:$0xff]  ;;  %v11085_v19 = vld [vmem:[%s11503_s21 + $0x68] sm:$0xff] }
 0x177   : > { %9202 = vrot.lane.b32.xlu0 %v9201_v61, %s11393_s24  ;;  %v9221_v5 = vpack.i.bf16 %v18840_v20, %v18839_v46  ;;  %v18848_v20 = vld [vmem:[#allocation248_spill] sm:$0xff]  ;;  %v9351_v60 = vpack.i.bf16 %v11085_v19, %v11084_v12  ;;  %v9376_v12 = vpack.i.bf16 %v11087_v41, %v11086_v47  ;;  %v18876_v19 = vld [vmem:[#allocation6_spill] sm:$0xff]  ;;  %v18879_v47 = vld [vmem:[#allocation23_spill] sm:$0xff] }
 0x178   : > { %v13344_v16 = vpop.permute.xlu1 %8927 }
 0x179   : > { %18835 = vst [vmem:[#allocation143_spill] sm:$0xff] %v13344_v16  ;;  %v13346_v21 = vpop.permute.xlu0 %8922  ;;  %v18861_v16 = vld [vmem:[#allocation5_spill] sm:$0xff] }
 0x17a   : > { %18836 = vst [vmem:[#allocation144_spill] sm:$0xff] %v13346_v21  ;;  %9217 = vrot.lane.b32.xlu1 %v9216_v50, %s11393_s24  ;;  %v9236_v50 = vpack.i.bf16 %v18844_v6, %v18843_v48  ;;  %v11061_v48 = vld [vmem:[%s11503_s21 + $0x418] sm:$0xff]  ;;  %v18863_v21 = vld [vmem:[#allocation131_spill] sm:$0xff] }
 0x17b   : > { %9212 = vrot.lane.b32.xlu0 %v9211_v29, %s11393_s24 }
 0x17c   : > { %v13354_v61 = vpop.permute.xlu1 %8937 }
 0x17d   : > { %18841 = vst [vmem:[#allocation148_spill] sm:$0xff] %v13354_v61  ;;  %v13356_v59 = vpop.permute.xlu0 %8932  ;;  %v11060_v61 = vld [vmem:[%s11503_s21 + $0x410] sm:$0xff] }
 0x17e   : > { %18842 = vst [vmem:[#allocation149_spill] sm:$0xff] %v13356_v59  ;;  %9227 = vrot.lane.b32.xlu1 %v9226_v25, %s11393_s24  ;;  %v9246_v25 = vpack.i.bf16 %v18849_v39, %v18848_v20  ;;  %v11064_v39 = vld [vmem:[%s11503_s21 + $0x438] sm:$0xff] }
 0x17f   : > { %9222 = vrot.lane.b32.xlu0 %v9221_v5, %s11393_s24  ;;  %v9241_v5 = vpack.i.bf16 %v11061_v48, %v11060_v61  ;;  %v11067_v48 = vld [vmem:[%s11503_s21 + $0x478] sm:$0xff] }
 0x180   : > { %v13364_v29 = vpop.permute.xlu1 %8947 }
 0x181   : > { %18846 = vst [vmem:[#allocation151_spill] sm:$0xff] %v13364_v29  ;;  %v13366_v46 = vpop.permute.xlu0 %8942 }
 0x182   : > { %18847 = vst [vmem:[#allocation152_spill] sm:$0xff] %v13366_v46  ;;  %9237 = vrot.lane.b32.xlu1 %v9236_v50, %s11393_s24  ;;  %v11063_v50 = vld [vmem:[%s11503_s21 + $0x450] sm:$0xff] }
 0x183   : > { %9232 = vrot.lane.b32.xlu0 %v9231_v34, %s11393_s24  ;;  %v9256_v29 = vpack.i.bf16 %v11063_v50, %v11062_v45  ;;  %v11065_v34 = vld [vmem:[%s11503_s21 + $0x440] sm:$0xff] }
 0x184   : > { %v13374_v6 = vpop.permute.xlu1 %8957  ;;  %v9251_v20 = vpack.i.bf16 %v11065_v34, %v11064_v39  ;;  %v11068_v45 = vld [vmem:[%s11503_s21 + $0x460] sm:$0xff] }
 0x185   : > { %18850 = vst [vmem:[#allocation155_spill] sm:$0xff] %v13374_v6  ;;  %v13376_v28 = vpop.permute.xlu0 %8952  ;;  %v11071_v34 = vld [vmem:[%s11503_s21 + $0x4a0] sm:$0xff] }
 0x186   : > { %18851 = vst [vmem:[#allocation156_spill] sm:$0xff] %v13376_v28  ;;  %9247 = vrot.lane.b32.xlu1 %v9246_v25, %s11393_s24  ;;  %v11066_v25 = vld [vmem:[%s11503_s21 + $0x470] sm:$0xff] }
 0x187   : > { %9242 = vrot.lane.b32.xlu0 %v9241_v5, %s11393_s24  ;;  %v9266_v6 = vpack.i.bf16 %v11067_v48, %v11066_v25  ;;  %v11069_v5 = vld [vmem:[%s11503_s21 + $0x468] sm:$0xff] }
 0x188   : > { %v13384_v46 = vpop.permute.xlu1 %8967  ;;  %v9261_v50 = vpack.i.bf16 %v11069_v5, %v11068_v45  ;;  %v11072_v25 = vld [vmem:[%s11503_s21 + $0x488] sm:$0xff]  ;;  %v11074_v5 = vld [vmem:[%s11503_s21 + $0x4c0] sm:$0xff] }
 0x189   : > { %18852 = vst [vmem:[#allocation159_spill] sm:$0xff] %v13384_v46  ;;  %v13386_v61 = vpop.permute.xlu0 %8962 }
 0x18a   : > { %18853 = vst [vmem:[#allocation160_spill] sm:$0xff] %v13386_v61  ;;  %9257 = vrot.lane.b32.xlu1 %v9256_v29, %s11393_s24  ;;  %v11070_v29 = vld [vmem:[%s11503_s21 + $0x498] sm:$0xff] }
 0x18b   : > { %9252 = vrot.lane.b32.xlu0 %v9251_v20, %s11393_s24  ;;  %v9276_v46 = vpack.i.bf16 %v11071_v34, %v11070_v29  ;;  %v11073_v20 = vld [vmem:[%s11503_s21 + $0x490] sm:$0xff] }
 0x18c   : > { %v13394_v28 = vpop.permute.xlu1 %8977  ;;  %v9271_v48 = vpack.i.bf16 %v11073_v20, %v11072_v25  ;;  %v11076_v29 = vld [vmem:[%s11503_s21 + $0x4b0] sm:$0xff]  ;;  %v11078_v20 = vld [vmem:[%s11503_s21 + $0x4d8] sm:$0xff] }
 0x18d   : > { %18854 = vst [vmem:[#allocation162_spill] sm:$0xff] %v13394_v28  ;;  %v13396_v39 = vpop.permute.xlu0 %8972  ;;  %v11075_v28 = vld [vmem:[%s11503_s21 + $0x4c8] sm:$0xff] }
 0x18e   : > { %18855 = vst [vmem:[#allocation163_spill] sm:$0xff] %v13396_v39  ;;  %9267 = vrot.lane.b32.xlu1 %v9266_v6, %s11393_s24  ;;  %v9286_v6 = vpack.i.bf16 %v11075_v28, %v11074_v5  ;;  %v11080_v5 = vld [vmem:[%s11503_s21 + $0x50] sm:$0xff] }
 0x18f   : > { %9262 = vrot.lane.b32.xlu0 %v9261_v50, %s11393_s24  ;;  %v11077_v50 = vld [vmem:[%s11503_s21 + $0x4b8] sm:$0xff] }
 0x190   : > { %v13404_v61 = vpop.permute.xlu1 %8987  ;;  %v9281_v34 = vpack.i.bf16 %v11077_v50, %v11076_v29  ;;  %v11081_v29 = vld [vmem:[%s11503_s21 + $0x58] sm:$0xff] }
 0x191   : > { %18856 = vst [vmem:[#allocation167_spill] sm:$0xff] %v13404_v61  ;;  %v13406_v45 = vpop.permute.xlu0 %8982 }
 0x192   : > { %18857 = vst [vmem:[#allocation168_spill] sm:$0xff] %v13406_v45  ;;  %9277 = vrot.lane.b32.xlu1 %v9276_v46, %s11393_s24  ;;  %v11079_v46 = vld [vmem:[%s11503_s21 + $0x4e0] sm:$0xff] }
 0x193   : > { %9272 = vrot.lane.b32.xlu0 %v9271_v48, %s11393_s24  ;;  %v9291_v61 = vpack.i.bf16 %v11079_v46, %v11078_v20  ;;  %v18858_v48 = vld [vmem:[#allocation54_spill] sm:$0xff]  ;;  %v18859_v20 = vld [vmem:[#allocation8_spill] sm:$0xff] }
 0x194   : > { %v13414_v39 = vpop.permute.xlu1 %8997 }
 0x195   : > { %v13416_v25 = vpop.permute.xlu0 %8992 }
 0x196   : > { %9287 = vrot.lane.b32.xlu1 %v9286_v6, %s11393_s24  ;;  %v9301_v6 = vpack.i.bf16 %v11081_v29, %v11080_v5  ;;  %v11082_v5 = vld [vmem:[%s11503_s21 + $0x190] sm:$0xff]  ;;  %v11083_v29 = vld [vmem:[%s11503_s21 + $0x198] sm:$0xff] }
 0x197   : > { %9282 = vrot.lane.b32.xlu0 %v9281_v34, %s11393_s24  ;;  %v9326_v59 = vpack.i.bf16 %v11083_v29, %v11082_v5  ;;  %v18866_v5 = vld [vmem:[#allocation22_spill] sm:$0xff]  ;;  %v18867_v29 = vld [vmem:[#allocation24_spill] sm:$0xff] }
 0x198   : > { %v13422_v45 = vpop.permute.xlu1 %9007 }
 0x199   : > { %v13424_v28 = vpop.permute.xlu0 %9002 }
 0x19a   : > { %9297 = vrot.lane.b32.xlu1 %v18858_v48, %s11394_s25 }
 0x19b   : > { %9292 = vrot.lane.b32.xlu0 %v9291_v61, %s11393_s24  ;;  %v18860_v61 = vld [vmem:[#allocation80_spill] sm:$0xff] }
 0x19c   : > { %v13431_v50 = vpop.permute.xlu1 %9017 }
 0x19d   : > { %v13433_v34 = vpop.permute.xlu0 %9012 }
 0x19e   : > { %9307 = vrot.lane.b32.xlu1 %v18859_v20, %s11395_s26 }
 0x19f   : > { %9302 = vrot.lane.b32.xlu0 %v9301_v6, %s11396_s10 }
 0x1a0   : > { %v13438_v46 = vpop.permute.xlu1 %9027 }
 0x1a1   : > { %v13440_v48 = vpop.permute.xlu0 %9022 }
 0x1a2   : > { %9317 = vrot.lane.b32.xlu1 %v18860_v61, %s11397_s12 }
 0x1a3   : > { %9312 = vrot.lane.b32.xlu0 %v18861_v16, %s11398_s13 }
 0x1a4   : > { %v13448_v54 = vpop.permute.xlu1 %9037 }
 0x1a5   : > { %18862 = vst [vmem:[#allocation171_spill] sm:$0xff] %v13448_v54  ;;  %v13450_v6 = vpop.permute.xlu0 %9032 }
 0x1a6   : > { %9327 = vrot.lane.b32.xlu1 %v9326_v59, %s11396_s10  ;;  %v18870_v59 = vld [vmem:[#allocation53_spill] sm:$0xff] }
 0x1a7   : > { %9322 = vrot.lane.b32.xlu0 %v18863_v21, %s11394_s25 }
 0x1a8   : > { %v13455_v58 = vpop.permute.xlu1 %9047 }
 0x1a9   : > { %18864 = vst [vmem:[#allocation172_spill] sm:$0xff] %v13455_v58  ;;  %v13457_v38 = vpop.permute.xlu0 %9042  ;;  %v11090_v58 = vld [vmem:[%s11503_s21 + $0x1b8] sm:$0xff] }
 0x1aa   : > { %18865 = vst [vmem:[#allocation175_spill] sm:$0xff] %v13457_v38  ;;  %9337 = vrot.lane.b32.xlu1 %v18866_v5, %s11398_s13  ;;  %v9426_v37 = vpack.i.bf16 %v11091_v40, %v11090_v58  ;;  %v18891_v58 = vld [vmem:[#allocation26_spill] sm:$0xff]  ;;  %v8674_v38 = vunpack.i.l.bf16 %v13086_v18 }
 0x1ab   : > { %9332 = vrot.lane.b32.xlu0 %v18867_v29, %s11395_s26  ;;  %v18936_v5 = vld [vmem:[#allocation14_spill] sm:$0xff] }
 0x1ac   : > { %v13463_v16 = vpop.permute.xlu1 %9057 }
 0x1ad   : > { %18868 = vst [vmem:[#allocation176_spill] sm:$0xff] %v13463_v16  ;;  %v13465_v17 = vpop.permute.xlu0 %9052  ;;  %v18878_v16 = vld [vmem:[#allocation21_spill] sm:$0xff] }
 0x1ae   : > { %18869 = vst [vmem:[#allocation179_spill] sm:$0xff] %v13465_v17  ;;  %9347 = vrot.lane.b32.xlu1 %v18870_v59, %s11394_s25  ;;  %v18875_v59 = vld [vmem:[#allocation79_spill] sm:$0xff] }
 0x1af   : > { %9342 = vrot.lane.b32.xlu0 %v18871_v13, %s11397_s12 }
 0x1b0   : > { %v13473_v36 = vpop.permute.xlu1 %9067 }
 0x1b1   : > { %18872 = vst [vmem:[#allocation180_spill] sm:$0xff] %v13473_v36  ;;  %v13475_v15 = vpop.permute.xlu0 %9062 }
 0x1b2   : > { %18873 = vst [vmem:[#allocation183_spill] sm:$0xff] %v13475_v15  ;;  %9357 = vrot.lane.b32.xlu1 %v18874_v43, %s11395_s26 }
 0x1b3   : > { %9352 = vrot.lane.b32.xlu0 %v9351_v60, %s11396_s10  ;;  %v18877_v60 = vld [vmem:[#allocation130_spill] sm:$0xff] }
 0x1b4   : > { %v13480_v26 = vpop.permute.xlu1 %9077 }
 0x1b5   : > { %v13482_v33 = vpop.permute.xlu0 %9072 }
 0x1b6   : > { %9367 = vrot.lane.b32.xlu1 %v18875_v59, %s11397_s12 }
 0x1b7   : > { %9362 = vrot.lane.b32.xlu0 %v18876_v19, %s11398_s13 }
 0x1b8   : > { %v13490_v36 = vpop.permute.xlu1 %9087 }
 0x1b9   : > { %v13492_v15 = vpop.permute.xlu0 %9082 }
 0x1ba   : > { %9377 = vrot.lane.b32.xlu1 %v9376_v12, %s11396_s10  ;;  %v18880_v12 = vld [vmem:[#allocation138_spill] sm:$0xff] }
 0x1bb   : > { %9372 = vrot.lane.b32.xlu0 %v18877_v60, %s11394_s25 }
 0x1bc   : > { %v13497_v55 = vpop.permute.xlu1 %9097 }
 0x1bd   : > { %v13499_v1 = vpop.permute.xlu0 %9092 }
 0x1be   : > { %9387 = vrot.lane.b32.xlu1 %v18878_v16, %s11398_s13  ;;  %v11107_v16 = vld [vmem:[%s11503_s21 + $0xd0] sm:$0xff] }
 0x1bf   : > { %9382 = vrot.lane.b32.xlu0 %v18879_v47, %s11395_s26 }
 0x1c0   : > { %v13505_v41 = vpop.permute.xlu1 %9107 }
 0x1c1   : > { %v13507_v19 = vpop.permute.xlu0 %9102 }
 0x1c2   : > { %9397 = vrot.lane.b32.xlu1 %v18860_v61, %s11394_s25  ;;  %v18886_v61 = vld [vmem:[#allocation89_spill] sm:$0xff] }
 0x1c3   : > { %9392 = vrot.lane.b32.xlu0 %v18880_v12, %s11397_s12 }
 0x1c4   : > { %v13515_v17 = vpop.permute.xlu1 %9117 }
 0x1c5   : > { %18881 = vst [vmem:[#allocation184_spill] sm:$0xff] %v13515_v17  ;;  %v13517_v35 = vpop.permute.xlu0 %9112  ;;  %v18934_v17 = vld [vmem:[#allocation27_spill] sm:$0xff] }
 0x1c6   : > { %18882 = vst [vmem:[#allocation187_spill] sm:$0xff] %v13517_v35  ;;  %9407 = vrot.lane.b32.xlu1 %v18883_v24, %s11395_s26 }
 0x1c7   : > { %9402 = vrot.lane.b32.xlu0 %v9401_v10, %s11396_s10 }
 0x1c8   : > { %v13522_v31 = vpop.permute.xlu1 %9127 }
 0x1c9   : > { %18884 = vst [vmem:[#allocation188_spill] sm:$0xff] %v13522_v31  ;;  %v13524_v42 = vpop.permute.xlu0 %9122 }
 0x1ca   : > { %18885 = vst [vmem:[#allocation191_spill] sm:$0xff] %v13524_v42  ;;  %9417 = vrot.lane.b32.xlu1 %v18886_v61, %s11397_s12  ;;  %v11094_v42 = vld [vmem:[%s11503_s21 + $0x1c8] sm:$0xff] }
 0x1cb   : > { %9412 = vrot.lane.b32.xlu0 %v18859_v20, %s11398_s13 }
 0x1cc   : > { %v13532_v11 = vpop.permute.xlu1 %9137 }
 0x1cd   : > { %18887 = vst [vmem:[#allocation192_spill] sm:$0xff] %v13532_v11  ;;  %v13534_v0 = vpop.permute.xlu0 %9132 }
 0x1ce   : > { %18888 = vst [vmem:[#allocation195_spill] sm:$0xff] %v13534_v0  ;;  %9427 = vrot.lane.b32.xlu1 %v9426_v37, %s11396_s10  ;;  %v11092_v37 = vld [vmem:[%s11503_s21 + $0x88] sm:$0xff]  ;;  %v18897_v0 = vld [vmem:[#allocation9_spill] sm:$0xff] }
 0x1cf   : > { %9422 = vrot.lane.b32.xlu0 %v18871_v13, %s11394_s25  ;;  %v18894_v13 = vld [vmem:[#allocation147_spill] sm:$0xff] }
 0x1d0   : > { %v13539_v10 = vpop.permute.xlu1 %9147 }
 0x1d1   : > { %18889 = vst [vmem:[#allocation196_spill] sm:$0xff] %v13539_v10  ;;  %v13541_v31 = vpop.permute.xlu0 %9142  ;;  %v11093_v10 = vld [vmem:[%s11503_s21 + $0x90] sm:$0xff] }
 0x1d2   : > { %18890 = vst [vmem:[#allocation199_spill] sm:$0xff] %v13541_v31  ;;  %9437 = vrot.lane.b32.xlu1 %v18867_v29, %s11398_s13  ;;  %v9451_v31 = vpack.i.bf16 %v11093_v10, %v11092_v37  ;;  %v9476_v10 = vpack.i.bf16 %v11095_v23, %v11094_v42  ;;  %v18905_v42 = vld [vmem:[#allocation25_spill] sm:$0xff] }
 0x1d3   : > { %9432 = vrot.lane.b32.xlu0 %v18891_v58, %s11395_s26 }
 0x1d4   : > { %v13547_v40 = vpop.permute.xlu1 %9157 }
 0x1d5   : > { %18892 = vst [vmem:[#allocation200_spill] sm:$0xff] %v13547_v40  ;;  %v13549_v20 = vpop.permute.xlu0 %9152 }
 0x1d6   : > { %18893 = vst [vmem:[#allocation203_spill] sm:$0xff] %v13549_v20  ;;  %9447 = vrot.lane.b32.xlu1 %v18875_v59, %s11394_s25  ;;  %v18900_v59 = vld [vmem:[#allocation86_spill] sm:$0xff] }
 0x1d7   : > { %9442 = vrot.lane.b32.xlu0 %v18894_v13, %s11397_s12 }
 0x1d8   : > { %v13557_v11 = vpop.permute.xlu1 %9167 }
 0x1d9   : > { %18895 = vst [vmem:[#allocation204_spill] sm:$0xff] %v13557_v11  ;;  %v13559_v29 = vpop.permute.xlu0 %9162 }
 0x1da   : > { %18896 = vst [vmem:[#allocation207_spill] sm:$0xff] %v13559_v29  ;;  %9457 = vrot.lane.b32.xlu1 %v18897_v0, %s11395_s26  ;;  %v11099_v29 = vld [vmem:[%s11503_s21 + $0x1e8] sm:$0xff] }
 0x1db   : > { %9452 = vrot.lane.b32.xlu0 %v9451_v31, %s11396_s10 }
 0x1dc   : > { %v13564_v40 = vpop.permute.xlu1 %9177 }
 0x1dd   : > { %18898 = vst [vmem:[#allocation208_spill] sm:$0xff] %v13564_v40  ;;  %v13566_v20 = vpop.permute.xlu0 %9172 }
 0x1de   : > { %18899 = vst [vmem:[#allocation211_spill] sm:$0xff] %v13566_v20  ;;  %9467 = vrot.lane.b32.xlu1 %v18900_v59, %s11397_s12  ;;  %v11098_v20 = vld [vmem:[%s11503_s21 + $0x1e0] sm:$0xff] }
 0x1df   : > { %9462 = vrot.lane.b32.xlu0 %v18874_v43, %s11398_s13 }
 0x1e0   : > { %v13574_v37 = vpop.permute.xlu1 %9187 }
 0x1e1   : > { %18901 = vst [vmem:[#allocation212_spill] sm:$0xff] %v13574_v37  ;;  %v13576_v11 = vpop.permute.xlu0 %9182 }
 0x1e2   : > { %18902 = vst [vmem:[#allocation215_spill] sm:$0xff] %v13576_v11  ;;  %9477 = vrot.lane.b32.xlu1 %v9476_v10, %s11396_s10  ;;  %v11096_v10 = vld [vmem:[%s11503_s21 + $0xa0] sm:$0xff]  ;;  %v18911_v11 = vld [vmem:[#allocation12_spill] sm:$0xff] }
 0x1e3   : > { %9472 = vrot.lane.b32.xlu0 %v18880_v12, %s11394_s25  ;;  %v18908_v12 = vld [vmem:[#allocation146_spill] sm:$0xff] }
 0x1e4   : > { %v13581_v31 = vpop.permute.xlu1 %9197 }
 0x1e5   : > { %18903 = vst [vmem:[#allocation218_spill] sm:$0xff] %v13581_v31  ;;  %v13583_v40 = vpop.permute.xlu0 %9192  ;;  %v11097_v31 = vld [vmem:[%s11503_s21 + $0xa8] sm:$0xff] }
 0x1e6   : > { %18904 = vst [vmem:[#allocation219_spill] sm:$0xff] %v13583_v40  ;;  %9487 = vrot.lane.b32.xlu1 %v18879_v47, %s11398_s13  ;;  %v9501_v40 = vpack.i.bf16 %v11097_v31, %v11096_v10  ;;  %v9526_v31 = vpack.i.bf16 %v11099_v29, %v11098_v20  ;;  %v18919_v20 = vld [vmem:[#allocation28_spill] sm:$0xff] }
 0x1e7   : > { %9482 = vrot.lane.b32.xlu0 %v18905_v42, %s11395_s26 }
 0x1e8   : > { %v13589_v43 = vpop.permute.xlu1 %9207 }
 0x1e9   : > { %18906 = vst [vmem:[#allocation222_spill] sm:$0xff] %v13589_v43  ;;  %v13591_v23 = vpop.permute.xlu0 %9202 }
 0x1ea   : > { %18907 = vst [vmem:[#allocation223_spill] sm:$0xff] %v13591_v23  ;;  %9497 = vrot.lane.b32.xlu1 %v18886_v61, %s11394_s25  ;;  %v18914_v61 = vld [vmem:[#allocation97_spill] sm:$0xff] }
 0x1eb   : > { %9492 = vrot.lane.b32.xlu0 %v18908_v12, %s11397_s12 }
 0x1ec   : > { %v13599_v37 = vpop.permute.xlu1 %9217 }
 0x1ed   : > { %18909 = vst [vmem:[#allocation226_spill] sm:$0xff] %v13599_v37  ;;  %v13601_v47 = vpop.permute.xlu0 %9212 }
 0x1ee   : > { %18910 = vst [vmem:[#allocation227_spill] sm:$0xff] %v13601_v47  ;;  %9507 = vrot.lane.b32.xlu1 %v18911_v11, %s11395_s26 }
 0x1ef   : > { %9502 = vrot.lane.b32.xlu0 %v9501_v40, %s11396_s10 }
 0x1f0   : > { %v13606_v43 = vpop.permute.xlu1 %9227 }
 0x1f1   : > { %18912 = vst [vmem:[#allocation230_spill] sm:$0xff] %v13606_v43  ;;  %v13608_v23 = vpop.permute.xlu0 %9222 }
 0x1f2   : > { %18913 = vst [vmem:[#allocation233_spill] sm:$0xff] %v13608_v23  ;;  %9517 = vrot.lane.b32.xlu1 %v18914_v61, %s11397_s12  ;;  %v11101_v23 = vld [vmem:[%s11503_s21 + $0xb8] sm:$0xff] }
 0x1f3   : > { %9512 = vrot.lane.b32.xlu0 %v18883_v24, %s11398_s13 }
 0x1f4   : > { %v13616_v10 = vpop.permute.xlu1 %9237 }
 0x1f5   : > { %18915 = vst [vmem:[#allocation234_spill] sm:$0xff] %v13616_v10  ;;  %v13618_v37 = vpop.permute.xlu0 %9232  ;;  %v11102_v10 = vld [vmem:[%s11503_s21 + $0x1f0] sm:$0xff] }
 0x1f6   : > { %18916 = vst [vmem:[#allocation237_spill] sm:$0xff] %v13618_v37  ;;  %9527 = vrot.lane.b32.xlu1 %v9526_v31, %s11396_s10  ;;  %v11100_v31 = vld [vmem:[%s11503_s21 + $0xb0] sm:$0xff]  ;;  %v11103_v37 = vld [vmem:[%s11503_s21 + $0x1f8] sm:$0xff] }
 0x1f7   : > { %9522 = vrot.lane.b32.xlu0 %v18894_v13, %s11394_s25  ;;  %v18922_v13 = vld [vmem:[#allocation157_spill] sm:$0xff]  ;;  %v9551_v47 = vpack.i.bf16 %v11101_v23, %v11100_v31  ;;  %v9576_v23 = vpack.i.bf16 %v11103_v37, %v11102_v10  ;;  %v11104_v10 = vld [vmem:[%s11503_s21 + $0x8] sm:$0xff] }
 0x1f8   : > { %v13623_v40 = vpop.permute.xlu1 %9247 }
 0x1f9   : > { %18917 = vst [vmem:[#allocation238_spill] sm:$0xff] %v13623_v40  ;;  %v13625_v43 = vpop.permute.xlu0 %9242 }
 0x1fa   : > { %18918 = vst [vmem:[#allocation241_spill] sm:$0xff] %v13625_v43  ;;  %9537 = vrot.lane.b32.xlu1 %v18891_v58, %s11398_s13  ;;  %v18925_v43 = vld [vmem:[#allocation11_spill] sm:$0xff] }
 0x1fb   : > { %9532 = vrot.lane.b32.xlu0 %v18919_v20, %s11395_s26 }
 0x1fc   : > { %v13631_v24 = vpop.permute.xlu1 %9257 }
 0x1fd   : > { %18920 = vst [vmem:[#allocation242_spill] sm:$0xff] %v13631_v24  ;;  %v13633_v29 = vpop.permute.xlu0 %9252 }
 0x1fe   : > { %18921 = vst [vmem:[#allocation245_spill] sm:$0xff] %v13633_v29  ;;  %9547 = vrot.lane.b32.xlu1 %v18900_v59, %s11394_s25  ;;  %v18928_v59 = vld [vmem:[#allocation91_spill] sm:$0xff] }
 0x1ff   : > { %9542 = vrot.lane.b32.xlu0 %v18922_v13, %s11397_s12 }
 0x200   : > { %v13641_v40 = vpop.permute.xlu1 %9267 }
 0x201   : > { %18923 = vst [vmem:[#allocation248_spill] sm:$0xff] %v13641_v40  ;;  %v13643_v58 = vpop.permute.xlu0 %9262 }
 0x202   : > { %18924 = vst [vmem:[#allocation249_spill] sm:$0xff] %v13643_v58  ;;  %9557 = vrot.lane.b32.xlu1 %v18925_v43, %s11395_s26 }
 0x203   : > { %9552 = vrot.lane.b32.xlu0 %v9551_v47, %s11396_s10  ;;  %v18931_v47 = vld [vmem:[#allocation66_spill] sm:$0xff] }
 0x204   : > { %v13648_v24 = vpop.permute.xlu1 %9277  ;;  %v8355_v58 = vunpack.i.h.bf16 %v18931_v47 }
 0x205   : > { %18926 = vst [vmem:[#allocation54_spill] sm:$0xff] %v13648_v24  ;;  %v13650_v29 = vpop.permute.xlu0 %9272  ;;  %v8354_v24 = vunpack.i.l.bf16 %v18931_v47 }
 0x206   : > { %18927 = vst [vmem:[#allocation8_spill] sm:$0xff] %v13650_v29  ;;  %9567 = vrot.lane.b32.xlu1 %v18928_v59, %s11397_s12  ;;  %v8675_v29 = vunpack.i.h.bf16 %v13086_v18 }
 0x207   : > { %9562 = vrot.lane.b32.xlu0 %v18897_v0, %s11398_s13 }
 0x208   : > { %v13658_v31 = vpop.permute.xlu1 %9287 }
 0x209   : > { %18929 = vst [vmem:[#allocation80_spill] sm:$0xff] %v13658_v31  ;;  %v13660_v40 = vpop.permute.xlu0 %9282  ;;  %v4332_v31 = vsel %vm4330_vm2, %v11104_v10, %v8355_v58 }
 0x20a   : > { %18930 = vst [vmem:[#allocation5_spill] sm:$0xff] %v13660_v40  ;;  %9577 = vrot.lane.b32.xlu1 %v9576_v23, %s11396_s10  ;;  %v11105_v40 = vld [vmem:[%s11503_s21] sm:$0xff]  ;;  %v11106_v23 = vld [vmem:[%s11503_s21 + $0xc8] sm:$0xff] }
 0x20b   : > { %9572 = vrot.lane.b32.xlu0 %v18908_v12, %s11394_s25  ;;  %v4331_v47 = vsel %vm4330_vm2, %v11105_v40, %v8354_v24  ;;  %v4461_v12 = vsel %vm4459_vm3, %v4332_v31, %v8675_v29  ;;  %v8994_v40 = vunpack.i.l.bf16 %v13416_v25  ;;  %v8995_v31 = vunpack.i.h.bf16 %v13416_v25 }
 0x20c   : > { %v9298_v0 = vpop.permute.xlu1 %9297  ;;  %v4460_v60 = vsel %vm4459_vm3, %v4331_v47, %v8674_v38  ;;  %v9601_v7 = vpack.i.bf16 %v11107_v16, %v11106_v23 }
 0x20d   : > { %v13669_v37 = vpop.permute.xlu0 %9292  ;;  %v9300_v58 = vunpack.i.h.bf16 %v9298_v0 }
 0x20e   : > { %18932 = vst [vmem:[#allocation24_spill] sm:$0xff] %v13669_v37  ;;  %9587 = vrot.lane.b32.xlu1 %v18905_v42, %s11398_s13  ;;  %v9299_v42 = vunpack.i.l.bf16 %v9298_v0  ;;  %v18935_v37 = vld [vmem:[#allocation154_spill] sm:$0xff] }
 0x20f   : > { %9582 = vrot.lane.b32.xlu0 %v18934_v17, %s11395_s26 }
 0x210   : > { %v9308_v24 = vpop.permute.xlu1 %9307 }
 0x211   : > { %v9303_v10 = vpop.permute.xlu0 %9302  ;;  %v9310_v18 = vunpack.i.h.bf16 %v9308_v24  ;;  %v9309_v38 = vunpack.i.l.bf16 %v9308_v24 }
 0x212   : > { %v9305_v47 = vunpack.i.h.bf16 %v9303_v10  ;;  %v9304_v29 = vunpack.i.l.bf16 %v9303_v10  ;;  %9597 = vrot.lane.b32.xlu1 %v18914_v61, %s11394_s25  ;;  %v4589_v10 = vsel %vm4588_vm4, %v4460_v60, %v8994_v40 }
 0x213   : > { %9592 = vrot.lane.b32.xlu0 %v18935_v37, %s11397_s12 }
 0x214   : > { %v9318_v0 = vpop.permute.xlu1 %9317  ;;  %v4976_v54 = vsel %vm4975_vm5, %v9299_v42, %v9304_v29  ;;  %v4977_v24 = vsel %vm4975_vm5, %v9300_v58, %v9305_v47 }
 0x215   : > { %v9320_v3 = vunpack.i.h.bf16 %v9318_v0  ;;  %v9319_v61 = vunpack.i.l.bf16 %v9318_v0  ;;  %v9313_v21 = vpop.permute.xlu0 %9312  ;;  %v5105_v16 = vsel %vm5104_vm6, %v4976_v54, %v9309_v38  ;;  %v5106_v23 = vsel %vm5104_vm6, %v4977_v24, %v9310_v18  ;;  %v18940_v38 = vld [vmem:[#allocation70_spill] sm:$0xff] }
 0x216   : > { %v9315_v25 = vunpack.i.h.bf16 %v9313_v21  ;;  %v9314_v35 = vunpack.i.l.bf16 %v9313_v21  ;;  %9607 = vrot.lane.b32.xlu1 %v18936_v5, %s11395_s26  ;;  %v4590_v21 = vsel %vm4588_vm4, %v4461_v12, %v8995_v31  ;;  %v8754_v54 = vunpack.i.l.bf16 %v13176_v53 }
 0x217   : > { %9602 = vrot.lane.b32.xlu0 %v9601_v7, %s11396_s10  ;;  %v5234_v47 = vsel %vm5233_vm7, %v5105_v16, %v9319_v61  ;;  %v5235_v29 = vsel %vm5233_vm7, %v5106_v23, %v9320_v3  ;;  %v8360_v0 = vunpack.i.h.bf16 %v18940_v38  ;;  %v9075_v12 = vunpack.i.h.bf16 %v13482_v33  ;;  %v18941_v23 = vld [vmem:[#allocation101_spill] sm:$0xff] }
 0x218   : > { %v9328_v40 = vpop.permute.xlu1 %9327  ;;  %v13710_v18 = vpack.c.bf16 %v5235_v29, %v5234_v47  ;;  %v4718_v7 = vsel %vm4717_vm8, %v4589_v10, %v9314_v35  ;;  %v4719_v3 = vsel %vm4717_vm8, %v4590_v21, %v9315_v25  ;;  %v9074_v31 = vunpack.i.l.bf16 %v13482_v33  ;;  %v11108_v10 = vld [vmem:[%s11503_s21 + $0x208] sm:$0xff]  ;;  %v11109_v25 = vld [vmem:[%s11503_s21 + $0x210] sm:$0xff]  ;;  %v11111_v33 = vld [vmem:[%s11503_s21 + $0x140] sm:$0xff] }
 0x219   : > { %v9323_v24 = vpop.permute.xlu0 %9322  ;;  %v4847_v61 = vsel %vm4846_vm10, %v4718_v7, %v9299_v42  ;;  %v4848_v16 = vsel %vm4846_vm10, %v4719_v3, %v9300_v58  ;;  %v9626_v47 = vpack.i.bf16 %v11109_v25, %v11108_v10  ;;  %v8359_v42 = vunpack.i.l.bf16 %v18940_v38  ;;  %v11110_v29 = vld [vmem:[%s11503_s21 + $0x148] sm:$0xff] }
 0x21a   : > { %18939 = vst [vmem:[#allocation53_spill] sm:$0xff] %v13710_v18  ;;  %9617 = vrot.lane.b32.xlu1 %v18941_v23, %s11397_s12  ;;  %7638 = vmatprep.subr.msk.bf16.mxu0 %vm13704_vm11, %v13710_v18  ;;  %v13724_v35 = vpack.c.bf16 %v4848_v16, %v4847_v61  ;;  %v18943_v58 = vunpack.i.h.bf16 %v18933_v22  ;;  %v18944_v7 = vunpack.i.l.bf16 %v18933_v22  ;;  %v18945_v16 = vunpack.i.h.bf16 %v13176_v53 }
 0x21b   : > { %9612 = vrot.lane.b32.xlu0 %v18911_v11, %s11398_s13  ;;  %v9330_v38 = vunpack.i.h.bf16 %v9328_v40  ;;  %v9329_v25 = vunpack.i.l.bf16 %v9328_v40  ;;  %v9324_v22 = vunpack.i.l.bf16 %v9323_v24 }
 0x21c   : > { %18942 = vst [vmem:[#allocation139_spill] sm:$0xff] %v13724_v35  ;;  %v4364_v21 = vsel %vm4330_vm2, %v11110_v29, %v18943_v58  ;;  %v4363_v3 = vsel %vm4330_vm2, %v11111_v33, %v18944_v7  ;;  %7640 = vmatpush1.bf16.xpose.msra.mxu0 %v13724_v35  ;;  %v9338_v29 = vpop.permute.xlu1 %9337  ;;  %v9325_v58 = vunpack.i.h.bf16 %v9323_v24 }
 0x21d   : > { %v4492_v61 = vsel %vm4459_vm3, %v4363_v3, %v8754_v54  ;;  %v4493_v10 = vsel %vm4459_vm3, %v4364_v21, %v18945_v16  ;;  %v9340_v18 = vunpack.i.h.bf16 %v9338_v29  ;;  %v9339_v33 = vunpack.i.l.bf16 %v9338_v29  ;;  %v9333_v7 = vpop.permute.xlu0 %9332  ;;  %v11112_v16 = vld [vmem:[%s11503_s21 + $0x18] sm:$0xff]  ;;  %v11113_v29 = vld [vmem:[%s11503_s21 + $0x10] sm:$0xff] }
 0x21e   : > { %9627 = vrot.lane.b32.xlu1 %v9626_v47, %s11396_s10  ;;  %v4621_v11 = vsel %vm4588_vm4, %v4492_v61, %v9074_v31  ;;  %v4622_v53 = vsel %vm4588_vm4, %v4493_v10, %v9075_v12  ;;  %v9335_v54 = vunpack.i.h.bf16 %v9333_v7  ;;  %v9334_v21 = vunpack.i.l.bf16 %v9333_v7  ;;  %v18946_v47 = vld [vmem:[#allocation106_spill] sm:$0xff] }
 0x21f   : > { %9622 = vrot.lane.b32.xlu0 %v18922_v13, %s11394_s25  ;;  %v4750_v40 = vsel %vm4717_vm8, %v4621_v11, %v9339_v33  ;;  %v4751_v3 = vsel %vm4717_vm8, %v4622_v53, %v9340_v18  ;;  %v4334_v24 = vsel %vm4330_vm2, %v11112_v16, %v8360_v0  ;;  %v4333_v35 = vsel %vm4330_vm2, %v11113_v29, %v8359_v42  ;;  %v18947_v11 = vld [vmem:[#allocation30_spill] sm:$0xff] }
 0x220   : > { %v13756_v31 = vpop.permute.xlu1 %9347  ;;  %v8680_v12 = vunpack.i.h.bf16 %v13080_v14  ;;  %v5008_v10 = vsel %vm4975_vm5, %v9324_v22, %v9329_v25  ;;  %v5009_v13 = vsel %vm4975_vm5, %v9325_v58, %v9330_v38  ;;  %v4879_v18 = vsel %vm4846_vm10, %v4750_v40, %v9324_v22 }
 0x221   : > { %v9343_v61 = vpop.permute.xlu0 %9342  ;;  %v4880_v0 = vsel %vm4846_vm10, %v4751_v3, %v9325_v58  ;;  %v8679_v42 = vunpack.i.l.bf16 %v13080_v14  ;;  %v5137_v53 = vsel %vm5104_vm6, %v5008_v10, %v9334_v21  ;;  %v5138_v25 = vsel %vm5104_vm6, %v5009_v13, %v9335_v54 }
 0x222   : > { %v9345_v33 = vunpack.i.h.bf16 %v9343_v61  ;;  %v9344_v7 = vunpack.i.l.bf16 %v9343_v61  ;;  %9637 = vrot.lane.b32.xlu1 %v18919_v20, %s11398_s13  ;;  %v8999_v38 = vunpack.i.l.bf16 %v13414_v39  ;;  %v9350_v22 = vunpack.i.h.bf16 %v13756_v31 }
 0x223   : > { %9632 = vrot.lane.b32.xlu0 %v18947_v11, %s11395_s26  ;;  %v9349_v14 = vunpack.i.l.bf16 %v13756_v31  ;;  %v13777_v3 = vpack.c.bf16 %v4880_v0, %v4879_v18  ;;  %v8439_v13 = vunpack.i.l.bf16 %v18946_v47  ;;  %v18949_v31 = vld [vmem:[#allocation165_spill] sm:$0xff]  ;;  %v11114_v18 = vld [vmem:[%s11503_s21 + $0xd8] sm:$0xff] }
 0x224   : > { %v9358_v16 = vpop.permute.xlu1 %9357  ;;  %v5266_v29 = vsel %vm5233_vm7, %v5137_v53, %v9344_v7  ;;  %v5267_v20 = vsel %vm5233_vm7, %v5138_v25, %v9345_v33  ;;  %v4462_v33 = vsel %vm4459_vm3, %v4333_v35, %v8679_v42  ;;  %v9000_v7 = vunpack.i.h.bf16 %v13414_v39  ;;  %v11115_v0 = vld [vmem:[%s11503_s21 + $0xe0] sm:$0xff] }
 0x225   : > { %v9353_v58 = vpop.permute.xlu0 %9352  ;;  %v13775_v40 = vpack.c.bf16 %v5267_v20, %v5266_v29  ;;  %18948 = vst [vmem:[#allocation7_spill] sm:$0xff] %v13777_v3  ;;  %v9360_v21 = vunpack.i.h.bf16 %v9358_v16  ;;  %v9359_v54 = vunpack.i.l.bf16 %v9358_v16  ;;  %v9651_v53 = vpack.i.bf16 %v11115_v0, %v11114_v18 }
 0x226   : > { %v9355_v61 = vunpack.i.h.bf16 %v9353_v58  ;;  %v9354_v10 = vunpack.i.l.bf16 %v9353_v58  ;;  %9647 = vrot.lane.b32.xlu1 %v18928_v59, %s11394_s25  ;;  %v4463_v25 = vsel %vm4459_vm3, %v4334_v24, %v8680_v12  ;;  %v8760_v59 = vunpack.i.h.bf16 %v13174_v62  ;;  %v18950_v12 = vld [vmem:[#allocation13_spill] sm:$0xff] }
 0x227   : > { %9642 = vrot.lane.b32.xlu0 %v18949_v31, %s11397_s12  ;;  %7718 = vmatprep.subr.msk.bf16.mxu1 %vm13704_vm11, %v13775_v40  ;;  %v4591_v42 = vsel %vm4588_vm4, %v4462_v33, %v8999_v38  ;;  %v8759_v38 = vunpack.i.l.bf16 %v13174_v62  ;;  %v9079_v62 = vunpack.i.l.bf16 %v13480_v26 }
 0x228   : > { %v4979_v16 = vsel %vm4975_vm5, %v9350_v22, %v9355_v61  ;;  %v4978_v35 = vsel %vm4975_vm5, %v9349_v14, %v9354_v10  ;;  %7720 = vmatpush1.bf16.xpose.msra.mxu1 %v13777_v3  ;;  %v9368_v39 = vpop.permute.xlu1 %9367  ;;  %v4592_v61 = vsel %vm4588_vm4, %v4463_v25, %v9000_v7 }
 0x229   : > { %v9370_v29 = vunpack.i.h.bf16 %v9368_v39  ;;  %v9369_v20 = vunpack.i.l.bf16 %v9368_v39  ;;  %v9363_v58 = vpop.permute.xlu0 %9362  ;;  %v5107_v2 = vsel %vm5104_vm6, %v4978_v35, %v9359_v54  ;;  %v5108_v18 = vsel %vm5104_vm6, %v4979_v16, %v9360_v21  ;;  %v18951_v35 = vld [vmem:[#allocation65_spill] sm:$0xff] }
 0x22a   : > { %v9365_v0 = vunpack.i.h.bf16 %v9363_v58  ;;  %v9364_v24 = vunpack.i.l.bf16 %v9363_v58  ;;  %9657 = vrot.lane.b32.xlu1 %v18950_v12, %s11395_s26  ;;  %v8365_v7 = vunpack.i.h.bf16 %v18951_v35 }
 0x22b   : > { %v5236_v10 = vsel %vm5233_vm7, %v5107_v2, %v9369_v20  ;;  %v5237_v3 = vsel %vm5233_vm7, %v5108_v18, %v9370_v29  ;;  %9652 = vrot.lane.b32.xlu0 %v9651_v53, %s11396_s10  ;;  %v9080_v53 = vunpack.i.h.bf16 %v13480_v26  ;;  %v11116_v29 = vld [vmem:[%s11503_s21 + $0x218] sm:$0xff]  ;;  %v11117_v20 = vld [vmem:[%s11503_s21 + $0x220] sm:$0xff]  ;;  %v11119_v26 = vld [vmem:[%s11503_s21 + $0x150] sm:$0xff] }
 0x22c   : > { %v9378_v54 = vpop.permute.xlu1 %9377  ;;  %v13806_v33 = vpack.c.bf16 %v5237_v3, %v5236_v10  ;;  %v4720_v21 = vsel %vm4717_vm8, %v4591_v42, %v9364_v24  ;;  %v4721_v16 = vsel %vm4717_vm8, %v4592_v61, %v9365_v0  ;;  %v18952_v3 = vld [vmem:[#allocation100_spill] sm:$0xff]  ;;  %v9676_v58 = vpack.i.bf16 %v11117_v20, %v11116_v29 }
 0x22d   : > { %v9373_v2 = vpop.permute.xlu0 %9372  ;;  %v4849_v25 = vsel %vm4846_vm10, %v4720_v21, %v9349_v14  ;;  %v4850_v39 = vsel %vm4846_vm10, %v4721_v16, %v9350_v22  ;;  %v8364_v14 = vunpack.i.l.bf16 %v18951_v35  ;;  %v11118_v18 = vld [vmem:[%s11503_s21 + $0x158] sm:$0xff]  ;;  %v18953_v22 = vunpack.i.h.bf16 %v18946_v47 }
 0x22e   : > { %9667 = vrot.lane.b32.xlu1 %v18952_v3, %s11397_s12  ;;  %7643 = vmatprep.subr.msk.bf16.mxu0 %vm13704_vm11, %v13806_v33  ;;  %v13820_v42 = vpack.c.bf16 %v4850_v39, %v4849_v25  ;;  %v4365_v24 = vsel %vm4330_vm2, %v11119_v26, %v8439_v13  ;;  %v9380_v21 = vunpack.i.h.bf16 %v9378_v54  ;;  %v9379_v16 = vunpack.i.l.bf16 %v9378_v54 }
 0x22f   : > { %v4366_v0 = vsel %vm4330_vm2, %v11118_v18, %v18953_v22  ;;  %9662 = vrot.lane.b32.xlu0 %v18925_v43, %s11398_s13  ;;  %v4494_v10 = vsel %vm4459_vm3, %v4365_v24, %v8759_v38  ;;  %v9375_v47 = vunpack.i.h.bf16 %v9373_v2  ;;  %v9374_v25 = vunpack.i.l.bf16 %v9373_v2  ;;  %v11120_v22 = vld [vmem:[%s11503_s21 + $0x30] sm:$0xff] }
 0x230   : > { %v4495_v61 = vsel %vm4459_vm3, %v4366_v0, %v8760_v59  ;;  %7645 = vmatpush1.bf16.xpose.msra.mxu0 %v13820_v42  ;;  %v9388_v35 = vpop.permute.xlu1 %9387  ;;  %v4623_v13 = vsel %vm4588_vm4, %v4494_v10, %v9079_v62  ;;  %v4336_v2 = vsel %vm4330_vm2, %v11120_v22, %v8365_v7  ;;  %v11121_v0 = vld [vmem:[%s11503_s21 + $0x28] sm:$0xff]  ;;  %v18954_v62 = vld [vmem:[#allocation116_spill] sm:$0xff] }
 0x231   : > { %v9390_v39 = vunpack.i.h.bf16 %v9388_v35  ;;  %v9389_v29 = vunpack.i.l.bf16 %v9388_v35  ;;  %v9383_v20 = vpop.permute.xlu0 %9382  ;;  %v4624_v43 = vsel %vm4588_vm4, %v4495_v61, %v9080_v53  ;;  %v4335_v26 = vsel %vm4330_vm2, %v11121_v0, %v8364_v14 }
 0x232   : > { %9677 = vrot.lane.b32.xlu1 %v9676_v58, %s11396_s10  ;;  %v9385_v59 = vunpack.i.h.bf16 %v9383_v20  ;;  %v9384_v38 = vunpack.i.l.bf16 %v9383_v20  ;;  %v8685_v58 = vunpack.i.h.bf16 %v13102_v4  ;;  %v5011_v61 = vsel %vm4975_vm5, %v9375_v47, %v9380_v21  ;;  %v18955_v21 = vld [vmem:[#allocation29_spill] sm:$0xff] }
 0x233   : > { %9672 = vrot.lane.b32.xlu0 %v18935_v37, %s11394_s25  ;;  %v4752_v54 = vsel %vm4717_vm8, %v4623_v13, %v9389_v29  ;;  %v4753_v18 = vsel %vm4717_vm8, %v4624_v43, %v9390_v39  ;;  %v5010_v37 = vsel %vm4975_vm5, %v9374_v25, %v9379_v16  ;;  %v8684_v39 = vunpack.i.l.bf16 %v13102_v4 }
 0x234   : > { %v13848_v53 = vpop.permute.xlu1 %9397  ;;  %v4881_v7 = vsel %vm4846_vm10, %v4752_v54, %v9374_v25  ;;  %v4882_v14 = vsel %vm4846_vm10, %v4753_v18, %v9375_v47  ;;  %v5139_v20 = vsel %vm5104_vm6, %v5010_v37, %v9384_v38  ;;  %v5140_v13 = vsel %vm5104_vm6, %v5011_v61, %v9385_v59 }
 0x235   : > { %v9393_v10 = vpop.permute.xlu0 %9392  ;;  %v9004_v16 = vunpack.i.l.bf16 %v13424_v28  ;;  %v9400_v25 = vunpack.i.h.bf16 %v13848_v53  ;;  %v9399_v4 = vunpack.i.l.bf16 %v13848_v53  ;;  %v13869_v59 = vpack.c.bf16 %v4882_v14, %v4881_v7  ;;  %v18956_v53 = vld [vmem:[#allocation164_spill] sm:$0xff] }
 0x236   : > { %v9395_v35 = vunpack.i.h.bf16 %v9393_v10  ;;  %v9394_v29 = vunpack.i.l.bf16 %v9393_v10  ;;  %9687 = vrot.lane.b32.xlu1 %v18934_v17, %s11398_s13  ;;  %v8444_v37 = vunpack.i.l.bf16 %v18954_v62  ;;  %v4465_v10 = vsel %vm4459_vm3, %v4336_v2, %v8685_v58  ;;  %v11123_v7 = vld [vmem:[%s11503_s21 + $0xf8] sm:$0xff] }
 0x237   : > { %9682 = vrot.lane.b32.xlu0 %v18955_v21, %s11395_s26 }
 0x238   : > { %v5268_v43 = vsel %vm5233_vm7, %v5139_v20, %v9394_v29  ;;  %v5269_v22 = vsel %vm5233_vm7, %v5140_v13, %v9395_v35  ;;  %v9408_v17 = vpop.permute.xlu1 %9407  ;;  %v9005_v35 = vunpack.i.h.bf16 %v13424_v28  ;;  %v11122_v29 = vld [vmem:[%s11503_s21 + $0xf0] sm:$0xff]  ;;  %v4464_v20 = vsel %vm4459_vm3, %v4335_v26, %v8684_v39  ;;  %v18957_v39 = vld [vmem:[#allocation16_spill] sm:$0xff] }
 0x239   : > { %v9403_v47 = vpop.permute.xlu0 %9402  ;;  %v13867_v38 = vpack.c.bf16 %v5269_v22, %v5268_v43  ;;  %v9410_v54 = vunpack.i.h.bf16 %v9408_v17  ;;  %v9409_v18 = vunpack.i.l.bf16 %v9408_v17  ;;  %v9701_v14 = vpack.i.bf16 %v11123_v7, %v11122_v29 }
 0x23a   : > { %v9405_v0 = vunpack.i.h.bf16 %v9403_v47  ;;  %v9404_v61 = vunpack.i.l.bf16 %v9403_v47  ;;  %9697 = vrot.lane.b32.xlu1 %v18941_v23, %s11394_s25  ;;  %v8765_v23 = vunpack.i.h.bf16 %v13186_v52  ;;  %v4593_v58 = vsel %vm4588_vm4, %v4464_v20, %v9004_v16 }
 0x23b   : > { %9692 = vrot.lane.b32.xlu0 %v18956_v53, %s11397_s12  ;;  %7723 = vmatprep.subr.msk.bf16.mxu1 %vm13704_vm11, %v13867_v38  ;;  %v8764_v16 = vunpack.i.l.bf16 %v13186_v52  ;;  %v9084_v52 = vunpack.i.l.bf16 %v13492_v15 }
 0x23c   : > { %v4981_v13 = vsel %vm4975_vm5, %v9400_v25, %v9405_v0  ;;  %v4980_v2 = vsel %vm4975_vm5, %v9399_v4, %v9404_v61  ;;  %7725 = vmatpush1.bf16.xpose.msra.mxu1 %v13869_v59  ;;  %v9418_v28 = vpop.permute.xlu1 %9417  ;;  %v4594_v0 = vsel %vm4588_vm4, %v4465_v10, %v9005_v35 }
 0x23d   : > { %v9420_v43 = vunpack.i.h.bf16 %v9418_v28  ;;  %v9419_v22 = vunpack.i.l.bf16 %v9418_v28  ;;  %v9413_v17 = vpop.permute.xlu0 %9412  ;;  %v5109_v47 = vsel %vm5104_vm6, %v4980_v2, %v9409_v18  ;;  %v5110_v29 = vsel %vm5104_vm6, %v4981_v13, %v9410_v54  ;;  %v18958_v2 = vld [vmem:[#allocation69_spill] sm:$0xff] }
 0x23e   : > { %v9415_v7 = vunpack.i.h.bf16 %v9413_v17  ;;  %v9414_v26 = vunpack.i.l.bf16 %v9413_v17  ;;  %9707 = vrot.lane.b32.xlu1 %v18957_v39, %s11395_s26  ;;  %v8370_v10 = vunpack.i.h.bf16 %v18958_v2  ;;  %v11125_v17 = vld [vmem:[%s11503_s21 + $0x238] sm:$0xff] }
 0x23f   : > { %v5238_v61 = vsel %vm5233_vm7, %v5109_v47, %v9419_v22  ;;  %v5239_v24 = vsel %vm5233_vm7, %v5110_v29, %v9420_v43  ;;  %9702 = vrot.lane.b32.xlu0 %v9701_v14, %s11396_s10  ;;  %v9085_v14 = vunpack.i.h.bf16 %v13492_v15  ;;  %v11124_v22 = vld [vmem:[%s11503_s21 + $0x230] sm:$0xff]  ;;  %v11127_v15 = vld [vmem:[%s11503_s21 + $0x168] sm:$0xff] }
 0x240   : > { %v9428_v18 = vpop.permute.xlu1 %9427  ;;  %v13898_v20 = vpack.c.bf16 %v5239_v24, %v5238_v61  ;;  %v4722_v54 = vsel %vm4717_vm8, %v4593_v58, %v9414_v26  ;;  %v4723_v13 = vsel %vm4717_vm8, %v4594_v0, %v9415_v7  ;;  %v18959_v24 = vld [vmem:[#allocation111_spill] sm:$0xff]  ;;  %v9726_v47 = vpack.i.bf16 %v11125_v17, %v11124_v22 }
 0x241   : > { %v9423_v35 = vpop.permute.xlu0 %9422  ;;  %v4851_v28 = vsel %vm4846_vm10, %v4722_v54, %v9399_v4  ;;  %v4852_v43 = vsel %vm4846_vm10, %v4723_v13, %v9400_v25  ;;  %v8369_v4 = vunpack.i.l.bf16 %v18958_v2  ;;  %v11126_v29 = vld [vmem:[%s11503_s21 + $0x170] sm:$0xff]  ;;  %v18960_v25 = vunpack.i.h.bf16 %v18954_v62 }
 0x242   : > { %9717 = vrot.lane.b32.xlu1 %v18959_v24, %s11397_s12  ;;  %7648 = vmatprep.subr.msk.bf16.mxu0 %vm13704_vm11, %v13898_v20  ;;  %v13912_v58 = vpack.c.bf16 %v4852_v43, %v4851_v28  ;;  %v4367_v26 = vsel %vm4330_vm2, %v11127_v15, %v8444_v37  ;;  %v9430_v54 = vunpack.i.h.bf16 %v9428_v18  ;;  %v9429_v13 = vunpack.i.l.bf16 %v9428_v18 }
 0x243   : > { %v4368_v7 = vsel %vm4330_vm2, %v11126_v29, %v18960_v25  ;;  %9712 = vrot.lane.b32.xlu0 %v18936_v5, %s11398_s13  ;;  %v4496_v0 = vsel %vm4459_vm3, %v4367_v26, %v8764_v16  ;;  %v9425_v62 = vunpack.i.h.bf16 %v9423_v35  ;;  %v9424_v28 = vunpack.i.l.bf16 %v9423_v35  ;;  %v11128_v25 = vld [vmem:[%s11503_s21 + $0x40] sm:$0xff] }
 0x244   : > { %v4497_v61 = vsel %vm4459_vm3, %v4368_v7, %v8765_v23  ;;  %7650 = vmatpush1.bf16.xpose.msra.mxu0 %v13912_v58  ;;  %v9438_v2 = vpop.permute.xlu1 %9437  ;;  %v4625_v37 = vsel %vm4588_vm4, %v4496_v0, %v9084_v52  ;;  %v4338_v35 = vsel %vm4330_vm2, %v11128_v25, %v8370_v10  ;;  %v11129_v7 = vld [vmem:[%s11503_s21 + $0x38] sm:$0xff]  ;;  %v18961_v52 = vld [vmem:[#allocation113_spill] sm:$0xff] }
 0x245   : > { %v9440_v43 = vunpack.i.h.bf16 %v9438_v2  ;;  %v9439_v22 = vunpack.i.l.bf16 %v9438_v2  ;;  %v9433_v17 = vpop.permute.xlu0 %9432  ;;  %v4626_v5 = vsel %vm4588_vm4, %v4497_v61, %v9085_v14  ;;  %v4337_v15 = vsel %vm4330_vm2, %v11129_v7, %v8369_v4 }
 0x246   : > { %9727 = vrot.lane.b32.xlu1 %v9726_v47, %s11396_s10  ;;  %v9435_v16 = vunpack.i.h.bf16 %v9433_v17  ;;  %v9434_v23 = vunpack.i.l.bf16 %v9433_v17  ;;  %v8690_v47 = vunpack.i.h.bf16 %v13098_v56  ;;  %v5013_v0 = vsel %vm4975_vm5, %v9425_v62, %v9430_v54  ;;  %v18962_v54 = vld [vmem:[#allocation32_spill] sm:$0xff] }
 0x247   : > { %9722 = vrot.lane.b32.xlu0 %v18949_v31, %s11394_s25  ;;  %v4754_v18 = vsel %vm4717_vm8, %v4625_v37, %v9439_v22  ;;  %v4755_v29 = vsel %vm4717_vm8, %v4626_v5, %v9440_v43  ;;  %v5012_v31 = vsel %vm4975_vm5, %v9424_v28, %v9429_v13  ;;  %v8689_v43 = vunpack.i.l.bf16 %v13098_v56 }
 0x248   : > { %v13940_v14 = vpop.permute.xlu1 %9447  ;;  %v4883_v10 = vsel %vm4846_vm10, %v4754_v18, %v9424_v28  ;;  %v4884_v4 = vsel %vm4846_vm10, %v4755_v29, %v9425_v62  ;;  %v5141_v17 = vsel %vm5104_vm6, %v5012_v31, %v9434_v23  ;;  %v5142_v37 = vsel %vm5104_vm6, %v5013_v0, %v9435_v16 }
 0x249   : > { %v9443_v61 = vpop.permute.xlu0 %9442  ;;  %v9009_v13 = vunpack.i.l.bf16 %v13422_v45  ;;  %v9450_v28 = vunpack.i.h.bf16 %v13940_v14  ;;  %v9449_v56 = vunpack.i.l.bf16 %v13940_v14  ;;  %v13961_v16 = vpack.c.bf16 %v4884_v4, %v4883_v10  ;;  %v18964_v14 = vld [vmem:[#allocation173_spill] sm:$0xff]  ;;  %v11131_v10 = vld [vmem:[%s11503_s21 + $0x108] sm:$0xff] }
 0x24a   : > { %v9445_v2 = vunpack.i.h.bf16 %v9443_v61  ;;  %v9444_v22 = vunpack.i.l.bf16 %v9443_v61  ;;  %9737 = vrot.lane.b32.xlu1 %v18947_v11, %s11398_s13  ;;  %v8449_v31 = vunpack.i.l.bf16 %v18961_v52  ;;  %v4467_v61 = vsel %vm4459_vm3, %v4338_v35, %v8690_v47 }
 0x24b   : > { %9732 = vrot.lane.b32.xlu0 %v18962_v54, %s11395_s26  ;;  %18963 = vst [vmem:[#allocation79_spill] sm:$0xff] %v13961_v16 }
 0x24c   : > { %v5270_v5 = vsel %vm5233_vm7, %v5141_v17, %v9444_v22  ;;  %v5271_v25 = vsel %vm5233_vm7, %v5142_v37, %v9445_v2  ;;  %v9458_v11 = vpop.permute.xlu1 %9457  ;;  %v9010_v2 = vunpack.i.h.bf16 %v13422_v45  ;;  %v11130_v22 = vld [vmem:[%s11503_s21 + $0x100] sm:$0xff]  ;;  %v4466_v17 = vsel %vm4459_vm3, %v4337_v15, %v8689_v43  ;;  %v18965_v43 = vld [vmem:[#allocation15_spill] sm:$0xff] }
 0x24d   : > { %v9453_v62 = vpop.permute.xlu0 %9452  ;;  %v13959_v23 = vpack.c.bf16 %v5271_v25, %v5270_v5  ;;  %v9460_v18 = vunpack.i.h.bf16 %v9458_v11  ;;  %v9459_v29 = vunpack.i.l.bf16 %v9458_v11  ;;  %v9751_v4 = vpack.i.bf16 %v11131_v10, %v11130_v22 }
 0x24e   : > { %v9455_v7 = vunpack.i.h.bf16 %v9453_v62  ;;  %v9454_v0 = vunpack.i.l.bf16 %v9453_v62  ;;  %9747 = vrot.lane.b32.xlu1 %v18952_v3, %s11394_s25  ;;  %v8770_v3 = vunpack.i.h.bf16 %v13184_v8  ;;  %v4595_v47 = vsel %vm4588_vm4, %v4466_v17, %v9009_v13 }
 0x24f   : > { %9742 = vrot.lane.b32.xlu0 %v18964_v14, %s11397_s12  ;;  %7728 = vmatprep.subr.msk.bf16.mxu1 %vm13704_vm11, %v13959_v23  ;;  %v8769_v13 = vunpack.i.l.bf16 %v13184_v8  ;;  %v9089_v8 = vunpack.i.l.bf16 %v13490_v36 }
 0x250   : > { %v4983_v37 = vsel %vm4975_vm5, %v9450_v28, %v9455_v7  ;;  %v4982_v35 = vsel %vm4975_vm5, %v9449_v56, %v9454_v0  ;;  %7730 = vmatpush1.bf16.xpose.msra.mxu1 %v13961_v16  ;;  %v9468_v45 = vpop.permute.xlu1 %9467  ;;  %v4596_v7 = vsel %vm4588_vm4, %v4467_v61, %v9010_v2 }
 0x251   : > { %v9470_v5 = vunpack.i.h.bf16 %v9468_v45  ;;  %v9469_v25 = vunpack.i.l.bf16 %v9468_v45  ;;  %v9463_v11 = vpop.permute.xlu0 %9462  ;;  %v5111_v62 = vsel %vm5104_vm6, %v4982_v35, %v9459_v29  ;;  %v5112_v22 = vsel %vm5104_vm6, %v4983_v37, %v9460_v18  ;;  %v18966_v35 = vld [vmem:[#allocation74_spill] sm:$0xff] }
 0x252   : > { %v9465_v10 = vunpack.i.h.bf16 %v9463_v11  ;;  %v9464_v15 = vunpack.i.l.bf16 %v9463_v11  ;;  %9757 = vrot.lane.b32.xlu1 %v18965_v43, %s11395_s26  ;;  %v8375_v61 = vunpack.i.h.bf16 %v18966_v35  ;;  %v11133_v11 = vld [vmem:[%s11503_s21 + $0x248] sm:$0xff] }
 0x253   : > { %v5240_v0 = vsel %vm5233_vm7, %v5111_v62, %v9469_v25  ;;  %v5241_v26 = vsel %vm5233_vm7, %v5112_v22, %v9470_v5  ;;  %9752 = vrot.lane.b32.xlu0 %v9751_v4, %s11396_s10  ;;  %v9090_v4 = vunpack.i.h.bf16 %v13490_v36  ;;  %v11132_v25 = vld [vmem:[%s11503_s21 + $0x240] sm:$0xff]  ;;  %v11135_v36 = vld [vmem:[%s11503_s21 + $0x178] sm:$0xff] }
 0x254   : > { %v9478_v29 = vpop.permute.xlu1 %9477  ;;  %v13990_v17 = vpack.c.bf16 %v5241_v26, %v5240_v0  ;;  %v4724_v18 = vsel %vm4717_vm8, %v4595_v47, %v9464_v15  ;;  %v4725_v37 = vsel %vm4717_vm8, %v4596_v7, %v9465_v10  ;;  %v18967_v26 = vld [vmem:[#allocation110_spill] sm:$0xff]  ;;  %v9776_v62 = vpack.i.bf16 %v11133_v11, %v11132_v25  ;;  %v11134_v22 = vld [vmem:[%s11503_s21 + $0x180] sm:$0xff] }
 0x255   : > { %v9473_v2 = vpop.permute.xlu0 %9472  ;;  %v4853_v45 = vsel %vm4846_vm10, %v4724_v18, %v9449_v56  ;;  %v4854_v5 = vsel %vm4846_vm10, %v4725_v37, %v9450_v28  ;;  %v8374_v56 = vunpack.i.l.bf16 %v18966_v35  ;;  %v18969_v28 = vunpack.i.h.bf16 %v18961_v52 }
 0x256   : > { %9767 = vrot.lane.b32.xlu1 %v18967_v26, %s11397_s12  ;;  %7653 = vmatprep.subr.msk.bf16.mxu0 %vm13704_vm11, %v13990_v17  ;;  %v14004_v47 = vpack.c.bf16 %v4854_v5, %v4853_v45  ;;  %v4369_v15 = vsel %vm4330_vm2, %v11135_v36, %v8449_v31  ;;  %v9480_v18 = vunpack.i.h.bf16 %v9478_v29  ;;  %v9479_v37 = vunpack.i.l.bf16 %v9478_v29 }
 0x257   : > { %v4370_v10 = vsel %vm4330_vm2, %v11134_v22, %v18969_v28  ;;  %9762 = vrot.lane.b32.xlu0 %v18950_v12, %s11398_s13  ;;  %v4498_v0 = vsel %vm4459_vm3, %v4369_v15, %v8769_v13  ;;  %v9475_v52 = vunpack.i.h.bf16 %v9473_v2  ;;  %v9474_v45 = vunpack.i.l.bf16 %v9473_v2  ;;  %v11136_v28 = vld [vmem:[%s11503_s21 + $0x58] sm:$0xff] }
 0x258   : > { %18968 = vst [vmem:[#allocation6_spill] sm:$0xff] %v14004_v47  ;;  %v4499_v7 = vsel %vm4459_vm3, %v4370_v10, %v8770_v3  ;;  %7655 = vmatpush1.bf16.xpose.msra.mxu0 %v14004_v47  ;;  %v9488_v35 = vpop.permute.xlu1 %9487  ;;  %v4627_v31 = vsel %vm4588_vm4, %v4498_v0, %v9089_v8  ;;  %v4340_v2 = vsel %vm4330_vm2, %v11136_v28, %v8375_v61  ;;  %v11137_v10 = vld [vmem:[%s11503_s21 + $0x50] sm:$0xff]  ;;  %v18970_v8 = vld [vmem:[#allocation124_spill] sm:$0xff] }
 0x259   : > { %v9490_v5 = vunpack.i.h.bf16 %v9488_v35  ;;  %v9489_v25 = vunpack.i.l.bf16 %v9488_v35  ;;  %v9483_v11 = vpop.permute.xlu0 %9482  ;;  %v4628_v12 = vsel %vm4588_vm4, %v4499_v7, %v9090_v4  ;;  %v4339_v36 = vsel %vm4330_vm2, %v11137_v10, %v8374_v56 }
 0x25a   : > { %9777 = vrot.lane.b32.xlu1 %v9776_v62, %s11396_s10  ;;  %v9485_v3 = vunpack.i.h.bf16 %v9483_v11  ;;  %v9484_v13 = vunpack.i.l.bf16 %v9483_v11  ;;  %v8695_v62 = vunpack.i.h.bf16 %v13114_v51  ;;  %v5015_v7 = vsel %vm4975_vm5, %v9475_v52, %v9480_v18  ;;  %v18971_v18 = vld [vmem:[#allocation31_spill] sm:$0xff] }
 0x25b   : > { %9772 = vrot.lane.b32.xlu0 %v18956_v53, %s11394_s25  ;;  %v4756_v29 = vsel %vm4717_vm8, %v4627_v31, %v9489_v25  ;;  %v4757_v22 = vsel %vm4717_vm8, %v4628_v12, %v9490_v5  ;;  %v5014_v53 = vsel %vm4975_vm5, %v9474_v45, %v9479_v37  ;;  %v8694_v5 = vunpack.i.l.bf16 %v13114_v51 }
 0x25c   : > { %v14032_v4 = vpop.permute.xlu1 %9497  ;;  %v4885_v61 = vsel %vm4846_vm10, %v4756_v29, %v9474_v45  ;;  %v4886_v56 = vsel %vm4846_vm10, %v4757_v22, %v9475_v52  ;;  %v5143_v11 = vsel %vm5104_vm6, %v5014_v53, %v9484_v13  ;;  %v5144_v31 = vsel %vm5104_vm6, %v5015_v7, %v9485_v3 }
 0x25d   : > { %v9493_v0 = vpop.permute.xlu0 %9492  ;;  %v9014_v37 = vunpack.i.l.bf16 %v13433_v34  ;;  %v9500_v45 = vunpack.i.h.bf16 %v14032_v4  ;;  %v9499_v51 = vunpack.i.l.bf16 %v14032_v4  ;;  %v14053_v3 = vpack.c.bf16 %v4886_v56, %v4885_v61  ;;  %v18974_v4 = vld [vmem:[#allocation170_spill] sm:$0xff]  ;;  %v11139_v61 = vld [vmem:[%s11503_s21 + $0x120] sm:$0xff] }
 0x25e   : > { %v9495_v35 = vunpack.i.h.bf16 %v9493_v0  ;;  %v9494_v25 = vunpack.i.l.bf16 %v9493_v0  ;;  %9787 = vrot.lane.b32.xlu1 %v18955_v21, %s11398_s13  ;;  %v8454_v53 = vunpack.i.l.bf16 %v18970_v8  ;;  %v4468_v0 = vsel %vm4459_vm3, %v4339_v36, %v8694_v5 }
 0x25f   : > { %9782 = vrot.lane.b32.xlu0 %v18971_v18, %s11395_s26  ;;  %18973 = vst [vmem:[#allocation138_spill] sm:$0xff] %v14053_v3  ;;  %v4597_v5 = vsel %vm4588_vm4, %v4468_v0, %v9014_v37  ;;  %v8774_v37 = vunpack.i.l.bf16 %v13196_v49 }
 0x260   : > { %v5272_v12 = vsel %vm5233_vm7, %v5143_v11, %v9494_v25  ;;  %v5273_v28 = vsel %vm5233_vm7, %v5144_v31, %v9495_v35  ;;  %v9508_v21 = vpop.permute.xlu1 %9507  ;;  %v9015_v35 = vunpack.i.h.bf16 %v13433_v34  ;;  %v11138_v25 = vld [vmem:[%s11503_s21 + $0x118] sm:$0xff]  ;;  %v4469_v11 = vsel %vm4459_vm3, %v4340_v2, %v8695_v62  ;;  %v18975_v62 = vld [vmem:[#allocation18_spill] sm:$0xff] }
 0x261   : > { %v9503_v52 = vpop.permute.xlu0 %9502  ;;  %v14051_v13 = vpack.c.bf16 %v5273_v28, %v5272_v12  ;;  %v9510_v29 = vunpack.i.h.bf16 %v9508_v21  ;;  %v9509_v22 = vunpack.i.l.bf16 %v9508_v21  ;;  %v9801_v56 = vpack.i.bf16 %v11139_v61, %v11138_v25 }
 0x262   : > { %v9505_v10 = vunpack.i.h.bf16 %v9503_v52  ;;  %v9504_v7 = vunpack.i.l.bf16 %v9503_v52  ;;  %9797 = vrot.lane.b32.xlu1 %v18959_v24, %s11394_s25  ;;  %v8775_v24 = vunpack.i.h.bf16 %v13196_v49  ;;  %v9094_v49 = vunpack.i.l.bf16 %v13499_v1 }
 0x263   : > { %18972 = vst [vmem:[#allocation23_spill] sm:$0xff] %v14051_v13  ;;  %9792 = vrot.lane.b32.xlu0 %v18974_v4, %s11397_s12  ;;  %7733 = vmatprep.subr.msk.bf16.mxu1 %vm13704_vm11, %v14051_v13 }
 0x264   : > { %v4985_v31 = vsel %vm4975_vm5, %v9500_v45, %v9505_v10  ;;  %v4984_v36 = vsel %vm4975_vm5, %v9499_v51, %v9504_v7  ;;  %7735 = vmatpush1.bf16.xpose.msra.mxu1 %v14053_v3  ;;  %v9518_v34 = vpop.permute.xlu1 %9517  ;;  %v4598_v10 = vsel %vm4588_vm4, %v4469_v11, %v9015_v35 }
 0x265   : > { %v9520_v12 = vunpack.i.h.bf16 %v9518_v34  ;;  %v9519_v28 = vunpack.i.l.bf16 %v9518_v34  ;;  %v9513_v21 = vpop.permute.xlu0 %9512  ;;  %v5113_v52 = vsel %vm5104_vm6, %v4984_v36, %v9509_v22  ;;  %v5114_v25 = vsel %vm5104_vm6, %v4985_v31, %v9510_v29  ;;  %v18977_v36 = vld [vmem:[#allocation73_spill] sm:$0xff] }
 0x266   : > { %v9515_v61 = vunpack.i.h.bf16 %v9513_v21  ;;  %v9514_v2 = vunpack.i.l.bf16 %v9513_v21  ;;  %9807 = vrot.lane.b32.xlu1 %v18975_v62, %s11395_s26  ;;  %v8380_v35 = vunpack.i.h.bf16 %v18977_v36  ;;  %v11141_v21 = vld [vmem:[%s11503_s21 + $0x260] sm:$0xff] }
 0x267   : > { %v5242_v7 = vsel %vm5233_vm7, %v5113_v52, %v9519_v28  ;;  %v5243_v15 = vsel %vm5233_vm7, %v5114_v25, %v9520_v12  ;;  %9802 = vrot.lane.b32.xlu0 %v9801_v56, %s11396_s10  ;;  %v9095_v56 = vunpack.i.h.bf16 %v13499_v1  ;;  %v11140_v28 = vld [vmem:[%s11503_s21 + $0x258] sm:$0xff]  ;;  %v11143_v1 = vld [vmem:[%s11503_s21 + $0x190] sm:$0xff] }
 0x268   : > { %v9528_v22 = vpop.permute.xlu1 %9527  ;;  %v14082_v0 = vpack.c.bf16 %v5243_v15, %v5242_v7  ;;  %v4726_v29 = vsel %vm4717_vm8, %v4597_v5, %v9514_v2  ;;  %v4727_v31 = vsel %vm4717_vm8, %v4598_v10, %v9515_v61  ;;  %v18978_v15 = vld [vmem:[#allocation121_spill] sm:$0xff]  ;;  %v9826_v52 = vpack.i.bf16 %v11141_v21, %v11140_v28  ;;  %v11142_v25 = vld [vmem:[%s11503_s21 + $0x198] sm:$0xff] }
 0x269   : > { %v9523_v11 = vpop.permute.xlu0 %9522  ;;  %v4855_v34 = vsel %vm4846_vm10, %v4726_v29, %v9499_v51  ;;  %v4856_v12 = vsel %vm4846_vm10, %v4727_v31, %v9500_v45  ;;  %v8379_v51 = vunpack.i.l.bf16 %v18977_v36  ;;  %v18980_v45 = vunpack.i.h.bf16 %v18970_v8 }
 0x26a   : > { %18976 = vst [vmem:[#allocation10_spill] sm:$0xff] %v14082_v0  ;;  %9817 = vrot.lane.b32.xlu1 %v18978_v15, %s11397_s12  ;;  %7658 = vmatprep.subr.msk.bf16.mxu0 %vm13704_vm11, %v14082_v0  ;;  %v14096_v5 = vpack.c.bf16 %v4856_v12, %v4855_v34  ;;  %v4371_v2 = vsel %vm4330_vm2, %v11143_v1, %v8454_v53  ;;  %v9530_v29 = vunpack.i.h.bf16 %v9528_v22  ;;  %v9529_v31 = vunpack.i.l.bf16 %v9528_v22 }
 0x26b   : > { %v4372_v61 = vsel %vm4330_vm2, %v11142_v25, %v18980_v45  ;;  %9812 = vrot.lane.b32.xlu0 %v18957_v39, %s11398_s13  ;;  %v4500_v10 = vsel %vm4459_vm3, %v4371_v2, %v8774_v37  ;;  %v9525_v8 = vunpack.i.h.bf16 %v9523_v11  ;;  %v9524_v34 = vunpack.i.l.bf16 %v9523_v11  ;;  %v11144_v45 = vld [vmem:[%s11503_s21 + $0x68] sm:$0xff] }
 0x26c   : > { %18979 = vst [vmem:[#allocation89_spill] sm:$0xff] %v14096_v5  ;;  %v4501_v7 = vsel %vm4459_vm3, %v4372_v61, %v8775_v24  ;;  %7660 = vmatpush1.bf16.xpose.msra.mxu0 %v14096_v5  ;;  %v9538_v36 = vpop.permute.xlu1 %9537  ;;  %v4629_v53 = vsel %vm4588_vm4, %v4500_v10, %v9094_v49  ;;  %v4342_v11 = vsel %vm4330_vm2, %v11144_v45, %v8380_v35  ;;  %v11145_v61 = vld [vmem:[%s11503_s21 + $0x60] sm:$0xff]  ;;  %v18981_v49 = vld [vmem:[#allocation122_spill] sm:$0xff] }
 0x26d   : > { %v9540_v12 = vunpack.i.h.bf16 %v9538_v36  ;;  %v9539_v28 = vunpack.i.l.bf16 %v9538_v36  ;;  %v9533_v21 = vpop.permute.xlu0 %9532  ;;  %v4630_v39 = vsel %vm4588_vm4, %v4501_v7, %v9095_v56  ;;  %v4341_v1 = vsel %vm4330_vm2, %v11145_v61, %v8379_v51  ;;  %v19113_v5 = vld [vmem:[#allocation41_spill] sm:$0xff] }
 0x26e   : > { %9827 = vrot.lane.b32.xlu1 %v9826_v52, %s11396_s10  ;;  %v9535_v37 = vunpack.i.h.bf16 %v9533_v21  ;;  %v9534_v24 = vunpack.i.l.bf16 %v9533_v21  ;;  %v8700_v52 = vunpack.i.h.bf16 %v13112_v27  ;;  %v5017_v10 = vsel %vm4975_vm5, %v9525_v8, %v9530_v29  ;;  %v18982_v29 = vld [vmem:[#allocation34_spill] sm:$0xff] }
 0x26f   : > { %9822 = vrot.lane.b32.xlu0 %v18964_v14, %s11394_s25  ;;  %v4758_v22 = vsel %vm4717_vm8, %v4629_v53, %v9539_v28  ;;  %v4759_v25 = vsel %vm4717_vm8, %v4630_v39, %v9540_v12  ;;  %v5016_v14 = vsel %vm4975_vm5, %v9524_v34, %v9529_v31  ;;  %v8699_v12 = vunpack.i.l.bf16 %v13112_v27 }
 0x270   : > { %v14124_v56 = vpop.permute.xlu1 %9547  ;;  %v4887_v35 = vsel %vm4846_vm10, %v4758_v22, %v9524_v34  ;;  %v4888_v51 = vsel %vm4846_vm10, %v4759_v25, %v9525_v8  ;;  %v5145_v21 = vsel %vm5104_vm6, %v5016_v14, %v9534_v24  ;;  %v5146_v53 = vsel %vm5104_vm6, %v5017_v10, %v9535_v37 }
 0x271   : > { %v9543_v7 = vpop.permute.xlu0 %9542  ;;  %v9019_v31 = vunpack.i.l.bf16 %v13431_v50  ;;  %v9550_v34 = vunpack.i.h.bf16 %v14124_v56  ;;  %v9549_v27 = vunpack.i.l.bf16 %v14124_v56  ;;  %v14145_v37 = vpack.c.bf16 %v4888_v51, %v4887_v35  ;;  %v18985_v56 = vld [vmem:[#allocation181_spill] sm:$0xff]  ;;  %v11147_v35 = vld [vmem:[%s11503_s21 + $0x130] sm:$0xff] }
 0x272   : > { %v9545_v36 = vunpack.i.h.bf16 %v9543_v7  ;;  %v9544_v28 = vunpack.i.l.bf16 %v9543_v7  ;;  %9837 = vrot.lane.b32.xlu1 %v18962_v54, %s11398_s13  ;;  %v8459_v14 = vunpack.i.l.bf16 %v18981_v49  ;;  %v4471_v7 = vsel %vm4459_vm3, %v4342_v11, %v8700_v52 }
 0x273   : > { %9832 = vrot.lane.b32.xlu0 %v18982_v29, %s11395_s26  ;;  %18984 = vst [vmem:[#allocation147_spill] sm:$0xff] %v14145_v37 }
 0x274   : > { %v5274_v39 = vsel %vm5233_vm7, %v5145_v21, %v9544_v28  ;;  %v5275_v45 = vsel %vm5233_vm7, %v5146_v53, %v9545_v36  ;;  %v9558_v54 = vpop.permute.xlu1 %9557  ;;  %v9020_v36 = vunpack.i.h.bf16 %v13431_v50  ;;  %v11146_v28 = vld [vmem:[%s11503_s21 + $0x128] sm:$0xff]  ;;  %v4470_v21 = vsel %vm4459_vm3, %v4341_v1, %v8699_v12  ;;  %v18986_v12 = vld [vmem:[#allocation17_spill] sm:$0xff] }
 0x275   : > { %v9553_v8 = vpop.permute.xlu0 %9552  ;;  %v14143_v24 = vpack.c.bf16 %v5275_v45, %v5274_v39  ;;  %v9560_v22 = vunpack.i.h.bf16 %v9558_v54  ;;  %v9559_v25 = vunpack.i.l.bf16 %v9558_v54  ;;  %v9851_v51 = vpack.i.bf16 %v11147_v35, %v11146_v28 }
 0x276   : > { %v9555_v61 = vunpack.i.h.bf16 %v9553_v8  ;;  %v9554_v10 = vunpack.i.l.bf16 %v9553_v8  ;;  %9847 = vrot.lane.b32.xlu1 %v18967_v26, %s11394_s25  ;;  %v8780_v26 = vunpack.i.h.bf16 %v13194_v9  ;;  %v4599_v52 = vsel %vm4588_vm4, %v4470_v21, %v9019_v31 }
 0x277   : > { %18983 = vst [vmem:[#allocation26_spill] sm:$0xff] %v14143_v24  ;;  %9842 = vrot.lane.b32.xlu0 %v18985_v56, %s11397_s12  ;;  %7738 = vmatprep.subr.msk.bf16.mxu1 %vm13704_vm11, %v14143_v24  ;;  %v8779_v31 = vunpack.i.l.bf16 %v13194_v9  ;;  %v9099_v9 = vunpack.i.l.bf16 %v13497_v55 }
 0x278   : > { %v4987_v53 = vsel %vm4975_vm5, %v9550_v34, %v9555_v61  ;;  %v4986_v11 = vsel %vm4975_vm5, %v9549_v27, %v9554_v10  ;;  %7740 = vmatpush1.bf16.xpose.msra.mxu1 %v14145_v37  ;;  %v9568_v50 = vpop.permute.xlu1 %9567  ;;  %v4600_v61 = vsel %vm4588_vm4, %v4471_v7, %v9020_v36 }
 0x279   : > { %v9570_v39 = vunpack.i.h.bf16 %v9568_v50  ;;  %v9569_v45 = vunpack.i.l.bf16 %v9568_v50  ;;  %v9563_v54 = vpop.permute.xlu0 %9562  ;;  %v5115_v8 = vsel %vm5104_vm6, %v4986_v11, %v9559_v25  ;;  %v5116_v28 = vsel %vm5104_vm6, %v4987_v53, %v9560_v22  ;;  %v18988_v11 = vld [vmem:[#allocation76_spill] sm:$0xff] }
 0x27a   : > { %v9565_v35 = vunpack.i.h.bf16 %v9563_v54  ;;  %v9564_v1 = vunpack.i.l.bf16 %v9563_v54  ;;  %9857 = vrot.lane.b32.xlu1 %v18986_v12, %s11395_s26  ;;  %v8385_v7 = vunpack.i.h.bf16 %v18988_v11  ;;  %v11149_v54 = vld [vmem:[%s11503_s21 + $0x270] sm:$0xff] }
 0x27b   : > { %v5244_v10 = vsel %vm5233_vm7, %v5115_v8, %v9569_v45  ;;  %v5245_v2 = vsel %vm5233_vm7, %v5116_v28, %v9570_v39  ;;  %9852 = vrot.lane.b32.xlu0 %v9851_v51, %s11396_s10  ;;  %v9100_v51 = vunpack.i.h.bf16 %v13497_v55  ;;  %v11148_v45 = vld [vmem:[%s11503_s21 + $0x268] sm:$0xff]  ;;  %v11151_v55 = vld [vmem:[%s11503_s21 + $0x1a0] sm:$0xff] }
 0x27c   : > { %v9578_v25 = vpop.permute.xlu1 %9577  ;;  %v14174_v21 = vpack.c.bf16 %v5245_v2, %v5244_v10  ;;  %v4728_v22 = vsel %vm4717_vm8, %v4599_v52, %v9564_v1  ;;  %v4729_v53 = vsel %vm4717_vm8, %v4600_v61, %v9565_v35  ;;  %v18989_v2 = vld [vmem:[#allocation120_spill] sm:$0xff]  ;;  %v9876_v8 = vpack.i.bf16 %v11149_v54, %v11148_v45  ;;  %v11150_v28 = vld [vmem:[%s11503_s21 + $0x1a8] sm:$0xff] }
 0x27d   : > { %v9573_v36 = vpop.permute.xlu0 %9572  ;;  %v4857_v50 = vsel %vm4846_vm10, %v4728_v22, %v9549_v27  ;;  %v4858_v39 = vsel %vm4846_vm10, %v4729_v53, %v9550_v34  ;;  %v8384_v27 = vunpack.i.l.bf16 %v18988_v11  ;;  %v18991_v34 = vunpack.i.h.bf16 %v18981_v49 }
 0x27e   : > { %18987 = vst [vmem:[#allocation9_spill] sm:$0xff] %v14174_v21  ;;  %9867 = vrot.lane.b32.xlu1 %v18989_v2, %s11397_s12  ;;  %7663 = vmatprep.subr.msk.bf16.mxu0 %vm13704_vm11, %v14174_v21  ;;  %v14188_v52 = vpack.c.bf16 %v4858_v39, %v4857_v50  ;;  %v4373_v1 = vsel %vm4330_vm2, %v11151_v55, %v8459_v14  ;;  %v9580_v22 = vunpack.i.h.bf16 %v9578_v25  ;;  %v9579_v53 = vunpack.i.l.bf16 %v9578_v25 }
 0x27f   : > { %v4374_v35 = vsel %vm4330_vm2, %v11150_v28, %v18991_v34  ;;  %9862 = vrot.lane.b32.xlu0 %v18965_v43, %s11398_s13  ;;  %v4502_v10 = vsel %vm4459_vm3, %v4373_v1, %v8779_v31  ;;  %v9575_v49 = vunpack.i.h.bf16 %v9573_v36  ;;  %v9574_v50 = vunpack.i.l.bf16 %v9573_v36  ;;  %v11152_v34 = vld [vmem:[%s11503_s21 + $0x80] sm:$0xff] }
 0x280   : > { %18990 = vst [vmem:[#allocation86_spill] sm:$0xff] %v14188_v52  ;;  %v4503_v61 = vsel %vm4459_vm3, %v4374_v35, %v8780_v26  ;;  %7665 = vmatpush1.bf16.xpose.msra.mxu0 %v14188_v52  ;;  %v9588_v11 = vpop.permute.xlu1 %9587  ;;  %v4631_v14 = vsel %vm4588_vm4, %v4502_v10, %v9099_v9  ;;  %v4344_v36 = vsel %vm4330_vm2, %v11152_v34, %v8385_v7  ;;  %v11153_v35 = vld [vmem:[%s11503_s21 + $0x78] sm:$0xff]  ;;  %v18992_v9 = vld [vmem:[#allocation129_spill] sm:$0xff] }
 0x281   : > { %v9590_v39 = vunpack.i.h.bf16 %v9588_v11  ;;  %v9589_v45 = vunpack.i.l.bf16 %v9588_v11  ;;  %v9583_v54 = vpop.permute.xlu0 %9582  ;;  %v4632_v43 = vsel %vm4588_vm4, %v4503_v61, %v9100_v51  ;;  %v4343_v55 = vsel %vm4330_vm2, %v11153_v35, %v8384_v27 }
 0x282   : > { %9877 = vrot.lane.b32.xlu1 %v9876_v8, %s11396_s10  ;;  %v9585_v26 = vunpack.i.h.bf16 %v9583_v54  ;;  %v9584_v31 = vunpack.i.l.bf16 %v9583_v54  ;;  %v8705_v8 = vunpack.i.h.bf16 %v13126_v44  ;;  %v5019_v61 = vsel %vm4975_vm5, %v9575_v49, %v9580_v22  ;;  %v18993_v22 = vld [vmem:[#allocation33_spill] sm:$0xff] }
 0x283   : > { %9872 = vrot.lane.b32.xlu0 %v18974_v4, %s11394_s25  ;;  %v4760_v25 = vsel %vm4717_vm8, %v4631_v14, %v9589_v45  ;;  %v4761_v28 = vsel %vm4717_vm8, %v4632_v43, %v9590_v39  ;;  %v5018_v4 = vsel %vm4975_vm5, %v9574_v50, %v9579_v53  ;;  %v8704_v39 = vunpack.i.l.bf16 %v13126_v44 }
 0x284   : > { %v14216_v51 = vpop.permute.xlu1 %9597  ;;  %v4889_v7 = vsel %vm4846_vm10, %v4760_v25, %v9574_v50  ;;  %v4890_v27 = vsel %vm4846_vm10, %v4761_v28, %v9575_v49  ;;  %v5147_v54 = vsel %vm5104_vm6, %v5018_v4, %v9584_v31  ;;  %v5148_v14 = vsel %vm5104_vm6, %v5019_v61, %v9585_v26 }
 0x285   : > { %v9593_v10 = vpop.permute.xlu0 %9592  ;;  %v9024_v53 = vunpack.i.l.bf16 %v13440_v48  ;;  %v9600_v50 = vunpack.i.h.bf16 %v14216_v51  ;;  %v9599_v44 = vunpack.i.l.bf16 %v14216_v51  ;;  %v14237_v26 = vpack.c.bf16 %v4890_v27, %v4889_v7  ;;  %v18996_v51 = vld [vmem:[#allocation178_spill] sm:$0xff] }
 0x286   : > { %v9595_v11 = vunpack.i.h.bf16 %v9593_v10  ;;  %v9594_v45 = vunpack.i.l.bf16 %v9593_v10  ;;  %9887 = vrot.lane.b32.xlu1 %v18971_v18, %s11398_s13  ;;  %v8464_v4 = vunpack.i.l.bf16 %v18992_v9  ;;  %v4472_v10 = vsel %vm4459_vm3, %v4343_v55, %v8704_v39  ;;  %v11155_v7 = vld [vmem:[%s11503_s21 + $0x148] sm:$0xff] }
 0x287   : > { %9882 = vrot.lane.b32.xlu0 %v18993_v22, %s11395_s26  ;;  %18995 = vst [vmem:[#allocation146_spill] sm:$0xff] %v14237_v26  ;;  %v4601_v39 = vsel %vm4588_vm4, %v4472_v10, %v9024_v53  ;;  %v8784_v53 = vunpack.i.l.bf16 %v13206_v32 }
 0x288   : > { %v5276_v43 = vsel %vm5233_vm7, %v5147_v54, %v9594_v45  ;;  %v5277_v34 = vsel %vm5233_vm7, %v5148_v14, %v9595_v11  ;;  %v9608_v18 = vpop.permute.xlu1 %9607  ;;  %v9025_v11 = vunpack.i.h.bf16 %v13440_v48  ;;  %v11154_v45 = vld [vmem:[%s11503_s21 + $0x140] sm:$0xff]  ;;  %v4473_v54 = vsel %vm4459_vm3, %v4344_v36, %v8705_v8  ;;  %v18997_v8 = vld [vmem:[#allocation20_spill] sm:$0xff] }
 0x289   : > { %v9603_v49 = vpop.permute.xlu0 %9602  ;;  %v14235_v31 = vpack.c.bf16 %v5277_v34, %v5276_v43  ;;  %v9610_v25 = vunpack.i.h.bf16 %v9608_v18  ;;  %v9609_v28 = vunpack.i.l.bf16 %v9608_v18  ;;  %v9901_v27 = vpack.i.bf16 %v11155_v7, %v11154_v45 }
 0x28a   : > { %v9605_v35 = vunpack.i.h.bf16 %v9603_v49  ;;  %v9604_v61 = vunpack.i.l.bf16 %v9603_v49  ;;  %9897 = vrot.lane.b32.xlu1 %v18978_v15, %s11394_s25  ;;  %v8785_v15 = vunpack.i.h.bf16 %v13206_v32  ;;  %v9104_v32 = vunpack.i.l.bf16 %v13507_v19 }
 0x28b   : > { %18994 = vst [vmem:[#allocation25_spill] sm:$0xff] %v14235_v31  ;;  %9892 = vrot.lane.b32.xlu0 %v18996_v51, %s11397_s12  ;;  %7743 = vmatprep.subr.msk.bf16.mxu1 %vm13704_vm11, %v14235_v31 }
 0x28c   : > { %v4989_v14 = vsel %vm4975_vm5, %v9600_v50, %v9605_v35  ;;  %v4988_v55 = vsel %vm4975_vm5, %v9599_v44, %v9604_v61  ;;  %7745 = vmatpush1.bf16.xpose.msra.mxu1 %v14237_v26  ;;  %v9618_v48 = vpop.permute.xlu1 %9617  ;;  %v4602_v35 = vsel %vm4588_vm4, %v4473_v54, %v9025_v11 }
 0x28d   : > { %v9620_v43 = vunpack.i.h.bf16 %v9618_v48  ;;  %v9619_v34 = vunpack.i.l.bf16 %v9618_v48  ;;  %v9613_v18 = vpop.permute.xlu0 %9612  ;;  %v5117_v49 = vsel %vm5104_vm6, %v4988_v55, %v9609_v28  ;;  %v5118_v45 = vsel %vm5104_vm6, %v4989_v14, %v9610_v25  ;;  %v18999_v55 = vld [vmem:[#allocation75_spill] sm:$0xff] }
 0x28e   : > { %v9615_v7 = vunpack.i.h.bf16 %v9613_v18  ;;  %v9614_v36 = vunpack.i.l.bf16 %v9613_v18  ;;  %9907 = vrot.lane.b32.xlu1 %v18997_v8, %s11395_s26  ;;  %v8390_v11 = vunpack.i.h.bf16 %v18999_v55  ;;  %v11157_v18 = vld [vmem:[%s11503_s21 + $0x288] sm:$0xff] }
 0x28f   : > { %v5246_v61 = vsel %vm5233_vm7, %v5117_v49, %v9619_v34  ;;  %v5247_v1 = vsel %vm5233_vm7, %v5118_v45, %v9620_v43  ;;  %9902 = vrot.lane.b32.xlu0 %v9901_v27, %s11396_s10  ;;  %v9105_v27 = vunpack.i.h.bf16 %v13507_v19  ;;  %v11156_v34 = vld [vmem:[%s11503_s21 + $0x280] sm:$0xff]  ;;  %v11159_v19 = vld [vmem:[%s11503_s21 + $0x1b8] sm:$0xff] }
 0x290   : > { %v9628_v28 = vpop.permute.xlu1 %9627  ;;  %v14266_v10 = vpack.c.bf16 %v5247_v1, %v5246_v61  ;;  %v4730_v25 = vsel %vm4717_vm8, %v4601_v39, %v9614_v36  ;;  %v4731_v14 = vsel %vm4717_vm8, %v4602_v35, %v9615_v7  ;;  %v19000_v1 = vld [vmem:[#allocation127_spill] sm:$0xff]  ;;  %v9926_v49 = vpack.i.bf16 %v11157_v18, %v11156_v34  ;;  %v11158_v45 = vld [vmem:[%s11503_s21 + $0x1c0] sm:$0xff] }
 0x291   : > { %v9623_v54 = vpop.permute.xlu0 %9622  ;;  %v4859_v48 = vsel %vm4846_vm10, %v4730_v25, %v9599_v44  ;;  %v4860_v43 = vsel %vm4846_vm10, %v4731_v14, %v9600_v50  ;;  %v8389_v44 = vunpack.i.l.bf16 %v18999_v55  ;;  %v19002_v50 = vunpack.i.h.bf16 %v18992_v9 }
 0x292   : > { %18998 = vst [vmem:[#allocation12_spill] sm:$0xff] %v14266_v10  ;;  %9917 = vrot.lane.b32.xlu1 %v19000_v1, %s11397_s12  ;;  %7668 = vmatprep.subr.msk.bf16.mxu0 %vm13704_vm11, %v14266_v10  ;;  %v14280_v39 = vpack.c.bf16 %v4860_v43, %v4859_v48  ;;  %v4375_v36 = vsel %vm4330_vm2, %v11159_v19, %v8464_v4  ;;  %v9630_v25 = vunpack.i.h.bf16 %v9628_v28  ;;  %v9629_v14 = vunpack.i.l.bf16 %v9628_v28 }
 0x293   : > { %v4376_v7 = vsel %vm4330_vm2, %v11158_v45, %v19002_v50  ;;  %9912 = vrot.lane.b32.xlu0 %v18975_v62, %s11398_s13  ;;  %v4504_v35 = vsel %vm4459_vm3, %v4375_v36, %v8784_v53  ;;  %v9625_v9 = vunpack.i.h.bf16 %v9623_v54  ;;  %v9624_v48 = vunpack.i.l.bf16 %v9623_v54  ;;  %v11160_v50 = vld [vmem:[%s11503_s21 + $0x90] sm:$0xff] }
 0x294   : > { %19001 = vst [vmem:[#allocation97_spill] sm:$0xff] %v14280_v39  ;;  %v4505_v61 = vsel %vm4459_vm3, %v4376_v7, %v8785_v15  ;;  %7670 = vmatpush1.bf16.xpose.msra.mxu0 %v14280_v39  ;;  %v9638_v55 = vpop.permute.xlu1 %9637  ;;  %v4633_v4 = vsel %vm4588_vm4, %v4504_v35, %v9104_v32  ;;  %v4346_v54 = vsel %vm4330_vm2, %v11160_v50, %v8390_v11  ;;  %v11161_v7 = vld [vmem:[%s11503_s21 + $0x88] sm:$0xff]  ;;  %v19003_v32 = vld [vmem:[#allocation128_spill] sm:$0xff] }
 0x295   : > { %v9640_v43 = vunpack.i.h.bf16 %v9638_v55  ;;  %v9639_v34 = vunpack.i.l.bf16 %v9638_v55  ;;  %v9633_v18 = vpop.permute.xlu0 %9632  ;;  %v4634_v62 = vsel %vm4588_vm4, %v4505_v61, %v9105_v27  ;;  %v4345_v19 = vsel %vm4330_vm2, %v11161_v7, %v8389_v44 }
 0x296   : > { %9927 = vrot.lane.b32.xlu1 %v9926_v49, %s11396_s10  ;;  %v9635_v53 = vunpack.i.h.bf16 %v9633_v18  ;;  %v9634_v15 = vunpack.i.l.bf16 %v9633_v18  ;;  %v8710_v49 = vunpack.i.h.bf16 %v13124_v63  ;;  %v5021_v35 = vsel %vm4975_vm5, %v9625_v9, %v9630_v25  ;;  %v19004_v25 = vld [vmem:[#allocation36_spill] sm:$0xff] }
 0x297   : > { %9922 = vrot.lane.b32.xlu0 %v18985_v56, %s11394_s25  ;;  %v4762_v28 = vsel %vm4717_vm8, %v4633_v4, %v9639_v34  ;;  %v4763_v45 = vsel %vm4717_vm8, %v4634_v62, %v9640_v43  ;;  %v5020_v56 = vsel %vm4975_vm5, %v9624_v48, %v9629_v14  ;;  %v8709_v43 = vunpack.i.l.bf16 %v13124_v63 }
 0x298   : > { %v14308_v27 = vpop.permute.xlu1 %9647  ;;  %v4891_v11 = vsel %vm4846_vm10, %v4762_v28, %v9624_v48  ;;  %v4892_v44 = vsel %vm4846_vm10, %v4763_v45, %v9625_v9  ;;  %v5149_v18 = vsel %vm5104_vm6, %v5020_v56, %v9634_v15  ;;  %v5150_v4 = vsel %vm5104_vm6, %v5021_v35, %v9635_v53 }
 0x299   : > { %v9643_v61 = vpop.permute.xlu0 %9642  ;;  %v9029_v14 = vunpack.i.l.bf16 %v13438_v46  ;;  %v9650_v48 = vunpack.i.h.bf16 %v14308_v27  ;;  %v9649_v63 = vunpack.i.l.bf16 %v14308_v27  ;;  %v14329_v53 = vpack.c.bf16 %v4892_v44, %v4891_v11  ;;  %v19007_v27 = vld [vmem:[#allocation189_spill] sm:$0xff]  ;;  %v11163_v11 = vld [vmem:[%s11503_s21 + $0x158] sm:$0xff] }
 0x29a   : > { %v9645_v55 = vunpack.i.h.bf16 %v9643_v61  ;;  %v9644_v34 = vunpack.i.l.bf16 %v9643_v61  ;;  %9937 = vrot.lane.b32.xlu1 %v18982_v29, %s11398_s13  ;;  %v8469_v56 = vunpack.i.l.bf16 %v19003_v32  ;;  %v4475_v61 = vsel %vm4459_vm3, %v4346_v54, %v8710_v49 }
 0x29b   : > { %9932 = vrot.lane.b32.xlu0 %v19004_v25, %s11395_s26  ;;  %19006 = vst [vmem:[#allocation157_spill] sm:$0xff] %v14329_v53 }
 0x29c   : > { %v5278_v62 = vsel %vm5233_vm7, %v5149_v18, %v9644_v34  ;;  %v5279_v50 = vsel %vm5233_vm7, %v5150_v4, %v9645_v55  ;;  %v9658_v29 = vpop.permute.xlu1 %9657  ;;  %v9030_v55 = vunpack.i.h.bf16 %v13438_v46  ;;  %v11162_v34 = vld [vmem:[%s11503_s21 + $0x150] sm:$0xff]  ;;  %v4474_v18 = vsel %vm4459_vm3, %v4345_v19, %v8709_v43 }
 0x29d   : > { %v9653_v9 = vpop.permute.xlu0 %9652  ;;  %v14327_v15 = vpack.c.bf16 %v5279_v50, %v5278_v62  ;;  %v9660_v28 = vunpack.i.h.bf16 %v9658_v29  ;;  %v9659_v45 = vunpack.i.l.bf16 %v9658_v29  ;;  %v9951_v44 = vpack.i.bf16 %v11163_v11, %v11162_v34  ;;  %v19008_v43 = vld [vmem:[#allocation19_spill] sm:$0xff] }
 0x29e   : > { %v9655_v7 = vunpack.i.h.bf16 %v9653_v9  ;;  %v9654_v35 = vunpack.i.l.bf16 %v9653_v9  ;;  %9947 = vrot.lane.b32.xlu1 %v18989_v2, %s11394_s25  ;;  %v8790_v2 = vunpack.i.h.bf16 %v13204_v57  ;;  %v4603_v49 = vsel %vm4588_vm4, %v4474_v18, %v9029_v14 }
 0x29f   : > { %19005 = vst [vmem:[#allocation28_spill] sm:$0xff] %v14327_v15  ;;  %9942 = vrot.lane.b32.xlu0 %v19007_v27, %s11397_s12  ;;  %7748 = vmatprep.subr.msk.bf16.mxu1 %vm13704_vm11, %v14327_v15  ;;  %v8789_v14 = vunpack.i.l.bf16 %v13204_v57  ;;  %v9110_v57 = vunpack.i.h.bf16 %v13505_v41 }
 0x2a0   : > { %v4991_v4 = vsel %vm4975_vm5, %v9650_v48, %v9655_v7  ;;  %v4990_v54 = vsel %vm4975_vm5, %v9649_v63, %v9654_v35  ;;  %7750 = vmatpush1.bf16.xpose.msra.mxu1 %v14329_v53  ;;  %v9668_v46 = vpop.permute.xlu1 %9667  ;;  %v4604_v7 = vsel %vm4588_vm4, %v4475_v61, %v9030_v55  ;;  %v19011_v55 = vld [vmem:[#allocation78_spill] sm:$0xff] }
 0x2a1   : > { %v9670_v62 = vunpack.i.h.bf16 %v9668_v46  ;;  %v9669_v50 = vunpack.i.l.bf16 %v9668_v46  ;;  %v9663_v29 = vpop.permute.xlu0 %9662  ;;  %v5119_v9 = vsel %vm5104_vm6, %v4990_v54, %v9659_v45  ;;  %v5120_v34 = vsel %vm5104_vm6, %v4991_v4, %v9660_v28  ;;  %v19010_v54 = vld [vmem:[#allocation77_spill] sm:$0xff] }
 0x2a2   : > { %v9665_v11 = vunpack.i.h.bf16 %v9663_v29  ;;  %v9664_v19 = vunpack.i.l.bf16 %v9663_v29  ;;  %9957 = vrot.lane.b32.xlu1 %v19008_v43, %s11395_s26  ;;  %v8395_v46 = vunpack.i.h.bf16 %v19011_v55  ;;  %v19012_v29 = vld [vmem:[#allocation123_spill] sm:$0xff] }
 0x2a3   : > { %v5248_v35 = vsel %vm5233_vm7, %v5119_v9, %v9669_v50  ;;  %v5249_v36 = vsel %vm5233_vm7, %v5120_v34, %v9670_v62  ;;  %9952 = vrot.lane.b32.xlu0 %v9951_v44, %s11396_s10  ;;  %v11164_v9 = vld [vmem:[%s11503_s21 + $0x290] sm:$0xff]  ;;  %v11165_v34 = vld [vmem:[%s11503_s21 + $0x298] sm:$0xff] }
 0x2a4   : > { %v9678_v45 = vpop.permute.xlu1 %9677  ;;  %v14358_v18 = vpack.c.bf16 %v5249_v36, %v5248_v35  ;;  %v4732_v28 = vsel %vm4717_vm8, %v4603_v49, %v9664_v19  ;;  %v4733_v4 = vsel %vm4717_vm8, %v4604_v7, %v9665_v11  ;;  %v9109_v36 = vunpack.i.l.bf16 %v13505_v41  ;;  %v11166_v19 = vld [vmem:[%s11503_s21 + $0x1d0] sm:$0xff]  ;;  %v11167_v41 = vld [vmem:[%s11503_s21 + $0x1c8] sm:$0xff] }
 0x2a5   : > { %v9673_v62 = vpop.permute.xlu0 %9672  ;;  %v4861_v44 = vsel %vm4846_vm10, %v4732_v28, %v9649_v63  ;;  %v4862_v50 = vsel %vm4846_vm10, %v4733_v4, %v9650_v48  ;;  %v9976_v11 = vpack.i.bf16 %v11165_v34, %v11164_v9  ;;  %v8394_v63 = vunpack.i.l.bf16 %v19011_v55 }
 0x2a6   : > { %19009 = vst [vmem:[#allocation11_spill] sm:$0xff] %v14358_v18  ;;  %9967 = vrot.lane.b32.xlu1 %v19012_v29, %s11397_s12  ;;  %7673 = vmatprep.subr.msk.bf16.mxu0 %vm13704_vm11, %v14358_v18  ;;  %v14373_v49 = vpack.c.bf16 %v4862_v50, %v4861_v44  ;;  %v19014_v48 = vunpack.i.h.bf16 %v19003_v32  ;;  %v4377_v35 = vsel %vm4330_vm2, %v11167_v41, %v8469_v56  ;;  %v9680_v44 = vunpack.i.h.bf16 %v9678_v45  ;;  %v11168_v41 = vld [vmem:[%s11503_s21 + $0xa8] sm:$0xff] }
 0x2a7   : > { %9962 = vrot.lane.b32.xlu0 %v18986_v12, %s11398_s13  ;;  %v4506_v4 = vsel %vm4459_vm3, %v4377_v35, %v8789_v14  ;;  %v9679_v50 = vunpack.i.l.bf16 %v9678_v45  ;;  %v9675_v9 = vunpack.i.h.bf16 %v9673_v62  ;;  %v9674_v32 = vunpack.i.l.bf16 %v9673_v62 }
 0x2a8   : > { %19013 = vst [vmem:[#allocation91_spill] sm:$0xff] %v14373_v49  ;;  %v4378_v7 = vsel %vm4330_vm2, %v11166_v19, %v19014_v48  ;;  %7675 = vmatpush1.bf16.xpose.msra.mxu0 %v14373_v49  ;;  %v9688_v55 = vpop.permute.xlu1 %9687  ;;  %v4635_v56 = vsel %vm4588_vm4, %v4506_v4, %v9109_v36  ;;  %v4348_v35 = vsel %vm4330_vm2, %v11168_v41, %v8395_v46  ;;  %v8715_v4 = vunpack.i.h.bf16 %v13136_v30 }
 0x2a9   : > { %v4507_v28 = vsel %vm4459_vm3, %v4378_v7, %v8790_v2  ;;  %v9690_v34 = vunpack.i.h.bf16 %v9688_v55  ;;  %v9689_v19 = vunpack.i.l.bf16 %v9688_v55  ;;  %v9683_v48 = vpop.permute.xlu0 %9682  ;;  %v11169_v55 = vld [vmem:[%s11503_s21 + $0xa0] sm:$0xff] }
 0x2aa   : > { %v4636_v12 = vsel %vm4588_vm4, %v4507_v28, %v9110_v57  ;;  %9977 = vrot.lane.b32.xlu1 %v9976_v11, %s11396_s10  ;;  %v9685_v2 = vunpack.i.h.bf16 %v9683_v48  ;;  %v9684_v14 = vunpack.i.l.bf16 %v9683_v48  ;;  %v4347_v36 = vsel %vm4330_vm2, %v11169_v55, %v8394_v63  ;;  %v19015_v57 = vld [vmem:[#allocation137_spill] sm:$0xff] }
 0x2ab   : > { %9972 = vrot.lane.b32.xlu0 %v18996_v51, %s11394_s25  ;;  %v4764_v45 = vsel %vm4717_vm8, %v4635_v56, %v9689_v19  ;;  %v4765_v7 = vsel %vm4717_vm8, %v4636_v12, %v9690_v34  ;;  %v5023_v51 = vsel %vm4975_vm5, %v9675_v9, %v9680_v44  ;;  %v5022_v19 = vsel %vm4975_vm5, %v9674_v32, %v9679_v50  ;;  %v19016_v44 = vld [vmem:[#allocation35_spill] sm:$0xff] }
 0x2ac   : > { %v14402_v11 = vpop.permute.xlu1 %9697  ;;  %v4893_v46 = vsel %vm4846_vm10, %v4764_v45, %v9674_v32  ;;  %v4894_v63 = vsel %vm4846_vm10, %v4765_v7, %v9675_v9  ;;  %v8714_v12 = vunpack.i.l.bf16 %v13136_v30  ;;  %v5151_v41 = vsel %vm5104_vm6, %v5022_v19, %v9684_v14 }
 0x2ad   : > { %v9693_v48 = vpop.permute.xlu0 %9692  ;;  %v5152_v55 = vsel %vm5104_vm6, %v5023_v51, %v9685_v2  ;;  %v9034_v50 = vunpack.i.l.bf16 %v13450_v6  ;;  %v9700_v32 = vunpack.i.h.bf16 %v14402_v11  ;;  %v9699_v30 = vunpack.i.l.bf16 %v14402_v11  ;;  %v19019_v11 = vld [vmem:[#allocation186_spill] sm:$0xff] }
 0x2ae   : > { %v9695_v34 = vunpack.i.h.bf16 %v9693_v48  ;;  %v9694_v56 = vunpack.i.l.bf16 %v9693_v48  ;;  %9987 = vrot.lane.b32.xlu1 %v18993_v22, %s11398_s13  ;;  %v14423_v2 = vpack.c.bf16 %v4894_v63, %v4893_v46  ;;  %v11171_v46 = vld [vmem:[%s11503_s21 + $0x170] sm:$0xff] }
 0x2af   : > { %9982 = vrot.lane.b32.xlu0 %v19016_v44, %s11395_s26 }
 0x2b0   : > { %v5280_v48 = vsel %vm5233_vm7, %v5151_v41, %v9694_v56  ;;  %v5281_v28 = vsel %vm5233_vm7, %v5152_v55, %v9695_v34  ;;  %v9708_v22 = vpop.permute.xlu1 %9707  ;;  %19018 = vst [vmem:[#allocation109_spill] sm:$0xff] %v14423_v2  ;;  %v8474_v34 = vunpack.i.l.bf16 %v19015_v57  ;;  %v4476_v56 = vsel %vm4459_vm3, %v4347_v36, %v8714_v12 }
 0x2b1   : > { %v9703_v9 = vpop.permute.xlu0 %9702  ;;  %v14421_v14 = vpack.c.bf16 %v5281_v28, %v5280_v48  ;;  %v9710_v45 = vunpack.i.h.bf16 %v9708_v22  ;;  %v9709_v7 = vunpack.i.l.bf16 %v9708_v22  ;;  %v9035_v41 = vunpack.i.h.bf16 %v13450_v6  ;;  %v11170_v28 = vld [vmem:[%s11503_s21 + $0x168] sm:$0xff]  ;;  %v19020_v48 = vld [vmem:[#allocation88_spill] sm:$0xff] }
 0x2b2   : > { %v9705_v51 = vunpack.i.h.bf16 %v9703_v9  ;;  %v9704_v19 = vunpack.i.l.bf16 %v9703_v9  ;;  %9997 = vrot.lane.b32.xlu1 %v19000_v1, %s11394_s25  ;;  %v10001_v63 = vpack.i.bf16 %v11171_v46, %v11170_v28  ;;  %v4477_v55 = vsel %vm4459_vm3, %v4348_v35, %v8715_v4 }
 0x2b3   : > { %19017 = vst [vmem:[#allocation66_spill] sm:$0xff] %v14421_v14  ;;  %9992 = vrot.lane.b32.xlu0 %v19019_v11, %s11397_s12  ;;  %7753 = vmatprep.subr.msk.bf16.mxu1 %vm13704_vm11, %v14421_v14  ;;  %v8795_v1 = vunpack.i.h.bf16 %v19020_v48  ;;  %v4605_v12 = vsel %vm4588_vm4, %v4476_v56, %v9034_v50  ;;  %v8794_v56 = vunpack.i.l.bf16 %v19020_v48 }
 0x2b4   : > { %v4993_v22 = vsel %vm4975_vm5, %v9700_v32, %v9705_v51  ;;  %v4992_v36 = vsel %vm4975_vm5, %v9699_v30, %v9704_v19  ;;  %7755 = vmatpush1.bf16.xpose.msra.mxu1 %v14423_v2  ;;  %v9718_v6 = vpop.permute.xlu1 %9717  ;;  %v19021_v51 = vld [vmem:[#allocation22_spill] sm:$0xff]  ;;  %v4606_v19 = vsel %vm4588_vm4, %v4477_v55, %v9035_v41  ;;  %v19023_v41 = vunpack.i.h.bf16 %v19010_v54 }
 0x2b5   : > { %v9720_v9 = vunpack.i.h.bf16 %v9718_v6  ;;  %v9719_v62 = vunpack.i.l.bf16 %v9718_v6  ;;  %v9713_v61 = vpop.permute.xlu0 %9712  ;;  %v5121_v14 = vsel %vm5104_vm6, %v4992_v36, %v9709_v7  ;;  %v5122_v35 = vsel %vm5104_vm6, %v4993_v22, %v9710_v45  ;;  %v11172_v22 = vld [vmem:[%s11503_s21 + $0xb8] sm:$0xff] }
 0x2b6   : > { %v9715_v4 = vunpack.i.h.bf16 %v9713_v61  ;;  %v9714_v28 = vunpack.i.l.bf16 %v9713_v61  ;;  %10007 = vrot.lane.b32.xlu1 %v19021_v51, %s11395_s26  ;;  %v11174_v51 = vld [vmem:[%s11503_s21 + $0x2a8] sm:$0xff] }
 0x2b7   : > { %v5250_v46 = vsel %vm5233_vm7, %v5121_v14, %v9719_v62  ;;  %v5251_v50 = vsel %vm5233_vm7, %v5122_v35, %v9720_v9  ;;  %10002 = vrot.lane.b32.xlu0 %v10001_v63, %s11396_s10  ;;  %v14460_v62 = vsel %vm4330_vm2, %v11172_v22, %v19023_v41  ;;  %v11173_v14 = vld [vmem:[%s11503_s21 + $0xb0] sm:$0xff]  ;;  %v19024_v63 = vunpack.i.l.bf16 %v19010_v54  ;;  %v11177_v22 = vld [vmem:[%s11503_s21 + $0x1e0] sm:$0xff] }
 0x2b8   : > { %v9728_v6 = vpop.permute.xlu1 %9727  ;;  %v14452_v7 = vpack.c.bf16 %v5251_v50, %v5250_v46  ;;  %v4734_v61 = vsel %vm4717_vm8, %v4605_v12, %v9714_v28  ;;  %v4735_v45 = vsel %vm4717_vm8, %v4606_v19, %v9715_v4  ;;  %v19025_v9 = vld [vmem:[#allocation187_spill] sm:$0xff]  ;;  %v19028_v50 = vld [vmem:[#allocation81_spill] sm:$0xff]  ;;  %v4379_v41 = vsel %vm4330_vm2, %v11177_v22, %v8474_v34 }
 0x2b9   : > { %v14466_v55 = vsel %vm4330_vm2, %v11173_v14, %v19024_v63  ;;  %v9723_v48 = vpop.permute.xlu0 %9722  ;;  %v4863_v36 = vsel %vm4846_vm10, %v4734_v61, %v9699_v30  ;;  %v4864_v12 = vsel %vm4846_vm10, %v4735_v45, %v9700_v32  ;;  %v9115_v35 = vunpack.i.h.bf16 %v19025_v9  ;;  %v19026_v28 = vld [vmem:[#allocation131_spill] sm:$0xff]  ;;  %v11176_v61 = vld [vmem:[%s11503_s21 + $0x1e8] sm:$0xff] }
 0x2ba   : > { %19022 = vst [vmem:[#allocation27_spill] sm:$0xff] %v14452_v7  ;;  %v9114_v4 = vunpack.i.l.bf16 %v19025_v9  ;;  %10017 = vrot.lane.b32.xlu1 %v19026_v28, %s11397_s12  ;;  %7678 = vmatprep.subr.msk.bf16.mxu0 %vm13704_vm11, %v14452_v7  ;;  %v14477_v54 = vpack.c.bf16 %v4864_v12, %v4863_v36  ;;  %v11175_v19 = vld [vmem:[%s11503_s21 + $0x2b0] sm:$0xff]  ;;  %v19029_v32 = vunpack.i.h.bf16 %v19015_v57  ;;  %v4508_v14 = vsel %vm4459_vm3, %v4379_v41, %v8794_v56 }
 0x2bb   : > { %v10026_v46 = vpack.i.bf16 %v11175_v19, %v11174_v51  ;;  %10012 = vrot.lane.b32.xlu0 %v18997_v8, %s11398_s13  ;;  %v9730_v36 = vunpack.i.h.bf16 %v9728_v6  ;;  %v9729_v12 = vunpack.i.l.bf16 %v9728_v6  ;;  %v9725_v28 = vunpack.i.h.bf16 %v9723_v48 }
 0x2bc   : > { %19027 = vst [vmem:[#allocation154_spill] sm:$0xff] %v14477_v54  ;;  %v4380_v45 = vsel %vm4330_vm2, %v11176_v61, %v19029_v32  ;;  %7680 = vmatpush1.bf16.xpose.msra.mxu0 %v14477_v54  ;;  %v9738_v9 = vpop.permute.xlu1 %9737  ;;  %v9724_v51 = vunpack.i.l.bf16 %v9723_v48  ;;  %v4637_v32 = vsel %vm4588_vm4, %v4508_v14, %v9114_v4  ;;  %v19031_v4 = vld [vmem:[#allocation136_spill] sm:$0xff] }
 0x2bd   : > { %v4509_v63 = vsel %vm4459_vm3, %v4380_v45, %v8795_v1  ;;  %v9740_v57 = vunpack.i.h.bf16 %v9738_v9  ;;  %v9739_v19 = vunpack.i.l.bf16 %v9738_v9  ;;  %v9733_v61 = vpop.permute.xlu0 %9732  ;;  %v19030_v45 = vld [vmem:[#allocation85_spill] sm:$0xff]  ;;  %v5025_v9 = vsel %vm4975_vm5, %v9725_v28, %v9730_v36  ;;  %v19033_v36 = vld [vmem:[#allocation38_spill] sm:$0xff] }
 0x2be   : > { %v4638_v34 = vsel %vm4588_vm4, %v4509_v63, %v9115_v35  ;;  %10027 = vrot.lane.b32.xlu1 %v10026_v46, %s11396_s10  ;;  %v9735_v8 = vunpack.i.h.bf16 %v9733_v61  ;;  %v9734_v56 = vunpack.i.l.bf16 %v9733_v61  ;;  %v19032_v46 = vld [vmem:[#allocation275_spill] sm:$0xff] }
 0x2bf   : > { %10022 = vrot.lane.b32.xlu0 %v19007_v27, %s11394_s25  ;;  %v4766_v1 = vsel %vm4717_vm8, %v4637_v32, %v9739_v19  ;;  %v4767_v6 = vsel %vm4717_vm8, %v4638_v34, %v9740_v57  ;;  %v8720_v63 = vunpack.i.h.bf16 %v19032_v46  ;;  %v5024_v27 = vsel %vm4975_vm5, %v9724_v51, %v9729_v12  ;;  %v19034_v12 = vld [vmem:[#allocation171_spill] sm:$0xff] }
 0x2c0   : > { %v14504_v35 = vpop.permute.xlu1 %9747  ;;  %v4895_v57 = vsel %vm4846_vm10, %v4766_v1, %v9724_v51  ;;  %v4896_v34 = vsel %vm4846_vm10, %v4767_v6, %v9725_v28  ;;  %v8719_v41 = vunpack.i.l.bf16 %v19032_v46  ;;  %v5153_v14 = vsel %vm5104_vm6, %v5024_v27, %v9734_v56 }
 0x2c1   : > { %v9743_v61 = vpop.permute.xlu0 %9742  ;;  %v5154_v22 = vsel %vm5104_vm6, %v5025_v9, %v9735_v8  ;;  %v9039_v48 = vunpack.i.l.bf16 %v19034_v12  ;;  %v9750_v51 = vunpack.i.h.bf16 %v14504_v35  ;;  %v9749_v28 = vunpack.i.l.bf16 %v14504_v35  ;;  %v19037_v35 = vld [vmem:[#allocation197_spill] sm:$0xff] }
 0x2c2   : > { %v9745_v19 = vunpack.i.h.bf16 %v9743_v61  ;;  %v9744_v32 = vunpack.i.l.bf16 %v9743_v61  ;;  %10037 = vrot.lane.b32.xlu1 %v19004_v25, %s11398_s13  ;;  %v14525_v8 = vpack.c.bf16 %v4896_v34, %v4895_v57  ;;  %v19038_v34 = vld [vmem:[#allocation87_spill] sm:$0xff] }
 0x2c3   : > { %10032 = vrot.lane.b32.xlu0 %v19033_v36, %s11395_s26 }
 0x2c4   : > { %v5282_v61 = vsel %vm5233_vm7, %v5153_v14, %v9744_v32  ;;  %v5283_v30 = vsel %vm5233_vm7, %v5154_v22, %v9745_v19  ;;  %v9758_v25 = vpop.permute.xlu1 %9757  ;;  %19036 = vst [vmem:[#allocation70_spill] sm:$0xff] %v14525_v8  ;;  %v8479_v22 = vunpack.i.l.bf16 %v19031_v4  ;;  %v4479_v14 = vsel %vm4459_vm3, %v14460_v62, %v8720_v63  ;;  %v11179_v32 = vld [vmem:[%s11503_s21 + $0x180] sm:$0xff] }
 0x2c5   : > { %v9753_v1 = vpop.permute.xlu0 %9752  ;;  %v14523_v56 = vpack.c.bf16 %v5283_v30, %v5282_v61  ;;  %v9760_v6 = vunpack.i.h.bf16 %v9758_v25  ;;  %v9759_v46 = vunpack.i.l.bf16 %v9758_v25  ;;  %v9040_v19 = vunpack.i.h.bf16 %v19034_v12  ;;  %v11178_v30 = vld [vmem:[%s11503_s21 + $0x178] sm:$0xff] }
 0x2c6   : > { %v9755_v9 = vunpack.i.h.bf16 %v9753_v1  ;;  %v9754_v27 = vunpack.i.l.bf16 %v9753_v1  ;;  %10047 = vrot.lane.b32.xlu1 %v19012_v29, %s11394_s25  ;;  %v10051_v57 = vpack.i.bf16 %v11179_v32, %v11178_v30  ;;  %v4478_v29 = vsel %vm4459_vm3, %v14466_v55, %v8719_v41 }
 0x2c7   : > { %19035 = vst [vmem:[#allocation14_spill] sm:$0xff] %v14523_v56  ;;  %10042 = vrot.lane.b32.xlu0 %v19037_v35, %s11397_s12  ;;  %7758 = vmatprep.subr.msk.bf16.mxu1 %vm13704_vm11, %v14523_v56  ;;  %v8800_v61 = vunpack.i.h.bf16 %v19038_v34  ;;  %v4607_v12 = vsel %vm4588_vm4, %v4478_v29, %v9039_v48  ;;  %v8799_v29 = vunpack.i.l.bf16 %v19038_v34 }
 0x2c8   : > { %v4995_v25 = vsel %vm4975_vm5, %v9750_v51, %v9755_v9  ;;  %v4994_v62 = vsel %vm4975_vm5, %v9749_v28, %v9754_v27  ;;  %7760 = vmatpush1.bf16.xpose.msra.mxu1 %v14525_v8  ;;  %v9768_v63 = vpop.permute.xlu1 %9767  ;;  %v19039_v9 = vld [vmem:[#allocation21_spill] sm:$0xff]  ;;  %v4608_v27 = vsel %vm4588_vm4, %v4479_v14, %v9040_v19  ;;  %v19041_v14 = vunpack.i.h.bf16 %v19028_v50  ;;  %v11181_v19 = vld [vmem:[%s11503_s21 + $0xd8] sm:$0xff] }
 0x2c9   : > { %v9770_v1 = vunpack.i.h.bf16 %v9768_v63  ;;  %v9769_v2 = vunpack.i.l.bf16 %v9768_v63  ;;  %v9763_v56 = vpop.permute.xlu0 %9762  ;;  %v5123_v30 = vsel %vm5104_vm6, %v4994_v62, %v9759_v46  ;;  %v5124_v55 = vsel %vm5104_vm6, %v4995_v25, %v9760_v6  ;;  %v11180_v25 = vld [vmem:[%s11503_s21 + $0xe0] sm:$0xff] }
 0x2ca   : > { %v9765_v41 = vunpack.i.h.bf16 %v9763_v56  ;;  %v9764_v32 = vunpack.i.l.bf16 %v9763_v56  ;;  %10057 = vrot.lane.b32.xlu1 %v19039_v9, %s11395_s26  ;;  %v11183_v9 = vld [vmem:[%s11503_s21 + $0x2c0] sm:$0xff] }
 0x2cb   : > { %v5252_v8 = vsel %vm5233_vm7, %v5123_v30, %v9769_v2  ;;  %v5253_v48 = vsel %vm5233_vm7, %v5124_v55, %v9770_v1  ;;  %10052 = vrot.lane.b32.xlu0 %v10051_v57, %s11396_s10  ;;  %v14564_v2 = vsel %vm4330_vm2, %v11180_v25, %v19041_v14  ;;  %v19042_v57 = vunpack.i.l.bf16 %v19028_v50  ;;  %v19043_v1 = vld [vmem:[#allocation184_spill] sm:$0xff]  ;;  %v11186_v14 = vld [vmem:[%s11503_s21 + $0x1f0] sm:$0xff] }
 0x2cc   : > { %v9778_v63 = vpop.permute.xlu1 %9777  ;;  %v14556_v46 = vpack.c.bf16 %v5253_v48, %v5252_v8  ;;  %v4736_v56 = vsel %vm4717_vm8, %v4607_v12, %v9764_v32  ;;  %v4737_v6 = vsel %vm4717_vm8, %v4608_v27, %v9765_v41  ;;  %v9120_v30 = vunpack.i.h.bf16 %v19043_v1  ;;  %v19044_v41 = vld [vmem:[#allocation130_spill] sm:$0xff]  ;;  %v11182_v32 = vld [vmem:[%s11503_s21 + $0x2b8] sm:$0xff]  ;;  %v11184_v48 = vld [vmem:[%s11503_s21 + $0xd0] sm:$0xff] }
 0x2cd   : > { %v14570_v34 = vsel %vm4330_vm2, %v11181_v19, %v19042_v57  ;;  %v9773_v8 = vpop.permute.xlu0 %9772  ;;  %v4865_v62 = vsel %vm4846_vm10, %v4736_v56, %v9749_v28  ;;  %v4866_v12 = vsel %vm4846_vm10, %v4737_v6, %v9750_v51  ;;  %v9119_v55 = vunpack.i.l.bf16 %v19043_v1  ;;  %v11185_v56 = vld [vmem:[%s11503_s21 + $0x1f8] sm:$0xff] }
 0x2ce   : > { %19040 = vst [vmem:[#allocation101_spill] sm:$0xff] %v14556_v46  ;;  %10067 = vrot.lane.b32.xlu1 %v19044_v41, %s11397_s12  ;;  %7683 = vmatprep.subr.msk.bf16.mxu0 %vm13704_vm11, %v14556_v46  ;;  %v14581_v50 = vpack.c.bf16 %v4866_v12, %v4865_v62  ;;  %v10076_v27 = vpack.i.bf16 %v11183_v9, %v11182_v32  ;;  %v19046_v28 = vunpack.i.h.bf16 %v19030_v45  ;;  %v19047_v6 = vunpack.i.h.bf16 %v19031_v4 }
 0x2cf   : > { %v4381_v19 = vsel %vm4330_vm2, %v11186_v14, %v8479_v22  ;;  %10062 = vrot.lane.b32.xlu0 %v19008_v43, %s11398_s13  ;;  %v9780_v12 = vunpack.i.h.bf16 %v9778_v63  ;;  %v9779_v1 = vunpack.i.l.bf16 %v9778_v63  ;;  %v9775_v32 = vunpack.i.h.bf16 %v9773_v8  ;;  %v19049_v14 = vld [vmem:[#allocation90_spill] sm:$0xff] }
 0x2d0   : > { %19045 = vst [vmem:[#allocation106_spill] sm:$0xff] %v14581_v50  ;;  %v14589_v51 = vsel %vm4330_vm2, %v11184_v48, %v19046_v28  ;;  %v4382_v25 = vsel %vm4330_vm2, %v11185_v56, %v19047_v6  ;;  %v4510_v62 = vsel %vm4459_vm3, %v4381_v19, %v8799_v29  ;;  %7685 = vmatpush1.bf16.xpose.msra.mxu0 %v14581_v50  ;;  %v9788_v41 = vpop.permute.xlu1 %9787  ;;  %v9774_v4 = vunpack.i.l.bf16 %v9773_v8  ;;  %v11187_v6 = vld [vmem:[%s11503_s21 + $0xc8] sm:$0xff]  ;;  %v19050_v19 = vld [vmem:[#allocation145_spill] sm:$0xff] }
 0x2d1   : > { %v4511_v57 = vsel %vm4459_vm3, %v4382_v25, %v8800_v61  ;;  %v9790_v9 = vunpack.i.h.bf16 %v9788_v41  ;;  %v9789_v48 = vunpack.i.l.bf16 %v9788_v41  ;;  %v9783_v28 = vpop.permute.xlu0 %9782  ;;  %v4639_v22 = vsel %vm4588_vm4, %v4510_v62, %v9119_v55  ;;  %v19051_v62 = vld [vmem:[#allocation277_spill] sm:$0xff] }
 0x2d2   : > { %v4640_v56 = vsel %vm4588_vm4, %v4511_v57, %v9120_v30  ;;  %10077 = vrot.lane.b32.xlu1 %v10076_v27, %s11396_s10  ;;  %v9785_v43 = vunpack.i.h.bf16 %v9783_v28  ;;  %v9784_v61 = vunpack.i.l.bf16 %v9783_v28  ;;  %v19048_v8 = vunpack.i.l.bf16 %v19030_v45 }
 0x2d3   : > { %10072 = vrot.lane.b32.xlu0 %v19019_v11, %s11394_s25  ;;  %v4768_v29 = vsel %vm4717_vm8, %v4639_v22, %v9789_v48  ;;  %v4769_v63 = vsel %vm4717_vm8, %v4640_v56, %v9790_v9  ;;  %v8725_v41 = vunpack.i.h.bf16 %v19051_v62  ;;  %v5027_v11 = vsel %vm4975_vm5, %v9775_v32, %v9780_v12  ;;  %v19052_v12 = vld [vmem:[#allocation37_spill] sm:$0xff] }
 0x2d4   : > { %v4351_v25 = vsel %vm4330_vm2, %v11187_v6, %v19048_v8  ;;  %v14616_v57 = vpop.permute.xlu1 %9797  ;;  %v5026_v48 = vsel %vm4975_vm5, %v9774_v4, %v9779_v1  ;;  %v4897_v45 = vsel %vm4846_vm10, %v4768_v29, %v9774_v4  ;;  %v4898_v56 = vsel %vm4846_vm10, %v4769_v63, %v9775_v32  ;;  %v19053_v1 = vld [vmem:[#allocation175_spill] sm:$0xff] }
 0x2d5   : > { %v9793_v9 = vpop.permute.xlu0 %9792  ;;  %v8724_v6 = vunpack.i.l.bf16 %v19051_v62  ;;  %v5155_v8 = vsel %vm5104_vm6, %v5026_v48, %v9784_v61  ;;  %v5156_v30 = vsel %vm5104_vm6, %v5027_v11, %v9785_v43  ;;  %v9044_v27 = vunpack.i.l.bf16 %v19053_v1 }
 0x2d6   : > { %v9795_v28 = vunpack.i.h.bf16 %v9793_v9  ;;  %v9794_v22 = vunpack.i.l.bf16 %v9793_v9  ;;  %10087 = vrot.lane.b32.xlu1 %v19016_v44, %s11398_s13  ;;  %v9800_v4 = vunpack.i.h.bf16 %v14616_v57  ;;  %v9799_v32 = vunpack.i.l.bf16 %v14616_v57 }
 0x2d7   : > { %10082 = vrot.lane.b32.xlu0 %v19052_v12, %s11395_s26  ;;  %v14637_v43 = vpack.c.bf16 %v4898_v56, %v4897_v45  ;;  %v4480_v57 = vsel %vm4459_vm3, %v4351_v25, %v8724_v6  ;;  %v11188_v45 = vld [vmem:[%s11503_s21 + $0x2d0] sm:$0xff]  ;;  %v11189_v56 = vld [vmem:[%s11503_s21 + $0x2d8] sm:$0xff] }
 0x2d8   : > { %v5284_v9 = vsel %vm5233_vm7, %v5155_v8, %v9794_v22  ;;  %v5285_v55 = vsel %vm5233_vm7, %v5156_v30, %v9795_v28  ;;  %v9808_v44 = vpop.permute.xlu1 %9807  ;;  %v5363_v30 = vld [vmem:[%s17836_s1 + $0x8] sm:$0xff]  ;;  %v8484_v28 = vunpack.i.l.bf16 %v19050_v19  ;;  %v4481_v8 = vsel %vm4459_vm3, %v14589_v51, %v8725_v41 }
 0x2d9   : > { %v9803_v29 = vpop.permute.xlu0 %9802  ;;  %v14635_v61 = vpack.c.bf16 %v5285_v55, %v5284_v9  ;;  %19055 = vst [vmem:[#allocation165_spill] sm:$0xff] %v14637_v43  ;;  %v9810_v63 = vunpack.i.h.bf16 %v9808_v44  ;;  %v9809_v62 = vunpack.i.l.bf16 %v9808_v44  ;;  %v9045_v55 = vunpack.i.h.bf16 %v19053_v1  ;;  %v19056_v22 = vld [vmem:[#allocation194_spill] sm:$0xff]  ;;  %7290 = vmatprep.mubr.msk.f32.mxu0 %vm5368_vm9, %v5363_v30  ;;  %7325 = vmatprep.mubr.msk.f32.mxu1 %vm5368_vm9, %v5363_v30 }
 0x2da   : > { %v9805_v11 = vunpack.i.h.bf16 %v9803_v29  ;;  %v9804_v48 = vunpack.i.l.bf16 %v9803_v29  ;;  %10097 = vrot.lane.b32.xlu1 %v19037_v35, %s11394_s25  ;;  %v10101_v35 = vpack.i.bf16 %v11189_v56, %v11188_v45  ;;  %v19057_v9 = vld [vmem:[#allocation94_spill] sm:$0xff]  ;;  %v4609_v1 = vsel %vm4588_vm4, %v4480_v57, %v9044_v27 }
 0x2db   : > { %19054 = vst [vmem:[#allocation30_spill] sm:$0xff] %v14635_v61  ;;  %10092 = vrot.lane.b32.xlu0 %v19056_v22, %s11397_s12  ;;  %7763 = vmatprep.subr.msk.bf16.mxu1 %vm13704_vm11, %v14635_v61  ;;  %v8805_v44 = vunpack.i.h.bf16 %v19057_v9  ;;  %v4610_v56 = vsel %vm4588_vm4, %v4481_v8, %v9045_v55  ;;  %v8804_v30 = vunpack.i.l.bf16 %v19057_v9  ;;  %v19061_v9 = vld [vmem:[#allocation191_spill] sm:$0xff] }
 0x2dc   : > { %v4997_v29 = vsel %vm4975_vm5, %v9800_v4, %v9805_v11  ;;  %v4996_v25 = vsel %vm4975_vm5, %v9799_v32, %v9804_v48  ;;  %7765 = vmatpush1.bf16.xpose.msra.mxu1 %v14637_v43  ;;  %v9818_v6 = vpop.permute.xlu1 %9817  ;;  %v19058_v48 = vld [vmem:[#allocation40_spill] sm:$0xff] }
 0x2dd   : > { %v9820_v61 = vunpack.i.h.bf16 %v9818_v6  ;;  %v9819_v50 = vunpack.i.l.bf16 %v9818_v6  ;;  %v9813_v46 = vpop.permute.xlu0 %9812  ;;  %v5125_v51 = vsel %vm5104_vm6, %v4996_v25, %v9809_v62  ;;  %v5126_v41 = vsel %vm5104_vm6, %v4997_v29, %v9810_v63  ;;  %v19060_v29 = vld [vmem:[#allocation92_spill] sm:$0xff]  ;;  %v19062_v6 = vld [vmem:[#allocation205_spill] sm:$0xff] }
 0x2de   : > { %v9815_v45 = vunpack.i.h.bf16 %v9813_v46  ;;  %v9814_v11 = vunpack.i.l.bf16 %v9813_v46  ;;  %10107 = vrot.lane.b32.xlu1 %v19058_v48, %s11395_s26  ;;  %v8415_v55 = vunpack.i.h.bf16 %v19060_v29  ;;  %v9125_v25 = vunpack.i.h.bf16 %v19061_v9 }
 0x2df   : > { %v5254_v43 = vsel %vm5233_vm7, %v5125_v51, %v9819_v50  ;;  %v5255_v27 = vsel %vm5233_vm7, %v5126_v41, %v9820_v61  ;;  %10102 = vrot.lane.b32.xlu0 %v10101_v35, %s11396_s10  ;;  %v8414_v50 = vunpack.i.l.bf16 %v19060_v29  ;;  %v11190_v51 = vld [vmem:[%s11503_s21 + $0x410] sm:$0xff]  ;;  %v11191_v41 = vld [vmem:[%s11503_s21 + $0x418] sm:$0xff] }
 0x2e0   : > { %v9828_v62 = vpop.permute.xlu1 %9827  ;;  %v14672_v57 = vpack.c.bf16 %v5255_v27, %v5254_v43  ;;  %v4738_v46 = vsel %vm4717_vm8, %v4609_v1, %v9814_v11  ;;  %v4739_v63 = vsel %vm4717_vm8, %v4610_v56, %v9815_v45  ;;  %v9124_v43 = vunpack.i.l.bf16 %v19061_v9  ;;  %v11192_v11 = vld [vmem:[%s11503_s21 + $0x108] sm:$0xff]  ;;  %v11193_v56 = vld [vmem:[%s11503_s21 + $0x210] sm:$0xff] }
 0x2e1   : > { %v9823_v61 = vpop.permute.xlu0 %9822  ;;  %v4867_v35 = vsel %vm4846_vm10, %v4738_v46, %v9799_v32  ;;  %v4868_v8 = vsel %vm4846_vm10, %v4739_v63, %v9800_v4  ;;  %v10126_v45 = vpack.i.bf16 %v11191_v41, %v11190_v51  ;;  %v19064_v32 = vunpack.i.h.bf16 %v19049_v14  ;;  %v11194_v63 = vld [vmem:[%s11503_s21 + $0x208] sm:$0xff] }
 0x2e2   : > { %19059 = vst [vmem:[#allocation13_spill] sm:$0xff] %v14672_v57  ;;  %10117 = vrot.lane.b32.xlu1 %v19062_v6, %s11397_s12  ;;  %7688 = vmatprep.subr.msk.bf16.mxu0 %vm13704_vm11, %v14672_v57  ;;  %v14687_v1 = vpack.c.bf16 %v4868_v8, %v4867_v35  ;;  %v19065_v27 = vunpack.i.h.bf16 %v19050_v19  ;;  %v4383_v29 = vsel %vm4330_vm2, %v11194_v63, %v8484_v28  ;;  %v9830_v9 = vunpack.i.h.bf16 %v9828_v62 }
 0x2e3   : > { %v14695_v4 = vsel %vm4330_vm2, %v11192_v11, %v19064_v32  ;;  %10112 = vrot.lane.b32.xlu0 %v19033_v36, %s11398_s13  ;;  %v4512_v35 = vsel %vm4459_vm3, %v4383_v29, %v8804_v30  ;;  %v9829_v51 = vunpack.i.l.bf16 %v9828_v62  ;;  %v9825_v19 = vunpack.i.h.bf16 %v9823_v61  ;;  %v19066_v62 = vld [vmem:[#allocation254_spill] sm:$0xff] }
 0x2e4   : > { %19063 = vst [vmem:[#allocation65_spill] sm:$0xff] %v14687_v1  ;;  %v4384_v46 = vsel %vm4330_vm2, %v11193_v56, %v19065_v27  ;;  %7690 = vmatpush1.bf16.xpose.msra.mxu0 %v14687_v1  ;;  %v9838_v41 = vpop.permute.xlu1 %9837  ;;  %v9824_v11 = vunpack.i.l.bf16 %v9823_v61  ;;  %v4641_v27 = vsel %vm4588_vm4, %v4512_v35, %v9124_v43  ;;  %v11195_v61 = vld [vmem:[%s11503_s21 + $0x100] sm:$0xff]  ;;  %v19067_v29 = vunpack.i.l.bf16 %v19049_v14  ;;  %v11196_v43 = vld [vmem:[%s11503_s21 + $0xf8] sm:$0xff] }
 0x2e5   : > { %v4513_v8 = vsel %vm4459_vm3, %v4384_v46, %v8805_v44  ;;  %v9840_v32 = vunpack.i.h.bf16 %v9838_v41  ;;  %v9839_v56 = vunpack.i.l.bf16 %v9838_v41  ;;  %v9833_v28 = vpop.permute.xlu0 %9832 }
 0x2e6   : > { %v4642_v36 = vsel %vm4588_vm4, %v4513_v8, %v9125_v25  ;;  %10127 = vrot.lane.b32.xlu1 %v10126_v45, %s11396_s10  ;;  %v9835_v44 = vunpack.i.h.bf16 %v9833_v28  ;;  %v9834_v30 = vunpack.i.l.bf16 %v9833_v28  ;;  %v14719_v41 = vsel %vm4330_vm2, %v11195_v61, %v19067_v29  ;;  %v11197_v45 = vld [vmem:[%s11503_s21 + $0xf0] sm:$0xff]  ;;  %v19068_v8 = vld [vmem:[#allocation142_spill] sm:$0xff] }
 0x2e7   : > { %10122 = vrot.lane.b32.xlu0 %v19066_v62, %s11394_s25  ;;  %v4770_v46 = vsel %vm4717_vm8, %v4641_v27, %v9839_v56  ;;  %v4771_v63 = vsel %vm4717_vm8, %v4642_v36, %v9840_v32  ;;  %v14723_v25 = vsel %vm4330_vm2, %v11196_v43, %v8415_v55  ;;  %v14727_v35 = vsel %vm4330_vm2, %v11197_v45, %v8414_v50  ;;  %v19069_v56 = vld [vmem:[#allocation276_spill] sm:$0xff] }
 0x2e8   : > { %v14730_v1 = vpop.permute.xlu1 %9847  ;;  %v8730_v32 = vunpack.i.h.bf16 %v19069_v56  ;;  %v5029_v27 = vsel %vm4975_vm5, %v9825_v19, %v9830_v9  ;;  %v5028_v14 = vsel %vm4975_vm5, %v9824_v11, %v9829_v51  ;;  %v19070_v55 = vld [vmem:[#allocation56_spill] sm:$0xff]  ;;  %v4899_v43 = vsel %vm4846_vm10, %v4770_v46, %v9824_v11  ;;  %v19071_v9 = vld [vmem:[#allocation58_spill] sm:$0xff] }
 0x2e9   : > { %v9843_v36 = vpop.permute.xlu0 %9842  ;;  %v4900_v50 = vsel %vm4846_vm10, %v4771_v63, %v9825_v19  ;;  %v8729_v45 = vunpack.i.l.bf16 %v19069_v56  ;;  %v5157_v28 = vsel %vm5104_vm6, %v5028_v14, %v9834_v30  ;;  %v5158_v57 = vsel %vm5104_vm6, %v5029_v27, %v9835_v44  ;;  %v19072_v51 = vld [vmem:[#allocation172_spill] sm:$0xff] }
 0x2ea   : > { %v9845_v61 = vunpack.i.h.bf16 %v9843_v36  ;;  %v9844_v29 = vunpack.i.l.bf16 %v9843_v36  ;;  %10137 = vrot.lane.b32.xlu1 %v19070_v55, %s11398_s13  ;;  %v9049_v54 = vunpack.i.l.bf16 %v19072_v51  ;;  %v9850_v11 = vunpack.i.h.bf16 %v14730_v1 }
 0x2eb   : > { %10132 = vrot.lane.b32.xlu0 %v19071_v9, %s11395_s26  ;;  %v9849_v19 = vunpack.i.l.bf16 %v14730_v1  ;;  %v14751_v44 = vpack.c.bf16 %v4900_v50, %v4899_v43  ;;  %v19075_v1 = vld [vmem:[#allocation258_spill] sm:$0xff] }
 0x2ec   : > { %v5286_v36 = vsel %vm5233_vm7, %v5157_v28, %v9844_v29  ;;  %v5287_v53 = vsel %vm5233_vm7, %v5158_v57, %v9845_v61  ;;  %v9858_v7 = vpop.permute.xlu1 %9857  ;;  %v8489_v57 = vunpack.i.l.bf16 %v19068_v8  ;;  %v4483_v28 = vsel %vm4459_vm3, %v14564_v2, %v8730_v32  ;;  %v19076_v2 = vld [vmem:[#allocation93_spill] sm:$0xff] }
 0x2ed   : > { %v9853_v46 = vpop.permute.xlu0 %9852  ;;  %v14749_v30 = vpack.c.bf16 %v5287_v53, %v5286_v36  ;;  %19074 = vst [vmem:[#allocation116_spill] sm:$0xff] %v14751_v44  ;;  %v9860_v63 = vunpack.i.h.bf16 %v9858_v7  ;;  %v9859_v56 = vunpack.i.l.bf16 %v9858_v7  ;;  %v9050_v61 = vunpack.i.h.bf16 %v19072_v51  ;;  %v14765_v53 = vld [vmem:[%s11503_s21 + $0x2e0] sm:$0xff]  ;;  %v14768_v7 = vld [vmem:[%s11503_s21 + $0x2e8] sm:$0xff] }
 0x2ee   : > { %v9855_v27 = vunpack.i.h.bf16 %v9853_v46  ;;  %v9854_v14 = vunpack.i.l.bf16 %v9853_v46  ;;  %10147 = vrot.lane.b32.xlu1 %v19056_v22, %s11394_s25  ;;  %v10151_v22 = vpack.i.bf16 %v14768_v7, %v14765_v53  ;;  %v4482_v29 = vsel %vm4459_vm3, %v14570_v34, %v8729_v45  ;;  %v19077_v45 = vld [vmem:[#allocation39_spill] sm:$0xff] }
 0x2ef   : > { %19073 = vst [vmem:[#allocation100_spill] sm:$0xff] %v14749_v30  ;;  %10142 = vrot.lane.b32.xlu0 %v19075_v1, %s11397_s12  ;;  %7768 = vmatprep.subr.msk.bf16.mxu1 %vm13704_vm11, %v14749_v30  ;;  %v8810_v32 = vunpack.i.h.bf16 %v19076_v2  ;;  %v4611_v36 = vsel %vm4588_vm4, %v4482_v29, %v9049_v54  ;;  %v8809_v54 = vunpack.i.l.bf16 %v19076_v2 }
 0x2f0   : > { %v4999_v43 = vsel %vm4975_vm5, %v9850_v11, %v9855_v27  ;;  %v4998_v50 = vsel %vm4975_vm5, %v9849_v19, %v9854_v14  ;;  %7770 = vmatpush1.bf16.xpose.msra.mxu1 %v14751_v44  ;;  %v9868_v51 = vpop.permute.xlu1 %9867  ;;  %v4612_v27 = vsel %vm4588_vm4, %v4483_v28, %v9050_v61 }
 0x2f1   : > { %v9870_v46 = vunpack.i.h.bf16 %v9868_v51  ;;  %v9869_v30 = vunpack.i.l.bf16 %v9868_v51  ;;  %v9863_v49 = vpop.permute.xlu0 %9862  ;;  %v5127_v15 = vsel %vm5104_vm6, %v4998_v50, %v9859_v56  ;;  %v5128_v26 = vsel %vm5104_vm6, %v4999_v43, %v9860_v63  ;;  %v19079_v43 = vld [vmem:[#allocation98_spill] sm:$0xff]  ;;  %v11200_v51 = vld [vmem:[%s11503_s21 + $0x420] sm:$0xff] }
 0x2f2   : > { %v9865_v18 = vunpack.i.h.bf16 %v9863_v49  ;;  %v9864_v34 = vunpack.i.l.bf16 %v9863_v49  ;;  %10157 = vrot.lane.b32.xlu1 %v19077_v45, %s11395_s26  ;;  %v8430_v28 = vunpack.i.h.bf16 %v19079_v43  ;;  %v19081_v50 = vld [vmem:[#allocation202_spill] sm:$0xff] }
 0x2f3   : > { %v5256_v14 = vsel %vm5233_vm7, %v5127_v15, %v9869_v30  ;;  %v5257_v44 = vsel %vm5233_vm7, %v5128_v26, %v9870_v46  ;;  %10152 = vrot.lane.b32.xlu0 %v10151_v22, %s11396_s10  ;;  %v8429_v15 = vunpack.i.l.bf16 %v19079_v43  ;;  %v19080_v22 = vld [vmem:[#allocation188_spill] sm:$0xff] }
 0x2f4   : > { %v9878_v56 = vpop.permute.xlu1 %9877  ;;  %v14788_v29 = vpack.c.bf16 %v5257_v44, %v5256_v14  ;;  %v4740_v49 = vsel %vm4717_vm8, %v4611_v36, %v9864_v34  ;;  %v4741_v63 = vsel %vm4717_vm8, %v4612_v27, %v9865_v18  ;;  %v9130_v2 = vunpack.i.h.bf16 %v19080_v22  ;;  %v11201_v36 = vld [vmem:[%s11503_s21 + $0x428] sm:$0xff]  ;;  %v19083_v34 = vld [vmem:[#allocation99_spill] sm:$0xff]  ;;  %v11202_v27 = vld [vmem:[%s11503_s21 + $0x220] sm:$0xff] }
 0x2f5   : > { %v9873_v26 = vpop.permute.xlu0 %9872  ;;  %v4869_v30 = vsel %vm4846_vm10, %v4740_v49, %v9849_v19  ;;  %v4870_v61 = vsel %vm4846_vm10, %v4741_v63, %v9850_v11  ;;  %v9129_v44 = vunpack.i.l.bf16 %v19080_v22  ;;  %v10176_v46 = vpack.i.bf16 %v11201_v36, %v11200_v51  ;;  %v11203_v49 = vld [vmem:[%s11503_s21 + $0x218] sm:$0xff] }
 0x2f6   : > { %19078 = vst [vmem:[#allocation29_spill] sm:$0xff] %v14788_v29  ;;  %10167 = vrot.lane.b32.xlu1 %v19081_v50, %s11397_s12  ;;  %7693 = vmatprep.subr.msk.bf16.mxu0 %vm13704_vm11, %v14788_v29  ;;  %v14803_v18 = vpack.c.bf16 %v4870_v61, %v4869_v30  ;;  %v19084_v11 = vunpack.i.h.bf16 %v19068_v8  ;;  %v4385_v63 = vsel %vm4330_vm2, %v11203_v49, %v8489_v57  ;;  %v9880_v61 = vunpack.i.h.bf16 %v9878_v56 }
 0x2f7   : > { %10162 = vrot.lane.b32.xlu0 %v19052_v12, %s11398_s13  ;;  %v4514_v30 = vsel %vm4459_vm3, %v4385_v63, %v8809_v54  ;;  %v9879_v22 = vunpack.i.l.bf16 %v9878_v56  ;;  %v9875_v8 = vunpack.i.h.bf16 %v9873_v26  ;;  %v9874_v36 = vunpack.i.l.bf16 %v9873_v26  ;;  %v19085_v56 = vld [vmem:[#allocation253_spill] sm:$0xff]  ;;  %v11204_v63 = vld [vmem:[%s11503_s21 + $0x130] sm:$0xff] }
 0x2f8   : > { %19082 = vst [vmem:[#allocation164_spill] sm:$0xff] %v14803_v18  ;;  %v4386_v14 = vsel %vm4330_vm2, %v11202_v27, %v19084_v11  ;;  %7695 = vmatpush1.bf16.xpose.msra.mxu0 %v14803_v18  ;;  %v9888_v51 = vpop.permute.xlu1 %9887  ;;  %v4643_v57 = vsel %vm4588_vm4, %v4514_v30, %v9129_v44  ;;  %v14828_v26 = vsel %vm4330_vm2, %v11204_v63, %v8430_v28  ;;  %v19087_v30 = vld [vmem:[#allocation278_spill] sm:$0xff]  ;;  %v19088_v63 = vld [vmem:[#allocation55_spill] sm:$0xff] }
 0x2f9   : > { %v4515_v43 = vsel %vm4459_vm3, %v4386_v14, %v8810_v32  ;;  %v9890_v27 = vunpack.i.h.bf16 %v9888_v51  ;;  %v9889_v11 = vunpack.i.l.bf16 %v9888_v51  ;;  %v9883_v19 = vpop.permute.xlu0 %9882  ;;  %v11205_v51 = vld [vmem:[%s11503_s21 + $0x128] sm:$0xff]  ;;  %v8735_v18 = vunpack.i.h.bf16 %v19087_v30 }
 0x2fa   : > { %v4644_v12 = vsel %vm4588_vm4, %v4515_v43, %v9130_v2  ;;  %10177 = vrot.lane.b32.xlu1 %v10176_v46, %s11396_s10  ;;  %v9885_v32 = vunpack.i.h.bf16 %v9883_v19  ;;  %v9884_v54 = vunpack.i.l.bf16 %v9883_v19  ;;  %v14832_v44 = vsel %vm4330_vm2, %v11205_v51, %v8429_v15  ;;  %v19086_v46 = vld [vmem:[#allocation153_spill] sm:$0xff] }
 0x2fb   : > { %10172 = vrot.lane.b32.xlu0 %v19085_v56, %s11394_s25  ;;  %v4772_v14 = vsel %vm4717_vm8, %v4643_v57, %v9889_v11  ;;  %v4773_v49 = vsel %vm4717_vm8, %v4644_v12, %v9890_v27  ;;  %v5031_v11 = vsel %vm4975_vm5, %v9875_v8, %v9880_v61  ;;  %v5030_v27 = vsel %vm4975_vm5, %v9874_v36, %v9879_v22  ;;  %v19089_v61 = vld [vmem:[#allocation57_spill] sm:$0xff]  ;;  %v19090_v22 = vld [vmem:[#allocation179_spill] sm:$0xff] }
 0x2fc   : > { %v14836_v19 = vpop.permute.xlu1 %9897  ;;  %v4901_v15 = vsel %vm4846_vm10, %v4772_v14, %v9874_v36  ;;  %v4902_v51 = vsel %vm4846_vm10, %v4773_v49, %v9875_v8  ;;  %v8734_v43 = vunpack.i.l.bf16 %v19087_v30  ;;  %v5159_v2 = vsel %vm5104_vm6, %v5030_v27, %v9884_v54 }
 0x2fd   : > { %v9893_v57 = vpop.permute.xlu0 %9892  ;;  %v5160_v29 = vsel %vm5104_vm6, %v5031_v11, %v9885_v32  ;;  %v9054_v39 = vunpack.i.l.bf16 %v19090_v22  ;;  %v9900_v36 = vunpack.i.h.bf16 %v14836_v19  ;;  %v9899_v8 = vunpack.i.l.bf16 %v14836_v19  ;;  %v19093_v19 = vld [vmem:[#allocation257_spill] sm:$0xff] }
 0x2fe   : > { %v9895_v12 = vunpack.i.h.bf16 %v9893_v57  ;;  %v9894_v28 = vunpack.i.l.bf16 %v9893_v57  ;;  %10187 = vrot.lane.b32.xlu1 %v19088_v63, %s11398_s13  ;;  %v14857_v32 = vpack.c.bf16 %v4902_v51, %v4901_v15  ;;  %v19094_v15 = vld [vmem:[#allocation96_spill] sm:$0xff] }
 0x2ff   : > { %10182 = vrot.lane.b32.xlu0 %v19089_v61, %s11395_s26  ;;  %v8815_v51 = vunpack.i.h.bf16 %v19094_v15 }
 0x300   : > { %v5288_v57 = vsel %vm5233_vm7, %v5159_v2, %v9894_v28  ;;  %v5289_v31 = vsel %vm5233_vm7, %v5160_v29, %v9895_v12  ;;  %v9908_v37 = vpop.permute.xlu1 %9907  ;;  %19092 = vst [vmem:[#allocation69_spill] sm:$0xff] %v14857_v32  ;;  %v8494_v29 = vunpack.i.l.bf16 %v19086_v46  ;;  %v4484_v2 = vsel %vm4459_vm3, %v14727_v35, %v8734_v43 }
 0x301   : > { %v9903_v14 = vpop.permute.xlu0 %9902  ;;  %v14855_v54 = vpack.c.bf16 %v5289_v31, %v5288_v57  ;;  %v9910_v49 = vunpack.i.h.bf16 %v9908_v37  ;;  %v9909_v30 = vunpack.i.l.bf16 %v9908_v37  ;;  %v9055_v12 = vunpack.i.h.bf16 %v19090_v22  ;;  %v11206_v37 = vld [vmem:[%s11503_s21 + $0x2f8] sm:$0xff]  ;;  %v11207_v31 = vld [vmem:[%s11503_s21 + $0x300] sm:$0xff] }
 0x302   : > { %v9905_v11 = vunpack.i.h.bf16 %v9903_v14  ;;  %v9904_v27 = vunpack.i.l.bf16 %v9903_v14  ;;  %10197 = vrot.lane.b32.xlu1 %v19062_v6, %s11394_s25  ;;  %v10201_v28 = vpack.i.bf16 %v11207_v31, %v11206_v37  ;;  %v4485_v6 = vsel %vm4459_vm3, %v14723_v25, %v8735_v18 }
 0x303   : > { %19091 = vst [vmem:[#allocation16_spill] sm:$0xff] %v14855_v54  ;;  %10192 = vrot.lane.b32.xlu0 %v19093_v19, %s11397_s12  ;;  %7773 = vmatprep.subr.msk.bf16.mxu1 %vm13704_vm11, %v14855_v54  ;;  %v4613_v22 = vsel %vm4588_vm4, %v4484_v2, %v9054_v39  ;;  %v8814_v2 = vunpack.i.l.bf16 %v19094_v15 }
 0x304   : > { %v5001_v57 = vsel %vm4975_vm5, %v9900_v36, %v9905_v11  ;;  %v5000_v35 = vsel %vm4975_vm5, %v9899_v8, %v9904_v27  ;;  %7775 = vmatpush1.bf16.xpose.msra.mxu1 %v14857_v32  ;;  %v9918_v43 = vpop.permute.xlu1 %9917  ;;  %v19095_v11 = vld [vmem:[#allocation42_spill] sm:$0xff]  ;;  %v4614_v27 = vsel %vm4588_vm4, %v4485_v6, %v9055_v12  ;;  %v19097_v12 = vunpack.i.h.bf16 %v19083_v34  ;;  %v11209_v6 = vld [vmem:[%s11503_s21 + $0x118] sm:$0xff] }
 0x305   : > { %v9920_v14 = vunpack.i.h.bf16 %v9918_v43  ;;  %v9919_v10 = vunpack.i.l.bf16 %v9918_v43  ;;  %v9913_v54 = vpop.permute.xlu0 %9912  ;;  %v5129_v37 = vsel %vm5104_vm6, %v5000_v35, %v9909_v30  ;;  %v5130_v25 = vsel %vm5104_vm6, %v5001_v57, %v9910_v49  ;;  %v11208_v57 = vld [vmem:[%s11503_s21 + $0x120] sm:$0xff] }
 0x306   : > { %v9915_v18 = vunpack.i.h.bf16 %v9913_v54  ;;  %v9914_v31 = vunpack.i.l.bf16 %v9913_v54  ;;  %10207 = vrot.lane.b32.xlu1 %v19095_v11, %s11395_s26 }
 0x307   : > { %v5258_v32 = vsel %vm5233_vm7, %v5129_v37, %v9919_v10  ;;  %v5259_v39 = vsel %vm5233_vm7, %v5130_v25, %v9920_v14  ;;  %10202 = vrot.lane.b32.xlu0 %v10201_v28, %s11396_s10  ;;  %v14896_v10 = vsel %vm4330_vm2, %v11208_v57, %v19097_v12  ;;  %v19098_v28 = vunpack.i.l.bf16 %v19083_v34  ;;  %v19099_v14 = vld [vmem:[#allocation195_spill] sm:$0xff]  ;;  %v19102_v57 = vld [vmem:[#allocation150_spill] sm:$0xff] }
 0x308   : > { %v9928_v43 = vpop.permute.xlu1 %9927  ;;  %v14888_v30 = vpack.c.bf16 %v5259_v39, %v5258_v32  ;;  %v4742_v54 = vsel %vm4717_vm8, %v4613_v22, %v9914_v31  ;;  %v4743_v49 = vsel %vm4717_vm8, %v4614_v27, %v9915_v18  ;;  %v9135_v37 = vunpack.i.h.bf16 %v19099_v14  ;;  %v19100_v18 = vld [vmem:[#allocation213_spill] sm:$0xff]  ;;  %v11210_v31 = vld [vmem:[%s11503_s21 + $0x438] sm:$0xff]  ;;  %v11213_v12 = vld [vmem:[%s11503_s21 + $0x230] sm:$0xff] }
 0x309   : > { %v14902_v15 = vsel %vm4330_vm2, %v11209_v6, %v19098_v28  ;;  %v9923_v32 = vpop.permute.xlu0 %9922  ;;  %v4871_v35 = vsel %vm4846_vm10, %v4742_v54, %v9899_v8  ;;  %v4872_v22 = vsel %vm4846_vm10, %v4743_v49, %v9900_v36  ;;  %v9134_v25 = vunpack.i.l.bf16 %v19099_v14  ;;  %v11211_v27 = vld [vmem:[%s11503_s21 + $0x440] sm:$0xff]  ;;  %v11212_v54 = vld [vmem:[%s11503_s21 + $0x238] sm:$0xff] }
 0x30a   : > { %19096 = vst [vmem:[#allocation111_spill] sm:$0xff] %v14888_v30  ;;  %10217 = vrot.lane.b32.xlu1 %v19100_v18, %s11397_s12  ;;  %7698 = vmatprep.subr.msk.bf16.mxu0 %vm13704_vm11, %v14888_v30  ;;  %v14913_v34 = vpack.c.bf16 %v4872_v22, %v4871_v35  ;;  %v10226_v39 = vpack.i.bf16 %v11211_v27, %v11210_v31  ;;  %v8500_v8 = vunpack.i.h.bf16 %v19102_v57  ;;  %v19103_v36 = vunpack.i.h.bf16 %v19086_v46 }
 0x30b   : > { %v4387_v6 = vsel %vm4330_vm2, %v11213_v12, %v8494_v29  ;;  %10212 = vrot.lane.b32.xlu0 %v19058_v48, %s11398_s13  ;;  %v9930_v22 = vunpack.i.h.bf16 %v9928_v43  ;;  %v9929_v14 = vunpack.i.l.bf16 %v9928_v43  ;;  %v9925_v27 = vunpack.i.h.bf16 %v9923_v32 }
 0x30c   : > { %19101 = vst [vmem:[#allocation113_spill] sm:$0xff] %v14913_v34  ;;  %v4388_v49 = vsel %vm4330_vm2, %v11212_v54, %v19103_v36  ;;  %v4516_v28 = vsel %vm4459_vm3, %v4387_v6, %v8814_v2  ;;  %7700 = vmatpush1.bf16.xpose.msra.mxu0 %v14913_v34  ;;  %v9938_v31 = vpop.permute.xlu1 %9937  ;;  %v9924_v46 = vunpack.i.l.bf16 %v9923_v32 }
 0x30d   : > { %v4517_v35 = vsel %vm4459_vm3, %v4388_v49, %v8815_v51  ;;  %v9940_v30 = vunpack.i.h.bf16 %v9938_v31  ;;  %v9939_v54 = vunpack.i.l.bf16 %v9938_v31  ;;  %v9933_v36 = vpop.permute.xlu0 %9932  ;;  %v4645_v29 = vsel %vm4588_vm4, %v4516_v28, %v9134_v25  ;;  %v11214_v49 = vld [vmem:[%s11503_s21 + $0x248] sm:$0xff] }
 0x30e   : > { %v4646_v12 = vsel %vm4588_vm4, %v4517_v35, %v9135_v37  ;;  %10227 = vrot.lane.b32.xlu1 %v10226_v39, %s11396_s10  ;;  %v9935_v48 = vunpack.i.h.bf16 %v9933_v36  ;;  %v9934_v2 = vunpack.i.l.bf16 %v9933_v36  ;;  %v14938_v32 = vsel %vm4330_vm2, %v11214_v49, %v8500_v8  ;;  %v19104_v25 = vld [vmem:[#allocation158_spill] sm:$0xff] }
 0x30f   : > { %10222 = vrot.lane.b32.xlu0 %v19075_v1, %s11394_s25  ;;  %v4774_v51 = vsel %vm4717_vm8, %v4645_v29, %v9939_v54  ;;  %v4775_v43 = vsel %vm4717_vm8, %v4646_v12, %v9940_v30  ;;  %v19105_v35 = vld [vmem:[#allocation82_spill] sm:$0xff]  ;;  %v5033_v1 = vsel %vm4975_vm5, %v9925_v27, %v9930_v22  ;;  %v5032_v54 = vsel %vm4975_vm5, %v9924_v46, %v9929_v14  ;;  %v19106_v22 = vld [vmem:[#allocation60_spill] sm:$0xff] }
 0x310   : > { %v14943_v39 = vpop.permute.xlu1 %9947  ;;  %v8740_v31 = vunpack.i.h.bf16 %v19105_v35  ;;  %v4903_v8 = vsel %vm4846_vm10, %v4774_v51, %v9924_v46  ;;  %v4904_v12 = vsel %vm4846_vm10, %v4775_v43, %v9925_v27  ;;  %v8739_v49 = vunpack.i.l.bf16 %v19105_v35  ;;  %v19107_v14 = vld [vmem:[#allocation176_spill] sm:$0xff] }
 0x311   : > { %v9943_v36 = vpop.permute.xlu0 %9942  ;;  %v5161_v37 = vsel %vm5104_vm6, %v5032_v54, %v9934_v2  ;;  %v5162_v28 = vsel %vm5104_vm6, %v5033_v1, %v9935_v48  ;;  %v9059_v6 = vunpack.i.l.bf16 %v19107_v14  ;;  %v9950_v46 = vunpack.i.h.bf16 %v14943_v39 }
 0x312   : > { %v9945_v30 = vunpack.i.h.bf16 %v9943_v36  ;;  %v9944_v29 = vunpack.i.l.bf16 %v9943_v36  ;;  %10237 = vrot.lane.b32.xlu1 %v19071_v9, %s11398_s13  ;;  %v9949_v27 = vunpack.i.l.bf16 %v14943_v39  ;;  %v14964_v48 = vpack.c.bf16 %v4904_v12, %v4903_v8  ;;  %v19111_v39 = vld [vmem:[#allocation262_spill] sm:$0xff]  ;;  %v14981_v8 = vld [vmem:[%s11503_s21 + $0x310] sm:$0xff] }
 0x313   : > { %10232 = vrot.lane.b32.xlu0 %v19106_v22, %s11395_s26  ;;  %v4486_v12 = vsel %vm4459_vm3, %v14719_v41, %v8739_v49 }
 0x314   : > { %v5290_v36 = vsel %vm5233_vm7, %v5161_v37, %v9944_v29  ;;  %v5291_v34 = vsel %vm5233_vm7, %v5162_v28, %v9945_v30  ;;  %v9958_v9 = vpop.permute.xlu1 %9957  ;;  %19109 = vst [vmem:[#allocation173_spill] sm:$0xff] %v14964_v48  ;;  %v19110_v28 = vld [vmem:[#allocation161_spill] sm:$0xff]  ;;  %v4487_v30 = vsel %vm4459_vm3, %v14695_v4, %v8740_v31  ;;  %v9060_v29 = vunpack.i.h.bf16 %v19107_v14  ;;  %v19112_v4 = vld [vmem:[#allocation95_spill] sm:$0xff] }
 0x315   : > { %v9953_v51 = vpop.permute.xlu0 %9952  ;;  %v14962_v2 = vpack.c.bf16 %v5291_v34, %v5290_v36  ;;  %v9960_v43 = vunpack.i.h.bf16 %v9958_v9  ;;  %v9959_v35 = vunpack.i.l.bf16 %v9958_v9  ;;  %v8505_v37 = vunpack.i.h.bf16 %v19110_v28  ;;  %v14978_v34 = vld [vmem:[%s11503_s21 + $0x308] sm:$0xff] }
 0x316   : > { %v9955_v1 = vunpack.i.h.bf16 %v9953_v51  ;;  %v9954_v54 = vunpack.i.l.bf16 %v9953_v51  ;;  %10247 = vrot.lane.b32.xlu1 %v19081_v50, %s11394_s25  ;;  %v10251_v50 = vpack.i.bf16 %v14981_v8, %v14978_v34  ;;  %v8820_v31 = vunpack.i.h.bf16 %v19112_v4 }
 0x317   : > { %19108 = vst [vmem:[#allocation32_spill] sm:$0xff] %v14962_v2  ;;  %10242 = vrot.lane.b32.xlu0 %v19111_v39, %s11397_s12  ;;  %7778 = vmatprep.subr.msk.bf16.mxu1 %vm13704_vm11, %v14962_v2  ;;  %v4615_v51 = vsel %vm4588_vm4, %v4486_v12, %v9059_v6  ;;  %v8819_v6 = vunpack.i.l.bf16 %v19112_v4 }
 0x318   : > { %v5003_v14 = vsel %vm4975_vm5, %v9950_v46, %v9955_v1  ;;  %v5002_v36 = vsel %vm4975_vm5, %v9949_v27, %v9954_v54  ;;  %7780 = vmatpush1.bf16.xpose.msra.mxu1 %v14964_v48  ;;  %v9968_v9 = vpop.permute.xlu1 %9967  ;;  %v4616_v1 = vsel %vm4588_vm4, %v4487_v30, %v9060_v29  ;;  %v19115_v30 = vunpack.i.l.bf16 %v19102_v57  ;;  %v19116_v29 = vld [vmem:[#allocation192_spill] sm:$0xff] }
 0x319   : > { %v9970_v2 = vunpack.i.h.bf16 %v9968_v9  ;;  %v9969_v52 = vunpack.i.l.bf16 %v9968_v9  ;;  %v9963_v24 = vpop.permute.xlu0 %9962  ;;  %v5131_v3 = vsel %vm5104_vm6, %v5002_v36, %v9959_v35  ;;  %v5132_v21 = vsel %vm5104_vm6, %v5003_v14, %v9960_v43  ;;  %v11217_v14 = vld [vmem:[%s11503_s21 + $0x240] sm:$0xff]  ;;  %v19117_v36 = vld [vmem:[#allocation210_spill] sm:$0xff]  ;;  %v11219_v9 = vld [vmem:[%s11503_s21 + $0x450] sm:$0xff] }
 0x31a   : > { %v9965_v41 = vunpack.i.h.bf16 %v9963_v24  ;;  %v9964_v49 = vunpack.i.l.bf16 %v9963_v24  ;;  %10257 = vrot.lane.b32.xlu1 %v19113_v5, %s11395_s26  ;;  %v9139_v4 = vunpack.i.l.bf16 %v19116_v29 }
 0x31b   : > { %v5260_v54 = vsel %vm5233_vm7, %v5131_v3, %v9969_v52  ;;  %v5261_v48 = vsel %vm5233_vm7, %v5132_v21, %v9970_v2  ;;  %10252 = vrot.lane.b32.xlu0 %v10251_v50, %s11396_s10  ;;  %v4389_v3 = vsel %vm4330_vm2, %v11217_v14, %v19115_v30  ;;  %v8504_v21 = vunpack.i.l.bf16 %v19110_v28  ;;  %v11218_v28 = vld [vmem:[%s11503_s21 + $0x448] sm:$0xff] }
 0x31c   : > { %v9978_v12 = vpop.permute.xlu1 %9977  ;;  %v15001_v35 = vpack.c.bf16 %v5261_v48, %v5260_v54  ;;  %v4744_v24 = vsel %vm4717_vm8, %v4615_v51, %v9964_v49  ;;  %v4745_v43 = vsel %vm4717_vm8, %v4616_v1, %v9965_v41  ;;  %v9140_v50 = vunpack.i.h.bf16 %v19116_v29  ;;  %v11220_v41 = vld [vmem:[%s11503_s21 + $0x270] sm:$0xff]  ;;  %v11221_v49 = vld [vmem:[%s11503_s21 + $0x268] sm:$0xff] }
 0x31d   : > { %v9973_v52 = vpop.permute.xlu0 %9972  ;;  %v4873_v2 = vsel %vm4846_vm10, %v4744_v24, %v9949_v27  ;;  %v4874_v48 = vsel %vm4846_vm10, %v4745_v43, %v9950_v46  ;;  %v10276_v51 = vpack.i.bf16 %v11219_v9, %v11218_v28  ;;  %v19119_v27 = vunpack.i.h.bf16 %v19104_v25  ;;  %v11222_v24 = vld [vmem:[%s11503_s21 + $0x260] sm:$0xff] }
 0x31e   : > { %19114 = vst [vmem:[#allocation15_spill] sm:$0xff] %v15001_v35  ;;  %10267 = vrot.lane.b32.xlu1 %v19117_v36, %s11397_s12  ;;  %7703 = vmatprep.subr.msk.bf16.mxu0 %vm13704_vm11, %v15001_v35  ;;  %v15019_v57 = vpack.c.bf16 %v4874_v48, %v4873_v2  ;;  %v19120_v1 = vunpack.i.l.bf16 %v19104_v25  ;;  %v15037_v43 = vsel %vm4330_vm2, %v11222_v24, %v8505_v37  ;;  %v9980_v2 = vunpack.i.h.bf16 %v9978_v12 }
 0x31f   : > { %v15027_v46 = vsel %vm4330_vm2, %v11220_v41, %v19119_v27  ;;  %10262 = vrot.lane.b32.xlu0 %v19077_v45, %s11398_s13  ;;  %v4519_v14 = vsel %vm4459_vm3, %v14938_v32, %v8820_v31  ;;  %v4518_v30 = vsel %vm4459_vm3, %v4389_v3, %v8819_v6  ;;  %v9979_v48 = vunpack.i.l.bf16 %v9978_v12  ;;  %v11223_v3 = vld [vmem:[%s11503_s21 + $0x258] sm:$0xff] }
 0x320   : > { %19118 = vst [vmem:[#allocation74_spill] sm:$0xff] %v15019_v57  ;;  %v15033_v54 = vsel %vm4330_vm2, %v11221_v49, %v19120_v1  ;;  %7705 = vmatpush1.bf16.xpose.msra.mxu0 %v15019_v57  ;;  %v9988_v25 = vpop.permute.xlu1 %9987  ;;  %v9975_v29 = vunpack.i.h.bf16 %v9973_v52  ;;  %v9974_v28 = vunpack.i.l.bf16 %v9973_v52  ;;  %v4647_v27 = vsel %vm4588_vm4, %v4518_v30, %v9139_v4  ;;  %v19121_v49 = vld [vmem:[#allocation166_spill] sm:$0xff] }
 0x321   : > { %v9990_v9 = vunpack.i.h.bf16 %v9988_v25  ;;  %v9989_v41 = vunpack.i.l.bf16 %v9988_v25  ;;  %v9983_v37 = vpop.permute.xlu0 %9982  ;;  %v4648_v45 = vsel %vm4588_vm4, %v4519_v14, %v9140_v50  ;;  %v15054_v52 = vsel %vm4330_vm2, %v11223_v3, %v8504_v21  ;;  %v19122_v50 = vld [vmem:[#allocation169_spill] sm:$0xff]  ;;  %v19123_v14 = vld [vmem:[#allocation84_spill] sm:$0xff] }
 0x322   : > { %10277 = vrot.lane.b32.xlu1 %v10276_v51, %s11396_s10  ;;  %v9985_v32 = vunpack.i.h.bf16 %v9983_v37  ;;  %v9984_v31 = vunpack.i.l.bf16 %v9983_v37  ;;  %v8745_v30 = vunpack.i.h.bf16 %v19123_v14  ;;  %v5034_v25 = vsel %vm4975_vm5, %v9974_v28, %v9979_v48  ;;  %v19125_v48 = vld [vmem:[#allocation183_spill] sm:$0xff] }
 0x323   : > { %10272 = vrot.lane.b32.xlu0 %v19093_v19, %s11394_s25  ;;  %v4776_v6 = vsel %vm4717_vm8, %v4647_v27, %v9989_v41  ;;  %v4777_v12 = vsel %vm4717_vm8, %v4648_v45, %v9990_v9  ;;  %v5035_v19 = vsel %vm4975_vm5, %v9975_v29, %v9980_v2  ;;  %v8744_v45 = vunpack.i.l.bf16 %v19123_v14  ;;  %v19124_v2 = vld [vmem:[#allocation59_spill] sm:$0xff] }
 0x324   : > { %v15059_v51 = vpop.permute.xlu1 %9997  ;;  %v4905_v21 = vsel %vm4846_vm10, %v4776_v6, %v9974_v28  ;;  %v4906_v27 = vsel %vm4846_vm10, %v4777_v12, %v9975_v29  ;;  %v5163_v3 = vsel %vm5104_vm6, %v5034_v25, %v9984_v31  ;;  %v5164_v24 = vsel %vm5104_vm6, %v5035_v19, %v9985_v32 }
 0x325   : > { %v9993_v41 = vpop.permute.xlu0 %9992  ;;  %v9064_v4 = vunpack.i.l.bf16 %v19125_v48  ;;  %v10000_v28 = vunpack.i.h.bf16 %v15059_v51  ;;  %v9999_v29 = vunpack.i.l.bf16 %v15059_v51  ;;  %v15080_v32 = vpack.c.bf16 %v4906_v27, %v4905_v21  ;;  %v19128_v51 = vld [vmem:[#allocation261_spill] sm:$0xff]  ;;  %v15095_v21 = vld [vmem:[%s11503_s21 + $0x328] sm:$0xff] }
 0x326   : > { %v9995_v9 = vunpack.i.h.bf16 %v9993_v41  ;;  %v9994_v37 = vunpack.i.l.bf16 %v9993_v41  ;;  %10287 = vrot.lane.b32.xlu1 %v19089_v61, %s11398_s13 }
 0x327   : > { %10282 = vrot.lane.b32.xlu0 %v19124_v2, %s11395_s26  ;;  %19127 = vst [vmem:[#allocation124_spill] sm:$0xff] %v15080_v32 }
 0x328   : > { %v5292_v41 = vsel %vm5233_vm7, %v5163_v3, %v9994_v37  ;;  %v5293_v1 = vsel %vm5233_vm7, %v5164_v24, %v9995_v9  ;;  %v10008_v61 = vpop.permute.xlu1 %10007  ;;  %v8514_v24 = vunpack.i.l.bf16 %v19122_v50  ;;  %v4488_v9 = vsel %vm4459_vm3, %v14902_v15, %v8744_v45  ;;  %v19129_v3 = vld [vmem:[#allocation103_spill] sm:$0xff] }
 0x329   : > { %v10003_v6 = vpop.permute.xlu0 %10002  ;;  %v15078_v31 = vpack.c.bf16 %v5293_v1, %v5292_v41  ;;  %v10010_v12 = vunpack.i.h.bf16 %v10008_v61  ;;  %v10009_v14 = vunpack.i.l.bf16 %v10008_v61  ;;  %v9065_v37 = vunpack.i.h.bf16 %v19125_v48  ;;  %v11224_v1 = vld [vmem:[%s11503_s21 + $0x320] sm:$0xff] }
 0x32a   : > { %v10005_v19 = vunpack.i.h.bf16 %v10003_v6  ;;  %v10004_v25 = vunpack.i.l.bf16 %v10003_v6  ;;  %10297 = vrot.lane.b32.xlu1 %v19100_v18, %s11394_s25  ;;  %v10301_v27 = vpack.i.bf16 %v15095_v21, %v11224_v1  ;;  %v4489_v18 = vsel %vm4459_vm3, %v14896_v10, %v8745_v30 }
 0x32b   : > { %19126 = vst [vmem:[#allocation110_spill] sm:$0xff] %v15078_v31  ;;  %10292 = vrot.lane.b32.xlu0 %v19128_v51, %s11397_s12  ;;  %7783 = vmatprep.subr.msk.bf16.mxu1 %vm13704_vm11, %v15078_v31  ;;  %v8825_v41 = vunpack.i.h.bf16 %v19129_v3  ;;  %v4617_v61 = vsel %vm4588_vm4, %v4488_v9, %v9064_v4  ;;  %v8824_v9 = vunpack.i.l.bf16 %v19129_v3 }
 0x32c   : > { %v5005_v15 = vsel %vm4975_vm5, %v10000_v28, %v10005_v19  ;;  %v5004_v45 = vsel %vm4975_vm5, %v9999_v29, %v10004_v25  ;;  %7785 = vmatpush1.bf16.xpose.msra.mxu1 %v15080_v32  ;;  %v10018_v48 = vpop.permute.xlu1 %10017  ;;  %v19130_v19 = vld [vmem:[#allocation44_spill] sm:$0xff]  ;;  %v4618_v25 = vsel %vm4588_vm4, %v4489_v18, %v9065_v37  ;;  %v19132_v37 = vunpack.i.h.bf16 %v19121_v49 }
 0x32d   : > { %v10020_v6 = vunpack.i.h.bf16 %v10018_v48  ;;  %v10019_v31 = vunpack.i.l.bf16 %v10018_v48  ;;  %v10013_v57 = vpop.permute.xlu0 %10012  ;;  %v5133_v1 = vsel %vm5104_vm6, %v5004_v45, %v10009_v14  ;;  %v5134_v10 = vsel %vm5104_vm6, %v5005_v15, %v10010_v12  ;;  %v11226_v15 = vld [vmem:[%s11503_s21 + $0x298] sm:$0xff] }
 0x32e   : > { %v10015_v30 = vunpack.i.h.bf16 %v10013_v57  ;;  %v10014_v35 = vunpack.i.l.bf16 %v10013_v57  ;;  %10307 = vrot.lane.b32.xlu1 %v19130_v19, %s11395_s26  ;;  %v19133_v18 = vunpack.i.l.bf16 %v19121_v49 }
 0x32f   : > { %v5262_v32 = vsel %vm5233_vm7, %v5133_v1, %v10019_v31  ;;  %v5263_v4 = vsel %vm5233_vm7, %v5134_v10, %v10020_v6  ;;  %10302 = vrot.lane.b32.xlu0 %v10301_v27, %s11396_s10  ;;  %v15122_v31 = vsel %vm4330_vm2, %v11226_v15, %v19132_v37  ;;  %v11227_v27 = vld [vmem:[%s11503_s21 + $0x290] sm:$0xff]  ;;  %v19135_v10 = vld [vmem:[#allocation220_spill] sm:$0xff]  ;;  %v11230_v15 = vld [vmem:[%s11503_s21 + $0x288] sm:$0xff] }
 0x330   : > { %v10028_v48 = vpop.permute.xlu1 %10027  ;;  %v15114_v14 = vpack.c.bf16 %v5263_v4, %v5262_v32  ;;  %v4746_v57 = vsel %vm4717_vm8, %v4617_v61, %v10014_v35  ;;  %v4747_v12 = vsel %vm4717_vm8, %v4618_v25, %v10015_v30  ;;  %v15128_v3 = vsel %vm4330_vm2, %v11227_v27, %v19133_v18  ;;  %v19134_v61 = vld [vmem:[#allocation199_spill] sm:$0xff]  ;;  %v11228_v30 = vld [vmem:[%s11503_s21 + $0x460] sm:$0xff]  ;;  %v11229_v25 = vld [vmem:[%s11503_s21 + $0x468] sm:$0xff] }
 0x331   : > { %v10023_v32 = vpop.permute.xlu0 %10022  ;;  %v4875_v45 = vsel %vm4846_vm10, %v4746_v57, %v9999_v29  ;;  %v4876_v35 = vsel %vm4846_vm10, %v4747_v12, %v10000_v28  ;;  %v9145_v6 = vunpack.i.h.bf16 %v19134_v61  ;;  %v9144_v1 = vunpack.i.l.bf16 %v19134_v61  ;;  %v11231_v57 = vld [vmem:[%s11503_s21 + $0x280] sm:$0xff]  ;;  %v19138_v37 = vld [vmem:[#allocation174_spill] sm:$0xff] }
 0x332   : > { %19131 = vst [vmem:[#allocation31_spill] sm:$0xff] %v15114_v14  ;;  %10317 = vrot.lane.b32.xlu1 %v19135_v10, %s11397_s12  ;;  %7708 = vmatprep.subr.msk.bf16.mxu0 %vm13704_vm11, %v15114_v14  ;;  %v15139_v49 = vpack.c.bf16 %v4876_v35, %v4875_v45  ;;  %v10326_v4 = vpack.i.bf16 %v11229_v25, %v11228_v30  ;;  %v19137_v29 = vunpack.i.h.bf16 %v19122_v50  ;;  %v8530_v27 = vunpack.i.h.bf16 %v19138_v37 }
 0x333   : > { %v15151_v12 = vsel %vm4330_vm2, %v11231_v57, %v8514_v24  ;;  %10312 = vrot.lane.b32.xlu0 %v19095_v11, %s11398_s13  ;;  %v4520_v18 = vsel %vm4459_vm3, %v15054_v52, %v8824_v9  ;;  %v4521_v45 = vsel %vm4459_vm3, %v15037_v43, %v8825_v41  ;;  %v10030_v35 = vunpack.i.h.bf16 %v10028_v48 }
 0x334   : > { %19136 = vst [vmem:[#allocation170_spill] sm:$0xff] %v15139_v49  ;;  %v15147_v28 = vsel %vm4330_vm2, %v11230_v15, %v19137_v29  ;;  %v10029_v50 = vunpack.i.l.bf16 %v10028_v48  ;;  %7710 = vmatpush1.bf16.xpose.msra.mxu0 %v15139_v49  ;;  %v10038_v61 = vpop.permute.xlu1 %10037  ;;  %v10025_v30 = vunpack.i.h.bf16 %v10023_v32  ;;  %v10024_v24 = vunpack.i.l.bf16 %v10023_v32  ;;  %v11232_v48 = vld [vmem:[%s11503_s21 + $0x2c0] sm:$0xff] }
 0x335   : > { %v10040_v25 = vunpack.i.h.bf16 %v10038_v61  ;;  %v10039_v15 = vunpack.i.l.bf16 %v10038_v61  ;;  %v10033_v29 = vpop.permute.xlu0 %10032  ;;  %v4649_v57 = vsel %vm4588_vm4, %v4520_v18, %v9144_v1  ;;  %v4650_v11 = vsel %vm4588_vm4, %v4521_v45, %v9145_v6  ;;  %v19139_v1 = vld [vmem:[#allocation177_spill] sm:$0xff]  ;;  %v19140_v45 = vld [vmem:[#allocation83_spill] sm:$0xff] }
 0x336   : > { %10327 = vrot.lane.b32.xlu1 %v10326_v4, %s11396_s10  ;;  %v10035_v52 = vunpack.i.h.bf16 %v10033_v29  ;;  %v10034_v9 = vunpack.i.l.bf16 %v10033_v29  ;;  %v15170_v32 = vsel %vm4330_vm2, %v11232_v48, %v8530_v27  ;;  %v8529_v61 = vunpack.i.l.bf16 %v19138_v37 }
 0x337   : > { %10322 = vrot.lane.b32.xlu0 %v19111_v39, %s11394_s25  ;;  %v4778_v43 = vsel %vm4717_vm8, %v4649_v57, %v10039_v15  ;;  %v4779_v41 = vsel %vm4717_vm8, %v4650_v11, %v10040_v25  ;;  %v8750_v29 = vunpack.i.h.bf16 %v19140_v45  ;;  %v5037_v39 = vsel %vm4975_vm5, %v10025_v30, %v10030_v35  ;;  %v19141_v35 = vld [vmem:[#allocation62_spill] sm:$0xff] }
 0x338   : > { %v15175_v4 = vpop.permute.xlu1 %10047  ;;  %v5036_v15 = vsel %vm4975_vm5, %v10024_v24, %v10029_v50  ;;  %v4907_v37 = vsel %vm4846_vm10, %v4778_v43, %v10024_v24  ;;  %v4908_v27 = vsel %vm4846_vm10, %v4779_v41, %v10025_v30  ;;  %v8749_v48 = vunpack.i.l.bf16 %v19140_v45  ;;  %v19142_v50 = vld [vmem:[#allocation180_spill] sm:$0xff] }
 0x339   : > { %v10043_v57 = vpop.permute.xlu0 %10042  ;;  %v5165_v6 = vsel %vm5104_vm6, %v5036_v15, %v10034_v9  ;;  %v5166_v18 = vsel %vm5104_vm6, %v5037_v39, %v10035_v52  ;;  %v9069_v49 = vunpack.i.l.bf16 %v19142_v50  ;;  %v10050_v24 = vunpack.i.h.bf16 %v15175_v4 }
 0x33a   : > { %v10045_v25 = vunpack.i.h.bf16 %v10043_v57  ;;  %v10044_v11 = vunpack.i.l.bf16 %v10043_v57  ;;  %10337 = vrot.lane.b32.xlu1 %v19106_v22, %s11398_s13  ;;  %v10049_v30 = vunpack.i.l.bf16 %v15175_v4  ;;  %v15196_v52 = vpack.c.bf16 %v4908_v27, %v4907_v37  ;;  %v15216_v37 = vld [vmem:[%s11503_s21 + $0x338] sm:$0xff] }
 0x33b   : > { %10332 = vrot.lane.b32.xlu0 %v19141_v35, %s11395_s26  ;;  %v4491_v4 = vsel %vm4459_vm3, %v14828_v26, %v8750_v29  ;;  %v19146_v26 = vld [vmem:[#allocation102_spill] sm:$0xff] }
 0x33c   : > { %v5294_v57 = vsel %vm5233_vm7, %v5165_v6, %v10044_v11  ;;  %v5295_v22 = vsel %vm5233_vm7, %v5166_v18, %v10045_v25  ;;  %v10058_v14 = vpop.permute.xlu1 %10057  ;;  %19144 = vst [vmem:[#allocation73_spill] sm:$0xff] %v15196_v52  ;;  %v11233_v18 = vld [vmem:[%s11503_s21 + $0x2b8] sm:$0xff]  ;;  %v9070_v25 = vunpack.i.h.bf16 %v19142_v50  ;;  %v19145_v11 = vld [vmem:[#allocation266_spill] sm:$0xff]  ;;  %v8830_v29 = vunpack.i.h.bf16 %v19146_v26 }
 0x33d   : > { %v10053_v9 = vpop.permute.xlu0 %10052  ;;  %v15194_v43 = vpack.c.bf16 %v5295_v22, %v5294_v57  ;;  %v10060_v41 = vunpack.i.h.bf16 %v10058_v14  ;;  %v10059_v45 = vunpack.i.l.bf16 %v10058_v14  ;;  %v15202_v6 = vsel %vm4330_vm2, %v11233_v18, %v8529_v61  ;;  %v15213_v14 = vld [vmem:[%s11503_s21 + $0x330] sm:$0xff] }
 0x33e   : > { %v10055_v39 = vunpack.i.h.bf16 %v10053_v9  ;;  %v10054_v15 = vunpack.i.l.bf16 %v10053_v9  ;;  %10347 = vrot.lane.b32.xlu1 %v19117_v36, %s11394_s25  ;;  %v10351_v36 = vpack.i.bf16 %v15216_v37, %v15213_v14  ;;  %v4490_v61 = vsel %vm4459_vm3, %v14832_v44, %v8749_v48 }
 0x33f   : > { %19143 = vst [vmem:[#allocation18_spill] sm:$0xff] %v15194_v43  ;;  %10342 = vrot.lane.b32.xlu0 %v19145_v11, %s11397_s12  ;;  %7788 = vmatprep.subr.msk.bf16.mxu1 %vm13704_vm11, %v15194_v43  ;;  %v4619_v22 = vsel %vm4588_vm4, %v4490_v61, %v9069_v49  ;;  %v8829_v61 = vunpack.i.l.bf16 %v19146_v26 }
 0x340   : > { %v5007_v27 = vsel %vm4975_vm5, %v10050_v24, %v10055_v39  ;;  %v5006_v50 = vsel %vm4975_vm5, %v10049_v30, %v10054_v15  ;;  %7790 = vmatpush1.bf16.xpose.msra.mxu1 %v15196_v52  ;;  %v10068_v57 = vpop.permute.xlu1 %10067  ;;  %v19147_v39 = vld [vmem:[#allocation43_spill] sm:$0xff]  ;;  %v4620_v15 = vsel %vm4588_vm4, %v4491_v4, %v9070_v25  ;;  %v19149_v4 = vunpack.i.h.bf16 %v19139_v1  ;;  %v11237_v25 = vld [vmem:[%s11503_s21 + $0x2a8] sm:$0xff] }
 0x341   : > { %v10070_v9 = vunpack.i.h.bf16 %v10068_v57  ;;  %v10069_v18 = vunpack.i.l.bf16 %v10068_v57  ;;  %v10063_v43 = vpop.permute.xlu0 %10062  ;;  %v5135_v13 = vsel %vm5104_vm6, %v5006_v50, %v10059_v45  ;;  %v5136_v44 = vsel %vm5104_vm6, %v5007_v27, %v10060_v41  ;;  %v11236_v27 = vld [vmem:[%s11503_s21 + $0x2b0] sm:$0xff] }
 0x342   : > { %v10065_v48 = vunpack.i.h.bf16 %v10063_v43  ;;  %v10064_v16 = vunpack.i.l.bf16 %v10063_v43  ;;  %10357 = vrot.lane.b32.xlu1 %v19147_v39, %s11395_s26 }
 0x343   : > { %v5264_v52 = vsel %vm5233_vm7, %v5135_v13, %v10069_v18  ;;  %v5265_v49 = vsel %vm5233_vm7, %v5136_v44, %v10070_v9  ;;  %10352 = vrot.lane.b32.xlu0 %v10351_v36, %s11396_s10  ;;  %v15244_v13 = vsel %vm4330_vm2, %v11236_v27, %v19149_v4  ;;  %v19150_v36 = vunpack.i.l.bf16 %v19139_v1  ;;  %v19152_v44 = vld [vmem:[#allocation217_spill] sm:$0xff]  ;;  %v19154_v27 = vld [vmem:[#allocation182_spill] sm:$0xff] }
 0x344   : > { %v10078_v57 = vpop.permute.xlu1 %10077  ;;  %v15236_v45 = vpack.c.bf16 %v5265_v49, %v5264_v52  ;;  %v4748_v43 = vsel %vm4717_vm8, %v4619_v22, %v10064_v16  ;;  %v4749_v41 = vsel %vm4717_vm8, %v4620_v15, %v10065_v48  ;;  %v19151_v16 = vld [vmem:[#allocation196_spill] sm:$0xff]  ;;  %v11238_v48 = vld [vmem:[%s11503_s21 + $0x470] sm:$0xff]  ;;  %v4523_v4 = vsel %vm4459_vm3, %v15027_v46, %v8830_v29 }
 0x345   : > { %v15250_v26 = vsel %vm4330_vm2, %v11237_v25, %v19150_v36  ;;  %v10073_v50 = vpop.permute.xlu0 %10072  ;;  %v4877_v52 = vsel %vm4846_vm10, %v4748_v43, %v10049_v30  ;;  %v4878_v9 = vsel %vm4846_vm10, %v4749_v41, %v10050_v24  ;;  %v9150_v22 = vunpack.i.h.bf16 %v19151_v16  ;;  %v11239_v15 = vld [vmem:[%s11503_s21 + $0x478] sm:$0xff]  ;;  %v19155_v43 = vld [vmem:[#allocation185_spill] sm:$0xff] }
 0x346   : > { %19148 = vst [vmem:[#allocation121_spill] sm:$0xff] %v15236_v45  ;;  %v9149_v18 = vunpack.i.l.bf16 %v19151_v16  ;;  %10367 = vrot.lane.b32.xlu1 %v19152_v44, %s11397_s12  ;;  %7713 = vmatprep.subr.msk.bf16.mxu0 %vm13704_vm11, %v15236_v45  ;;  %v15261_v1 = vpack.c.bf16 %v4878_v9, %v4877_v52  ;;  %v10376_v49 = vpack.i.bf16 %v11239_v15, %v11238_v48  ;;  %v8540_v30 = vunpack.i.h.bf16 %v19154_v27 }
 0x347   : > { %v8539_v24 = vunpack.i.l.bf16 %v19154_v27  ;;  %10362 = vrot.lane.b32.xlu0 %v19113_v5, %s11398_s13  ;;  %v4522_v25 = vsel %vm4459_vm3, %v15033_v54, %v8829_v61  ;;  %v10080_v36 = vunpack.i.h.bf16 %v10078_v57  ;;  %v10079_v52 = vunpack.i.l.bf16 %v10078_v57 }
 0x348   : > { %19153 = vst [vmem:[#allocation122_spill] sm:$0xff] %v15261_v1  ;;  %7715 = vmatpush1.bf16.xpose.msra.mxu0 %v15261_v1  ;;  %v10088_v9 = vpop.permute.xlu1 %10087  ;;  %v10075_v16 = vunpack.i.h.bf16 %v10073_v50  ;;  %v10074_v48 = vunpack.i.l.bf16 %v10073_v50  ;;  %v4651_v41 = vsel %vm4588_vm4, %v4522_v25, %v9149_v18  ;;  %v4652_v5 = vsel %vm4588_vm4, %v4523_v4, %v9150_v22  ;;  %v19156_v18 = vld [vmem:[#allocation231_spill] sm:$0xff] }
 0x349   : > { %v10090_v15 = vunpack.i.h.bf16 %v10088_v9  ;;  %v10089_v27 = vunpack.i.l.bf16 %v10088_v9  ;;  %v10083_v45 = vpop.permute.xlu0 %10082  ;;  %v15284_v57 = vsel %vm4330_vm2, %v14768_v7, %v8540_v30  ;;  %v15288_v50 = vsel %vm4330_vm2, %v14765_v53, %v8539_v24 }
 0x34a   : > { %10377 = vrot.lane.b32.xlu1 %v10376_v49, %s11396_s10  ;;  %v10085_v46 = vunpack.i.h.bf16 %v10083_v45  ;;  %v10084_v29 = vunpack.i.l.bf16 %v10083_v45  ;;  %v5039_v7 = vsel %vm4975_vm5, %v10075_v16, %v10080_v36  ;;  %v5038_v30 = vsel %vm4975_vm5, %v10074_v48, %v10079_v52  ;;  %v19158_v36 = vld [vmem:[#allocation61_spill] sm:$0xff]  ;;  %v19159_v52 = vld [vmem:[#allocation203_spill] sm:$0xff] }
 0x34b   : > { %10372 = vrot.lane.b32.xlu0 %v19128_v51, %s11394_s25  ;;  %v4780_v54 = vsel %vm4717_vm8, %v4651_v41, %v10089_v27  ;;  %v4781_v61 = vsel %vm4717_vm8, %v4652_v5, %v10090_v15  ;;  %v15297_v51 = vld [vmem:[%s17836_s1] sm:$0xff] }
 0x34c   : > { %v15292_v45 = vpop.permute.xlu1 %10097  ;;  %v19157_v41 = vld [vmem:[#allocation105_spill] sm:$0xff]  ;;  %v4909_v9 = vsel %vm4846_vm10, %v4780_v54, %v10074_v48  ;;  %v4910_v15 = vsel %vm4846_vm10, %v4781_v61, %v10075_v16  ;;  %v5167_v5 = vsel %vm5104_vm6, %v5038_v30, %v10084_v29  ;;  %v5168_v49 = vsel %vm5104_vm6, %v5039_v7, %v10085_v46 }
 0x34d   : > { %v8835_v4 = vunpack.i.h.bf16 %v19157_v41  ;;  %v10093_v25 = vpop.permute.xlu0 %10092  ;;  %v8834_v27 = vunpack.i.l.bf16 %v19157_v41  ;;  %v10100_v16 = vunpack.i.h.bf16 %v15292_v45  ;;  %v10099_v29 = vunpack.i.l.bf16 %v15292_v45  ;;  %v19162_v45 = vld [vmem:[#allocation265_spill] sm:$0xff] }
 0x34e   : > { %v10095_v53 = vunpack.i.h.bf16 %v10093_v25  ;;  %v10094_v24 = vunpack.i.l.bf16 %v10093_v25  ;;  %10387 = vrot.lane.b32.xlu1 %v19124_v2, %s11398_s13  ;;  %v9154_v25 = vunpack.i.l.bf16 %v19159_v52  ;;  %v15319_v61 = vpack.c.bf16 %v4910_v15, %v4909_v9  ;;  %v11241_v9 = vld [vmem:[%s11503_s21 + $0x350] sm:$0xff] }
 0x34f   : > { %10382 = vrot.lane.b32.xlu0 %v19158_v36, %s11395_s26  ;;  %5827 = vmatmul.mubr.f32.vlgmr.msra.gmra.mrb[0].mxu0 %v15297_v51 }
 0x350   : > { %v5296_v22 = vsel %vm5233_vm7, %v5167_v5, %v10094_v24  ;;  %v5297_v2 = vsel %vm5233_vm7, %v5168_v49, %v10095_v53  ;;  %v10108_v48 = vpop.permute.xlu1 %10107  ;;  %19161 = vst [vmem:[#allocation181_spill] sm:$0xff] %v15319_v61  ;;  %v8594_v49 = vunpack.i.l.bf16 %v19156_v18  ;;  %v4524_v53 = vsel %vm4459_vm3, %v15151_v12, %v8834_v27  ;;  %v19163_v5 = vld [vmem:[#allocation141_spill] sm:$0xff] }
 0x351   : > { %v10103_v54 = vpop.permute.xlu0 %10102  ;;  %v15317_v46 = vpack.c.bf16 %v5297_v2, %v5296_v22  ;;  %v10110_v41 = vunpack.i.h.bf16 %v10108_v48  ;;  %v10109_v7 = vunpack.i.l.bf16 %v10108_v48  ;;  %v9155_v24 = vunpack.i.h.bf16 %v19159_v52  ;;  %v11240_v22 = vld [vmem:[%s11503_s21 + $0x348] sm:$0xff] }
 0x352   : > { %v10105_v30 = vunpack.i.h.bf16 %v10103_v54  ;;  %v10104_v1 = vunpack.i.l.bf16 %v10103_v54  ;;  %10397 = vrot.lane.b32.xlu1 %v19135_v10, %s11394_s25  ;;  %v10401_v15 = vpack.i.bf16 %v11241_v9, %v11240_v22  ;;  %v4525_v10 = vsel %vm4459_vm3, %v15147_v28, %v8835_v4 }
 0x353   : > { %19160 = vst [vmem:[#allocation34_spill] sm:$0xff] %v15317_v46  ;;  %10392 = vrot.lane.b32.xlu0 %v19162_v45, %s11397_s12  ;;  %7793 = vmatprep.subr.msk.bf16.mxu1 %vm13704_vm11, %v15317_v46  ;;  %v8915_v2 = vunpack.i.h.bf16 %v19163_v5  ;;  %v4653_v52 = vsel %vm4588_vm4, %v4524_v53, %v9154_v25  ;;  %v8914_v53 = vunpack.i.l.bf16 %v19163_v5 }
 0x354   : > { %v5041_v48 = vsel %vm4975_vm5, %v10100_v16, %v10105_v30  ;;  %v5040_v12 = vsel %vm4975_vm5, %v10099_v29, %v10104_v1  ;;  %7795 = vmatpush1.bf16.xpose.msra.mxu1 %v15319_v61  ;;  %v10118_v27 = vpop.permute.xlu1 %10117  ;;  %v19164_v30 = vld [vmem:[#allocation46_spill] sm:$0xff]  ;;  %v4654_v1 = vsel %vm4588_vm4, %v4525_v10, %v9155_v24  ;;  %v19166_v24 = vunpack.i.h.bf16 %v19155_v43 }
 0x355   : > { %v10120_v54 = vunpack.i.h.bf16 %v10118_v27  ;;  %v10119_v0 = vunpack.i.l.bf16 %v10118_v27  ;;  %v10113_v46 = vpop.permute.xlu0 %10112  ;;  %v5169_v22 = vsel %vm5104_vm6, %v5040_v12, %v10109_v7  ;;  %v5170_v28 = vsel %vm5104_vm6, %v5041_v48, %v10110_v41  ;;  %v11242_v12 = vld [vmem:[%s11503_s21 + $0x2d8] sm:$0xff] }
 0x356   : > { %v10115_v4 = vunpack.i.h.bf16 %v10113_v46  ;;  %v10114_v9 = vunpack.i.l.bf16 %v10113_v46  ;;  %10407 = vrot.lane.b32.xlu1 %v19164_v30, %s11395_s26  ;;  %v19167_v10 = vunpack.i.l.bf16 %v19155_v43 }
 0x357   : > { %v5298_v61 = vsel %vm5233_vm7, %v5169_v22, %v10119_v0  ;;  %v5299_v25 = vsel %vm5233_vm7, %v5170_v28, %v10120_v54  ;;  %10402 = vrot.lane.b32.xlu0 %v10401_v15, %s11396_s10  ;;  %v15358_v0 = vsel %vm4330_vm2, %v11242_v12, %v19166_v24  ;;  %v11243_v15 = vld [vmem:[%s11503_s21 + $0x2d0] sm:$0xff]  ;;  %v19168_v54 = vld [vmem:[#allocation237_spill] sm:$0xff]  ;;  %v11246_v12 = vld [vmem:[%s11503_s21 + $0x3c8] sm:$0xff] }
 0x358   : > { %v4782_v7 = vsel %vm4717_vm8, %v4653_v52, %v10114_v9  ;;  %v4783_v41 = vsel %vm4717_vm8, %v4654_v1, %v10115_v4  ;;  %v10128_v46 = vpop.permute.xlu1 %10127  ;;  %v15352_v48 = vpack.c.bf16 %v5299_v25, %v5298_v61  ;;  %v15364_v5 = vsel %vm4330_vm2, %v11243_v15, %v19167_v10  ;;  %v19169_v4 = vld [vmem:[#allocation228_spill] sm:$0xff]  ;;  %v11244_v9 = vld [vmem:[%s11503_s21 + $0x488] sm:$0xff]  ;;  %v11245_v1 = vld [vmem:[%s11503_s21 + $0x490] sm:$0xff] }
 0x359   : > { %v10123_v27 = vpop.permute.xlu0 %10122  ;;  %v4911_v52 = vsel %vm4846_vm10, %v4782_v7, %v10099_v29  ;;  %v4912_v61 = vsel %vm4846_vm10, %v4783_v41, %v10100_v16  ;;  %v9235_v22 = vunpack.i.h.bf16 %v19168_v54  ;;  %v9234_v28 = vunpack.i.l.bf16 %v19168_v54  ;;  %v11247_v7 = vld [vmem:[%s11503_s21 + $0x3c0] sm:$0xff] }
 0x35a   : > { %19165 = vst [vmem:[#allocation17_spill] sm:$0xff] %v15352_v48  ;;  %10417 = vrot.lane.b32.xlu1 %v19169_v4, %s11397_s12  ;;  %7798 = vmatprep.subr.msk.bf16.mxu0 %vm13704_vm11, %v15352_v48  ;;  %v15375_v43 = vpack.c.bf16 %v4912_v61, %v4911_v52  ;;  %v10426_v25 = vpack.i.bf16 %v11245_v1, %v11244_v9  ;;  %v19171_v29 = vunpack.i.h.bf16 %v19156_v18  ;;  %v10130_v10 = vunpack.i.h.bf16 %v10128_v46 }
 0x35b   : > { %v4427_v41 = vsel %vm4330_vm2, %v11247_v7, %v8594_v49  ;;  %10412 = vrot.lane.b32.xlu0 %v19130_v19, %s11398_s13  ;;  %5910 = vmatmul.mubr.f32.vlgmr.msra.gmra.mrb[0].mxu1 %v15297_v51  ;;  %v10129_v52 = vunpack.i.l.bf16 %v10128_v46  ;;  %v10125_v18 = vunpack.i.h.bf16 %v10123_v27  ;;  %v10124_v54 = vunpack.i.l.bf16 %v10123_v27  ;;  %v19173_v7 = vld [vmem:[#allocation193_spill] sm:$0xff] }
 0x35c   : > { %19170 = vst [vmem:[#allocation76_spill] sm:$0xff] %v15375_v43  ;;  %v4428_v16 = vsel %vm4330_vm2, %v11246_v12, %v19171_v29  ;;  %v4556_v24 = vsel %vm4459_vm3, %v4427_v41, %v8914_v53  ;;  %7800 = vmatpush1.bf16.xpose.msra.mxu0 %v15375_v43  ;;  %v10138_v61 = vpop.permute.xlu1 %10137  ;;  %v19172_v29 = vld [vmem:[#allocation190_spill] sm:$0xff] }
 0x35d   : > { %v4557_v15 = vsel %vm4459_vm3, %v4428_v16, %v8915_v2  ;;  %v10140_v9 = vunpack.i.h.bf16 %v10138_v61  ;;  %v10139_v1 = vunpack.i.l.bf16 %v10138_v61  ;;  %v10133_v12 = vpop.permute.xlu0 %10132  ;;  %v4685_v49 = vsel %vm4588_vm4, %v4556_v24, %v9234_v28  ;;  %v19174_v28 = vld [vmem:[#allocation229_spill] sm:$0xff] }
 0x35e   : > { %v4686_v19 = vsel %vm4588_vm4, %v4557_v15, %v9235_v22  ;;  %10427 = vrot.lane.b32.xlu1 %v10426_v25, %s11396_s10  ;;  %v10135_v53 = vunpack.i.h.bf16 %v10133_v12  ;;  %v10134_v46 = vunpack.i.l.bf16 %v10133_v12  ;;  %v19175_v25 = vld [vmem:[#allocation104_spill] sm:$0xff]  ;;  %v5073_v61 = vsel %vm4975_vm5, %v10125_v18, %v10130_v10 }
 0x35f   : > { %v4814_v51 = vsel %vm4717_vm8, %v4685_v49, %v10139_v1  ;;  %v4815_v2 = vsel %vm4717_vm8, %v4686_v19, %v10140_v9  ;;  %10422 = vrot.lane.b32.xlu0 %v19145_v11, %s11394_s25  ;;  %v8840_v15 = vunpack.i.h.bf16 %v19175_v25  ;;  %v5072_v9 = vsel %vm4975_vm5, %v10124_v54, %v10129_v52  ;;  %v19176_v10 = vld [vmem:[#allocation64_spill] sm:$0xff] }
 0x360   : > { %v15402_v22 = vpop.permute.xlu1 %10147  ;;  %v4943_v11 = vsel %vm4846_vm10, %v4814_v51, %v10124_v54  ;;  %v4944_v19 = vsel %vm4846_vm10, %v4815_v2, %v10125_v18  ;;  %v8839_v41 = vunpack.i.l.bf16 %v19175_v25  ;;  %v5201_v24 = vsel %vm5104_vm6, %v5072_v9, %v10134_v46  ;;  %v19177_v52 = vld [vmem:[#allocation200_spill] sm:$0xff] }
 0x361   : > { %v10143_v1 = vpop.permute.xlu0 %10142  ;;  %v5202_v16 = vsel %vm5104_vm6, %v5073_v61, %v10135_v53  ;;  %v9159_v27 = vunpack.i.l.bf16 %v19177_v52  ;;  %v10150_v54 = vunpack.i.h.bf16 %v15402_v22  ;;  %v10149_v18 = vunpack.i.l.bf16 %v15402_v22  ;;  %v19180_v22 = vld [vmem:[#allocation270_spill] sm:$0xff] }
 0x362   : > { %v10145_v12 = vunpack.i.h.bf16 %v10143_v1  ;;  %v10144_v49 = vunpack.i.l.bf16 %v10143_v1  ;;  %10437 = vrot.lane.b32.xlu1 %v19141_v35, %s11398_s13  ;;  %v15423_v53 = vpack.c.bf16 %v4944_v19, %v4943_v11  ;;  %v19181_v19 = vld [vmem:[#allocation140_spill] sm:$0xff] }
 0x363   : > { %10432 = vrot.lane.b32.xlu0 %v19176_v10, %s11395_s26 }
 0x364   : > { %v5330_v1 = vsel %vm5233_vm7, %v5201_v24, %v10144_v49  ;;  %v5331_v43 = vsel %vm5233_vm7, %v5202_v16, %v10145_v12  ;;  %v10158_v35 = vpop.permute.xlu1 %10157  ;;  %19179 = vst [vmem:[#allocation129_spill] sm:$0xff] %v15423_v53  ;;  %v8599_v16 = vunpack.i.l.bf16 %v19174_v28  ;;  %v4527_v24 = vsel %vm4459_vm3, %v15122_v31, %v8840_v15  ;;  %v11249_v49 = vld [vmem:[%s11503_s21 + $0x360] sm:$0xff] }
 0x365   : > { %v10153_v51 = vpop.permute.xlu0 %10152  ;;  %v15421_v2 = vpack.c.bf16 %v5331_v43, %v5330_v1  ;;  %v10160_v46 = vunpack.i.h.bf16 %v10158_v35  ;;  %v10159_v25 = vunpack.i.l.bf16 %v10158_v35  ;;  %v9160_v12 = vunpack.i.h.bf16 %v19177_v52  ;;  %v11248_v43 = vld [vmem:[%s11503_s21 + $0x358] sm:$0xff] }
 0x366   : > { %v10155_v61 = vunpack.i.h.bf16 %v10153_v51  ;;  %v10154_v9 = vunpack.i.l.bf16 %v10153_v51  ;;  %10447 = vrot.lane.b32.xlu1 %v19152_v44, %s11394_s25  ;;  %v10451_v11 = vpack.i.bf16 %v11249_v49, %v11248_v43  ;;  %v4526_v44 = vsel %vm4459_vm3, %v15128_v3, %v8839_v41  ;;  %v19182_v41 = vld [vmem:[#allocation45_spill] sm:$0xff] }
 0x367   : > { %19178 = vst [vmem:[#allocation120_spill] sm:$0xff] %v15421_v2  ;;  %10442 = vrot.lane.b32.xlu0 %v19180_v22, %s11397_s12  ;;  %7878 = vmatprep.subr.msk.bf16.mxu1 %vm13704_vm11, %v15421_v2  ;;  %v8920_v1 = vunpack.i.h.bf16 %v19181_v19  ;;  %v4655_v52 = vsel %vm4588_vm4, %v4526_v44, %v9159_v27  ;;  %v8919_v27 = vunpack.i.l.bf16 %v19181_v19 }
 0x368   : > { %v5043_v35 = vsel %vm4975_vm5, %v10150_v54, %v10155_v61  ;;  %v5042_v31 = vsel %vm4975_vm5, %v10149_v18, %v10154_v9  ;;  %7880 = vmatpush1.bf16.xpose.msra.mxu1 %v15423_v53  ;;  %v10168_v15 = vpop.permute.xlu1 %10167  ;;  %v4656_v61 = vsel %vm4588_vm4, %v4527_v24, %v9160_v12  ;;  %v19184_v24 = vunpack.i.h.bf16 %v19172_v29 }
 0x369   : > { %v10170_v51 = vunpack.i.h.bf16 %v10168_v15  ;;  %v10169_v48 = vunpack.i.l.bf16 %v10168_v15  ;;  %v10163_v2 = vpop.permute.xlu0 %10162  ;;  %v5171_v47 = vsel %vm5104_vm6, %v5042_v31, %v10159_v25  ;;  %v5172_v43 = vsel %vm5104_vm6, %v5043_v35, %v10160_v46  ;;  %v19185_v35 = vld [vmem:[#allocation234_spill] sm:$0xff] }
 0x36a   : > { %v10165_v49 = vunpack.i.h.bf16 %v10163_v2  ;;  %v10164_v3 = vunpack.i.l.bf16 %v10163_v2  ;;  %10457 = vrot.lane.b32.xlu1 %v19182_v41, %s11395_s26  ;;  %v9240_v31 = vunpack.i.h.bf16 %v19185_v35  ;;  %v9239_v15 = vunpack.i.l.bf16 %v19185_v35 }
 0x36b   : > { %v5300_v9 = vsel %vm5233_vm7, %v5171_v47, %v10169_v48  ;;  %v5301_v53 = vsel %vm5233_vm7, %v5172_v43, %v10170_v51  ;;  %10452 = vrot.lane.b32.xlu0 %v10451_v11, %s11396_s10  ;;  %v15462_v47 = vsel %vm4330_vm2, %v14981_v8, %v19184_v24  ;;  %v8544_v48 = vunpack.i.l.bf16 %v19173_v7  ;;  %v11251_v51 = vld [vmem:[%s11503_s21 + $0x4a0] sm:$0xff] }
 0x36c   : > { %v4785_v25 = vsel %vm4717_vm8, %v4656_v61, %v10165_v49  ;;  %v4784_v46 = vsel %vm4717_vm8, %v4655_v52, %v10164_v3  ;;  %v10178_v2 = vpop.permute.xlu1 %10177  ;;  %v15456_v44 = vpack.c.bf16 %v5301_v53, %v5300_v9  ;;  %v19186_v53 = vld [vmem:[#allocation225_spill] sm:$0xff]  ;;  %v11250_v52 = vld [vmem:[%s11503_s21 + $0x498] sm:$0xff]  ;;  %v19189_v3 = vunpack.i.h.bf16 %v19174_v28  ;;  %v11253_v9 = vld [vmem:[%s11503_s21 + $0x3d0] sm:$0xff] }
 0x36d   : > { %v10173_v12 = vpop.permute.xlu0 %10172  ;;  %v4913_v11 = vsel %vm4846_vm10, %v4784_v46, %v10149_v18  ;;  %v4914_v19 = vsel %vm4846_vm10, %v4785_v25, %v10150_v54  ;;  %v10476_v43 = vpack.i.bf16 %v11251_v51, %v11250_v52  ;;  %v19188_v18 = vunpack.i.l.bf16 %v19172_v29  ;;  %v11252_v49 = vld [vmem:[%s11503_s21 + $0x3d8] sm:$0xff] }
 0x36e   : > { %19183 = vst [vmem:[#allocation33_spill] sm:$0xff] %v15456_v44  ;;  %10467 = vrot.lane.b32.xlu1 %v19186_v53, %s11397_s12  ;;  %7803 = vmatprep.subr.msk.bf16.mxu0 %vm13704_vm11, %v15456_v44  ;;  %v15474_v8 = vpack.c.bf16 %v4914_v19, %v4913_v11  ;;  %v4430_v61 = vsel %vm4330_vm2, %v11252_v49, %v19189_v3  ;;  %v10180_v29 = vunpack.i.h.bf16 %v10178_v2  ;;  %v10179_v11 = vunpack.i.l.bf16 %v10178_v2  ;;  %v11254_v49 = vld [vmem:[%s11503_s21 + $0x300] sm:$0xff] }
 0x36f   : > { %v15482_v54 = vsel %vm4330_vm2, %v14978_v34, %v19188_v18  ;;  %v4429_v25 = vsel %vm4330_vm2, %v11253_v9, %v8599_v16  ;;  %10462 = vrot.lane.b32.xlu0 %v19147_v39, %s11398_s13  ;;  %v4559_v46 = vsel %vm4459_vm3, %v4430_v61, %v8920_v1  ;;  %v10175_v28 = vunpack.i.h.bf16 %v10173_v12  ;;  %v19192_v9 = vld [vmem:[#allocation239_spill] sm:$0xff] }
 0x370   : > { %19187 = vst [vmem:[#allocation178_spill] sm:$0xff] %v15474_v8  ;;  %v4558_v24 = vsel %vm4459_vm3, %v4429_v25, %v8919_v27  ;;  %7805 = vmatpush1.bf16.xpose.msra.mxu0 %v15474_v8  ;;  %v10188_v34 = vpop.permute.xlu1 %10187  ;;  %v10174_v19 = vunpack.i.l.bf16 %v10173_v12  ;;  %v4688_v39 = vsel %vm4588_vm4, %v4559_v46, %v9240_v31  ;;  %v19190_v12 = vunpack.i.h.bf16 %v19173_v7 }
 0x371   : > { %v10190_v35 = vunpack.i.h.bf16 %v10188_v34  ;;  %v10189_v52 = vunpack.i.l.bf16 %v10188_v34  ;;  %v10183_v51 = vpop.permute.xlu0 %10182  ;;  %v4687_v16 = vsel %vm4588_vm4, %v4558_v24, %v9239_v15  ;;  %v11255_v15 = vld [vmem:[%s11503_s21 + $0x2f8] sm:$0xff] }
 0x372   : > { %10477 = vrot.lane.b32.xlu1 %v10476_v43, %s11396_s10  ;;  %v10185_v2 = vunpack.i.h.bf16 %v10183_v51  ;;  %v10184_v18 = vunpack.i.l.bf16 %v10183_v51  ;;  %v15506_v3 = vsel %vm4330_vm2, %v11254_v49, %v19190_v12  ;;  %v15510_v31 = vsel %vm4330_vm2, %v11255_v15, %v8544_v48  ;;  %v19191_v43 = vld [vmem:[#allocation198_spill] sm:$0xff]  ;;  %v19193_v24 = vld [vmem:[#allocation108_spill] sm:$0xff] }
 0x373   : > { %v4816_v1 = vsel %vm4717_vm8, %v4687_v16, %v10189_v52  ;;  %v4817_v27 = vsel %vm4717_vm8, %v4688_v39, %v10190_v35  ;;  %10472 = vrot.lane.b32.xlu0 %v19162_v45, %s11394_s25  ;;  %v8845_v34 = vunpack.i.h.bf16 %v19193_v24  ;;  %v5075_v45 = vsel %vm4975_vm5, %v10175_v28, %v10180_v29  ;;  %v19194_v29 = vld [vmem:[#allocation63_spill] sm:$0xff] }
 0x374   : > { %v15514_v46 = vpop.permute.xlu1 %10197  ;;  %v5074_v35 = vsel %vm4975_vm5, %v10174_v19, %v10179_v11  ;;  %v4945_v48 = vsel %vm4846_vm10, %v4816_v1, %v10174_v19  ;;  %v4946_v16 = vsel %vm4846_vm10, %v4817_v27, %v10175_v28  ;;  %v8844_v39 = vunpack.i.l.bf16 %v19193_v24  ;;  %v19195_v11 = vld [vmem:[#allocation207_spill] sm:$0xff] }
 0x375   : > { %v10193_v7 = vpop.permute.xlu0 %10192  ;;  %v5203_v49 = vsel %vm5104_vm6, %v5074_v35, %v10184_v18  ;;  %v5204_v12 = vsel %vm5104_vm6, %v5075_v45, %v10185_v2  ;;  %v9164_v15 = vunpack.i.l.bf16 %v19195_v11  ;;  %v10200_v19 = vunpack.i.h.bf16 %v15514_v46 }
 0x376   : > { %v10195_v52 = vunpack.i.h.bf16 %v10193_v7  ;;  %v10194_v51 = vunpack.i.l.bf16 %v10193_v7  ;;  %10487 = vrot.lane.b32.xlu1 %v19158_v36, %s11398_s13  ;;  %v10199_v28 = vunpack.i.l.bf16 %v15514_v46  ;;  %v15535_v2 = vpack.c.bf16 %v4946_v16, %v4945_v48  ;;  %v19198_v46 = vld [vmem:[#allocation269_spill] sm:$0xff]  ;;  %v11257_v48 = vld [vmem:[%s11503_s21 + $0x378] sm:$0xff] }
 0x377   : > { %10482 = vrot.lane.b32.xlu0 %v19194_v29, %s11395_s26 }
 0x378   : > { %v5332_v7 = vsel %vm5233_vm7, %v5203_v49, %v10194_v51  ;;  %v5333_v61 = vsel %vm5233_vm7, %v5204_v12, %v10195_v52  ;;  %v10208_v36 = vpop.permute.xlu1 %10207  ;;  %19197 = vst [vmem:[#allocation75_spill] sm:$0xff] %v15535_v2  ;;  %v8604_v52 = vunpack.i.l.bf16 %v19192_v9  ;;  %v4528_v51 = vsel %vm4459_vm3, %v15250_v26, %v8844_v39  ;;  %v19199_v12 = vld [vmem:[#allocation144_spill] sm:$0xff] }
 0x379   : > { %v10203_v1 = vpop.permute.xlu0 %10202  ;;  %v15533_v27 = vpack.c.bf16 %v5333_v61, %v5332_v7  ;;  %v10210_v18 = vunpack.i.h.bf16 %v10208_v36  ;;  %v10209_v24 = vunpack.i.l.bf16 %v10208_v36  ;;  %v9165_v49 = vunpack.i.h.bf16 %v19195_v11  ;;  %v11256_v61 = vld [vmem:[%s11503_s21 + $0x370] sm:$0xff] }
 0x37a   : > { %v10205_v45 = vunpack.i.h.bf16 %v10203_v1  ;;  %v10204_v35 = vunpack.i.l.bf16 %v10203_v1  ;;  %10497 = vrot.lane.b32.xlu1 %v19169_v4, %s11394_s25  ;;  %v10501_v16 = vpack.i.bf16 %v11257_v48, %v11256_v61  ;;  %v4529_v4 = vsel %vm4459_vm3, %v15244_v13, %v8845_v34  ;;  %v19200_v34 = vld [vmem:[#allocation48_spill] sm:$0xff] }
 0x37b   : > { %19196 = vst [vmem:[#allocation20_spill] sm:$0xff] %v15533_v27  ;;  %10492 = vrot.lane.b32.xlu0 %v19198_v46, %s11397_s12  ;;  %7883 = vmatprep.subr.msk.bf16.mxu1 %vm13704_vm11, %v15533_v27  ;;  %v8925_v7 = vunpack.i.h.bf16 %v19199_v12  ;;  %v4657_v11 = vsel %vm4588_vm4, %v4528_v51, %v9164_v15  ;;  %v8924_v15 = vunpack.i.l.bf16 %v19199_v12  ;;  %v19203_v12 = vld [vmem:[#allocation241_spill] sm:$0xff] }
 0x37c   : > { %v5045_v36 = vsel %vm4975_vm5, %v10200_v19, %v10205_v45  ;;  %v5044_v26 = vsel %vm4975_vm5, %v10199_v28, %v10204_v35  ;;  %7885 = vmatpush1.bf16.xpose.msra.mxu1 %v15535_v2  ;;  %v10218_v39 = vpop.permute.xlu1 %10217  ;;  %v4658_v45 = vsel %vm4588_vm4, %v4529_v4, %v9165_v49  ;;  %v8559_v49 = vunpack.i.l.bf16 %v19191_v43  ;;  %v19202_v4 = vld [vmem:[#allocation201_spill] sm:$0xff] }
 0x37d   : > { %v10220_v1 = vunpack.i.h.bf16 %v10218_v39  ;;  %v10219_v25 = vunpack.i.l.bf16 %v10218_v39  ;;  %v10213_v27 = vpop.permute.xlu0 %10212  ;;  %v5173_v8 = vsel %vm5104_vm6, %v5044_v26, %v10209_v24  ;;  %v5174_v61 = vsel %vm5104_vm6, %v5045_v36, %v10210_v18 }
 0x37e   : > { %v10215_v48 = vunpack.i.h.bf16 %v10213_v27  ;;  %v10214_v13 = vunpack.i.l.bf16 %v10213_v27  ;;  %10507 = vrot.lane.b32.xlu1 %v19200_v34, %s11395_s26  ;;  %v9245_v26 = vunpack.i.h.bf16 %v19203_v12  ;;  %v9244_v39 = vunpack.i.l.bf16 %v19203_v12 }
 0x37f   : > { %v5302_v35 = vsel %vm5233_vm7, %v5173_v8, %v10219_v25  ;;  %v5303_v2 = vsel %vm5233_vm7, %v5174_v61, %v10220_v1  ;;  %10502 = vrot.lane.b32.xlu0 %v10501_v16, %s11396_s10  ;;  %v8555_v8 = vunpack.i.h.bf16 %v19202_v4  ;;  %v11258_v1 = vld [vmem:[%s11503_s21 + $0x4b0] sm:$0xff]  ;;  %v11259_v61 = vld [vmem:[%s11503_s21 + $0x4b8] sm:$0xff] }
 0x380   : > { %v4786_v24 = vsel %vm4717_vm8, %v4657_v11, %v10214_v13  ;;  %v4787_v18 = vsel %vm4717_vm8, %v4658_v45, %v10215_v48  ;;  %v10228_v27 = vpop.permute.xlu1 %10227  ;;  %v15568_v51 = vpack.c.bf16 %v5303_v2, %v5302_v35  ;;  %v19204_v11 = vld [vmem:[#allocation235_spill] sm:$0xff]  ;;  %v10526_v48 = vpack.i.bf16 %v11259_v61, %v11258_v1  ;;  %v11261_v35 = vld [vmem:[%s11503_s21 + $0x3e8] sm:$0xff] }
 0x381   : > { %v10223_v25 = vpop.permute.xlu0 %10222  ;;  %v4915_v16 = vsel %vm4846_vm10, %v4786_v24, %v10199_v28  ;;  %v4916_v36 = vsel %vm4846_vm10, %v4787_v18, %v10200_v19  ;;  %v11260_v13 = vld [vmem:[%s11503_s21 + $0x3f0] sm:$0xff]  ;;  %v19206_v19 = vunpack.i.h.bf16 %v19192_v9  ;;  %v4431_v24 = vsel %vm4330_vm2, %v11261_v35, %v8604_v52 }
 0x382   : > { %19201 = vst [vmem:[#allocation127_spill] sm:$0xff] %v15568_v51  ;;  %10517 = vrot.lane.b32.xlu1 %v19204_v11, %s11397_s12  ;;  %7808 = vmatprep.subr.msk.bf16.mxu0 %vm13704_vm11, %v15568_v51  ;;  %v15581_v2 = vpack.c.bf16 %v4916_v36, %v4915_v16  ;;  %v4560_v18 = vsel %vm4459_vm3, %v4431_v24, %v8924_v15  ;;  %v10230_v36 = vunpack.i.h.bf16 %v10228_v27  ;;  %v10229_v12 = vunpack.i.l.bf16 %v10228_v27  ;;  %v19209_v24 = vld [vmem:[#allocation107_spill] sm:$0xff] }
 0x383   : > { %v4432_v45 = vsel %vm4330_vm2, %v11260_v13, %v19206_v19  ;;  %10512 = vrot.lane.b32.xlu0 %v19164_v30, %s11398_s13  ;;  %v10225_v61 = vunpack.i.h.bf16 %v10223_v25  ;;  %v10224_v28 = vunpack.i.l.bf16 %v10223_v25  ;;  %v4689_v19 = vsel %vm4588_vm4, %v4560_v18, %v9244_v39  ;;  %v19208_v39 = vld [vmem:[#allocation236_spill] sm:$0xff] }
 0x384   : > { %19205 = vst [vmem:[#allocation128_spill] sm:$0xff] %v15581_v2  ;;  %v4561_v16 = vsel %vm4459_vm3, %v4432_v45, %v8925_v7  ;;  %7810 = vmatpush1.bf16.xpose.msra.mxu0 %v15581_v2  ;;  %v10238_v1 = vpop.permute.xlu1 %10237  ;;  %v19207_v25 = vunpack.i.h.bf16 %v19191_v43 }
 0x385   : > { %v10240_v9 = vunpack.i.h.bf16 %v10238_v1  ;;  %v10239_v51 = vunpack.i.l.bf16 %v10238_v1  ;;  %v10233_v13 = vpop.permute.xlu0 %10232  ;;  %v4690_v52 = vsel %vm4588_vm4, %v4561_v16, %v9245_v26  ;;  %v15612_v26 = vsel %vm4330_vm2, %v15213_v14, %v8559_v49 }
 0x386   : > { %10527 = vrot.lane.b32.xlu1 %v10526_v48, %s11396_s10  ;;  %v10235_v15 = vunpack.i.h.bf16 %v10233_v13  ;;  %v10234_v27 = vunpack.i.l.bf16 %v10233_v13  ;;  %v15608_v45 = vsel %vm4330_vm2, %v15216_v37, %v19207_v25  ;;  %v5077_v43 = vsel %vm4975_vm5, %v10225_v61, %v10230_v36  ;;  %v19210_v36 = vld [vmem:[#allocation68_spill] sm:$0xff]  ;;  %v19216_v48 = vld [vmem:[#allocation47_spill] sm:$0xff] }
 0x387   : > { %v4818_v30 = vsel %vm4717_vm8, %v4689_v19, %v10239_v51  ;;  %v4819_v7 = vsel %vm4717_vm8, %v4690_v52, %v10240_v9  ;;  %10522 = vrot.lane.b32.xlu0 %v19180_v22, %s11394_s25  ;;  %v15616_v51 = vsel %vm4330_vm2, %v15095_v21, %v8555_v8  ;;  %v8850_v22 = vunpack.i.h.bf16 %v19209_v24 }
 0x388   : > { %v15619_v35 = vpop.permute.xlu1 %10247  ;;  %v5076_v18 = vsel %vm4975_vm5, %v10224_v28, %v10229_v12  ;;  %v4947_v14 = vsel %vm4846_vm10, %v4818_v30, %v10224_v28  ;;  %v4948_v21 = vsel %vm4846_vm10, %v4819_v7, %v10225_v61  ;;  %v8849_v49 = vunpack.i.l.bf16 %v19209_v24  ;;  %v19211_v12 = vld [vmem:[#allocation204_spill] sm:$0xff] }
 0x389   : > { %v10243_v37 = vpop.permute.xlu0 %10242  ;;  %v5205_v8 = vsel %vm5104_vm6, %v5076_v18, %v10234_v27  ;;  %v5206_v9 = vsel %vm5104_vm6, %v5077_v43, %v10235_v15  ;;  %v9169_v13 = vunpack.i.l.bf16 %v19211_v12  ;;  %v10250_v28 = vunpack.i.h.bf16 %v15619_v35 }
 0x38a   : > { %v10245_v16 = vunpack.i.h.bf16 %v10243_v37  ;;  %v10244_v1 = vunpack.i.l.bf16 %v10243_v37  ;;  %10537 = vrot.lane.b32.xlu1 %v19176_v10, %s11398_s13  ;;  %v10249_v61 = vunpack.i.l.bf16 %v15619_v35  ;;  %v15640_v15 = vpack.c.bf16 %v4948_v21, %v4947_v14  ;;  %v19214_v35 = vld [vmem:[#allocation272_spill] sm:$0xff]  ;;  %v11263_v14 = vld [vmem:[%s11503_s21 + $0x388] sm:$0xff] }
 0x38b   : > { %10532 = vrot.lane.b32.xlu0 %v19210_v36, %s11395_s26  ;;  %v8609_v18 = vunpack.i.l.bf16 %v19208_v39  ;;  %v4531_v37 = vsel %vm4459_vm3, %v15170_v32, %v8850_v22 }
 0x38c   : > { %v5334_v19 = vsel %vm5233_vm7, %v5205_v8, %v10244_v1  ;;  %v5335_v52 = vsel %vm5233_vm7, %v5206_v9, %v10245_v16  ;;  %v10258_v10 = vpop.permute.xlu1 %10257  ;;  %19213 = vst [vmem:[#allocation189_spill] sm:$0xff] %v15640_v15  ;;  %v9170_v16 = vunpack.i.h.bf16 %v19211_v12  ;;  %v11262_v1 = vld [vmem:[%s11503_s21 + $0x380] sm:$0xff]  ;;  %v19215_v8 = vld [vmem:[#allocation143_spill] sm:$0xff] }
 0x38d   : > { %v10253_v30 = vpop.permute.xlu0 %10252  ;;  %v15638_v7 = vpack.c.bf16 %v5335_v52, %v5334_v19  ;;  %v10260_v27 = vunpack.i.h.bf16 %v10258_v10  ;;  %v10259_v25 = vunpack.i.l.bf16 %v10258_v10  ;;  %v10551_v21 = vpack.i.bf16 %v11263_v14, %v11262_v1 }
 0x38e   : > { %v10255_v24 = vunpack.i.h.bf16 %v10253_v30  ;;  %v10254_v43 = vunpack.i.l.bf16 %v10253_v30  ;;  %10547 = vrot.lane.b32.xlu1 %v19186_v53, %s11394_s25  ;;  %v4530_v53 = vsel %vm4459_vm3, %v15202_v6, %v8849_v49  ;;  %v8930_v9 = vunpack.i.h.bf16 %v19215_v8 }
 0x38f   : > { %19212 = vst [vmem:[#allocation36_spill] sm:$0xff] %v15638_v7  ;;  %10542 = vrot.lane.b32.xlu0 %v19214_v35, %s11397_s12  ;;  %7888 = vmatprep.subr.msk.bf16.mxu1 %vm13704_vm11, %v15638_v7  ;;  %v4659_v12 = vsel %vm4588_vm4, %v4530_v53, %v9169_v13  ;;  %v8929_v13 = vunpack.i.l.bf16 %v19215_v8 }
 0x390   : > { %v5047_v19 = vsel %vm4975_vm5, %v10250_v28, %v10255_v24  ;;  %v5046_v32 = vsel %vm4975_vm5, %v10249_v61, %v10254_v43  ;;  %7890 = vmatpush1.bf16.xpose.msra.mxu1 %v15640_v15  ;;  %v10268_v22 = vpop.permute.xlu1 %10267  ;;  %v4660_v24 = vsel %vm4588_vm4, %v4531_v37, %v9170_v16  ;;  %v19218_v37 = vunpack.i.l.bf16 %v19202_v4 }
 0x391   : > { %v10270_v52 = vunpack.i.h.bf16 %v10268_v22  ;;  %v10269_v10 = vunpack.i.l.bf16 %v10268_v22  ;;  %v10263_v30 = vpop.permute.xlu0 %10262  ;;  %v5175_v1 = vsel %vm5104_vm6, %v5046_v32, %v10259_v25  ;;  %v5176_v14 = vsel %vm5104_vm6, %v5047_v19, %v10260_v27  ;;  %v11264_v32 = vld [vmem:[%s11503_s21 + $0x320] sm:$0xff] }
 0x392   : > { %v10265_v6 = vunpack.i.h.bf16 %v10263_v30  ;;  %v10264_v49 = vunpack.i.l.bf16 %v10263_v30  ;;  %10557 = vrot.lane.b32.xlu1 %v19216_v48, %s11395_s26  ;;  %v15679_v16 = vsel %vm4330_vm2, %v11264_v32, %v19218_v37  ;;  %v19219_v22 = vld [vmem:[#allocation209_spill] sm:$0xff]  ;;  %v19220_v30 = vld [vmem:[#allocation238_spill] sm:$0xff] }
 0x393   : > { %v5304_v43 = vsel %vm5233_vm7, %v5175_v1, %v10269_v10  ;;  %v5305_v15 = vsel %vm5233_vm7, %v5176_v14, %v10270_v52  ;;  %10552 = vrot.lane.b32.xlu0 %v10551_v21, %s11396_s10  ;;  %v19221_v1 = vld [vmem:[#allocation232_spill] sm:$0xff]  ;;  %v11265_v14 = vld [vmem:[%s11503_s21 + $0x4c0] sm:$0xff] }
 0x394   : > { %v4789_v25 = vsel %vm4717_vm8, %v4660_v24, %v10265_v6  ;;  %v4788_v27 = vsel %vm4717_vm8, %v4659_v12, %v10264_v49  ;;  %v10278_v53 = vpop.permute.xlu1 %10277  ;;  %v15673_v19 = vpack.c.bf16 %v5305_v15, %v5304_v43  ;;  %v9250_v12 = vunpack.i.h.bf16 %v19220_v30  ;;  %v11266_v6 = vld [vmem:[%s11503_s21 + $0x4c8] sm:$0xff]  ;;  %v11267_v24 = vld [vmem:[%s11503_s21 + $0x400] sm:$0xff] }
 0x395   : > { %v10273_v8 = vpop.permute.xlu0 %10272  ;;  %v4917_v52 = vsel %vm4846_vm10, %v4788_v27, %v10249_v61  ;;  %v4918_v10 = vsel %vm4846_vm10, %v4789_v25, %v10250_v28  ;;  %v9249_v15 = vunpack.i.l.bf16 %v19220_v30  ;;  %v10576_v49 = vpack.i.bf16 %v11266_v6, %v11265_v14  ;;  %v11268_v25 = vld [vmem:[%s11503_s21 + $0x3f8] sm:$0xff] }
 0x396   : > { %19217 = vst [vmem:[#allocation19_spill] sm:$0xff] %v15673_v19  ;;  %10567 = vrot.lane.b32.xlu1 %v19221_v1, %s11397_s12  ;;  %7813 = vmatprep.subr.msk.bf16.mxu0 %vm13704_vm11, %v15673_v19  ;;  %v15691_v4 = vpack.c.bf16 %v4918_v10, %v4917_v52  ;;  %v19223_v28 = vunpack.i.h.bf16 %v19208_v39  ;;  %v4433_v27 = vsel %vm4330_vm2, %v11268_v25, %v8609_v18  ;;  %v10280_v52 = vunpack.i.h.bf16 %v10278_v53  ;;  %v19250_v19 = vld [vmem:[#allocation49_spill] sm:$0xff] }
 0x397   : > { %10562 = vrot.lane.b32.xlu0 %v19182_v41, %s11398_s13  ;;  %v4562_v37 = vsel %vm4459_vm3, %v4433_v27, %v8929_v13  ;;  %v10279_v10 = vunpack.i.l.bf16 %v10278_v53  ;;  %v10275_v14 = vunpack.i.h.bf16 %v10273_v8  ;;  %v10274_v6 = vunpack.i.l.bf16 %v10273_v8  ;;  %v19225_v27 = vld [vmem:[#allocation246_spill] sm:$0xff] }
 0x398   : > { %19222 = vst [vmem:[#allocation77_spill] sm:$0xff] %v15691_v4  ;;  %v4434_v43 = vsel %vm4330_vm2, %v11267_v24, %v19223_v28  ;;  %7815 = vmatpush1.bf16.xpose.msra.mxu0 %v15691_v4  ;;  %v10288_v30 = vpop.permute.xlu1 %10287  ;;  %v4691_v28 = vsel %vm4588_vm4, %v4562_v37, %v9249_v15 }
 0x399   : > { %v4563_v32 = vsel %vm4459_vm3, %v4434_v43, %v8930_v9  ;;  %v10290_v39 = vunpack.i.h.bf16 %v10288_v30  ;;  %v10289_v61 = vunpack.i.l.bf16 %v10288_v30  ;;  %v10283_v24 = vpop.permute.xlu0 %10282  ;;  %v19224_v43 = vld [vmem:[#allocation244_spill] sm:$0xff]  ;;  %v5078_v37 = vsel %vm4975_vm5, %v10274_v6, %v10279_v10  ;;  %v19228_v10 = vld [vmem:[#allocation211_spill] sm:$0xff] }
 0x39a   : > { %v4692_v18 = vsel %vm4588_vm4, %v4563_v32, %v9250_v12  ;;  %10577 = vrot.lane.b32.xlu1 %v10576_v49, %s11396_s10  ;;  %v10285_v13 = vunpack.i.h.bf16 %v10283_v24  ;;  %v10284_v53 = vunpack.i.l.bf16 %v10283_v24  ;;  %v8620_v8 = vunpack.i.h.bf16 %v19224_v43  ;;  %v19226_v49 = vld [vmem:[#allocation114_spill] sm:$0xff] }
 0x39b   : > { %v4820_v41 = vsel %vm4717_vm8, %v4691_v28, %v10289_v61  ;;  %v4821_v9 = vsel %vm4717_vm8, %v4692_v18, %v10290_v39  ;;  %10572 = vrot.lane.b32.xlu0 %v19198_v46, %s11394_s25  ;;  %v8855_v32 = vunpack.i.h.bf16 %v19226_v49  ;;  %v5079_v61 = vsel %vm4975_vm5, %v10275_v14, %v10280_v52  ;;  %v19227_v52 = vld [vmem:[#allocation67_spill] sm:$0xff] }
 0x39c   : > { %v15718_v12 = vpop.permute.xlu1 %10297  ;;  %v4949_v46 = vsel %vm4846_vm10, %v4820_v41, %v10274_v6  ;;  %v4950_v18 = vsel %vm4846_vm10, %v4821_v9, %v10275_v14  ;;  %v8854_v21 = vunpack.i.l.bf16 %v19226_v49  ;;  %v5207_v15 = vsel %vm5104_vm6, %v5078_v37, %v10284_v53 }
 0x39d   : > { %v10293_v39 = vpop.permute.xlu0 %10292  ;;  %v5208_v30 = vsel %vm5104_vm6, %v5079_v61, %v10285_v13  ;;  %v9174_v25 = vunpack.i.l.bf16 %v19228_v10  ;;  %v10300_v6 = vunpack.i.h.bf16 %v15718_v12  ;;  %v10299_v14 = vunpack.i.l.bf16 %v15718_v12 }
 0x39e   : > { %v10295_v24 = vunpack.i.h.bf16 %v10293_v39  ;;  %v10294_v28 = vunpack.i.l.bf16 %v10293_v39  ;;  %10587 = vrot.lane.b32.xlu1 %v19194_v29, %s11398_s13  ;;  %v15739_v13 = vpack.c.bf16 %v4950_v18, %v4949_v46  ;;  %v4532_v12 = vsel %vm4459_vm3, %v15364_v5, %v8854_v21  ;;  %v11271_v46 = vld [vmem:[%s11503_s21 + $0x3a0] sm:$0xff] }
 0x39f   : > { %10582 = vrot.lane.b32.xlu0 %v19227_v52, %s11395_s26 }
 0x3a0   : > { %v5336_v39 = vsel %vm5233_vm7, %v5207_v15, %v10294_v28  ;;  %v5337_v29 = vsel %vm5233_vm7, %v5208_v30, %v10295_v24  ;;  %v10308_v4 = vpop.permute.xlu1 %10307  ;;  %19230 = vst [vmem:[#allocation123_spill] sm:$0xff] %v15739_v13  ;;  %v11269_v30 = vld [vmem:[%s11503_s21 + $0x428] sm:$0xff]  ;;  %v9175_v24 = vunpack.i.h.bf16 %v19228_v10  ;;  %v19231_v28 = vld [vmem:[#allocation271_spill] sm:$0xff]  ;;  %v4661_v10 = vsel %vm4588_vm4, %v4532_v12, %v9174_v25 }
 0x3a1   : > { %v10303_v41 = vpop.permute.xlu0 %10302  ;;  %v15737_v9 = vpack.c.bf16 %v5337_v29, %v5336_v39  ;;  %v10310_v53 = vunpack.i.h.bf16 %v10308_v4  ;;  %v10309_v49 = vunpack.i.l.bf16 %v10308_v4  ;;  %v15745_v15 = vsel %vm4330_vm2, %v11269_v30, %v8620_v8  ;;  %v11270_v4 = vld [vmem:[%s11503_s21 + $0x398] sm:$0xff]  ;;  %v19232_v8 = vld [vmem:[#allocation149_spill] sm:$0xff] }
 0x3a2   : > { %v10305_v61 = vunpack.i.h.bf16 %v10303_v41  ;;  %v10304_v37 = vunpack.i.l.bf16 %v10303_v41  ;;  %10597 = vrot.lane.b32.xlu1 %v19204_v11, %s11394_s25  ;;  %v10601_v18 = vpack.i.bf16 %v11271_v46, %v11270_v4  ;;  %v4533_v11 = vsel %vm4459_vm3, %v15358_v0, %v8855_v32 }
 0x3a3   : > { %19229 = vst [vmem:[#allocation78_spill] sm:$0xff] %v15737_v9  ;;  %10592 = vrot.lane.b32.xlu0 %v19231_v28, %s11397_s12  ;;  %7893 = vmatprep.subr.msk.bf16.mxu1 %vm13704_vm11, %v15737_v9  ;;  %v8935_v39 = vunpack.i.h.bf16 %v19232_v8  ;;  %v8934_v12 = vunpack.i.l.bf16 %v19232_v8 }
 0x3a4   : > { %v5049_v29 = vsel %vm4975_vm5, %v10300_v6, %v10305_v61  ;;  %v5048_v5 = vsel %vm4975_vm5, %v10299_v14, %v10304_v37  ;;  %7895 = vmatpush1.bf16.xpose.msra.mxu1 %v15739_v13  ;;  %v10318_v21 = vpop.permute.xlu1 %10317  ;;  %v19233_v61 = vld [vmem:[#allocation50_spill] sm:$0xff]  ;;  %v4662_v37 = vsel %vm4588_vm4, %v4533_v11, %v9175_v24  ;;  %v19235_v24 = vunpack.i.l.bf16 %v19224_v43 }
 0x3a5   : > { %v10320_v41 = vunpack.i.h.bf16 %v10318_v21  ;;  %v10319_v30 = vunpack.i.l.bf16 %v10318_v21  ;;  %v10313_v9 = vpop.permute.xlu0 %10312  ;;  %v5177_v4 = vsel %vm5104_vm6, %v5048_v5, %v10309_v49  ;;  %v5178_v0 = vsel %vm5104_vm6, %v5049_v29, %v10310_v53  ;;  %v11272_v5 = vld [vmem:[%s11503_s21 + $0x420] sm:$0xff]  ;;  %v11273_v21 = vld [vmem:[%s11503_s21 + $0x418] sm:$0xff] }
 0x3a6   : > { %v10315_v32 = vunpack.i.h.bf16 %v10313_v9  ;;  %v10314_v46 = vunpack.i.l.bf16 %v10313_v9  ;;  %10607 = vrot.lane.b32.xlu1 %v19233_v61, %s11395_s26  ;;  %v15781_v11 = vsel %vm4330_vm2, %v11272_v5, %v19235_v24  ;;  %v11276_v5 = vld [vmem:[%s11503_s21 + $0x410] sm:$0xff] }
 0x3a7   : > { %v5306_v13 = vsel %vm5233_vm7, %v5177_v4, %v10319_v30  ;;  %v5307_v25 = vsel %vm5233_vm7, %v5178_v0, %v10320_v41  ;;  %10602 = vrot.lane.b32.xlu0 %v10601_v18, %s11396_s10  ;;  %v19236_v18 = vunpack.i.h.bf16 %v19225_v27  ;;  %v19237_v4 = vld [vmem:[#allocation245_spill] sm:$0xff] }
 0x3a8   : > { %v4790_v49 = vsel %vm4717_vm8, %v4661_v10, %v10314_v46  ;;  %v4791_v53 = vsel %vm4717_vm8, %v4662_v37, %v10315_v32  ;;  %v10328_v9 = vpop.permute.xlu1 %10327  ;;  %v15775_v29 = vpack.c.bf16 %v5307_v25, %v5306_v13  ;;  %v9255_v13 = vunpack.i.h.bf16 %v19237_v4  ;;  %v19238_v32 = vld [vmem:[#allocation243_spill] sm:$0xff]  ;;  %v11274_v46 = vld [vmem:[%s11503_s21 + $0x4d8] sm:$0xff]  ;;  %v11275_v37 = vld [vmem:[%s11503_s21 + $0x4e0] sm:$0xff] }
 0x3a9   : > { %v4436_v8 = vsel %vm4330_vm2, %v11273_v21, %v19236_v18  ;;  %v10323_v10 = vpop.permute.xlu0 %10322  ;;  %v4919_v41 = vsel %vm4846_vm10, %v4790_v49, %v10299_v14  ;;  %v4920_v30 = vsel %vm4846_vm10, %v4791_v53, %v10300_v6  ;;  %v9254_v0 = vunpack.i.l.bf16 %v19237_v4  ;;  %v19241_v49 = vld [vmem:[#allocation251_spill] sm:$0xff] }
 0x3aa   : > { %19234 = vst [vmem:[#allocation137_spill] sm:$0xff] %v15775_v29  ;;  %10617 = vrot.lane.b32.xlu1 %v19238_v32, %s11397_s12  ;;  %7818 = vmatprep.subr.msk.bf16.mxu0 %vm13704_vm11, %v15775_v29  ;;  %v15796_v43 = vpack.c.bf16 %v4920_v30, %v4919_v41  ;;  %v10626_v25 = vpack.i.bf16 %v11275_v37, %v11274_v46  ;;  %v19240_v14 = vunpack.i.l.bf16 %v19225_v27  ;;  %v8630_v53 = vunpack.i.h.bf16 %v19241_v49 }
 0x3ab   : > { %v8629_v24 = vunpack.i.l.bf16 %v19241_v49  ;;  %10612 = vrot.lane.b32.xlu0 %v19200_v34, %s11398_s13  ;;  %v4565_v18 = vsel %vm4459_vm3, %v4436_v8, %v8935_v39  ;;  %v10330_v41 = vunpack.i.h.bf16 %v10328_v9  ;;  %v10329_v30 = vunpack.i.l.bf16 %v10328_v9 }
 0x3ac   : > { %19239 = vst [vmem:[#allocation35_spill] sm:$0xff] %v15796_v43  ;;  %v4435_v6 = vsel %vm4330_vm2, %v11276_v5, %v19240_v14  ;;  %7820 = vmatpush1.bf16.xpose.msra.mxu0 %v15796_v43  ;;  %v10338_v4 = vpop.permute.xlu1 %10337  ;;  %v10325_v27 = vunpack.i.h.bf16 %v10323_v10  ;;  %v10324_v46 = vunpack.i.l.bf16 %v10323_v10  ;;  %v4694_v34 = vsel %vm4588_vm4, %v4565_v18, %v9255_v13  ;;  %v19242_v13 = vld [vmem:[#allocation252_spill] sm:$0xff] }
 0x3ad   : > { %v4564_v21 = vsel %vm4459_vm3, %v4435_v6, %v8934_v12  ;;  %v10340_v37 = vunpack.i.h.bf16 %v10338_v4  ;;  %v10339_v5 = vunpack.i.l.bf16 %v10338_v4  ;;  %v10333_v14 = vpop.permute.xlu0 %10332  ;;  %v11277_v6 = vld [vmem:[%s11503_s21 + $0x450] sm:$0xff]  ;;  %v11278_v4 = vld [vmem:[%s11503_s21 + $0x448] sm:$0xff] }
 0x3ae   : > { %v4693_v49 = vsel %vm4588_vm4, %v4564_v21, %v9254_v0  ;;  %10627 = vrot.lane.b32.xlu1 %v10626_v25, %s11396_s10  ;;  %v10335_v9 = vunpack.i.h.bf16 %v10333_v14  ;;  %v10334_v8 = vunpack.i.l.bf16 %v10333_v14  ;;  %v15820_v10 = vsel %vm4330_vm2, %v11277_v6, %v8630_v53 }
 0x3af   : > { %v4822_v39 = vsel %vm4717_vm8, %v4693_v49, %v10339_v5  ;;  %v4823_v12 = vsel %vm4717_vm8, %v4694_v34, %v10340_v37  ;;  %10622 = vrot.lane.b32.xlu0 %v19214_v35, %s11394_s25  ;;  %v15824_v0 = vsel %vm4330_vm2, %v11278_v4, %v8629_v24  ;;  %v8625_v21 = vunpack.i.h.bf16 %v19242_v13  ;;  %v19243_v37 = vld [vmem:[#allocation112_spill] sm:$0xff] }
 0x3b0   : > { %v15828_v18 = vpop.permute.xlu1 %10347  ;;  %v8860_v5 = vunpack.i.h.bf16 %v19243_v37  ;;  %v5081_v14 = vsel %vm4975_vm5, %v10325_v27, %v10330_v41  ;;  %v5080_v35 = vsel %vm4975_vm5, %v10324_v46, %v10329_v30  ;;  %v4951_v24 = vsel %vm4846_vm10, %v4822_v39, %v10324_v46  ;;  %v19244_v41 = vld [vmem:[#allocation72_spill] sm:$0xff] }
 0x3b1   : > { %v10343_v49 = vpop.permute.xlu0 %10342  ;;  %v4952_v6 = vsel %vm4846_vm10, %v4823_v12, %v10325_v27  ;;  %v8859_v4 = vunpack.i.l.bf16 %v19243_v37  ;;  %v5209_v25 = vsel %vm5104_vm6, %v5080_v35, %v10334_v8  ;;  %v5210_v43 = vsel %vm5104_vm6, %v5081_v14, %v10335_v9  ;;  %v19245_v30 = vld [vmem:[#allocation208_spill] sm:$0xff] }
 0x3b2   : > { %v10345_v34 = vunpack.i.h.bf16 %v10343_v49  ;;  %v10344_v53 = vunpack.i.l.bf16 %v10343_v49  ;;  %10637 = vrot.lane.b32.xlu1 %v19210_v36, %s11398_s13  ;;  %v9179_v29 = vunpack.i.l.bf16 %v19245_v30  ;;  %v10350_v46 = vunpack.i.h.bf16 %v15828_v18 }
 0x3b3   : > { %10632 = vrot.lane.b32.xlu0 %v19244_v41, %s11395_s26  ;;  %v10349_v27 = vunpack.i.l.bf16 %v15828_v18  ;;  %v15849_v9 = vpack.c.bf16 %v4952_v6, %v4951_v24  ;;  %v4535_v18 = vsel %vm4459_vm3, %v15284_v57, %v8860_v5  ;;  %v11281_v24 = vld [vmem:[%s11503_s21 + $0x3b0] sm:$0xff] }
 0x3b4   : > { %v5338_v49 = vsel %vm5233_vm7, %v5209_v25, %v10344_v53  ;;  %v5339_v36 = vsel %vm5233_vm7, %v5210_v43, %v10345_v34  ;;  %v10358_v7 = vpop.permute.xlu1 %10357  ;;  %v11279_v43 = vld [vmem:[%s11503_s21 + $0x440] sm:$0xff]  ;;  %v9180_v34 = vunpack.i.h.bf16 %v19245_v30  ;;  %v19248_v53 = vld [vmem:[#allocation274_spill] sm:$0xff] }
 0x3b5   : > { %v10353_v39 = vpop.permute.xlu0 %10352  ;;  %v15847_v12 = vpack.c.bf16 %v5339_v36, %v5338_v49  ;;  %19247 = vst [vmem:[#allocation88_spill] sm:$0xff] %v15849_v9  ;;  %v10360_v8 = vunpack.i.h.bf16 %v10358_v7  ;;  %v10359_v37 = vunpack.i.l.bf16 %v10358_v7  ;;  %v15855_v25 = vsel %vm4330_vm2, %v11279_v43, %v8625_v21  ;;  %v11280_v7 = vld [vmem:[%s11503_s21 + $0x3a8] sm:$0xff]  ;;  %v19249_v21 = vld [vmem:[#allocation148_spill] sm:$0xff] }
 0x3b6   : > { %v10355_v14 = vunpack.i.h.bf16 %v10353_v39  ;;  %v10354_v35 = vunpack.i.l.bf16 %v10353_v39  ;;  %10647 = vrot.lane.b32.xlu1 %v19221_v1, %s11394_s25  ;;  %v10651_v6 = vpack.i.bf16 %v11281_v24, %v11280_v7  ;;  %v4534_v1 = vsel %vm4459_vm3, %v15288_v50, %v8859_v4 }
 0x3b7   : > { %19246 = vst [vmem:[#allocation186_spill] sm:$0xff] %v15847_v12  ;;  %10642 = vrot.lane.b32.xlu0 %v19248_v53, %s11397_s12  ;;  %7898 = vmatprep.subr.msk.bf16.mxu1 %vm13704_vm11, %v15847_v12  ;;  %v8940_v49 = vunpack.i.h.bf16 %v19249_v21  ;;  %v4663_v30 = vsel %vm4588_vm4, %v4534_v1, %v9179_v29  ;;  %v8939_v29 = vunpack.i.l.bf16 %v19249_v21 }
 0x3b8   : > { %v5051_v36 = vsel %vm4975_vm5, %v10350_v46, %v10355_v14  ;;  %v5050_v57 = vsel %vm4975_vm5, %v10349_v27, %v10354_v35  ;;  %7900 = vmatpush1.bf16.xpose.msra.mxu1 %v15849_v9  ;;  %v10368_v5 = vpop.permute.xlu1 %10367  ;;  %v4664_v14 = vsel %vm4588_vm4, %v4535_v18, %v9180_v34  ;;  %v19252_v18 = vunpack.i.l.bf16 %v19242_v13 }
 0x3b9   : > { %v10370_v39 = vunpack.i.h.bf16 %v10368_v5  ;;  %v10369_v43 = vunpack.i.l.bf16 %v10368_v5  ;;  %v10363_v12 = vpop.permute.xlu0 %10362  ;;  %v5179_v7 = vsel %vm5104_vm6, %v5050_v57, %v10359_v37  ;;  %v5180_v24 = vsel %vm5104_vm6, %v5051_v36, %v10360_v8  ;;  %v11282_v36 = vld [vmem:[%s11503_s21 + $0x438] sm:$0xff]  ;;  %v19253_v57 = vld [vmem:[#allocation255_spill] sm:$0xff] }
 0x3ba   : > { %v10365_v50 = vunpack.i.h.bf16 %v10363_v12  ;;  %v10364_v4 = vunpack.i.l.bf16 %v10363_v12  ;;  %10657 = vrot.lane.b32.xlu1 %v19250_v19, %s11395_s26  ;;  %v15891_v34 = vsel %vm4330_vm2, %v11282_v36, %v19252_v18  ;;  %v19259_v5 = vld [vmem:[#allocation115_spill] sm:$0xff] }
 0x3bb   : > { %v5308_v35 = vsel %vm5233_vm7, %v5179_v7, %v10369_v43  ;;  %v5309_v9 = vsel %vm5233_vm7, %v5180_v24, %v10370_v39  ;;  %10652 = vrot.lane.b32.xlu0 %v10651_v6, %s11396_s10  ;;  %v19254_v43 = vld [vmem:[#allocation242_spill] sm:$0xff]  ;;  %v8869_v44 = vunpack.i.l.bf16 %v19259_v5 }
 0x3bc   : > { %v4793_v37 = vsel %vm4717_vm8, %v4664_v14, %v10365_v50  ;;  %v4792_v8 = vsel %vm4717_vm8, %v4663_v30, %v10364_v4  ;;  %v10378_v12 = vpop.permute.xlu1 %10377  ;;  %v15885_v1 = vpack.c.bf16 %v5309_v9, %v5308_v35  ;;  %v9260_v7 = vunpack.i.h.bf16 %v19254_v43  ;;  %v19255_v9 = vld [vmem:[#allocation240_spill] sm:$0xff]  ;;  %v11283_v24 = vld [vmem:[%s11503_s21 + $0x4e8] sm:$0xff]  ;;  %v11284_v50 = vld [vmem:[%s11503_s21 + $0x4f0] sm:$0xff] }
 0x3bd   : > { %v10373_v6 = vpop.permute.xlu0 %10372  ;;  %v4921_v21 = vsel %vm4846_vm10, %v4792_v8, %v10349_v27  ;;  %v4922_v39 = vsel %vm4846_vm10, %v4793_v37, %v10350_v46  ;;  %v9259_v30 = vunpack.i.l.bf16 %v19254_v43  ;;  %v15907_v4 = vpack.i.bf16 %v11284_v50, %v11283_v24  ;;  %v19257_v46 = vld [vmem:[#allocation117_spill] sm:$0xff] }
 0x3be   : > { %19251 = vst [vmem:[#allocation22_spill] sm:$0xff] %v15885_v1  ;;  %10667 = vrot.lane.b32.xlu1 %v19255_v9, %s11397_s12  ;;  %7823 = vmatprep.subr.msk.bf16.mxu0 %vm13704_vm11, %v15885_v1  ;;  %v15903_v13 = vpack.c.bf16 %v4922_v39, %v4921_v21  ;;  %v8865_v14 = vunpack.i.h.bf16 %v19257_v46  ;;  %v8864_v35 = vunpack.i.l.bf16 %v19257_v46  ;;  %v4567_v37 = vsel %vm4459_vm3, %v15745_v15, %v8940_v49 }
 0x3bf   : > { %10662 = vrot.lane.b32.xlu0 %v19216_v48, %s11398_s13  ;;  %v4566_v8 = vsel %vm4459_vm3, %v15781_v11, %v8939_v29  ;;  %v10380_v36 = vunpack.i.h.bf16 %v10378_v12  ;;  %v10379_v18 = vunpack.i.l.bf16 %v10378_v12  ;;  %v10375_v39 = vunpack.i.h.bf16 %v10373_v6  ;;  %v19258_v12 = vld [vmem:[#allocation256_spill] sm:$0xff] }
 0x3c0   : > { %19256 = vst [vmem:[#allocation187_spill] sm:$0xff] %v15903_v13  ;;  %7825 = vmatpush1.bf16.xpose.msra.mxu0 %v15903_v13  ;;  %v10388_v21 = vpop.permute.xlu1 %10387  ;;  %v10374_v43 = vunpack.i.l.bf16 %v10373_v6  ;;  %v4695_v46 = vsel %vm4588_vm4, %v4566_v8, %v9259_v30  ;;  %v4696_v48 = vsel %vm4588_vm4, %v4567_v37, %v9260_v7  ;;  %v4536_v7 = vsel %vm4459_vm3, %v15510_v31, %v8864_v35  ;;  %v19260_v31 = vld [vmem:[#allocation215_spill] sm:$0xff] }
 0x3c1   : > { %v10390_v24 = vunpack.i.h.bf16 %v10388_v21  ;;  %v10389_v50 = vunpack.i.l.bf16 %v10388_v21  ;;  %v10383_v27 = vpop.permute.xlu0 %10382  ;;  %v4537_v8 = vsel %vm4459_vm3, %v15506_v3, %v8865_v14  ;;  %v9184_v35 = vunpack.i.l.bf16 %v19260_v31  ;;  %v19261_v14 = vld [vmem:[#allocation71_spill] sm:$0xff] }
 0x3c2   : > { %10677 = vrot.lane.b32.xlu1 %v15907_v4, %s11396_s10  ;;  %v10385_v49 = vunpack.i.h.bf16 %v10383_v27  ;;  %v10384_v29 = vunpack.i.l.bf16 %v10383_v27  ;;  %v5082_v27 = vsel %vm4975_vm5, %v10374_v43, %v10379_v18 }
 0x3c3   : > { %v4824_v15 = vsel %vm4717_vm8, %v4695_v46, %v10389_v50  ;;  %v4825_v11 = vsel %vm4717_vm8, %v4696_v48, %v10390_v24  ;;  %10672 = vrot.lane.b32.xlu0 %v19231_v28, %s11394_s25  ;;  %v5083_v24 = vsel %vm4975_vm5, %v10375_v39, %v10380_v36  ;;  %v9185_v36 = vunpack.i.h.bf16 %v19260_v31 }
 0x3c4   : > { %v15932_v37 = vpop.permute.xlu1 %10397  ;;  %v4953_v48 = vsel %vm4846_vm10, %v4824_v15, %v10374_v43  ;;  %v4954_v21 = vsel %vm4846_vm10, %v4825_v11, %v10375_v39  ;;  %v5211_v6 = vsel %vm5104_vm6, %v5082_v27, %v10384_v29  ;;  %v5212_v3 = vsel %vm5104_vm6, %v5083_v24, %v10385_v49 }
 0x3c5   : > { %v10393_v50 = vpop.permute.xlu0 %10392  ;;  %v10400_v43 = vunpack.i.h.bf16 %v15932_v37  ;;  %v10399_v39 = vunpack.i.l.bf16 %v15932_v37  ;;  %v15954_v49 = vpack.c.bf16 %v4954_v21, %v4953_v48  ;;  %v19265_v21 = vld [vmem:[#allocation273_spill] sm:$0xff] }
 0x3c6   : > { %v10395_v28 = vunpack.i.h.bf16 %v10393_v50  ;;  %v10394_v46 = vunpack.i.l.bf16 %v10393_v50  ;;  %10687 = vrot.lane.b32.xlu1 %v19227_v52, %s11398_s13  ;;  %v11285_v48 = vld [vmem:[%s11503_s21 + $0x3c0] sm:$0xff] }
 0x3c7   : > { %10682 = vrot.lane.b32.xlu0 %v19261_v14, %s11395_s26  ;;  %19263 = vst [vmem:[#allocation81_spill] sm:$0xff] %v15954_v49 }
 0x3c8   : > { %v5340_v18 = vsel %vm5233_vm7, %v5211_v6, %v10394_v46  ;;  %v5341_v52 = vsel %vm5233_vm7, %v5212_v3, %v10395_v28  ;;  %v10408_v50 = vpop.permute.xlu1 %10407  ;;  %v15959_v6 = vld [vmem:[%s11503_s21 + $0x500] sm:$0xff]  ;;  %v19264_v28 = vld [vmem:[#allocation152_spill] sm:$0xff]  ;;  %v4665_v3 = vsel %vm4588_vm4, %v4536_v7, %v9184_v35  ;;  %v15976_v7 = vld [vmem:[%s11503_s21 + $0x508] sm:$0xff] }
 0x3c9   : > { %v10403_v15 = vpop.permute.xlu0 %10402  ;;  %v15952_v11 = vpack.c.bf16 %v5341_v52, %v5340_v18  ;;  %v10410_v29 = vunpack.i.h.bf16 %v10408_v50  ;;  %v10409_v24 = vunpack.i.l.bf16 %v10408_v50  ;;  %v8945_v46 = vunpack.i.h.bf16 %v19264_v28  ;;  %v11286_v18 = vld [vmem:[%s11503_s21 + $0x3c8] sm:$0xff]  ;;  %v15979_v35 = vld [vmem:[%s11503_s21 + $0x510] sm:$0xff] }
 0x3ca   : > { %v10405_v27 = vunpack.i.h.bf16 %v10403_v15  ;;  %v10404_v31 = vunpack.i.l.bf16 %v10403_v15  ;;  %10697 = vrot.lane.b32.xlu1 %v19238_v32, %s11394_s25  ;;  %v8944_v37 = vunpack.i.l.bf16 %v19264_v28  ;;  %v10701_v52 = vpack.i.bf16 %v11286_v18, %v11285_v48 }
 0x3cb   : > { %19262 = vst [vmem:[#allocation131_spill] sm:$0xff] %v15952_v11  ;;  %10692 = vrot.lane.b32.xlu0 %v19265_v21, %s11397_s12  ;;  %7903 = vmatprep.subr.msk.bf16.mxu1 %vm13704_vm11, %v15952_v11  ;;  %v4666_v32 = vsel %vm4588_vm4, %v4537_v8, %v9185_v36  ;;  %v2369_v11 = vrot.slane %v15959_v6, 1 }
 0x3cc   : > { %v5053_v50 = vsel %vm4975_vm5, %v10400_v43, %v10405_v27  ;;  %v5052_v15 = vsel %vm4975_vm5, %v10399_v39, %v10404_v31  ;;  %7905 = vmatpush1.bf16.xpose.msra.mxu1 %v15954_v49  ;;  %v10418_v28 = vpop.permute.xlu1 %10417  ;;  %v19266_v31 = vld [vmem:[#allocation52_spill] sm:$0xff] }
 0x3cd   : > { %v10420_v30 = vunpack.i.h.bf16 %v10418_v28  ;;  %v10419_v13 = vunpack.i.l.bf16 %v10418_v28  ;;  %v10413_v1 = vpop.permute.xlu0 %10412  ;;  %v5181_v48 = vsel %vm5104_vm6, %v5052_v15, %v10409_v24  ;;  %v5182_v8 = vsel %vm5104_vm6, %v5053_v50, %v10410_v29 }
 0x3ce   : > { %v10415_v36 = vunpack.i.h.bf16 %v10413_v1  ;;  %v10414_v27 = vunpack.i.l.bf16 %v10413_v1  ;;  %10707 = vrot.lane.b32.xlu1 %v19266_v31, %s11395_s26  ;;  %v2370_v28 = vrot.slane %v15976_v7, 1 }
 0x3cf   : > { %v5310_v18 = vsel %vm5233_vm7, %v5181_v48, %v10419_v13  ;;  %v5311_v49 = vsel %vm5233_vm7, %v5182_v8, %v10420_v30  ;;  %10702 = vrot.lane.b32.xlu0 %v10701_v52, %s11396_s10  ;;  %v4568_v13 = vsel %vm4459_vm3, %v15891_v34, %v8944_v37  ;;  %v4569_v30 = vsel %vm4459_vm3, %v15855_v25, %v8945_v46  ;;  %v19267_v8 = vld [vmem:[#allocation249_spill] sm:$0xff] }
 0x3d0   : > { %v4794_v24 = vsel %vm4717_vm8, %v4665_v3, %v10414_v27  ;;  %v4795_v29 = vsel %vm4717_vm8, %v4666_v32, %v10415_v36  ;;  %v10428_v1 = vpop.permute.xlu1 %10427  ;;  %v15994_v50 = vpack.c.bf16 %v5311_v49, %v5310_v18  ;;  %v9265_v2 = vunpack.i.h.bf16 %v19267_v8  ;;  %v19268_v32 = vld [vmem:[#allocation250_spill] sm:$0xff] }
 0x3d1   : > { %v10423_v52 = vpop.permute.xlu0 %10422  ;;  %v4923_v15 = vsel %vm4846_vm10, %v4794_v24, %v10399_v39  ;;  %v4924_v48 = vsel %vm4846_vm10, %v4795_v29, %v10400_v43  ;;  %v9264_v3 = vunpack.i.l.bf16 %v19267_v8  ;;  %v16013_v25 = vpack.i.bf16 %v15976_v7, %v15959_v6 }
 0x3d2   : > { %10717 = vrot.lane.b32.xlu1 %v19268_v32, %s11397_s12  ;;  %7828 = vmatprep.subr.msk.bf16.mxu0 %vm13704_vm11, %v15994_v50  ;;  %v16009_v34 = vpack.c.bf16 %v4924_v48, %v4923_v15  ;;  %v2371_v43 = vsel %vm634_vm0, %v2369_v11, %v2370_v28  ;;  %v19270_v39 = vrot.slane %v15979_v35, 1  ;;  %v2762_v46 = vrot.slane %v15959_v6, 2 }
 0x3d3   : > { %10712 = vrot.lane.b32.xlu0 %v19233_v61, %s11398_s13  ;;  %v10430_v37 = vunpack.i.h.bf16 %v10428_v1  ;;  %v10429_v36 = vunpack.i.l.bf16 %v10428_v1  ;;  %v2763_v18 = vrot.slane %v15976_v7, 2  ;;  %v10425_v29 = vunpack.i.h.bf16 %v10423_v52 }
 0x3d4   : > { %19269 = vst [vmem:[#allocation85_spill] sm:$0xff] %v16009_v34  ;;  %v2373_v49 = vsel %vm634_vm0, %v2370_v28, %v19270_v39  ;;  %7830 = vmatpush1.bf16.xpose.msra.mxu0 %v16009_v34  ;;  %v10438_v27 = vpop.permute.xlu1 %10437  ;;  %v10424_v61 = vunpack.i.l.bf16 %v10423_v52  ;;  %v4697_v8 = vsel %vm4588_vm4, %v4568_v13, %v9264_v3  ;;  %v4698_v28 = vsel %vm4588_vm4, %v4569_v30, %v9265_v2  ;;  %v11287_v52 = vld [vmem:[%s11503_s21 + $0x478] sm:$0xff] }
 0x3d5   : > { %v10440_v15 = vunpack.i.h.bf16 %v10438_v27  ;;  %v10439_v11 = vunpack.i.l.bf16 %v10438_v27  ;;  %v10433_v48 = vpop.permute.xlu0 %10432  ;;  %v16029_v6 = vpack.i.bf16 %v2373_v49, %v2371_v43  ;;  %v19271_v27 = vunpack.i.h.bf16 %v19253_v57 }
 0x3d6   : > { %10727 = vrot.lane.b32.xlu1 %v16013_v25, %s11396_s10  ;;  %v10435_v39 = vunpack.i.h.bf16 %v10433_v48  ;;  %v10434_v24 = vunpack.i.l.bf16 %v10433_v48  ;;  %v19272_v2 = vunpack.i.h.bf16 %v19259_v5  ;;  %v2764_v43 = vsel %vm1307_vm1, %v2762_v46, %v2763_v18 }
 0x3d7   : > { %v4826_v1 = vsel %vm4717_vm8, %v4697_v8, %v10439_v11  ;;  %v4827_v7 = vsel %vm4717_vm8, %v4698_v28, %v10440_v15  ;;  %10722 = vrot.lane.b32.xlu0 %v19248_v53, %s11394_s25  ;;  %v16039_v13 = vsel %vm4330_vm2, %v11287_v52, %v19271_v27  ;;  %v19273_v49 = vrot.slane %v15979_v35, 2  ;;  %v19274_v52 = vld [vmem:[#allocation212_spill] sm:$0xff] }
 0x3d8   : > { %v4539_v30 = vsel %vm4459_vm3, %v15462_v47, %v19272_v2  ;;  %v16045_v3 = vpop.permute.xlu1 %10447  ;;  %v4538_v53 = vsel %vm4459_vm3, %v15482_v54, %v8869_v44  ;;  %v5085_v11 = vsel %vm4975_vm5, %v10425_v29, %v10430_v37  ;;  %v5084_v48 = vsel %vm4975_vm5, %v10424_v61, %v10429_v36 }
 0x3d9   : > { %v2766_v15 = vsel %vm1307_vm1, %v2763_v18, %v19273_v49  ;;  %v10443_v8 = vpop.permute.xlu0 %10442  ;;  %v4955_v47 = vsel %vm4846_vm10, %v4826_v1, %v10424_v61  ;;  %v4956_v46 = vsel %vm4846_vm10, %v4827_v7, %v10425_v29  ;;  %v9189_v27 = vunpack.i.l.bf16 %v19274_v52 }
 0x3da   : > { %v10445_v5 = vunpack.i.h.bf16 %v10443_v8  ;;  %v10444_v28 = vunpack.i.l.bf16 %v10443_v8  ;;  %10737 = vrot.lane.b32.xlu1 %v19244_v41, %s11398_s13  ;;  %v5213_v18 = vsel %vm5104_vm6, %v5084_v48, %v10434_v24  ;;  %v5214_v44 = vsel %vm5104_vm6, %v5085_v11, %v10435_v39  ;;  %v19277_v11 = vld [vmem:[#allocation151_spill] sm:$0xff] }
 0x3db   : > { %10732 = vrot.lane.b32.xlu0 %v16029_v6, %s11395_s26  ;;  %v16064_v54 = vpack.i.bf16 %v2766_v15, %v2764_v43  ;;  %v9190_v37 = vunpack.i.h.bf16 %v19274_v52  ;;  %v10450_v29 = vunpack.i.h.bf16 %v16045_v3  ;;  %v10449_v24 = vunpack.i.l.bf16 %v16045_v3 }
 0x3dc   : > { %v5342_v36 = vsel %vm5233_vm7, %v5213_v18, %v10444_v28  ;;  %v5343_v41 = vsel %vm5233_vm7, %v5214_v44, %v10445_v5  ;;  %v10458_v61 = vpop.permute.xlu1 %10457  ;;  %v16073_v39 = vpack.c.bf16 %v4956_v46, %v4955_v47  ;;  %v8950_v48 = vunpack.i.h.bf16 %v19277_v11  ;;  %v11288_v5 = vld [vmem:[%s11503_s21 + $0x3d0] sm:$0xff]  ;;  %v11289_v28 = vld [vmem:[%s11503_s21 + $0x3d8] sm:$0xff] }
 0x3dd   : > { %v10453_v1 = vpop.permute.xlu0 %10452  ;;  %v16071_v7 = vpack.c.bf16 %v5343_v41, %v5342_v36  ;;  %v10460_v2 = vunpack.i.h.bf16 %v10458_v61  ;;  %v10459_v43 = vunpack.i.l.bf16 %v10458_v61  ;;  %v8949_v8 = vunpack.i.l.bf16 %v19277_v11  ;;  %v468_v36 = vld [vmem:[%s11503_s21 + $0x520] sm:$0x3] }
 0x3de   : > { %19276 = vst [vmem:[#allocation275_spill] sm:$0xff] %v16073_v39  ;;  %v10455_v49 = vunpack.i.h.bf16 %v10453_v1  ;;  %v10454_v15 = vunpack.i.l.bf16 %v10453_v1  ;;  %10747 = vrot.lane.b32.xlu1 %v19255_v9, %s11394_s25  ;;  %v4667_v3 = vsel %vm4588_vm4, %v4538_v53, %v9189_v27  ;;  %v10751_v47 = vpack.i.bf16 %v11289_v28, %v11288_v5  ;;  %v19278_v9 = vld [vmem:[#allocation248_spill] sm:$0xff] }
 0x3df   : > { %19275 = vst [vmem:[#allocation136_spill] sm:$0xff] %v16071_v7  ;;  %10742 = vrot.lane.b32.xlu0 %v16064_v54, %s11397_s12  ;;  %7908 = vmatprep.subr.msk.bf16.mxu1 %vm13704_vm11, %v16071_v7  ;;  %v4668_v46 = vsel %vm4588_vm4, %v4539_v30, %v9190_v37  ;;  %v9269_v52 = vunpack.i.l.bf16 %v19278_v9  ;;  %v467_v27 = vld [vmem:[%s11503_s21 + $0x518] sm:$0xff]  ;;  %v19279_v37 = vld [vmem:[#allocation51_spill] sm:$0xff]  ;;  %v2376_v7 = vrot.slane %v468_v36, 1 }
 0x3e0   : > { %v5055_v18 = vsel %vm4975_vm5, %v10450_v29, %v10455_v49  ;;  %v5054_v44 = vsel %vm4975_vm5, %v10449_v24, %v10454_v15  ;;  %7910 = vmatpush1.bf16.xpose.msra.mxu1 %v16073_v39  ;;  %v10468_v53 = vpop.permute.xlu1 %10467  ;;  %v2374_v39 = vrot.slane %v467_v27, 1 }
 0x3e1   : > { %v10470_v41 = vunpack.i.h.bf16 %v10468_v53  ;;  %v10469_v61 = vunpack.i.l.bf16 %v10468_v53  ;;  %v10463_v1 = vpop.permute.xlu0 %10462  ;;  %v5183_v11 = vsel %vm5104_vm6, %v5054_v44, %v10459_v43  ;;  %v5184_v5 = vsel %vm5104_vm6, %v5055_v18, %v10460_v2 }
 0x3e2   : > { %v10465_v28 = vunpack.i.h.bf16 %v10463_v1  ;;  %v10464_v30 = vunpack.i.l.bf16 %v10463_v1  ;;  %10757 = vrot.lane.b32.xlu1 %v19279_v37, %s11395_s26  ;;  %v9270_v53 = vunpack.i.h.bf16 %v19278_v9  ;;  %v4571_v44 = vsel %vm4459_vm3, %v15820_v10, %v8950_v48  ;;  %v19280_v9 = vld [vmem:[#allocation247_spill] sm:$0xff] }
 0x3e3   : > { %v5312_v49 = vsel %vm5233_vm7, %v5183_v11, %v10469_v61  ;;  %v5313_v15 = vsel %vm5233_vm7, %v5184_v5, %v10470_v41  ;;  %10752 = vrot.lane.b32.xlu0 %v10751_v47, %s11396_s10  ;;  %v4570_v61 = vsel %vm4459_vm3, %v15824_v0, %v8949_v8  ;;  %v2767_v10 = vrot.slane %v467_v27, 2 }
 0x3e4   : > { %v4797_v34 = vsel %vm4717_vm8, %v4668_v46, %v10465_v28  ;;  %v4796_v43 = vsel %vm4717_vm8, %v4667_v3, %v10464_v30  ;;  %v10478_v2 = vpop.permute.xlu1 %10477  ;;  %v16104_v18 = vpack.c.bf16 %v5313_v15, %v5312_v49  ;;  %v16120_v46 = vpack.i.bf16 %v467_v27, %v15979_v35 }
 0x3e5   : > { %v10473_v41 = vpop.permute.xlu0 %10472  ;;  %v4925_v47 = vsel %vm4846_vm10, %v4796_v43, %v10449_v24  ;;  %v4926_v1 = vsel %vm4846_vm10, %v4797_v34, %v10450_v29  ;;  %v2769_v48 = vrot.slane %v468_v36, 2  ;;  %v4699_v0 = vsel %vm4588_vm4, %v4570_v61, %v9269_v52 }
 0x3e6   : > { %10767 = vrot.lane.b32.xlu1 %v19280_v9, %s11397_s12  ;;  %7833 = vmatprep.subr.msk.bf16.mxu0 %vm13704_vm11, %v16104_v18  ;;  %v16117_v3 = vpack.c.bf16 %v4926_v1, %v4925_v47  ;;  %v19281_v34 = vrot.slane %v15979_v35, 1  ;;  %v2377_v24 = vsel %vm634_vm0, %v2374_v39, %v2376_v7  ;;  %v4700_v8 = vsel %vm4588_vm4, %v4571_v44, %v9270_v53 }
 0x3e7   : > { %10762 = vrot.lane.b32.xlu0 %v19250_v19, %s11398_s13  ;;  %v10480_v11 = vunpack.i.h.bf16 %v10478_v2  ;;  %v10479_v5 = vunpack.i.l.bf16 %v10478_v2  ;;  %v10475_v27 = vunpack.i.h.bf16 %v10473_v41  ;;  %v10474_v36 = vunpack.i.l.bf16 %v10473_v41  ;;  %v11290_v41 = vld [vmem:[%s11503_s21 + $0x468] sm:$0xff] }
 0x3e8   : > { %v2375_v29 = vsel %vm634_vm0, %v19281_v34, %v2374_v39  ;;  %7835 = vmatpush1.bf16.xpose.msra.mxu0 %v16117_v3  ;;  %v10488_v28 = vpop.permute.xlu1 %10487  ;;  %v11399_v49 = vmov 0   ;;  %v19282_v39 = vrot.slane %v15979_v35, 2  ;;  %v2770_v53 = vsel %vm1307_vm1, %v2767_v10, %v2769_v48  ;;  %v11291_v35 = vld [vmem:[%s11503_s21 + $0x460] sm:$0xff]  ;;  %v19285_v48 = vld [vmem:[#allocation118_spill] sm:$0xff] }
 0x3e9   : > { %v10490_v52 = vunpack.i.h.bf16 %v10488_v28  ;;  %v10489_v30 = vunpack.i.l.bf16 %v10488_v28  ;;  %v10483_v19 = vpop.permute.xlu0 %10482  ;;  %10912 = vset.pattern.permute.xlu1 %v11399_v49  ;;  %10911 = vset.pattern.permute.xlu0 %v11399_v49  ;;  %v16133_v7 = vpack.i.bf16 %v2377_v24, %v2375_v29  ;;  %v19283_v47 = vunpack.i.h.bf16 %v19258_v12  ;;  %v19286_v29 = vld [vmem:[#allocation119_spill] sm:$0xff] }
 0x3ea   : > { %10777 = vrot.lane.b32.xlu1 %v16120_v46, %s11396_s10  ;;  %v2768_v15 = vsel %vm1307_vm1, %v19282_v39, %v2767_v10  ;;  %v10485_v44 = vunpack.i.h.bf16 %v10483_v19  ;;  %v10484_v61 = vunpack.i.l.bf16 %v10483_v19  ;;  %v19284_v34 = vunpack.i.l.bf16 %v19258_v12 }
 0x3eb   : > { %v4828_v43 = vsel %vm4717_vm8, %v4699_v0, %v10489_v30  ;;  %v4829_v2 = vsel %vm4717_vm8, %v4700_v8, %v10490_v52  ;;  %10772 = vrot.lane.b32.xlu0 %v19265_v21, %s11394_s25  ;;  %v16147_v1 = vsel %vm4330_vm2, %v11290_v41, %v19283_v47  ;;  %v8875_v24 = vunpack.i.h.bf16 %v19286_v29  ;;  %v19287_v47 = vld [vmem:[#allocation219_spill] sm:$0xff] }
 0x3ec   : > { %v16153_v10 = vsel %vm4330_vm2, %v11291_v35, %v19284_v34  ;;  %v16157_v8 = vpop.permute.xlu1 %10497  ;;  %v8874_v21 = vunpack.i.l.bf16 %v19286_v29  ;;  %v5087_v28 = vsel %vm4975_vm5, %v10475_v27, %v10480_v11  ;;  %v5086_v52 = vsel %vm4975_vm5, %v10474_v36, %v10479_v5 }
 0x3ed   : > { %v10493_v30 = vpop.permute.xlu0 %10492  ;;  %v16162_v19 = vpack.i.bf16 %v2770_v53, %v2768_v15  ;;  %v4957_v39 = vsel %vm4846_vm10, %v4828_v43, %v10474_v36  ;;  %v4958_v41 = vsel %vm4846_vm10, %v4829_v2, %v10475_v27  ;;  %v9195_v35 = vunpack.i.h.bf16 %v19287_v47  ;;  %v11293_v36 = vld [vmem:[%s11503_s21 + $0x3f0] sm:$0xff] }
 0x3ee   : > { %v10495_v12 = vunpack.i.h.bf16 %v10493_v30  ;;  %v10494_v49 = vunpack.i.l.bf16 %v10493_v30  ;;  %10787 = vrot.lane.b32.xlu1 %v16133_v7, %s11395_s26  ;;  %v5215_v11 = vsel %vm5104_vm6, %v5086_v52, %v10484_v61  ;;  %v5216_v5 = vsel %vm5104_vm6, %v5087_v28, %v10485_v44  ;;  %v11292_v30 = vld [vmem:[%s11503_s21 + $0x3e8] sm:$0xff] }
 0x3ef   : > { %10782 = vrot.lane.b32.xlu0 %v15907_v4, %s11393_s24  ;;  %v9194_v15 = vunpack.i.l.bf16 %v19287_v47  ;;  %v10806_v43 = vpack.i.bf16 %v11293_v36, %v11292_v30  ;;  %v10500_v27 = vunpack.i.h.bf16 %v16157_v8  ;;  %v10499_v2 = vunpack.i.l.bf16 %v16157_v8 }
 0x3f0   : > { %v5344_v53 = vsel %vm5233_vm7, %v5215_v11, %v10494_v49  ;;  %v5345_v34 = vsel %vm5233_vm7, %v5216_v5, %v10495_v12  ;;  %v10508_v29 = vpop.permute.xlu1 %10507  ;;  %v16182_v44 = vpack.c.bf16 %v4958_v41, %v4957_v39  ;;  %v4540_v12 = vsel %vm4459_vm3, %v15679_v16, %v8874_v21  ;;  %v19288_v11 = vld [vmem:[#allocation156_spill] sm:$0xff] }
 0x3f1   : > { %v10503_v61 = vpop.permute.xlu0 %10502  ;;  %v16180_v52 = vpack.c.bf16 %v5345_v34, %v5344_v53  ;;  %v10510_v4 = vunpack.i.h.bf16 %v10508_v29  ;;  %v10509_v28 = vunpack.i.l.bf16 %v10508_v29  ;;  %v4541_v49 = vsel %vm4459_vm3, %v15616_v51, %v8875_v24 }
 0x3f2   : > { %v10505_v47 = vunpack.i.h.bf16 %v10503_v61  ;;  %v10504_v0 = vunpack.i.l.bf16 %v10503_v61  ;;  %10797 = vrot.lane.b32.xlu1 %v16162_v19, %s11397_s12  ;;  %v8955_v8 = vunpack.i.h.bf16 %v19288_v11  ;;  %v8954_v39 = vunpack.i.l.bf16 %v19288_v11 }
 0x3f3   : > { %10792 = vrot.lane.b32.xlu0 %v19261_v14, %s11398_s13  ;;  %7913 = vmatprep.subr.msk.bf16.mxu1 %vm13704_vm11, %v16180_v52  ;;  %v4669_v41 = vsel %vm4588_vm4, %v4540_v12, %v9194_v15  ;;  %v4670_v24 = vsel %vm4588_vm4, %v4541_v49, %v9195_v35  ;;  %v19289_v15 = vld [vmem:[#allocation8_spill] sm:$0xff]  ;;  %v19290_v11 = vunpack.i.h.bf16 %v19285_v48 }
 0x3f4   : > { %v5057_v5 = vsel %vm4975_vm5, %v10500_v27, %v10505_v47  ;;  %v5056_v16 = vsel %vm4975_vm5, %v10499_v2, %v10504_v0  ;;  %7915 = vmatpush1.bf16.xpose.msra.mxu1 %v16182_v44  ;;  %v10518_v51 = vpop.permute.xlu1 %10517  ;;  %v9274_v0 = vunpack.i.l.bf16 %v19289_v15  ;;  %v8879_v47 = vunpack.i.l.bf16 %v19285_v48 }
 0x3f5   : > { %v10520_v21 = vunpack.i.h.bf16 %v10518_v51  ;;  %v10519_v53 = vunpack.i.l.bf16 %v10518_v51  ;;  %v10513_v14 = vpop.permute.xlu0 %10512  ;;  %v5185_v34 = vsel %vm5104_vm6, %v5056_v16, %v10509_v28  ;;  %v5186_v29 = vsel %vm5104_vm6, %v5057_v5, %v10510_v4 }
 0x3f6   : > { %v10515_v30 = vunpack.i.h.bf16 %v10513_v14  ;;  %v10514_v36 = vunpack.i.l.bf16 %v10513_v14  ;;  %10807 = vrot.lane.b32.xlu1 %v10806_v43, %s11396_s10  ;;  %v470_v43 = vld [vmem:[%s11503_s21 + $0x530] sm:$0xff]  ;;  %v16220_v5 = vsel %vm4459_vm3, %v15608_v45, %v19290_v11  ;;  %v4572_v16 = vsel %vm4459_vm3, %v16153_v10, %v8954_v39  ;;  %v19291_v10 = vld [vmem:[#allocation218_spill] sm:$0xff] }
 0x3f7   : > { %v5314_v61 = vsel %vm5233_vm7, %v5185_v34, %v10519_v53  ;;  %v5315_v35 = vsel %vm5233_vm7, %v5186_v29, %v10520_v21  ;;  %10802 = vrot.lane.b32.xlu0 %v19268_v32, %s11394_s25  ;;  %v469_v21 = vld [vmem:[%s11503_s21 + $0x528] sm:$0xff]  ;;  %v4573_v53 = vsel %vm4459_vm3, %v16147_v1, %v8955_v8  ;;  %v9275_v14 = vunpack.i.h.bf16 %v19289_v15 }
 0x3f8   : > { %v4798_v28 = vsel %vm4717_vm8, %v4669_v41, %v10514_v36  ;;  %v4799_v4 = vsel %vm4717_vm8, %v4670_v24, %v10515_v30  ;;  %v10528_v12 = vpop.permute.xlu1 %10527  ;;  %v16213_v49 = vpack.c.bf16 %v5315_v35, %v5314_v61  ;;  %v16228_v24 = vld [vmem:[%s11503_s21 + $0x538] sm:$0xff]  ;;  %v3545_v39 = vrot.slane %v470_v43, 1 }
 0x3f9   : > { %v10523_v32 = vpop.permute.xlu0 %10522  ;;  %v4927_v51 = vsel %vm4846_vm10, %v4798_v28, %v10499_v2  ;;  %v4928_v41 = vsel %vm4846_vm10, %v4799_v4, %v10500_v27  ;;  %v9200_v2 = vunpack.i.h.bf16 %v19291_v10  ;;  %v4701_v27 = vsel %vm4588_vm4, %v4572_v16, %v9274_v0 }
 0x3fa   : > { %10817 = vrot.lane.b32.xlu1 %v19266_v31, %s11398_s13  ;;  %7838 = vmatprep.subr.msk.bf16.mxu0 %vm13704_vm11, %v16213_v49  ;;  %v16238_v45 = vpack.c.bf16 %v4928_v41, %v4927_v51  ;;  %v10530_v1 = vunpack.i.h.bf16 %v10528_v12  ;;  %v10529_v8 = vunpack.i.l.bf16 %v10528_v12  ;;  %v3544_v31 = vrot.slane %v469_v21, 1 }
 0x3fb   : > { %10812 = vrot.lane.b32.xlu0 %v19070_v55, %s11395_s26  ;;  %v3547_v29 = vrot.slane %v16228_v24, 1  ;;  %v10525_v30 = vunpack.i.h.bf16 %v10523_v32  ;;  %v10524_v36 = vunpack.i.l.bf16 %v10523_v32  ;;  %v4702_v28 = vsel %vm4588_vm4, %v4573_v53, %v9275_v14 }
 0x3fc   : > { %7840 = vmatpush1.bf16.xpose.msra.mxu0 %v16238_v45  ;;  %v10538_v34 = vpop.permute.xlu1 %10537  ;;  %v3938_v55 = vrot.slane %v470_v43, 2  ;;  %v10831_v0 = vpack.i.bf16 %v470_v43, %v469_v21  ;;  %v3937_v51 = vrot.slane %v469_v21, 2  ;;  %v3546_v41 = vsel %vm634_vm0, %v3544_v31, %v3545_v39 }
 0x3fd   : > { %v10540_v15 = vunpack.i.h.bf16 %v10538_v34  ;;  %v10539_v61 = vunpack.i.l.bf16 %v10538_v34  ;;  %v10533_v35 = vpop.permute.xlu0 %10532  ;;  %v3940_v43 = vrot.slane %v16228_v24, 2  ;;  %v9199_v53 = vunpack.i.l.bf16 %v19291_v10  ;;  %v16307_v10 = vld [vmem:[%s11503_s21 + $0x548] sm:$0x3] }
 0x3fe   : > { %10827 = vrot.lane.b32.xlu1 %v16064_v54, %s11394_s25  ;;  %v10535_v11 = vunpack.i.h.bf16 %v10533_v35  ;;  %v10534_v16 = vunpack.i.l.bf16 %v10533_v35  ;;  %v3548_v54 = vsel %vm634_vm0, %v3545_v39, %v3547_v29  ;;  %v5089_v14 = vsel %vm4975_vm5, %v10525_v30, %v10530_v1 }
 0x3ff   : > { %v4830_v4 = vsel %vm4717_vm8, %v4701_v27, %v10539_v61  ;;  %v4831_v12 = vsel %vm4717_vm8, %v4702_v28, %v10540_v15  ;;  %10822 = vrot.lane.b32.xlu0 %v19066_v62, %s11397_s12  ;;  %v5088_v27 = vsel %vm4975_vm5, %v10524_v36, %v10529_v8  ;;  %v10841_v35 = vpack.i.bf16 %v3548_v54, %v3546_v41 }
 0x400   : > { %v16253_v32 = vpop.permute.xlu1 %10547  ;;  %v4959_v21 = vsel %vm4846_vm10, %v4830_v4, %v10524_v36  ;;  %v4960_v31 = vsel %vm4846_vm10, %v4831_v12, %v10525_v30  ;;  %v5217_v39 = vsel %vm5104_vm6, %v5088_v27, %v10534_v16  ;;  %v5218_v61 = vsel %vm5104_vm6, %v5089_v14, %v10535_v11 }
 0x401   : > { %v10543_v34 = vpop.permute.xlu0 %10542  ;;  %v10550_v30 = vunpack.i.h.bf16 %v16253_v32  ;;  %v10549_v36 = vunpack.i.l.bf16 %v16253_v32 }
 0x402   : > { %v10545_v15 = vunpack.i.h.bf16 %v10543_v34  ;;  %v10544_v62 = vunpack.i.l.bf16 %v10543_v34  ;;  %10837 = vrot.lane.b32.xlu1 %v16013_v25, %s11393_s24  ;;  %v3939_v34 = vsel %vm1307_vm1, %v3937_v51, %v3938_v55  ;;  %v3941_v25 = vsel %vm1307_vm1, %v3938_v55, %v3940_v43  ;;  %v19292_v51 = vld [vmem:[#allocation155_spill] sm:$0xff] }
 0x403   : > { %10832 = vrot.lane.b32.xlu0 %v10831_v0, %s11396_s10  ;;  %v16280_v0 = vpack.c.bf16 %v4960_v31, %v4959_v21  ;;  %v4542_v55 = vsel %vm4459_vm3, %v15612_v26, %v8879_v47  ;;  %v8960_v32 = vunpack.i.h.bf16 %v19292_v51  ;;  %v8959_v14 = vunpack.i.l.bf16 %v19292_v51  ;;  %v19293_v21 = vld [vmem:[#allocation54_spill] sm:$0xff] }
 0x404   : > { %v5346_v1 = vsel %vm5233_vm7, %v5217_v39, %v10544_v62  ;;  %v5347_v8 = vsel %vm5233_vm7, %v5218_v61, %v10545_v15  ;;  %v10558_v28 = vpop.permute.xlu1 %10557  ;;  %v10851_v27 = vpack.i.bf16 %v3941_v25, %v3939_v34  ;;  %v4671_v15 = vsel %vm4588_vm4, %v4542_v55, %v9199_v53  ;;  %v16303_v62 = vld [vmem:[%s11503_s21 + $0x540] sm:$0xff] }
 0x405   : > { %v16278_v4 = vpack.c.bf16 %v5347_v8, %v5346_v1  ;;  %v10553_v12 = vpop.permute.xlu0 %10552  ;;  %v10560_v11 = vunpack.i.h.bf16 %v10558_v28  ;;  %v10559_v16 = vunpack.i.l.bf16 %v10558_v28  ;;  %v9279_v31 = vunpack.i.l.bf16 %v19293_v21  ;;  %v5364_v28 = vld [vmem:[%s17836_s1 + $0x10] sm:$0xff] }
 0x406   : > { %v10555_v41 = vunpack.i.h.bf16 %v10553_v12  ;;  %v10554_v54 = vunpack.i.l.bf16 %v10553_v12  ;;  %10847 = vrot.lane.b32.xlu1 %v16029_v6, %s11398_s13  ;;  %v4672_v6 = vsel %vm4588_vm4, %v16220_v5, %v9200_v2  ;;  %v5365_v5 = vld [vmem:[%s17836_s1 + $0x18] sm:$0xff] }
 0x407   : > { %10842 = vrot.lane.b32.xlu0 %v10841_v35, %s11395_s26  ;;  %7918 = vmatprep.subr.msk.bf16.mxu1 %vm13704_vm11, %v16278_v4  ;;  %v11294_v12 = vld [vmem:[%s11503_s21 + $0x3f8] sm:$0xff] }
 0x408   : > { %v5059_v26 = vsel %vm4975_vm5, %v10550_v30, %v10555_v41  ;;  %v5058_v48 = vsel %vm4975_vm5, %v10549_v36, %v10554_v54  ;;  %7920 = vmatpush1.bf16.xpose.msra.mxu1 %v16280_v0  ;;  %v10568_v47 = vpop.permute.xlu1 %10567  ;;  %7291 = vmatprep.mubr.msk.f32.mxu0 %vm5368_vm9, %v5365_v5  ;;  %v3549_v41 = vrot.slane %v16303_v62, 1 }
 0x409   : > { %v10570_v39 = vunpack.i.h.bf16 %v10568_v47  ;;  %v10569_v53 = vunpack.i.l.bf16 %v10568_v47  ;;  %v10563_v61 = vpop.permute.xlu0 %10562  ;;  %v5187_v2 = vsel %vm5104_vm6, %v5058_v48, %v10559_v16  ;;  %v5188_v35 = vsel %vm5104_vm6, %v5059_v26, %v10560_v11  ;;  %v11295_v11 = vld [vmem:[%s11503_s21 + $0x400] sm:$0xff]  ;;  %5833 = vmatmul.mubr.f32.gmra.mrb[2].mxu0 %v5364_v28  ;;  %7326 = vmatprep.mubr.msk.f32.mxu1 %vm5368_vm9, %v5365_v5  ;;  %v11296_v48 = vld [vmem:[%s11503_s21 + $0x470] sm:$0xff] }
 0x40a   : > { %v10565_v1 = vunpack.i.h.bf16 %v10563_v61  ;;  %v10564_v8 = vunpack.i.l.bf16 %v10563_v61  ;;  %10857 = vrot.lane.b32.xlu1 %v19280_v9, %s11394_s25  ;;  %v10861_v16 = vpack.i.bf16 %v11295_v11, %v11294_v12  ;;  %v3551_v26 = vrot.slane %v16307_v10, 1  ;;  %5916 = vmatmul.mubr.f32.gmra.mrb[2].mxu1 %v5364_v28 }
 0x40b   : > { %v5316_v34 = vsel %vm5233_vm7, %v5187_v2, %v10569_v53  ;;  %v5317_v25 = vsel %vm5233_vm7, %v5188_v35, %v10570_v39  ;;  %10852 = vrot.lane.b32.xlu0 %v10851_v27, %s11397_s12  ;;  %v19294_v27 = vunpack.i.l.bf16 %v19253_v57  ;;  %v4575_v39 = vsel %vm4459_vm3, %v16039_v13, %v8960_v32  ;;  %v5366_v13 = vld [vmem:[%s17836_s1 + $0x20] sm:$0xff] }
 0x40c   : > { %v16326_v9 = vpack.c.bf16 %v5317_v25, %v5316_v34  ;;  %v4801_v54 = vsel %vm4717_vm8, %v4672_v6, %v10565_v1  ;;  %v4800_v55 = vsel %vm4717_vm8, %v4671_v15, %v10564_v8  ;;  %v10578_v51 = vpop.permute.xlu1 %10577  ;;  %v5367_v15 = vld [vmem:[%s17836_s1 + $0x28] sm:$0xff]  ;;  %v9280_v2 = vunpack.i.h.bf16 %v19293_v21 }
 0x40d   : > { %v4445_v47 = vsel %vm4330_vm2, %v11296_v48, %v19294_v27  ;;  %v10573_v53 = vpop.permute.xlu0 %10572  ;;  %v4929_v61 = vsel %vm4846_vm10, %v4800_v55, %v10549_v36  ;;  %v4930_v6 = vsel %vm4846_vm10, %v4801_v54, %v10550_v30  ;;  %v3942_v36 = vrot.slane %v16303_v62, 2  ;;  %7292 = vmatprep.mubr.msk.f32.mxu0 %vm5368_vm9, %v5367_v15  ;;  %7327 = vmatprep.mubr.msk.f32.mxu1 %vm5368_vm9, %v5367_v15 }
 0x40e   : > { %v4574_v5 = vsel %vm4459_vm3, %v4445_v47, %v8959_v14  ;;  %10867 = vrot.lane.b32.xlu1 %v19088_v63, %s11395_s26  ;;  %7843 = vmatprep.subr.msk.bf16.mxu0 %vm13704_vm11, %v16326_v9  ;;  %v16350_v57 = vpack.c.bf16 %v4930_v6, %v4929_v61  ;;  %v3550_v63 = vsel %vm634_vm0, %v3547_v29, %v3549_v41  ;;  %v10580_v32 = vunpack.i.h.bf16 %v10578_v51 }
 0x40f   : > { %v4703_v30 = vsel %vm4588_vm4, %v4574_v5, %v9279_v31  ;;  %10862 = vrot.lane.b32.xlu0 %v10861_v16, %s11396_s10  ;;  %v10579_v14 = vunpack.i.l.bf16 %v10578_v51  ;;  %v3552_v35 = vsel %vm634_vm0, %v3549_v41, %v3551_v26  ;;  %v3944_v1 = vrot.slane %v16307_v10, 2  ;;  %5839 = vmatmul.mubr.f32.gmra.mrb[4].mxu0 %v5366_v13  ;;  %v11297_v10 = vld [vmem:[%s17836_s1 + $0x8] sm:$0xff] }
 0x410   : > { %7845 = vmatpush1.bf16.xpose.msra.mxu0 %v16350_v57  ;;  %v10588_v21 = vpop.permute.xlu1 %10587  ;;  %v10575_v31 = vunpack.i.h.bf16 %v10573_v53  ;;  %v10574_v8 = vunpack.i.l.bf16 %v10573_v53  ;;  %5922 = vmatmul.mubr.f32.gmra.mrb[4].mxu1 %v5366_v13  ;;  %v4704_v29 = vsel %vm4588_vm4, %v4575_v39, %v9280_v2  ;;  %v10886_v12 = vpack.i.bf16 %v16303_v62, %v16228_v24  ;;  %v11299_v51 = vld [vmem:[%s11503_s21 + $0x348] sm:$0xff] }
 0x411   : > { %v10590_v28 = vunpack.i.h.bf16 %v10588_v21  ;;  %v10589_v34 = vunpack.i.l.bf16 %v10588_v21  ;;  %v10583_v25 = vpop.permute.xlu0 %10582  ;;  %7360 = vmatprep.mubr.msk.f32.mxu0 %vm5368_vm9, %v11297_v10  ;;  %7395 = vmatprep.mubr.msk.f32.mxu1 %vm5368_vm9, %v11297_v10  ;;  %v19295_v62 = vunpack.i.h.bf16 %v19219_v22  ;;  %v19296_v26 = vunpack.i.l.bf16 %v19219_v22  ;;  %v19297_v13 = vld [vmem:[#allocation126_spill] sm:$0xff] }
 0x412   : > { %10877 = vrot.lane.b32.xlu1 %v19085_v56, %s11397_s12  ;;  %v10585_v41 = vunpack.i.h.bf16 %v10583_v25  ;;  %v10584_v54 = vunpack.i.l.bf16 %v10583_v25  ;;  %v11298_v56 = vld [vmem:[%s11503_s21 + $0x350] sm:$0xff]  ;;  %v10896_v47 = vpack.i.bf16 %v3552_v35, %v3550_v63  ;;  %v5091_v39 = vsel %vm4975_vm5, %v10575_v31, %v10580_v32 }
 0x413   : > { %v4832_v11 = vsel %vm4717_vm8, %v4703_v30, %v10589_v34  ;;  %v4833_v16 = vsel %vm4717_vm8, %v4704_v29, %v10590_v28  ;;  %10872 = vrot.lane.b32.xlu0 %v19279_v37, %s11398_s13  ;;  %v4416_v55 = vsel %vm4330_vm2, %v11298_v56, %v19295_v62  ;;  %v4415_v48 = vsel %vm4330_vm2, %v11299_v51, %v19296_v26 }
 0x414   : > { %v16388_v27 = vpop.permute.xlu1 %10597  ;;  %v5090_v53 = vsel %vm4975_vm5, %v10574_v8, %v10579_v14  ;;  %v3943_v61 = vsel %vm1307_vm1, %v3940_v43, %v3942_v36  ;;  %v3945_v6 = vsel %vm1307_vm1, %v3942_v36, %v3944_v1  ;;  %v4961_v22 = vsel %vm4846_vm10, %v4832_v11, %v10574_v8  ;;  %v19299_v11 = vld [vmem:[#allocation223_spill] sm:$0xff] }
 0x415   : > { %v10593_v37 = vpop.permute.xlu0 %10592  ;;  %v4962_v2 = vsel %vm4846_vm10, %v4833_v16, %v10575_v31  ;;  %v8885_v30 = vunpack.i.h.bf16 %v19297_v13  ;;  %v5219_v63 = vsel %vm5104_vm6, %v5090_v53, %v10584_v54  ;;  %v5220_v32 = vsel %vm5104_vm6, %v5091_v39, %v10585_v41 }
 0x416   : > { %v10595_v15 = vunpack.i.h.bf16 %v10593_v37  ;;  %v10594_v5 = vunpack.i.l.bf16 %v10593_v37  ;;  %10887 = vrot.lane.b32.xlu1 %v10886_v12, %s11396_s10  ;;  %v8884_v24 = vunpack.i.l.bf16 %v19297_v13  ;;  %v10906_v21 = vpack.i.bf16 %v3945_v6, %v3943_v61  ;;  %v19298_v12 = vld [vmem:[#allocation260_spill] sm:$0xff]  ;;  %v6095_v13 = vld [vmem:[%s17837_s2 + $0x8] sm:$0xff]  ;;  %s296_s10 = sand.u32 1, %s11381_s28  }
 0x417   : > { %10882 = vrot.lane.b32.xlu0 %v16162_v19, %s11394_s25  ;;  %v10600_v35 = vunpack.i.h.bf16 %v16388_v27  ;;  %v10599_v1 = vunpack.i.l.bf16 %v16388_v27  ;;  %v16411_v28 = vpack.c.bf16 %v4962_v2, %v4961_v22  ;;  %v8645_v10 = vunpack.i.h.bf16 %v19298_v12  ;;  %s17793_s17 = scalar_lea.sflag [#allocation3], %s296_s10 }
 0x418   : > { %v5348_v43 = vsel %vm5233_vm7, %v5219_v63, %v10594_v5  ;;  %v5349_v36 = vsel %vm5233_vm7, %v5220_v32, %v10595_v15  ;;  %v10608_v14 = vpop.permute.xlu1 %10607  ;;  %v9205_v16 = vunpack.i.h.bf16 %v19299_v11  ;;  %v9204_v41 = vunpack.i.l.bf16 %v19299_v11  ;;  %v11301_v11 = vld [vmem:[%s11503_s21 + $0x488] sm:$0xff] }
 0x419   : > { %v16409_v31 = vpack.c.bf16 %v5349_v36, %v5348_v43  ;;  %v10603_v8 = vpop.permute.xlu0 %10602  ;;  %v10610_v34 = vunpack.i.h.bf16 %v10608_v14  ;;  %v10609_v25 = vunpack.i.l.bf16 %v10608_v14  ;;  %v8644_v54 = vunpack.i.l.bf16 %v19298_v12  ;;  %v6094_v36 = vld [vmem:[%s17837_s2] sm:$0xff] }
 0x41a   : > { %v10605_v19 = vunpack.i.h.bf16 %v10603_v8  ;;  %v10604_v29 = vunpack.i.l.bf16 %v10603_v8  ;;  %10897 = vrot.lane.b32.xlu1 %v10896_v47, %s11395_s26  ;;  %v4544_v56 = vsel %vm4459_vm3, %v4415_v48, %v8884_v24  ;;  %v4545_v27 = vsel %vm4459_vm3, %v4416_v55, %v8885_v30  ;;  %v19300_v47 = vld [vmem:[#allocation160_spill] sm:$0xff]  ;;  %v19301_v8 = vld [vmem:[#allocation5_spill] sm:$0xff] }
 0x41b   : > { %10892 = vrot.lane.b32.xlu0 %v16120_v46, %s11393_s24  ;;  %7923 = vmatprep.subr.msk.bf16.mxu1 %vm13704_vm11, %v16409_v31  ;;  %v8965_v39 = vunpack.i.h.bf16 %v19300_v47  ;;  %v4673_v5 = vsel %vm4588_vm4, %v4544_v56, %v9204_v41  ;;  %v4674_v22 = vsel %vm4588_vm4, %v4545_v27, %v9205_v16  ;;  %v8964_v30 = vunpack.i.l.bf16 %v19300_v47  ;;  %s11403_s24 = smov [#allocation2]  }
 0x41c   : > { %v5061_v62 = vsel %vm4975_vm5, %v10600_v35, %v10605_v19  ;;  %v5060_v51 = vsel %vm4975_vm5, %v10599_v1, %v10604_v29  ;;  %7925 = vmatpush1.bf16.xpose.msra.mxu1 %v16411_v28  ;;  %v10618_v26 = vpop.permute.xlu1 %10617  ;;  %v11300_v29 = vld [vmem:[%s11503_s21 + $0x490] sm:$0xff]  ;;  %v4447_v16 = vsel %vm4330_vm2, %v11301_v11, %v8644_v54  ;;  %v19302_v54 = vld [vmem:[#allocation206_spill] sm:$0xff]  ;;  %s11331_s25 = sshll.u32 %s11403_s24, 4  ;;  %s11332_s25 = int_to_ptr.vmem [resolvable:$false] %s11331_s25 }
 0x41d   : > { %v10620_v46 = vunpack.i.h.bf16 %v10618_v26  ;;  %v10619_v53 = vunpack.i.l.bf16 %v10618_v26  ;;  %v10613_v37 = vpop.permute.xlu0 %10612  ;;  %v5189_v61 = vsel %vm5104_vm6, %v5060_v51, %v10609_v25  ;;  %v5190_v6 = vsel %vm5104_vm6, %v5061_v62, %v10610_v34  ;;  %s11333_s26 = scalar_lea.vmem %s11332_s25, 6144 }
 0x41e   : > { %v10615_v15 = vunpack.i.h.bf16 %v10613_v37  ;;  %v10614_v48 = vunpack.i.l.bf16 %v10613_v37  ;;  %10907 = vrot.lane.b32.xlu1 %v10906_v21, %s11397_s12  ;;  %v9285_v34 = vunpack.i.h.bf16 %v19301_v8  ;;  %v9284_v25 = vunpack.i.l.bf16 %v19301_v8 }
 0x41f   : > { %v5318_v2 = vsel %vm5233_vm7, %v5189_v61, %v10619_v53  ;;  %v5319_v55 = vsel %vm5233_vm7, %v5190_v6, %v10620_v46  ;;  %10902 = vrot.lane.b32.xlu0 %v16133_v7, %s11398_s13  ;;  %v4448_v12 = vsel %vm4330_vm2, %v11300_v29, %v8645_v10  ;;  %v8570_v53 = vunpack.i.h.bf16 %v19302_v54  ;;  %s8296_s13 = smul.u32 192, %s296_s10 }
 0x420   : > { %v16442_v63 = vpack.c.bf16 %v5319_v55, %v5318_v2  ;;  %v4802_v32 = vsel %vm4717_vm8, %v4673_v5, %v10614_v48  ;;  %v4803_v24 = vsel %vm4717_vm8, %v4674_v22, %v10615_v15  ;;  %v10628_v43 = vpop.permute.xlu1 %10627  ;;  %v4577_v41 = vsel %vm4459_vm3, %v4448_v12, %v8965_v39  ;;  %v6136_v5 = vld [vmem:[%s17838_s3] sm:$0xff] }
 0x421   : > { %v10623_v7 = vpop.permute.xlu0 %10622  ;;  %v4931_v14 = vsel %vm4846_vm10, %v4802_v32, %v10599_v1  ;;  %v4932_v21 = vsel %vm4846_vm10, %v4803_v24, %v10600_v35  ;;  %v7544_v35 = vld [vmem:[%s17837_s2 + $0x18] sm:$0xff]  ;;  %v4576_v1 = vsel %vm4459_vm3, %v4447_v16, %v8964_v30  ;;  %v10630_v56 = vunpack.i.h.bf16 %v10628_v43  ;;  %s17692_s19 = scalar_lea.vmem [#allocation2], %s8296_s13 }
 0x422   : > { %7848 = vmatprep.subr.msk.bf16.mxu0 %vm13704_vm11, %v16442_v63  ;;  %v16456_v19 = vpack.c.bf16 %v4932_v21, %v4931_v14  ;;  %6104 = vperm.xlu1 %10912, %v6095_v13   ;;  %v10629_v62 = vunpack.i.l.bf16 %v10628_v43  ;;  %v10625_v26 = vunpack.i.h.bf16 %v10623_v7  ;;  %v10624_v27 = vunpack.i.l.bf16 %v10623_v7 }
 0x423   : > { %6099 = vperm.xlu0 %10911, %v6094_v36   ;;  %v4705_v37 = vsel %vm4588_vm4, %v4576_v1, %v9284_v25  ;;  %v4706_v61 = vsel %vm4588_vm4, %v4577_v41, %v9285_v34  ;;  %v11302_v36 = vld [vmem:[%s11503_s21 + $0x360] sm:$0xff]  ;;  %v8569_v14 = vunpack.i.l.bf16 %v19302_v54  ;;  %v19304_v54 = vld [vmem:[#allocation259_spill] sm:$0xff] }
 0x424   : > { %7850 = vmatpush1.bf16.xpose.msra.mxu0 %v16456_v19  ;;  %v10638_v51 = vpop.permute.xlu1 %10637  ;;  %v5093_v2 = vsel %vm4975_vm5, %v10625_v26, %v10630_v56  ;;  %v5092_v55 = vsel %vm4975_vm5, %v10624_v27, %v10629_v62  ;;  %v4418_v7 = vsel %vm4330_vm2, %v11302_v36, %v8570_v53  ;;  %v19303_v34 = vld [vmem:[#allocation125_spill] sm:$0xff]  ;;  %v8650_v53 = vunpack.i.h.bf16 %v19304_v54 }
 0x425   : > { %v10640_v10 = vunpack.i.h.bf16 %v10638_v51  ;;  %v10639_v47 = vunpack.i.l.bf16 %v10638_v51  ;;  %v10633_v46 = vpop.permute.xlu0 %10632  ;;  %v8890_v25 = vunpack.i.h.bf16 %v19303_v34  ;;  %v8889_v29 = vunpack.i.l.bf16 %v19303_v34 }
 0x426   : > { %6583 = vperm.xlu1 %10912, %v7544_v35   ;;  %v10635_v15 = vunpack.i.h.bf16 %v10633_v46  ;;  %v10634_v48 = vunpack.i.l.bf16 %v10633_v46 }
 0x427   : > { %v4834_v39 = vsel %vm4717_vm8, %v4705_v37, %v10639_v47  ;;  %v4835_v6 = vsel %vm4717_vm8, %v4706_v61, %v10640_v10  ;;  %v11303_v47 = vld [vmem:[%s11503_s21 + $0x358] sm:$0xff]  ;;  %v19305_v37 = vld [vmem:[#allocation222_spill] sm:$0xff] }
 0x428   : > { %v10648_v22 = vpop.permute.xlu1 %10647  ;;  %v4963_v24 = vsel %vm4846_vm10, %v4834_v39, %v10624_v27  ;;  %v4964_v43 = vsel %vm4846_vm10, %v4835_v6, %v10625_v26  ;;  %v5221_v21 = vsel %vm5104_vm6, %v5092_v55, %v10634_v48  ;;  %v5222_v8 = vsel %vm5104_vm6, %v5093_v2, %v10635_v15  ;;  %v19306_v55 = vld [vmem:[#allocation159_spill] sm:$0xff] }
 0x429   : > { %v10643_v13 = vpop.permute.xlu0 %10642  ;;  %v10650_v35 = vunpack.i.h.bf16 %v10648_v22  ;;  %v10649_v1 = vunpack.i.l.bf16 %v10648_v22  ;;  %v16491_v62 = vpack.c.bf16 %v4964_v43, %v4963_v24  ;;  %v4417_v46 = vsel %vm4330_vm2, %v11303_v47, %v8569_v14 }
 0x42a   : > { %v10645_v30 = vunpack.i.h.bf16 %v10643_v13  ;;  %v10644_v32 = vunpack.i.l.bf16 %v10643_v13  ;;  %6141 = vperm.xlu1 %10912, %v6136_v5   ;;  %v9210_v61 = vunpack.i.h.bf16 %v19305_v37  ;;  %v9209_v39 = vunpack.i.l.bf16 %v19305_v37  ;;  %v11304_v37 = vld [vmem:[%s11503_s21 + $0x4a0] sm:$0xff] }
 0x42b   : > { %v8649_v6 = vunpack.i.l.bf16 %v19304_v54  ;;  %v4547_v15 = vsel %vm4459_vm3, %v4418_v7, %v8890_v25  ;;  %v4546_v2 = vsel %vm4459_vm3, %v4417_v46, %v8889_v29  ;;  %v8970_v13 = vunpack.i.h.bf16 %v19306_v55 }
 0x42c   : > { %v5350_v12 = vsel %vm5233_vm7, %v5221_v21, %v10644_v32  ;;  %v5351_v11 = vsel %vm5233_vm7, %v5222_v8, %v10645_v30  ;;  %v10658_v16 = vpop.permute.xlu1 %10657  ;;  %v4675_v21 = vsel %vm4588_vm4, %v4546_v2, %v9209_v39  ;;  %v4676_v8 = vsel %vm4588_vm4, %v4547_v15, %v9210_v61  ;;  %v11305_v39 = vld [vmem:[%s11503_s21 + $0x498] sm:$0xff] }
 0x42d   : > { %v16489_v41 = vpack.c.bf16 %v5351_v11, %v5350_v12  ;;  %v10653_v56 = vpop.permute.xlu0 %10652  ;;  %v10660_v51 = vunpack.i.h.bf16 %v10658_v16  ;;  %v10659_v26 = vunpack.i.l.bf16 %v10658_v16  ;;  %v8969_v29 = vunpack.i.l.bf16 %v19306_v55 }
 0x42e   : > { %v10655_v27 = vunpack.i.h.bf16 %v10653_v56  ;;  %v10654_v10 = vunpack.i.l.bf16 %v10653_v56  ;;  %v4450_v61 = vsel %vm4330_vm2, %v11304_v37, %v8650_v53  ;;  %v4449_v15 = vsel %vm4330_vm2, %v11305_v39, %v8649_v6  ;;  %v19309_v37 = vld [vmem:[#allocation133_spill] sm:$0xff] }
 0x42f   : > { %7928 = vmatprep.subr.msk.bf16.mxu1 %vm13704_vm11, %v16489_v41  ;;  %v8894_v39 = vunpack.i.l.bf16 %v19309_v37 }
 0x430   : > { %v5063_v48 = vsel %vm4975_vm5, %v10650_v35, %v10655_v27  ;;  %v5062_v5 = vsel %vm4975_vm5, %v10649_v1, %v10654_v10  ;;  %7930 = vmatpush1.bf16.xpose.msra.mxu1 %v16491_v62  ;;  %v10668_v22 = vpop.permute.xlu1 %10667  ;;  %v19307_v10 = vld [vmem:[#allocation80_spill] sm:$0xff] }
 0x431   : > { %v10670_v30 = vunpack.i.h.bf16 %v10668_v22  ;;  %v10669_v32 = vunpack.i.l.bf16 %v10668_v22  ;;  %v10663_v24 = vpop.permute.xlu0 %10662  ;;  %v5191_v43 = vsel %vm5104_vm6, %v5062_v5, %v10659_v26  ;;  %v5192_v36 = vsel %vm5104_vm6, %v5063_v48, %v10660_v51 }
 0x432   : > { %v10665_v14 = vunpack.i.h.bf16 %v10663_v24  ;;  %v10664_v7 = vunpack.i.l.bf16 %v10663_v24  ;;  %v9290_v47 = vunpack.i.h.bf16 %v19307_v10  ;;  %v9289_v46 = vunpack.i.l.bf16 %v19307_v10 }
 0x433   : > { %v5320_v34 = vsel %vm5233_vm7, %v5191_v43, %v10669_v32  ;;  %v5321_v25 = vsel %vm5233_vm7, %v5192_v36, %v10670_v30  ;;  %v19308_v43 = vld [vmem:[#allocation216_spill] sm:$0xff] }
 0x434   : > { %v16515_v12 = vpack.c.bf16 %v5321_v25, %v5320_v34  ;;  %v4805_v11 = vsel %vm4717_vm8, %v4676_v8, %v10665_v14  ;;  %v4804_v16 = vsel %vm4717_vm8, %v4675_v21, %v10664_v7  ;;  %v10678_v56 = vpop.permute.xlu1 %10677  ;;  %v8575_v53 = vunpack.i.h.bf16 %v19308_v43 }
 0x435   : > { %v10673_v51 = vpop.permute.xlu0 %10672  ;;  %v4933_v26 = vsel %vm4846_vm10, %v4804_v16, %v10649_v1  ;;  %v4934_v27 = vsel %vm4846_vm10, %v4805_v11, %v10650_v35  ;;  %v4579_v1 = vsel %vm4459_vm3, %v4450_v61, %v8970_v13  ;;  %v4578_v35 = vsel %vm4459_vm3, %v4449_v15, %v8969_v29 }
 0x436   : > { %7853 = vmatprep.subr.msk.bf16.mxu0 %vm13704_vm11, %v16515_v12  ;;  %v16526_v54 = vpack.c.bf16 %v4934_v27, %v4933_v26  ;;  %v10680_v48 = vunpack.i.h.bf16 %v10678_v56  ;;  %v10679_v5 = vunpack.i.l.bf16 %v10678_v56  ;;  %v10675_v2 = vunpack.i.h.bf16 %v10673_v51  ;;  %v11306_v26 = vld [vmem:[%s11503_s21 + $0x378] sm:$0xff] }
 0x437   : > { %v10674_v55 = vunpack.i.l.bf16 %v10673_v51  ;;  %v4707_v36 = vsel %vm4588_vm4, %v4578_v35, %v9289_v46  ;;  %v4708_v6 = vsel %vm4588_vm4, %v4579_v1, %v9290_v47  ;;  %v4420_v27 = vsel %vm4330_vm2, %v11306_v26, %v8575_v53  ;;  %v11307_v53 = vld [vmem:[%s11503_s21 + $0x370] sm:$0xff] }
 0x438   : > { %7855 = vmatpush1.bf16.xpose.msra.mxu0 %v16526_v54  ;;  %v10688_v22 = vpop.permute.xlu1 %10687  ;;  %v5095_v34 = vsel %vm4975_vm5, %v10675_v2, %v10680_v48  ;;  %v8574_v10 = vunpack.i.l.bf16 %v19308_v43  ;;  %v8895_v61 = vunpack.i.h.bf16 %v19309_v37 }
 0x439   : > { %v10690_v30 = vunpack.i.h.bf16 %v10688_v22  ;;  %v10689_v32 = vunpack.i.l.bf16 %v10688_v22  ;;  %v10683_v24 = vpop.permute.xlu0 %10682  ;;  %v5094_v25 = vsel %vm4975_vm5, %v10674_v55, %v10679_v5 }
 0x43a   : > { %v10685_v7 = vunpack.i.h.bf16 %v10683_v24  ;;  %v10684_v21 = vunpack.i.l.bf16 %v10683_v24 }
 0x43b   : > { %v4836_v13 = vsel %vm4717_vm8, %v4707_v36, %v10689_v32  ;;  %v4837_v14 = vsel %vm4717_vm8, %v4708_v6, %v10690_v30  ;;  %v4419_v36 = vsel %vm4330_vm2, %v11307_v53, %v8574_v10  ;;  %v19310_v6 = vld [vmem:[#allocation264_spill] sm:$0xff] }
 0x43c   : > { %v10698_v8 = vpop.permute.xlu1 %10697  ;;  %v4965_v56 = vsel %vm4846_vm10, %v4836_v13, %v10674_v55  ;;  %v4966_v51 = vsel %vm4846_vm10, %v4837_v14, %v10675_v2  ;;  %v5223_v47 = vsel %vm5104_vm6, %v5094_v25, %v10684_v21  ;;  %v5224_v46 = vsel %vm5104_vm6, %v5095_v34, %v10685_v7  ;;  %v19311_v14 = vld [vmem:[#allocation227_spill] sm:$0xff] }
 0x43d   : > { %v10693_v29 = vpop.permute.xlu0 %10692  ;;  %v10700_v48 = vunpack.i.h.bf16 %v10698_v8  ;;  %v10699_v5 = vunpack.i.l.bf16 %v10698_v8  ;;  %v16555_v55 = vpack.c.bf16 %v4966_v51, %v4965_v56  ;;  %v8655_v13 = vunpack.i.h.bf16 %v19310_v6  ;;  %v19312_v56 = vld [vmem:[#allocation163_spill] sm:$0xff] }
 0x43e   : > { %v10695_v11 = vunpack.i.h.bf16 %v10693_v29  ;;  %v10694_v16 = vunpack.i.l.bf16 %v10693_v29  ;;  %v9215_v7 = vunpack.i.h.bf16 %v19311_v14  ;;  %v9214_v21 = vunpack.i.l.bf16 %v19311_v14  ;;  %v19313_v14 = vld [vmem:[#allocation24_spill] sm:$0xff] }
 0x43f   : > { %v8654_v8 = vunpack.i.l.bf16 %v19310_v6  ;;  %v4548_v34 = vsel %vm4459_vm3, %v4419_v36, %v8894_v39  ;;  %v8975_v51 = vunpack.i.h.bf16 %v19312_v56 }
 0x440   : > { %v5352_v15 = vsel %vm5233_vm7, %v5223_v47, %v10694_v16  ;;  %v5353_v1 = vsel %vm5233_vm7, %v5224_v46, %v10695_v11  ;;  %v10708_v35 = vpop.permute.xlu1 %10707  ;;  %v4549_v16 = vsel %vm4459_vm3, %v4420_v27, %v8895_v61  ;;  %v8974_v61 = vunpack.i.l.bf16 %v19312_v56 }
 0x441   : > { %v16553_v22 = vpack.c.bf16 %v5353_v1, %v5352_v15  ;;  %v10703_v2 = vpop.permute.xlu0 %10702  ;;  %v10710_v30 = vunpack.i.h.bf16 %v10708_v35  ;;  %v10709_v32 = vunpack.i.l.bf16 %v10708_v35  ;;  %v4677_v1 = vsel %vm4588_vm4, %v4548_v34, %v9214_v21 }
 0x442   : > { %v10705_v24 = vunpack.i.h.bf16 %v10703_v2  ;;  %v10704_v43 = vunpack.i.l.bf16 %v10703_v2  ;;  %v4678_v35 = vsel %vm4588_vm4, %v4549_v16, %v9215_v7  ;;  %v9295_v7 = vunpack.i.h.bf16 %v19313_v14 }
 0x443   : > { %7933 = vmatprep.subr.msk.bf16.mxu1 %vm13704_vm11, %v16553_v22  ;;  %v9294_v21 = vunpack.i.l.bf16 %v19313_v14  ;;  %v19314_v14 = vld [vmem:[#allocation214_spill] sm:$0xff] }
 0x444   : > { %v5065_v25 = vsel %vm4975_vm5, %v10700_v48, %v10705_v24  ;;  %v5064_v29 = vsel %vm4975_vm5, %v10699_v5, %v10704_v43  ;;  %7935 = vmatpush1.bf16.xpose.msra.mxu1 %v16555_v55  ;;  %v10718_v11 = vpop.permute.xlu1 %10717 }
 0x445   : > { %v10720_v26 = vunpack.i.h.bf16 %v10718_v11  ;;  %v10719_v10 = vunpack.i.l.bf16 %v10718_v11  ;;  %v10713_v47 = vpop.permute.xlu0 %10712  ;;  %v5193_v46 = vsel %vm5104_vm6, %v5064_v29, %v10709_v32  ;;  %v5194_v37 = vsel %vm5104_vm6, %v5065_v25, %v10710_v30  ;;  %v11308_v25 = vld [vmem:[%s11503_s21 + $0x4b8] sm:$0xff]  ;;  %v11309_v11 = vld [vmem:[%s11503_s21 + $0x4b0] sm:$0xff] }
 0x446   : > { %v10715_v15 = vunpack.i.h.bf16 %v10713_v47  ;;  %v10714_v39 = vunpack.i.l.bf16 %v10713_v47  ;;  %v4452_v29 = vsel %vm4330_vm2, %v11308_v25, %v8655_v13  ;;  %v4451_v16 = vsel %vm4330_vm2, %v11309_v11, %v8654_v8  ;;  %v19315_v11 = vld [vmem:[#allocation132_spill] sm:$0xff] }
 0x447   : > { %v5322_v2 = vsel %vm5233_vm7, %v5193_v46, %v10719_v10  ;;  %v5323_v27 = vsel %vm5233_vm7, %v5194_v37, %v10720_v26 }
 0x448   : > { %v16579_v24 = vpack.c.bf16 %v5323_v27, %v5322_v2  ;;  %v4806_v32 = vsel %vm4717_vm8, %v4677_v1, %v10714_v39  ;;  %v4807_v30 = vsel %vm4717_vm8, %v4678_v35, %v10715_v15  ;;  %v10728_v43 = vpop.permute.xlu1 %10727 }
 0x449   : > { %v10723_v53 = vpop.permute.xlu0 %10722  ;;  %v4935_v36 = vsel %vm4846_vm10, %v4806_v32, %v10699_v5  ;;  %v4936_v6 = vsel %vm4846_vm10, %v4807_v30, %v10700_v48  ;;  %v4580_v5 = vsel %vm4459_vm3, %v4451_v16, %v8974_v61  ;;  %v4581_v48 = vsel %vm4459_vm3, %v4452_v29, %v8975_v51 }
 0x44a   : > { %7858 = vmatprep.subr.msk.bf16.mxu0 %vm13704_vm11, %v16579_v24  ;;  %v16590_v34 = vpack.c.bf16 %v4936_v6, %v4935_v36  ;;  %v10730_v56 = vunpack.i.h.bf16 %v10728_v43  ;;  %v10729_v26 = vunpack.i.l.bf16 %v10728_v43  ;;  %v10725_v47 = vunpack.i.h.bf16 %v10723_v53 }
 0x44b   : > { %v10724_v46 = vunpack.i.l.bf16 %v10723_v53  ;;  %v4709_v1 = vsel %vm4588_vm4, %v4580_v5, %v9294_v21  ;;  %v4710_v13 = vsel %vm4588_vm4, %v4581_v48, %v9295_v7  ;;  %v8580_v7 = vunpack.i.h.bf16 %v19314_v14 }
 0x44c   : > { %7860 = vmatpush1.bf16.xpose.msra.mxu0 %v16590_v34  ;;  %v10738_v10 = vpop.permute.xlu1 %10737  ;;  %v5097_v61 = vsel %vm4975_vm5, %v10725_v47, %v10730_v56  ;;  %v8579_v21 = vunpack.i.l.bf16 %v19314_v14  ;;  %v8900_v16 = vunpack.i.h.bf16 %v19315_v11  ;;  %v8899_v5 = vunpack.i.l.bf16 %v19315_v11 }
 0x44d   : > { %v10740_v37 = vunpack.i.h.bf16 %v10738_v10  ;;  %v10739_v15 = vunpack.i.l.bf16 %v10738_v10  ;;  %v10733_v39 = vpop.permute.xlu0 %10732  ;;  %v5096_v32 = vsel %vm4975_vm5, %v10724_v46, %v10729_v26 }
 0x44e   : > { %v10735_v2 = vunpack.i.h.bf16 %v10733_v39  ;;  %v10734_v51 = vunpack.i.l.bf16 %v10733_v39 }
 0x44f   : > { %v4838_v8 = vsel %vm4717_vm8, %v4709_v1, %v10739_v15  ;;  %v4839_v35 = vsel %vm4717_vm8, %v4710_v13, %v10740_v37 }
 0x450   : > { %v10748_v27 = vpop.permute.xlu1 %10747  ;;  %v4967_v36 = vsel %vm4846_vm10, %v4838_v8, %v10724_v46  ;;  %v4968_v6 = vsel %vm4846_vm10, %v4839_v35, %v10725_v47  ;;  %v5225_v25 = vsel %vm5104_vm6, %v5096_v32, %v10734_v51  ;;  %v5226_v29 = vsel %vm5104_vm6, %v5097_v61, %v10735_v2  ;;  %v19318_v35 = vld [vmem:[#allocation226_spill] sm:$0xff]  ;;  %v11311_v32 = vld [vmem:[%s11503_s21 + $0x380] sm:$0xff] }
 0x451   : > { %v10743_v30 = vpop.permute.xlu0 %10742  ;;  %v10750_v10 = vunpack.i.h.bf16 %v10748_v27  ;;  %v10749_v47 = vunpack.i.l.bf16 %v10748_v27  ;;  %v16617_v15 = vpack.c.bf16 %v4968_v6, %v4967_v36  ;;  %v9220_v2 = vunpack.i.h.bf16 %v19318_v35  ;;  %v11310_v61 = vld [vmem:[%s11503_s21 + $0x388] sm:$0xff] }
 0x452   : > { %v10745_v43 = vunpack.i.h.bf16 %v10743_v30  ;;  %v10744_v53 = vunpack.i.l.bf16 %v10743_v30  ;;  %v9219_v51 = vunpack.i.l.bf16 %v19318_v35  ;;  %v4422_v27 = vsel %vm4330_vm2, %v11310_v61, %v8580_v7 }
 0x453   : > { %19317 = vst [vmem:[#allocation171_spill] sm:$0xff] %v16617_v15  ;;  %v4421_v30 = vsel %vm4330_vm2, %v11311_v32, %v8579_v21  ;;  %v4551_v6 = vsel %vm4459_vm3, %v4422_v27, %v8900_v16 }
 0x454   : > { %v5354_v48 = vsel %vm5233_vm7, %v5225_v25, %v10744_v53  ;;  %v5355_v56 = vsel %vm5233_vm7, %v5226_v29, %v10745_v43  ;;  %v10758_v26 = vpop.permute.xlu1 %10757  ;;  %v4550_v14 = vsel %vm4459_vm3, %v4421_v30, %v8899_v5 }
 0x455   : > { %v16615_v46 = vpack.c.bf16 %v5355_v56, %v5354_v48  ;;  %v10753_v37 = vpop.permute.xlu0 %10752  ;;  %v10760_v39 = vunpack.i.h.bf16 %v10758_v26  ;;  %v10759_v1 = vunpack.i.l.bf16 %v10758_v26  ;;  %v4679_v26 = vsel %vm4588_vm4, %v4550_v14, %v9219_v51  ;;  %v19320_v51 = vld [vmem:[#allocation263_spill] sm:$0xff] }
 0x456   : > { %v10755_v13 = vunpack.i.h.bf16 %v10753_v37  ;;  %v10754_v8 = vunpack.i.l.bf16 %v10753_v37  ;;  %v4680_v37 = vsel %vm4588_vm4, %v4551_v6, %v9220_v2  ;;  %v8660_v32 = vunpack.i.h.bf16 %v19320_v51 }
 0x457   : > { %19316 = vst [vmem:[#allocation38_spill] sm:$0xff] %v16615_v46  ;;  %7938 = vmatprep.subr.msk.bf16.mxu1 %vm13704_vm11, %v16615_v46  ;;  %v8659_v30 = vunpack.i.l.bf16 %v19320_v51 }
 0x458   : > { %v5067_v43 = vsel %vm4975_vm5, %v10750_v10, %v10755_v13  ;;  %v5066_v53 = vsel %vm4975_vm5, %v10749_v47, %v10754_v8  ;;  %7940 = vmatpush1.bf16.xpose.msra.mxu1 %v16617_v15  ;;  %v10768_v36 = vpop.permute.xlu1 %10767 }
 0x459   : > { %v10770_v25 = vunpack.i.h.bf16 %v10768_v36  ;;  %v10769_v29 = vunpack.i.l.bf16 %v10768_v36  ;;  %v10763_v11 = vpop.permute.xlu0 %10762  ;;  %v5195_v48 = vsel %vm5104_vm6, %v5066_v53, %v10759_v1  ;;  %v5196_v7 = vsel %vm5104_vm6, %v5067_v43, %v10760_v39  ;;  %v19321_v43 = vld [vmem:[#allocation162_spill] sm:$0xff] }
 0x45a   : > { %v10765_v56 = vunpack.i.h.bf16 %v10763_v11  ;;  %v10764_v21 = vunpack.i.l.bf16 %v10763_v11  ;;  %v8980_v53 = vunpack.i.h.bf16 %v19321_v43  ;;  %v8979_v36 = vunpack.i.l.bf16 %v19321_v43 }
 0x45b   : > { %v5324_v13 = vsel %vm5233_vm7, %v5195_v48, %v10769_v29  ;;  %v5325_v8 = vsel %vm5233_vm7, %v5196_v7, %v10770_v25  ;;  %v11312_v7 = vld [vmem:[%s11503_s21 + $0x4c8] sm:$0xff] }
 0x45c   : > { %v16639_v16 = vpack.c.bf16 %v5325_v8, %v5324_v13  ;;  %v4809_v5 = vsel %vm4717_vm8, %v4680_v37, %v10765_v56  ;;  %v4808_v35 = vsel %vm4717_vm8, %v4679_v26, %v10764_v21  ;;  %v10778_v61 = vpop.permute.xlu1 %10777  ;;  %v4454_v56 = vsel %vm4330_vm2, %v11312_v7, %v8660_v32  ;;  %v11313_v21 = vld [vmem:[%s11503_s21 + $0x4c0] sm:$0xff]  ;;  %v19322_v8 = vld [vmem:[#allocation224_spill] sm:$0xff] }
 0x45d   : > { %v10773_v1 = vpop.permute.xlu0 %10772  ;;  %v4937_v39 = vsel %vm4846_vm10, %v4808_v35, %v10749_v47  ;;  %v4938_v27 = vsel %vm4846_vm10, %v4809_v5, %v10750_v10  ;;  %v10780_v10 = vunpack.i.h.bf16 %v10778_v61  ;;  %v10779_v6 = vunpack.i.l.bf16 %v10778_v61  ;;  %v7547_v32 = vld [vmem:[%s17838_s3 + $0x18] sm:$0xff] }
 0x45e   : > { %7863 = vmatprep.subr.msk.bf16.mxu0 %vm13704_vm11, %v16639_v16  ;;  %v16648_v2 = vpack.c.bf16 %v4938_v27, %v4937_v39  ;;  %v10775_v14 = vunpack.i.h.bf16 %v10773_v1  ;;  %v10774_v25 = vunpack.i.l.bf16 %v10773_v1  ;;  %v4453_v26 = vsel %vm4330_vm2, %v11313_v21, %v8659_v30  ;;  %v7545_v30 = vld [vmem:[%s17837_s2 + $0x20] sm:$0xff]  ;;  %6626 = vperm.xlu1 %10912, %v7547_v32  }
 0x45f   : > { %v8585_v5 = vunpack.i.h.bf16 %v19322_v8  ;;  %v4583_v35 = vsel %vm4459_vm3, %v4454_v56, %v8980_v53  ;;  %v4582_v39 = vsel %vm4459_vm3, %v4453_v26, %v8979_v36  ;;  %6588 = vperm.xlu0 %10911, %v7545_v30   ;;  %v8584_v26 = vunpack.i.l.bf16 %v19322_v8  ;;  %v6096_v8 = vld [vmem:[%s17837_s2 + $0x10] sm:$0xff]  ;;  %v19326_v32 = vld [vmem:[#allocation233_spill] sm:$0xff] }
 0x460   : > { %19319 = vst [vmem:[#allocation197_spill] sm:$0xff] %v16648_v2  ;;  %7865 = vmatpush1.bf16.xpose.msra.mxu0 %v16648_v2  ;;  %v10788_v47 = vpop.permute.xlu1 %10787  ;;  %v5099_v1 = vsel %vm4975_vm5, %v10775_v14, %v10780_v10  ;;  %v5098_v27 = vsel %vm4975_vm5, %v10774_v25, %v10779_v6  ;;  %v9225_v30 = vunpack.i.h.bf16 %v19326_v32 }
 0x461   : > { %v10783_v29 = vpop.permute.xlu0 %10782  ;;  %v10790_v11 = vunpack.i.h.bf16 %v10788_v47  ;;  %v10789_v48 = vunpack.i.l.bf16 %v10788_v47 }
 0x462   : > { %v10785_v37 = vunpack.i.h.bf16 %v10783_v29  ;;  %v10784_v13 = vunpack.i.l.bf16 %v10783_v29  ;;  %6109 = vperm.xlu1 %10912, %v6096_v8  }
 0x463   : > { %v5227_v53 = vsel %vm5104_vm6, %v5098_v27, %v10789_v48  ;;  %v5228_v36 = vsel %vm5104_vm6, %v5099_v1, %v10790_v11  ;;  %v19324_v27 = vld [vmem:[#allocation135_spill] sm:$0xff] }
 0x464   : > { %v10798_v61 = vpop.permute.xlu1 %10797  ;;  %v4712_v10 = vsel %vm4588_vm4, %v4583_v35, %v10785_v37  ;;  %v4711_v6 = vsel %vm4588_vm4, %v4582_v39, %v10784_v13  ;;  %v8904_v37 = vunpack.i.l.bf16 %v19324_v27 }
 0x465   : > { %v10800_v51 = vunpack.i.h.bf16 %v10798_v61  ;;  %v10799_v43 = vunpack.i.l.bf16 %v10798_v61  ;;  %v10793_v47 = vpop.permute.xlu0 %10792 }
 0x466   : > { %v10795_v29 = vunpack.i.h.bf16 %v10793_v47  ;;  %v10794_v7 = vunpack.i.l.bf16 %v10793_v47  ;;  %v8905_v47 = vunpack.i.h.bf16 %v19324_v27  ;;  %v16708_v27 = vpop.f32.mrb[0].mxu0 }
 0x467   : > { %v5356_v56 = vsel %vm5233_vm7, %v5227_v53, %v10799_v43  ;;  %v5357_v21 = vsel %vm5233_vm7, %v5228_v36, %v10800_v51  ;;  %v6137_v51 = vld [vmem:[%s17838_s3 + $0x8] sm:$0xff]  ;;  %v11315_v36 = vld [vmem:[%s11503_s21 + $0x398] sm:$0xff]  ;;  %v16710_v8 = vpop.f32.mrb[1].mxu0 }
 0x468   : > { %v16677_v61 = vpack.c.bf16 %v5357_v21, %v5356_v56  ;;  %v4840_v48 = vsel %vm4717_vm8, %v4711_v6, %v10794_v7  ;;  %v4841_v11 = vsel %vm4717_vm8, %v4712_v10, %v10795_v29  ;;  %v10808_v1 = vpop.permute.xlu1 %10807  ;;  %6146 = vperm.xlu0 %10911, %v6137_v51   ;;  %v4423_v29 = vsel %vm4330_vm2, %v11315_v36, %v8584_v26 }
 0x469   : > { %v10803_v13 = vpop.permute.xlu0 %10802  ;;  %v4969_v35 = vsel %vm4846_vm10, %v4840_v48, %v10774_v25  ;;  %v4970_v39 = vsel %vm4846_vm10, %v4841_v11, %v10775_v14  ;;  %v9224_v25 = vunpack.i.l.bf16 %v19326_v32  ;;  %v11314_v14 = vld [vmem:[%s11503_s21 + $0x3a0] sm:$0xff]  ;;  %v4552_v10 = vsel %vm4459_vm3, %v4423_v29, %v8904_v37  ;;  %v6138_v11 = vld [vmem:[%s17838_s3 + $0x10] sm:$0xff]  ;;  %v16716_v29 = vpop.f32.mrb[0].mxu1 }
 0x46a   : > { %19323 = vst [vmem:[#allocation87_spill] sm:$0xff] %v16677_v61  ;;  %7943 = vmatprep.subr.msk.bf16.mxu1 %vm13704_vm11, %v16677_v61  ;;  %v16694_v43 = vpack.c.bf16 %v4970_v39, %v4969_v35  ;;  %v4424_v53 = vsel %vm4330_vm2, %v11314_v14, %v8585_v5  ;;  %v10810_v5 = vunpack.i.h.bf16 %v10808_v1  ;;  %v10809_v35 = vunpack.i.l.bf16 %v10808_v1  ;;  %6151 = vperm.xlu1 %10912, %v6138_v11  }
 0x46b   : > { %v4553_v6 = vsel %vm4459_vm3, %v4424_v53, %v8905_v47  ;;  %v10805_v39 = vunpack.i.h.bf16 %v10803_v13  ;;  %v10804_v26 = vunpack.i.l.bf16 %v10803_v13  ;;  %v4681_v37 = vsel %vm4588_vm4, %v4552_v10, %v9224_v25 }
 0x46c   : > { %19325 = vst [vmem:[#allocation21_spill] sm:$0xff] %v16694_v43  ;;  %7945 = vmatpush1.bf16.xpose.msra.mxu1 %v16694_v43  ;;  %v10818_v7 = vpop.permute.xlu1 %10817  ;;  %v4682_v47 = vsel %vm4588_vm4, %v4553_v6, %v9225_v30  ;;  %v16720_v43 = vpop.f32.mrb[1].mxu1 }
 0x46d   : > { %v10820_v56 = vunpack.i.h.bf16 %v10818_v7  ;;  %v10819_v21 = vunpack.i.l.bf16 %v10818_v7  ;;  %v10813_v48 = vpop.permute.xlu0 %10812  ;;  %v19327_v7 = vld [vmem:[#allocation268_spill] sm:$0xff]  ;;  %v5069_v25 = vsel %vm4975_vm5, %v10805_v39, %v10810_v5  ;;  %v5068_v30 = vsel %vm4975_vm5, %v10804_v26, %v10809_v35 }
 0x46e   : > { %v10815_v51 = vunpack.i.h.bf16 %v10813_v48  ;;  %v10814_v32 = vunpack.i.l.bf16 %v10813_v48  ;;  %v8665_v1 = vunpack.i.h.bf16 %v19327_v7  ;;  %v8664_v13 = vunpack.i.l.bf16 %v19327_v7 }
 0x46f   : > { %v4810_v14 = vsel %vm4717_vm8, %v4681_v37, %v10819_v21  ;;  %v4811_v53 = vsel %vm4717_vm8, %v4682_v47, %v10820_v56  ;;  %v19328_v47 = vld [vmem:[#allocation168_spill] sm:$0xff] }
 0x470   : > { %v10828_v36 = vpop.permute.xlu1 %10827  ;;  %v5197_v21 = vsel %vm5104_vm6, %v5068_v30, %v10814_v32  ;;  %v5198_v56 = vsel %vm5104_vm6, %v5069_v25, %v10815_v51  ;;  %v4939_v48 = vsel %vm4846_vm10, %v4810_v14, %v10804_v26  ;;  %v4940_v37 = vsel %vm4846_vm10, %v4811_v53, %v10805_v39  ;;  %v11316_v51 = vld [vmem:[%s11503_s21 + $0x4e0] sm:$0xff]  ;;  %v11317_v39 = vld [vmem:[%s11503_s21 + $0x4d8] sm:$0xff] }
 0x471   : > { %v10823_v11 = vpop.permute.xlu0 %10822  ;;  %v8985_v7 = vunpack.i.h.bf16 %v19328_v47  ;;  %v8984_v61 = vunpack.i.l.bf16 %v19328_v47  ;;  %v16734_v46 = vpack.c.bf16 %v4940_v37, %v4939_v48  ;;  %v4456_v26 = vsel %vm4330_vm2, %v11316_v51, %v8665_v1 }
 0x472   : > { %v10825_v10 = vunpack.i.h.bf16 %v10823_v11  ;;  %v10824_v6 = vunpack.i.l.bf16 %v10823_v11  ;;  %v4455_v14 = vsel %vm4330_vm2, %v11317_v39, %v8664_v13  ;;  %v10830_v1 = vunpack.i.h.bf16 %v10828_v36 }
 0x473   : > { %19330 = vst [vmem:[#allocation130_spill] sm:$0xff] %v16734_v46  ;;  %v4584_v53 = vsel %vm4459_vm3, %v4455_v14, %v8984_v61  ;;  %v4585_v25 = vsel %vm4459_vm3, %v4456_v26, %v8985_v7  ;;  %v10829_v37 = vunpack.i.l.bf16 %v10828_v36 }
 0x474   : > { %v5326_v5 = vsel %vm5233_vm7, %v5197_v21, %v10824_v6  ;;  %v5327_v35 = vsel %vm5233_vm7, %v5198_v56, %v10825_v10  ;;  %v10838_v15 = vpop.permute.xlu1 %10837 }
 0x475   : > { %v16732_v2 = vpack.c.bf16 %v5327_v35, %v5326_v5  ;;  %v10833_v11 = vpop.permute.xlu0 %10832  ;;  %v10840_v32 = vunpack.i.h.bf16 %v10838_v15  ;;  %v10839_v30 = vunpack.i.l.bf16 %v10838_v15 }
 0x476   : > { %v10835_v15 = vunpack.i.h.bf16 %v10833_v11  ;;  %v10834_v6 = vunpack.i.l.bf16 %v10833_v11 }
 0x477   : > { %19329 = vst [vmem:[#allocation184_spill] sm:$0xff] %v16732_v2  ;;  %7868 = vmatprep.subr.msk.bf16.mxu0 %vm13704_vm11, %v16732_v2  ;;  %v4713_v13 = vsel %vm4588_vm4, %v4584_v53, %v10839_v30  ;;  %v4714_v47 = vsel %vm4588_vm4, %v4585_v25, %v10840_v32  ;;  %v19331_v53 = vld [vmem:[#allocation221_spill] sm:$0xff] }
 0x478   : > { %7870 = vmatpush1.bf16.xpose.msra.mxu0 %v16734_v46  ;;  %v10848_v10 = vpop.permute.xlu1 %10847  ;;  %v5101_v26 = vsel %vm4975_vm5, %v10830_v1, %v10835_v15  ;;  %v5100_v11 = vsel %vm4975_vm5, %v10829_v37, %v10834_v6  ;;  %v8590_v32 = vunpack.i.h.bf16 %v19331_v53  ;;  %v8589_v25 = vunpack.i.l.bf16 %v19331_v53  ;;  %v19335_v46 = vld [vmem:[#allocation230_spill] sm:$0xff] }
 0x479   : > { %v10850_v21 = vunpack.i.h.bf16 %v10848_v10  ;;  %v10849_v56 = vunpack.i.l.bf16 %v10848_v10  ;;  %v10843_v48 = vpop.permute.xlu0 %10842  ;;  %v9229_v2 = vunpack.i.l.bf16 %v19335_v46 }
 0x47a   : > { %v10845_v35 = vunpack.i.h.bf16 %v10843_v48  ;;  %v10844_v7 = vunpack.i.l.bf16 %v10843_v48  ;;  %v19332_v48 = vld [vmem:[#allocation134_spill] sm:$0xff] }
 0x47b   : > { %v4842_v5 = vsel %vm4717_vm8, %v4713_v13, %v10849_v56  ;;  %v4843_v61 = vsel %vm4717_vm8, %v4714_v47, %v10850_v21  ;;  %v8910_v13 = vunpack.i.h.bf16 %v19332_v48  ;;  %v8909_v15 = vunpack.i.l.bf16 %v19332_v48 }
 0x47c   : > { %v10858_v51 = vpop.permute.xlu1 %10857  ;;  %v4971_v36 = vsel %vm4846_vm10, %v4842_v5, %v10829_v37  ;;  %v4972_v30 = vsel %vm4846_vm10, %v4843_v61, %v10830_v1  ;;  %v5229_v21 = vsel %vm5104_vm6, %v5100_v11, %v10844_v7  ;;  %v5230_v56 = vsel %vm5104_vm6, %v5101_v26, %v10845_v35 }
 0x47d   : > { %v10853_v39 = vpop.permute.xlu0 %10852  ;;  %v10860_v1 = vunpack.i.h.bf16 %v10858_v51  ;;  %v10859_v5 = vunpack.i.l.bf16 %v10858_v51  ;;  %v16764_v53 = vpack.c.bf16 %v4972_v30, %v4971_v36  ;;  %v9230_v48 = vunpack.i.h.bf16 %v19335_v46 }
 0x47e   : > { %v10855_v14 = vunpack.i.h.bf16 %v10853_v39  ;;  %v10854_v10 = vunpack.i.l.bf16 %v10853_v39 }
 0x47f   : > { %19334 = vst [vmem:[#allocation145_spill] sm:$0xff] %v16764_v53 }
 0x480   : > { %v5358_v6 = vsel %vm5233_vm7, %v5229_v21, %v10854_v10  ;;  %v5359_v47 = vsel %vm5233_vm7, %v5230_v56, %v10855_v14  ;;  %v10868_v37 = vpop.permute.xlu1 %10867  ;;  %v11318_v14 = vld [vmem:[%s11503_s21 + $0x3b0] sm:$0xff]  ;;  %v11319_v10 = vld [vmem:[%s11503_s21 + $0x3a8] sm:$0xff] }
 0x481   : > { %v16762_v61 = vpack.c.bf16 %v5359_v47, %v5358_v6  ;;  %v10863_v39 = vpop.permute.xlu0 %10862  ;;  %v10870_v7 = vunpack.i.h.bf16 %v10868_v37  ;;  %v10869_v35 = vunpack.i.l.bf16 %v10868_v37  ;;  %v4426_v51 = vsel %vm4330_vm2, %v11318_v14, %v8590_v32 }
 0x482   : > { %v10865_v26 = vunpack.i.h.bf16 %v10863_v39  ;;  %v10864_v11 = vunpack.i.l.bf16 %v10863_v39  ;;  %v4425_v21 = vsel %vm4330_vm2, %v11319_v10, %v8589_v25  ;;  %v4555_v6 = vsel %vm4459_vm3, %v4426_v51, %v8910_v13 }
 0x483   : > { %19333 = vst [vmem:[#allocation90_spill] sm:$0xff] %v16762_v61  ;;  %7948 = vmatprep.subr.msk.bf16.mxu1 %vm13704_vm11, %v16762_v61  ;;  %v4554_v46 = vsel %vm4459_vm3, %v4425_v21, %v8909_v15 }
 0x484   : > { %v5071_v36 = vsel %vm4975_vm5, %v10860_v1, %v10865_v26  ;;  %v5070_v30 = vsel %vm4975_vm5, %v10859_v5, %v10864_v11  ;;  %7950 = vmatpush1.bf16.xpose.msra.mxu1 %v16764_v53  ;;  %v10878_v56 = vpop.permute.xlu1 %10877  ;;  %v4683_v26 = vsel %vm4588_vm4, %v4554_v46, %v9229_v2  ;;  %v4684_v11 = vsel %vm4588_vm4, %v4555_v6, %v9230_v48 }
 0x485   : > { %v10880_v47 = vunpack.i.h.bf16 %v10878_v56  ;;  %v10879_v37 = vunpack.i.l.bf16 %v10878_v56  ;;  %v10873_v39 = vpop.permute.xlu0 %10872  ;;  %v5199_v61 = vsel %vm5104_vm6, %v5070_v30, %v10869_v35  ;;  %v5200_v32 = vsel %vm5104_vm6, %v5071_v36, %v10870_v7  ;;  %v19339_v30 = vld [vmem:[#allocation167_spill] sm:$0xff] }
 0x486   : > { %v10875_v14 = vunpack.i.h.bf16 %v10873_v39  ;;  %v10874_v25 = vunpack.i.l.bf16 %v10873_v39  ;;  %v8990_v56 = vunpack.i.h.bf16 %v19339_v30  ;;  %v8989_v6 = vunpack.i.l.bf16 %v19339_v30 }
 0x487   : > { %v5328_v10 = vsel %vm5233_vm7, %v5199_v61, %v10879_v37  ;;  %v5329_v53 = vsel %vm5233_vm7, %v5200_v32, %v10880_v47  ;;  %v19338_v61 = vld [vmem:[#allocation267_spill] sm:$0xff]  ;;  %v19340_v32 = vld [vmem:[#allocation53_spill] sm:$0xff] }
 0x488   : > { %v16786_v13 = vpack.c.bf16 %v5329_v53, %v5328_v10  ;;  %v4813_v15 = vsel %vm4717_vm8, %v4684_v11, %v10875_v14  ;;  %v4812_v51 = vsel %vm4717_vm8, %v4683_v26, %v10874_v25  ;;  %v10888_v21 = vpop.permute.xlu1 %10887  ;;  %v8670_v53 = vunpack.i.h.bf16 %v19338_v61  ;;  %v11320_v26 = vld [vmem:[%s11503_s21 + $0x4f0] sm:$0xff]  ;;  %v11321_v10 = vld [vmem:[%s11503_s21 + $0x4e8] sm:$0xff]  ;;  %s7191_s21 = sshll.u32 %s17692_s19, 4  ;;  %s17781_s21 = int_to_ptr.vmem [resolvable:$true] %s7191_s21 }
 0x489   : > { %v10883_v35 = vpop.permute.xlu0 %10882  ;;  %v4941_v7 = vsel %vm4846_vm10, %v4812_v51, %v10859_v5  ;;  %v4942_v36 = vsel %vm4846_vm10, %v4813_v15, %v10860_v1  ;;  %v8669_v48 = vunpack.i.l.bf16 %v19338_v61  ;;  %v10890_v1 = vunpack.i.h.bf16 %v10888_v21  ;;  %s11327_s18 = scalar_lea.vmem %s17781_s21, 3072  ;;  %p11334_p0 = scmp.lt.s32.totalorder %s17781_s21, %s11332_s25 }
 0x48a   : > { %19336 = vst [vmem:[#allocation277_spill] sm:$0xff] %v16786_v13  ;;  %7873 = vmatprep.subr.msk.bf16.mxu0 %vm13704_vm11, %v16786_v13  ;;  %v16795_v2 = vpack.c.bf16 %v4942_v36, %v4941_v7  ;;  %v10889_v46 = vunpack.i.l.bf16 %v10888_v21  ;;  %v10885_v47 = vunpack.i.h.bf16 %v10883_v35  ;;  %v10884_v37 = vunpack.i.l.bf16 %v10883_v35  ;;  %p11328_p11 = scmp.ne.s32.totalorder %s17781_s21, %s11327_s18  ;;  %p11335_p1 = scmp.lt.s32.totalorder %s11333_s26, %s11327_s18 }
 0x48b   : > { %v4458_v11 = vsel %vm4330_vm2, %v11320_v26, %v8670_v53  ;;  %v4457_v15 = vsel %vm4330_vm2, %v11321_v10, %v8669_v48  ;;  %v19341_v10 = vld [vmem:[#allocation139_spill] sm:$0xff] }
 0x48c   : > { %19337 = vst [vmem:[#allocation37_spill] sm:$0xff] %v16795_v2  ;;  %7875 = vmatpush1.bf16.xpose.msra.mxu0 %v16795_v2  ;;  %v10898_v5 = vpop.permute.xlu1 %10897  ;;  %v4587_v36 = vsel %vm4459_vm3, %v4458_v11, %v8990_v56  ;;  %v4586_v21 = vsel %vm4459_vm3, %v4457_v15, %v8989_v6  ;;  %v5103_v61 = vsel %vm4975_vm5, %v10885_v47, %v10890_v1  ;;  %v11322_v1 = vld [vmem:[%s17836_s1] sm:$0xff]  ;;  %v11323_v15 = vld [vmem:[%s17836_s1 + $0x18] sm:$0xff]  ;;  %p11329_p12 = pnand %p11328_p11, %p11488_p5  ;;  %p11336_p2 = por %p11335_p1, %p11334_p0 }
 0x48d   : > { %v10893_v39 = vpop.permute.xlu0 %10892  ;;  %7958 = vmatprep.subr.msk.bf16.mxu0 %vm13704_vm11, %v19340_v32  ;;  %v10900_v14 = vunpack.i.h.bf16 %v10898_v5  ;;  %v10899_v25 = vunpack.i.l.bf16 %v10898_v5  ;;  %v5102_v30 = vsel %vm4975_vm5, %v10884_v37, %v10889_v46 }
 0x48e   : > { %v10895_v51 = vunpack.i.h.bf16 %v10893_v39  ;;  %v10894_v7 = vunpack.i.l.bf16 %v10893_v39  ;;  %p11330_p13 = pneg %p11329_p12 }
 0x48f   : > { %v5231_v13 = vsel %vm5104_vm6, %v5102_v30, %v10899_v25  ;;  %v5232_v53 = vsel %vm5104_vm6, %v5103_v61, %v10900_v14  ;;  %v19353_v61 = vld [vmem:[#allocation147_spill] sm:$0xff]  ;;  %v19354_v30 = vld [vmem:[#allocation25_spill] sm:$0xff] }
 0x490   : > { %v10908_v35 = vpop.permute.xlu1 %10907  ;;  %v4716_v39 = vsel %vm4588_vm4, %v4587_v36, %v10895_v51  ;;  %v4715_v56 = vsel %vm4588_vm4, %v4586_v21, %v10894_v7  ;;  %v11324_v7 = vld [vmem:[%s17836_s1 + $0x10] sm:$0xff]  ;;  %v19349_v36 = vld [vmem:[#allocation138_spill] sm:$0xff]  ;;  %p11337_p3 = pnand %p11336_p2, %p11330_p13 }
 0x491   : > { %v10910_v32 = vunpack.i.h.bf16 %v10908_v35  ;;  %v10909_v2 = vunpack.i.l.bf16 %v10908_v35  ;;  %v10903_v5 = vpop.permute.xlu0 %10902  ;;  %v19351_v21 = vld [vmem:[#allocation86_spill] sm:$0xff]  ;;  %v19352_v35 = vld [vmem:[#allocation12_spill] sm:$0xff] }
 0x492   : > { %v10905_v26 = vunpack.i.h.bf16 %v10903_v5  ;;  %v10904_v48 = vunpack.i.l.bf16 %v10903_v5  ;;  %v19356_v5 = vld [vmem:[#allocation11_spill] sm:$0xff] }
 0x493   : > { %v5360_v6 = vsel %vm5233_vm7, %v5231_v13, %v10909_v2  ;;  %v5361_v11 = vsel %vm5233_vm7, %v5232_v53, %v10910_v32  ;;  %5993 = vmatmul.mubr.f32.vlgmr.msra.gmra.mrb[6].mxu0 %v11322_v1  ;;  %v19355_v32 = vld [vmem:[#allocation97_spill] sm:$0xff]  ;;  %v19357_v53 = vld [vmem:[#allocation146_spill] sm:$0xff] }
 0x494   : > { %v16822_v46 = vpack.c.bf16 %v5361_v11, %v5360_v6  ;;  %v4844_v25 = vsel %vm4717_vm8, %v4715_v56, %v10904_v48  ;;  %v4845_v14 = vsel %vm4717_vm8, %v4716_v39, %v10905_v26  ;;  %7960 = vmatpush1.bf16.xpose.msra.mxu0 %v19341_v10  ;;  %7361 = vmatprep.mubr.msk.f32.mxu0 %vm5368_vm9, %v11323_v15  ;;  %v19358_v26 = vld [vmem:[#allocation28_spill] sm:$0xff]  ;;  %v19359_v48 = vld [vmem:[#allocation91_spill] sm:$0xff]  ;;  %v19361_v56 = vld [vmem:[#allocation157_spill] sm:$0xff] }
 0x495   : > { %7963 = vmatprep.subr.msk.bf16.mxu0 %vm13704_vm11, %v13806_v33  ;;  %v4973_v13 = vsel %vm4846_vm10, %v4844_v25, %v10884_v37  ;;  %v4974_v2 = vsel %vm4846_vm10, %v4845_v14, %v10885_v47  ;;  %v11325_v33 = vld [vmem:[%s17836_s1 + $0x28] sm:$0xff]  ;;  %v16855_v47 = vld [vmem:[%s17836_s1 + $0x38] sm:$0xff]  ;;  %v11326_v37 = vld [vmem:[%s17836_s1 + $0x20] sm:$0xff] }
 0x496   : > { %7953 = vmatprep.subr.msk.bf16.mxu1 %vm13704_vm11, %v16822_v46  ;;  %v16839_v51 = vpack.c.bf16 %v4974_v2, %v4973_v13  ;;  %v19360_v39 = vld [vmem:[#allocation27_spill] sm:$0xff]  ;;  %v19362_v6 = vld [vmem:[#allocation66_spill] sm:$0xff]  ;;  %v19365_v25 = vld [vmem:[#allocation109_spill] sm:$0xff] }
 0x497   : > { %5999 = vmatmul.mubr.f32.gmra.mrb[8].mxu0 %v11324_v7  ;;  %v19363_v11 = vld [vmem:[#allocation154_spill] sm:$0xff]  ;;  %v7548_v10 = vld [vmem:[%s17838_s3 + $0x20] sm:$0xff] }
 0x498   : > { %7955 = vmatpush1.bf16.xpose.msra.mxu1 %v16839_v51  ;;  %7362 = vmatprep.mubr.msk.f32.mxu0 %vm5368_vm9, %v11325_v33  ;;  %v19366_v14 = vld [vmem:[#allocation14_spill] sm:$0xff]  ;;  %v19368_v13 = vld [vmem:[#allocation13_spill] sm:$0xff] }
 0x499   : > { %8038 = vmatprep.subr.msk.bf16.mxu1 %vm13704_vm11, %v13775_v40  ;;  %v19342_v40 = vld [vmem:[#allocation7_spill] sm:$0xff]  ;;  %6631 = vperm.xlu0 %10911, %v7548_v10   ;;  %v7546_v2 = vld [vmem:[%s17837_s2 + $0x28] sm:$0xff]  ;;  %v19388_v10 = vld [vmem:[#allocation121_spill] sm:$0xff] }
 0x49b   : > { %6005 = vmatmul.mubr.f32.gmra.mrb[10].mxu0 %v11326_v37 }
 0x49c   : > { %7965 = vmatpush1.bf16.xpose.msra.mxu0 %v13820_v42  ;;  %7436 = vmatprep.mubr.msk.f32.mxu0 %vm5368_vm9, %v16855_v47  ;;  %v19343_v42 = vld [vmem:[#allocation6_spill] sm:$0xff] }
 0x49d   : > { %7968 = vmatprep.subr.msk.bf16.mxu0 %vm13704_vm11, %v13898_v20  ;;  %v19345_v20 = vld [vmem:[#allocation79_spill] sm:$0xff]  ;;  %6593 = vperm.xlu0 %10911, %v7546_v2   ;;  %v19391_v2 = vld [vmem:[#allocation122_spill] sm:$0xff] }
 0x49f   : > { %6076 = vmatmul.mubr.f32.vlgmr.msra.gmra.mrb[6].mxu1 %v11322_v1  ;;  %v19364_v1 = vld [vmem:[#allocation101_spill] sm:$0xff] }
 0x4a0   : > { %8040 = vmatpush1.bf16.xpose.msra.mxu1 %v19342_v40  ;;  %7396 = vmatprep.mubr.msk.f32.mxu1 %vm5368_vm9, %v11323_v15  ;;  %v19367_v15 = vld [vmem:[#allocation106_spill] sm:$0xff] }
 0x4a1   : > { %8043 = vmatprep.subr.msk.bf16.mxu1 %vm13704_vm11, %v13867_v38  ;;  %v19344_v38 = vld [vmem:[#allocation10_spill] sm:$0xff] }
 0x4a3   : > { %6082 = vmatmul.mubr.f32.gmra.mrb[8].mxu1 %v11324_v7  ;;  %v19369_v7 = vld [vmem:[#allocation70_spill] sm:$0xff] }
 0x4a4   : > { %7970 = vmatpush1.bf16.xpose.msra.mxu0 %v13912_v58  ;;  %7397 = vmatprep.mubr.msk.f32.mxu1 %vm5368_vm9, %v11325_v33  ;;  %v19346_v58 = vld [vmem:[#allocation23_spill] sm:$0xff]  ;;  %v19370_v33 = vld [vmem:[#allocation30_spill] sm:$0xff] }
 0x4a5   : > { %7973 = vmatprep.subr.msk.bf16.mxu0 %vm13704_vm11, %v13990_v17  ;;  %v19348_v17 = vld [vmem:[#allocation9_spill] sm:$0xff] }
 0x4a7   : > { %6088 = vmatmul.mubr.f32.gmra.mrb[10].mxu1 %v11326_v37  ;;  %v7549_v37 = vld [vmem:[%s17838_s3 + $0x28] sm:$0xff] }
 0x4a8   : > { %8045 = vmatpush1.bf16.xpose.msra.mxu1 %v13869_v59  ;;  %7471 = vmatprep.mubr.msk.f32.mxu1 %vm5368_vm9, %v16855_v47  ;;  %v19347_v59 = vld [vmem:[#allocation89_spill] sm:$0xff] }
 0x4a9   : > { %8048 = vmatprep.subr.msk.bf16.mxu1 %vm13704_vm11, %v13959_v23  ;;  %v19350_v23 = vld [vmem:[#allocation26_spill] sm:$0xff]  ;;  %6636 = vperm.xlu0 %10911, %v7549_v37   ;;  %v17011_v37 = vld [vmem:[%s17836_s1 + $0x30] sm:$0xff] }
 0x4ac   : > { %7975 = vmatpush1.bf16.xpose.msra.mxu0 %v19343_v42 }
 0x4ad   : > { %7978 = vmatprep.subr.msk.bf16.mxu0 %vm13704_vm11, %v19344_v38  ;;  %v19371_v38 = vld [vmem:[#allocation65_spill] sm:$0xff] }
 0x4b0   : > { %8050 = vmatpush1.bf16.xpose.msra.mxu1 %v19345_v20 }
 0x4b1   : > { %8053 = vmatprep.subr.msk.bf16.mxu1 %vm13704_vm11, %v19346_v58  ;;  %v19372_v58 = vld [vmem:[#allocation29_spill] sm:$0xff] }
 0x4b4   : > { %7980 = vmatpush1.bf16.xpose.msra.mxu0 %v19347_v59 }
 0x4b5   : > { %7983 = vmatprep.subr.msk.bf16.mxu0 %vm13704_vm11, %v19348_v17  ;;  %v19373_v17 = vld [vmem:[#allocation165_spill] sm:$0xff] }
 0x4b8   : > { %8055 = vmatpush1.bf16.xpose.msra.mxu1 %v19349_v36  ;;  %v19374_v36 = vld [vmem:[#allocation100_spill] sm:$0xff] }
 0x4b9   : > { %8058 = vmatprep.subr.msk.bf16.mxu1 %vm13704_vm11, %v19350_v23 }
 0x4bc   : > { %7985 = vmatpush1.bf16.xpose.msra.mxu0 %v19351_v21 }
 0x4bd   : > { %7988 = vmatprep.subr.msk.bf16.mxu0 %vm13704_vm11, %v19352_v35  ;;  %v19375_v35 = vld [vmem:[#allocation164_spill] sm:$0xff] }
 0x4c0   : > { %8060 = vmatpush1.bf16.xpose.msra.mxu1 %v19353_v61  ;;  %v19376_v61 = vld [vmem:[#allocation111_spill] sm:$0xff] }
 0x4c1   : > { %8063 = vmatprep.subr.msk.bf16.mxu1 %vm13704_vm11, %v19354_v30 }
 0x4c4   : > { %7990 = vmatpush1.bf16.xpose.msra.mxu0 %v19355_v32 }
 0x4c5   : > { %7993 = vmatprep.subr.msk.bf16.mxu0 %vm13704_vm11, %v19356_v5  ;;  %v19377_v5 = vld [vmem:[#allocation116_spill] sm:$0xff] }
 0x4c8   : > { %8065 = vmatpush1.bf16.xpose.msra.mxu1 %v19357_v53  ;;  %v19378_v53 = vld [vmem:[#allocation16_spill] sm:$0xff] }
 0x4c9   : > { %8068 = vmatprep.subr.msk.bf16.mxu1 %vm13704_vm11, %v19358_v26  ;;  %v19379_v26 = vld [vmem:[#allocation113_spill] sm:$0xff] }
 0x4cc   : > { %7995 = vmatpush1.bf16.xpose.msra.mxu0 %v19359_v48  ;;  %v19380_v48 = vld [vmem:[#allocation15_spill] sm:$0xff] }
 0x4cd   : > { %7998 = vmatprep.subr.msk.bf16.mxu0 %vm13704_vm11, %v19360_v39  ;;  %v19381_v39 = vld [vmem:[#allocation69_spill] sm:$0xff] }
 0x4d0   : > { %8070 = vmatpush1.bf16.xpose.msra.mxu1 %v19361_v56  ;;  %v19382_v56 = vld [vmem:[#allocation32_spill] sm:$0xff] }
 0x4d1   : > { %8073 = vmatprep.subr.msk.bf16.mxu1 %vm13704_vm11, %v19362_v6  ;;  %v19383_v6 = vld [vmem:[#allocation74_spill] sm:$0xff] }
 0x4d4   : > { %8000 = vmatpush1.bf16.xpose.msra.mxu0 %v19363_v11  ;;  %v19384_v11 = vld [vmem:[#allocation31_spill] sm:$0xff] }
 0x4d5   : > { %8003 = vmatprep.subr.msk.bf16.mxu0 %vm13704_vm11, %v19364_v1  ;;  %v19385_v1 = vld [vmem:[#allocation173_spill] sm:$0xff] }
 0x4d8   : > { %8075 = vmatpush1.bf16.xpose.msra.mxu1 %v19365_v25  ;;  %v19386_v25 = vld [vmem:[#allocation110_spill] sm:$0xff] }
 0x4d9   : > { %8078 = vmatprep.subr.msk.bf16.mxu1 %vm13704_vm11, %v19366_v14  ;;  %v19387_v14 = vld [vmem:[#allocation170_spill] sm:$0xff] }
 0x4dc   : > { %8005 = vmatpush1.bf16.xpose.msra.mxu0 %v19367_v15  ;;  %v16947_v40 = vpop.f32.mrb[2].mxu0  ;;  %v19389_v15 = vld [vmem:[#allocation124_spill] sm:$0xff] }
 0x4dd   : > { %8008 = vmatprep.subr.msk.bf16.mxu0 %vm13704_vm11, %v19368_v13  ;;  %v16949_v42 = vpop.f32.mrb[3].mxu0  ;;  %v16963_v23 = vpop.f32.mrb[2].mxu1  ;;  %v19390_v13 = vld [vmem:[#allocation18_spill] sm:$0xff] }
 0x4de   : > { %v16965_v21 = vpop.f32.mrb[3].mxu1 }
 0x4e0   : > { %8080 = vmatpush1.bf16.xpose.msra.mxu1 %v19369_v7  ;;  %v19392_v7 = vld [vmem:[#allocation17_spill] sm:$0xff] }
 0x4e1   : > { %8083 = vmatprep.subr.msk.bf16.mxu1 %vm13704_vm11, %v19370_v33  ;;  %v19393_v33 = vld [vmem:[#allocation73_spill] sm:$0xff] }
 0x4e2   : > { %v16952_v20 = vpop.f32.mrb[4].mxu0 }
 0x4e3   : > { %v16957_v59 = vpop.f32.mrb[5].mxu0  ;;  %v16971_v30 = vpop.f32.mrb[4].mxu1 }
 0x4e4   : > { %8010 = vmatpush1.bf16.xpose.msra.mxu0 %v19371_v38  ;;  %v16973_v32 = vpop.f32.mrb[5].mxu1  ;;  %v19394_v38 = vld [vmem:[#allocation34_spill] sm:$0xff] }
 0x4e5   : > { %8013 = vmatprep.subr.msk.bf16.mxu0 %vm13704_vm11, %v19372_v58  ;;  %v17019_v58 = vld [vmem:[%s17836_s1 + $0x48] sm:$0xff] }
 0x4e8   : > { %8085 = vmatpush1.bf16.xpose.msra.mxu1 %v19373_v17  ;;  %v19395_v17 = vld [vmem:[#allocation76_spill] sm:$0xff] }
 0x4e9   : > { %8088 = vmatprep.subr.msk.bf16.mxu1 %vm13704_vm11, %v19374_v36  ;;  %v17028_v36 = vld [vmem:[%s17836_s1 + $0x40] sm:$0xff] }
 0x4ec   : > { %8015 = vmatpush1.bf16.xpose.msra.mxu0 %v19375_v35  ;;  %v19396_v35 = vld [vmem:[#allocation33_spill] sm:$0xff] }
 0x4ed   : > { %8018 = vmatprep.subr.msk.bf16.mxu0 %vm13704_vm11, %v19376_v61  ;;  %v17036_v61 = vld [vmem:[%s17836_s1 + $0x58] sm:$0xff] }
 0x4f0   : > { %8090 = vmatpush1.bf16.xpose.msra.mxu1 %v19377_v5  ;;  %v19397_v5 = vld [vmem:[#allocation181_spill] sm:$0xff] }
 0x4f1   : > { %8093 = vmatprep.subr.msk.bf16.mxu1 %vm13704_vm11, %v19378_v53  ;;  %v17045_v53 = vld [vmem:[%s17836_s1 + $0x50] sm:$0xff] }
 0x4f4   : > { %8020 = vmatpush1.bf16.xpose.msra.mxu0 %v19379_v26  ;;  %v19398_v26 = vld [vmem:[#allocation120_spill] sm:$0xff] }
 0x4f5   : > { %8023 = vmatprep.subr.msk.bf16.mxu0 %vm13704_vm11, %v19380_v48  ;;  %v19399_v48 = vld [vmem:[#allocation178_spill] sm:$0xff] }
 0x4f8   : > { %8095 = vmatpush1.bf16.xpose.msra.mxu1 %v19381_v39  ;;  %v19400_v39 = vld [vmem:[#allocation127_spill] sm:$0xff] }
 0x4f9   : > { %8098 = vmatprep.subr.msk.bf16.mxu1 %vm13704_vm11, %v19382_v56  ;;  %v19401_v56 = vld [vmem:[#allocation129_spill] sm:$0xff] }
 0x4fc   : > { %8025 = vmatpush1.bf16.xpose.msra.mxu0 %v19383_v6  ;;  %v19402_v6 = vld [vmem:[#allocation20_spill] sm:$0xff] }
 0x4fd   : > { %8028 = vmatprep.subr.msk.bf16.mxu0 %vm13704_vm11, %v19384_v11  ;;  %v19403_v11 = vld [vmem:[#allocation128_spill] sm:$0xff] }
 0x500   : > { %8100 = vmatpush1.bf16.xpose.msra.mxu1 %v19385_v1  ;;  %v19404_v1 = vld [vmem:[#allocation19_spill] sm:$0xff] }
 0x501   : > { %8103 = vmatprep.subr.msk.bf16.mxu1 %vm13704_vm11, %v19386_v25  ;;  %v19405_v25 = vld [vmem:[#allocation75_spill] sm:$0xff] }
 0x504   : > { %8030 = vmatpush1.bf16.xpose.msra.mxu0 %v19387_v14  ;;  %v19406_v14 = vld [vmem:[#allocation36_spill] sm:$0xff] }
 0x505   : > { %8033 = vmatprep.subr.msk.bf16.mxu0 %vm13704_vm11, %v19388_v10  ;;  %v19407_v10 = vld [vmem:[#allocation77_spill] sm:$0xff] }
 0x508   : > { %8105 = vmatpush1.bf16.xpose.msra.mxu1 %v19389_v15  ;;  %v19408_v15 = vld [vmem:[#allocation137_spill] sm:$0xff] }
 0x509   : > { %8108 = vmatprep.subr.msk.bf16.mxu1 %vm13704_vm11, %v19390_v13  ;;  %v19409_v13 = vld [vmem:[#allocation189_spill] sm:$0xff] }
 0x50c   : > { %8035 = vmatpush1.bf16.xpose.msra.mxu0 %v19391_v2  ;;  %v19410_v2 = vld [vmem:[#allocation78_spill] sm:$0xff] }
 0x50d   : > { %8118 = vmatprep.subr.msk.bf16.mxu0 %vm13704_vm11, %v19392_v7  ;;  %v19411_v7 = vld [vmem:[#allocation35_spill] sm:$0xff] }
 0x510   : > { %8110 = vmatpush1.bf16.xpose.msra.mxu1 %v19393_v33  ;;  %v19412_v33 = vld [vmem:[#allocation22_spill] sm:$0xff] }
 0x511   : > { %8113 = vmatprep.subr.msk.bf16.mxu1 %vm13704_vm11, %v19394_v38  ;;  %v19414_v38 = vld [vmem:[#allocation186_spill] sm:$0xff] }
 0x513   : > { %6310 = vmatmul.mubr.f32.vlgmr.msra.gmra.mrb[12].mxu0 %v17011_v37 }
 0x514   : > { %8120 = vmatpush1.bf16.xpose.msra.mxu0 %v19395_v17  ;;  %7437 = vmatprep.mubr.msk.f32.mxu0 %vm5368_vm9, %v17019_v58  ;;  %v19415_v17 = vld [vmem:[#allocation187_spill] sm:$0xff] }
 0x515   : > { %8123 = vmatprep.subr.msk.bf16.mxu0 %vm13704_vm11, %v19396_v35  ;;  %v19416_v35 = vld [vmem:[#allocation88_spill] sm:$0xff] }
 0x517   : > { %6316 = vmatmul.mubr.f32.gmra.mrb[14].mxu0 %v17028_v36 }
 0x518   : > { %8115 = vmatpush1.bf16.xpose.msra.mxu1 %v19397_v5  ;;  %7438 = vmatprep.mubr.msk.f32.mxu0 %vm5368_vm9, %v17036_v61  ;;  %v19417_v5 = vld [vmem:[#allocation131_spill] sm:$0xff] }
 0x519   : > { %8198 = vmatprep.subr.msk.bf16.mxu1 %vm13704_vm11, %v19398_v26  ;;  %v19418_v26 = vld [vmem:[#allocation85_spill] sm:$0xff] }
 0x51b   : > { %6322 = vmatmul.mubr.f32.gmra.mrb[16].mxu0 %v17045_v53 }
 0x51c   : > { %8125 = vmatpush1.bf16.xpose.msra.mxu0 %v19399_v48  ;;  %7506 = vmatprep.mubr.msk.f32.mxu0 %vm5368_vm9, %v16855_v47  ;;  %v19419_v48 = vld [vmem:[#allocation81_spill] sm:$0xff] }
 0x51d   : > { %8128 = vmatprep.subr.msk.bf16.mxu0 %vm13704_vm11, %v19400_v39  ;;  %v19420_v39 = vld [vmem:[#allocation136_spill] sm:$0xff] }
 0x51f   : > { %6393 = vmatmul.mubr.f32.vlgmr.msra.gmra.mrb[12].mxu1 %v17011_v37 }
 0x520   : > { %8200 = vmatpush1.bf16.xpose.msra.mxu1 %v19401_v56  ;;  %7472 = vmatprep.mubr.msk.f32.mxu1 %vm5368_vm9, %v17019_v58  ;;  %v17115_v56 = vpop.permute.xlu1 %6104 }
 0x521   : > { %8203 = vmatprep.subr.msk.bf16.mxu1 %vm13704_vm11, %v19402_v6 }
 0x523   : > { %6399 = vmatmul.mubr.f32.gmra.mrb[14].mxu1 %v17028_v36 }
 0x524   : > { %8130 = vmatpush1.bf16.xpose.msra.mxu0 %v19403_v11  ;;  %7473 = vmatprep.mubr.msk.f32.mxu1 %vm5368_vm9, %v17036_v61 }
 0x525   : > { %8133 = vmatprep.subr.msk.bf16.mxu0 %vm13704_vm11, %v19404_v1 }
 0x527   : > { %6405 = vmatmul.mubr.f32.gmra.mrb[16].mxu1 %v17045_v53 }
 0x528   : > { %8205 = vmatpush1.bf16.xpose.msra.mxu1 %v19405_v25  ;;  %7541 = vmatprep.mubr.msk.f32.mxu1 %vm5368_vm9, %v16855_v47  ;;  %v19413_v47 = vld [vmem:[#allocation123_spill] sm:$0xff] }
 0x529   : > { %8208 = vmatprep.subr.msk.bf16.mxu1 %vm13704_vm11, %v19406_v14 }
 0x52c   : > { %8135 = vmatpush1.bf16.xpose.msra.mxu0 %v19407_v10 }
 0x52d   : > { %8138 = vmatprep.subr.msk.bf16.mxu0 %vm13704_vm11, %v19408_v15 }
 0x530   : > { %8210 = vmatpush1.bf16.xpose.msra.mxu1 %v19409_v13 }
 0x531   : > { %8213 = vmatprep.subr.msk.bf16.mxu1 %vm13704_vm11, %v19410_v2 }
 0x534   : > { %8140 = vmatpush1.bf16.xpose.msra.mxu0 %v19411_v7 }
 0x535   : > { %8143 = vmatprep.subr.msk.bf16.mxu0 %vm13704_vm11, %v19412_v33 }
 0x538   : > { %8215 = vmatpush1.bf16.xpose.msra.mxu1 %v19413_v47 }
 0x539   : > { %8218 = vmatprep.subr.msk.bf16.mxu1 %vm13704_vm11, %v19414_v38 }
 0x53c   : > { %8145 = vmatpush1.bf16.xpose.msra.mxu0 %v19415_v17 }
 0x53d   : > { %8148 = vmatprep.subr.msk.bf16.mxu0 %vm13704_vm11, %v15994_v50  ;;  %v19421_v50 = vld [vmem:[#allocation275_spill] sm:$0xff] }
 0x540   : > { %8220 = vmatpush1.bf16.xpose.msra.mxu1 %v19416_v35 }
 0x541   : > { %8223 = vmatprep.subr.msk.bf16.mxu1 %vm13704_vm11, %v19417_v5 }
 0x544   : > { %8150 = vmatpush1.bf16.xpose.msra.mxu0 %v19418_v26 }
 0x545   : > { %8153 = vmatprep.subr.msk.bf16.mxu0 %vm13704_vm11, %v16104_v18  ;;  %v17124_v18 = vpop.permute.xlu0 %6099 }
 0x546   : > { %v6115_v1 = vmul.f32 %v17124_v18, %v16720_v43  ;;  %v6123_v43 = vmul.f32 %v17115_v56, %v16965_v21 }
 0x548   : > { %8225 = vmatpush1.bf16.xpose.msra.mxu1 %v19419_v48 }
 0x549   : > { %8228 = vmatprep.subr.msk.bf16.mxu1 %vm13704_vm11, %v19420_v39 }
 0x54c   : > { %8155 = vmatpush1.bf16.xpose.msra.mxu0 %v16117_v3  ;;  %v17126_v3 = vpop.permute.xlu1 %6583 }
 0x54d   : > { %8158 = vmatprep.subr.msk.bf16.mxu0 %vm13704_vm11, %v16213_v49  ;;  %v17132_v49 = vpop.permute.xlu0 %6588 }
 0x550   : > { %8230 = vmatpush1.bf16.xpose.msra.mxu1 %v19421_v50 }
 0x551   : > { %8233 = vmatprep.subr.msk.bf16.mxu1 %vm13704_vm11, %v16180_v52  ;;  %v6113_v52 = vmul.f32 %v17124_v18, %v16710_v8  ;;  %v6114_v8 = vmul.f32 %v17124_v18, %v16716_v29 }
 0x554   : > { %8160 = vmatpush1.bf16.xpose.msra.mxu0 %v16238_v45  ;;  %v6112_v45 = vmul.f32 %v17124_v18, %v16708_v27  ;;  %v17157_v27 = vpop.permute.xlu0 %6146 }
 0x555   : > { %8163 = vmatprep.subr.msk.bf16.mxu0 %vm13704_vm11, %v16326_v9  ;;  %v17139_v9 = vpop.permute.xlu1 %6141  ;;  %v17211_v38 = vadd.f32 %v17157_v27, %v6123_v43 }
 0x556   : > { %v17151_v6 = vadd.f32 %v17139_v9, %v6112_v45  ;;  %v17195_v13 = vadd.f32 %v17139_v9, %v6115_v1 }
 0x557   : > { %v18422_v50 = vmax.f32 %v17211_v38, 0.0 }
 0x558   : > { %8235 = vmatpush1.bf16.xpose.msra.mxu1 %v16182_v44  ;;  %v6120_v44 = vmul.f32 %v17115_v56, %v16947_v40  ;;  %v18432_v35 = vmax.f32 %v17195_v13, 0.0 }
 0x559   : > { %8238 = vmatprep.subr.msk.bf16.mxu1 %vm13704_vm11, %v16278_v4  ;;  %v6121_v4 = vmul.f32 %v17115_v56, %v16949_v42  ;;  %v17171_v42 = vadd.f32 %v17139_v9, %v6114_v8 }
 0x55a   : > { %v17165_v40 = vadd.f32 %v17157_v27, %v6120_v44 }
 0x55b   : > { %v17168_v29 = vadd.f32 %v17157_v27, %v6121_v4 }
 0x55c   : > { %8165 = vmatpush1.bf16.xpose.msra.mxu0 %v16350_v57  ;;  %v17154_v57 = vadd.f32 %v17139_v9, %v6113_v52  ;;  %v18425_v10 = vmax.f32 %v17165_v40, 0.0 }
 0x55d   : > { %8168 = vmatprep.subr.msk.bf16.mxu0 %vm13704_vm11, %v16442_v63  ;;  %v6122_v63 = vmul.f32 %v17115_v56, %v16963_v23  ;;  %v18424_v15 = vmax.f32 %v17168_v29, 0.0 }
 0x55e   : > { %v18439_v11 = vmax.f32 %v17154_v57, 0.0 }
 0x55f   : > { %v17182_v23 = vadd.f32 %v17157_v27, %v6122_v63  ;;  %v6211_v47 = vadd.f32 %v18424_v15, %v18425_v10 }
 0x560   : > { %8240 = vmatpush1.bf16.xpose.msra.mxu1 %v16280_v0  ;;  %v18440_v0 = vmax.f32 %v17151_v6, 0.0 }
 0x561   : > { %8243 = vmatprep.subr.msk.bf16.mxu1 %vm13704_vm11, %v16409_v31  ;;  %v18423_v33 = vmax.f32 %v17182_v23, 0.0 }
 0x563   : > { %v6212_v39 = vadd.f32 %v6211_v47, %v18423_v33 }
 0x564   : > { %8170 = vmatpush1.bf16.xpose.msra.mxu0 %v16456_v19  ;;  %v18436_v19 = vmax.f32 %v17171_v42, 0.0 }
 0x565   : > { %8173 = vmatprep.subr.msk.bf16.mxu0 %vm13704_vm11, %v16515_v12  ;;  %v6202_v12 = vadd.f32 %v18439_v11, %v18440_v0  ;;  %v6213_v63 = vadd.f32 %v6212_v39, %v18422_v50  ;;  %v19422_v39 = vld [vmem:[#allocation38_spill] sm:$0xff] }
 0x566   : > { %v5994_v31 = vpop.f32.mrb[6].mxu0 }
 0x567   : > { %v6116_v25 = vmul.f32 %v17124_v18, %v5994_v31  ;;  %v5996_v14 = vpop.f32.mrb[7].mxu0 }
 0x568   : > { %8245 = vmatpush1.bf16.xpose.msra.mxu1 %v16411_v28  ;;  %v6117_v21 = vmul.f32 %v17124_v18, %v5996_v14 }
 0x569   : > { %8248 = vmatprep.subr.msk.bf16.mxu1 %vm13704_vm11, %v16489_v41  ;;  %v17202_v2 = vadd.f32 %v17139_v9, %v6116_v25  ;;  %v6203_v41 = vadd.f32 %v6202_v12, %v18436_v19 }
 0x56a   : > { %v6000_v7 = vpop.f32.mrb[8].mxu0  ;;  %v17223_v26 = vadd.f32 %v17139_v9, %v6117_v21 }
 0x56b   : > { %v6124_v28 = vmul.f32 %v17115_v56, %v6000_v7  ;;  %v6002_v17 = vpop.f32.mrb[9].mxu0  ;;  %v18431_v5 = vmax.f32 %v17202_v2, 0.0 }
 0x56c   : > { %8175 = vmatpush1.bf16.xpose.msra.mxu0 %v16526_v54  ;;  %v6125_v54 = vmul.f32 %v17115_v56, %v6002_v17  ;;  %v18430_v4 = vmax.f32 %v17223_v26, 0.0 }
 0x56d   : > { %8178 = vmatprep.subr.msk.bf16.mxu0 %vm13704_vm11, %v16579_v24  ;;  %v17231_v52 = vadd.f32 %v17157_v27, %v6124_v28  ;;  %v6204_v24 = vadd.f32 %v6203_v41, %v18432_v35 }
 0x56e   : > { %v17225_v48 = vpop.f32.mrb[10].mxu0  ;;  %v17249_v31 = vadd.f32 %v17157_v27, %v6125_v54 }
 0x56f   : > { %v17234_v45 = vpop.f32.mrb[11].mxu0  ;;  %v6205_v44 = vadd.f32 %v6204_v24, %v18431_v5  ;;  %v18421_v1 = vmax.f32 %v17231_v52, 0.0 }
 0x570   : > { %8250 = vmatpush1.bf16.xpose.msra.mxu1 %v16491_v62 }
 0x571   : > { %8253 = vmatprep.subr.msk.bf16.mxu1 %vm13704_vm11, %v16553_v22  ;;  %v6206_v43 = vadd.f32 %v6205_v44, %v18430_v4  ;;  %v6214_v7 = vadd.f32 %v6213_v63, %v18421_v1 }
 0x572   : > { %v6077_v8 = vpop.f32.mrb[6].mxu1 }
 0x573   : > { %v6118_v62 = vmul.f32 %v17124_v18, %v6077_v8  ;;  %v6079_v25 = vpop.f32.mrb[7].mxu1 }
 0x574   : > { %v6119_v14 = vmul.f32 %v17124_v18, %v6079_v25  ;;  %8180 = vmatpush1.bf16.xpose.msra.mxu0 %v16590_v34  ;;  %v18420_v18 = vmax.f32 %v17249_v31, 0.0  ;;  %v19424_v25 = vld [vmem:[#allocation184_spill] sm:$0xff] }
 0x575   : > { %v17255_v22 = vadd.f32 %v17139_v9, %v6118_v62  ;;  %8183 = vmatprep.subr.msk.bf16.mxu0 %vm13704_vm11, %v16639_v16  ;;  %v19423_v62 = vld [vmem:[#allocation197_spill] sm:$0xff] }
 0x576   : > { %v17263_v12 = vadd.f32 %v17139_v9, %v6119_v14  ;;  %v6083_v21 = vpop.f32.mrb[8].mxu1 }
 0x577   : > { %v18427_v34 = vmax.f32 %v17255_v22, 0.0  ;;  %v6126_v47 = vmul.f32 %v17115_v56, %v6083_v21  ;;  %v6085_v28 = vpop.f32.mrb[9].mxu1  ;;  %v19426_v21 = vld [vmem:[#allocation87_spill] sm:$0xff] }
 0x578   : > { %v18426_v17 = vmax.f32 %v17263_v12, 0.0  ;;  %v6127_v16 = vmul.f32 %v17115_v56, %v6085_v28  ;;  %8255 = vmatpush1.bf16.xpose.msra.mxu1 %v16555_v55  ;;  %v6215_v56 = vadd.f32 %v6214_v7, %v18420_v18  ;;  %v19427_v7 = vld [vmem:[#allocation130_spill] sm:$0xff]  ;;  %v19429_v28 = vld [vmem:[#allocation21_spill] sm:$0xff] }
 0x579   : > { %v6207_v9 = vadd.f32 %v6206_v43, %v18427_v34  ;;  %v17276_v41 = vadd.f32 %v17157_v27, %v6126_v47  ;;  %8258 = vmatprep.subr.msk.bf16.mxu1 %vm13704_vm11, %v19422_v39  ;;  %v19425_v43 = vld [vmem:[#allocation171_spill] sm:$0xff]  ;;  %v19428_v47 = vld [vmem:[#allocation277_spill] sm:$0xff] }
 0x57a   : > { %v17282_v54 = vadd.f32 %v17157_v27, %v6127_v16  ;;  %v17284_v24 = vpop.f32.mrb[10].mxu1  ;;  %v19430_v16 = vld [vmem:[#allocation90_spill] sm:$0xff]  ;;  %v19432_v39 = vld [vmem:[#allocation145_spill] sm:$0xff] }
 0x57b   : > { %v18419_v55 = vmax.f32 %v17276_v41, 0.0  ;;  %v17289_v44 = vpop.f32.mrb[11].mxu1  ;;  %v6208_v8 = vadd.f32 %v6207_v9, %v18426_v17  ;;  %v19431_v9 = vld [vmem:[#allocation37_spill] sm:$0xff] }
 0x57c   : > { %v18418_v63 = vmax.f32 %v17282_v54, 0.0  ;;  %8185 = vmatpush1.bf16.xpose.msra.mxu0 %v19423_v62 }
 0x57d   : > { %v6216_v27 = vadd.f32 %v6215_v56, %v18419_v55  ;;  %8188 = vmatprep.subr.msk.bf16.mxu0 %vm13704_vm11, %v19424_v25  ;;  %6209 = vadd.xlane.f32.xlu1 %v6208_v8 }
 0x57f   : > { %v6217_v14 = vadd.f32 %v6216_v27, %v18418_v63 }
 0x580   : > { %8260 = vmatpush1.bf16.xpose.msra.mxu1 %v19425_v43 }
 0x581   : > { %8263 = vmatprep.subr.msk.bf16.mxu1 %vm13704_vm11, %v19426_v21  ;;  %6218 = vadd.xlane.f32.xlu0 %v6217_v14 }
 0x584   : > { %8190 = vmatpush1.bf16.xpose.msra.mxu0 %v19427_v7 }
 0x585   : > { %8193 = vmatprep.subr.msk.bf16.mxu0 %vm13704_vm11, %v19428_v47  ;;  %v17346_v47 = vpop.permute.xlu0 %6631 }
 0x588   : > { %8265 = vmatpush1.bf16.xpose.msra.mxu1 %v19429_v28 }
 0x589   : > { %8268 = vmatprep.subr.msk.bf16.mxu1 %vm13704_vm11, %v19430_v16 }
 0x58c   : > { %8195 = vmatpush1.bf16.xpose.msra.mxu0 %v19431_v9 }
 0x590   : > { %8270 = vmatpush1.bf16.xpose.msra.mxu1 %v19432_v39 }
 0x591   : > { %8273 = vmatprep.subr.msk.bf16.mxu1 %vm13704_vm11, %v16822_v46 }
 0x593   : > { %6476 = vmatmul.mubr.f32.vlgmr.msra.gmra.mrb[18].mxu0 %v17011_v37 }
 0x594   : > { %7507 = vmatprep.mubr.msk.f32.mxu0 %vm5368_vm9, %v17019_v58 }
 0x597   : > { %6482 = vmatmul.mubr.f32.gmra.mrb[20].mxu0 %v17028_v36 }
 0x598   : > { %8275 = vmatpush1.bf16.xpose.msra.mxu1 %v16839_v51  ;;  %7508 = vmatprep.mubr.msk.f32.mxu0 %vm5368_vm9, %v17036_v61 }
 0x59b   : > { %6488 = vmatmul.mubr.f32.gmra.mrb[22].mxu0 %v17045_v53 }
 0x59f   : > { %6559 = vmatmul.mubr.f32.vlgmr.msra.gmra.mrb[18].mxu1 %v17011_v37 }
 0x5a0   : > { %7542 = vmatprep.mubr.msk.f32.mxu1 %vm5368_vm9, %v17019_v58  ;;  %v17336_v58 = vpop.permute.xlu1 %6626 }
 0x5a3   : > { %6565 = vmatmul.mubr.f32.gmra.mrb[20].mxu1 %v17028_v36 }
 0x5a4   : > { %7543 = vmatprep.mubr.msk.f32.mxu1 %vm5368_vm9, %v17036_v61  ;;  %v17338_v36 = vpop.permute.xlu1 %6109 }
 0x5a5   : > { %v6128_v61 = vmul.f32 %v17338_v36, %v16952_v20  ;;  %v6130_v9 = vmul.f32 %v17338_v36, %v16971_v30  ;;  %v6131_v20 = vmul.f32 %v17338_v36, %v16973_v32  ;;  %v6134_v35 = vmul.f32 %v17338_v36, %v17284_v24 }
 0x5a7   : > { %6571 = vmatmul.mubr.f32.gmra.mrb[22].mxu1 %v17045_v53  ;;  %v6129_v53 = vmul.f32 %v17338_v36, %v16957_v59 }
 0x5a8   : > { %v17344_v7 = vpop.permute.xlu1 %6151 }
 0x5a9   : > { %v17353_v39 = vadd.f32 %v17344_v7, %v6128_v61  ;;  %v17356_v63 = vadd.f32 %v17344_v7, %v6129_v53  ;;  %v17369_v61 = vpop.permute.xlu0 %6593  ;;  %v17372_v53 = vadd.f32 %v17344_v7, %v6130_v9 }
 0x5ab   : > { %v18429_v18 = vmax.f32 %v17353_v39, 0.0  ;;  %v18428_v32 = vmax.f32 %v17356_v63, 0.0 }
 0x5ad   : > { %v17402_v15 = vpop.permute.xlu0 %6636 }
 0x5e6   : > { %v6311_v60 = vpop.f32.mrb[12].mxu0 }
 0x5e7   : > { %v6313_v46 = vpop.f32.mrb[13].mxu0  ;;  %v6596_v28 = vmul.f32 %v17126_v3, %v6311_v60 }
 0x5e8   : > { %v6597_v16 = vmul.f32 %v17126_v3, %v6313_v46 }
 0x5e9   : > { %v17363_v60 = vadd.f32 %v17336_v58, %v6596_v28 }
 0x5ea   : > { %v6317_v51 = vpop.f32.mrb[14].mxu0  ;;  %v17366_v46 = vadd.f32 %v17336_v58, %v6597_v16 }
 0x5eb   : > { %v6319_v56 = vpop.f32.mrb[15].mxu0  ;;  %v6604_v59 = vmul.f32 %v17132_v49, %v6317_v51  ;;  %v17377_v51 = vadd.f32 %v17344_v7, %v6131_v20  ;;  %v18435_v1 = vmax.f32 %v17363_v60, 0.0 }
 0x5ec   : > { %v6605_v55 = vmul.f32 %v17132_v49, %v6319_v56  ;;  %v18433_v50 = vmax.f32 %v17366_v46, 0.0 }
 0x5ed   : > { %v17380_v56 = vadd.f32 %v17346_v47, %v6604_v59  ;;  %v18434_v59 = vmax.f32 %v17372_v53, 0.0 }
 0x5ee   : > { %v6323_v8 = vpop.f32.mrb[16].mxu0  ;;  %v17383_v28 = vadd.f32 %v17346_v47, %v6605_v55  ;;  %v6220_v55 = vadd.f32 %v18428_v32, %v18429_v18  ;;  %v6687_v4 = vadd.f32 %v18433_v50, %v18435_v1 }
 0x5ef   : > { %v6325_v62 = vpop.f32.mrb[17].mxu0 }
 0x5f0   : > { %19433 = vst [vmem:[#allocation175_spill] sm:$0xff] %v17383_v28  ;;  %v6613_v16 = vmul.f32 %v17369_v61, %v6325_v62  ;;  %v18437_v10 = vmax.f32 %v17383_v28, 0.0 }
 0x5f2   : > { %v6394_v27 = vpop.f32.mrb[12].mxu1  ;;  %v17411_v32 = vadd.f32 %v17402_v15, %v6613_v16  ;;  %v6221_v16 = vadd.f32 %v6220_v55, %v18434_v59 }
 0x5f3   : > { %v6396_v25 = vpop.f32.mrb[13].mxu1  ;;  %v6598_v30 = vmul.f32 %v17126_v3, %v6394_v27  ;;  %v6612_v27 = vmul.f32 %v17369_v61, %v6323_v8  ;;  %v6132_v8 = vmul.f32 %v17338_v36, %v17225_v48 }
 0x5f4   : > { %v6599_v20 = vmul.f32 %v17126_v3, %v6396_v25 }
 0x5f5   : > { %v17391_v33 = vadd.f32 %v17336_v58, %v6598_v30  ;;  %v18438_v30 = vmax.f32 %v17380_v56, 0.0  ;;  %v17408_v34 = vadd.f32 %v17402_v15, %v6612_v27 }
 0x5f6   : > { %v6400_v14 = vpop.f32.mrb[14].mxu1 }
 0x5f7   : > { %v6402_v37 = vpop.f32.mrb[15].mxu1  ;;  %v6606_v9 = vmul.f32 %v17132_v49, %v6400_v14  ;;  %v18442_v14 = vmax.f32 %v17377_v51, 0.0  ;;  %v18441_v5 = vmax.f32 %v17391_v33, 0.0 }
 0x5f8   : > { %v6607_v18 = vmul.f32 %v17132_v49, %v6402_v37  ;;  %v6133_v37 = vmul.f32 %v17338_v36, %v17234_v45 }
 0x5f9   : > { %v17414_v48 = vadd.f32 %v17346_v47, %v6606_v9  ;;  %v17429_v9 = vadd.f32 %v17344_v7, %v6132_v8 }
 0x5fa   : > { %v6406_v43 = vpop.f32.mrb[16].mxu1  ;;  %v17448_v19 = vadd.f32 %v17346_v47, %v6607_v18  ;;  %v17461_v11 = vadd.f32 %v17344_v7, %v6133_v37  ;;  %v6135_v37 = vmul.f32 %v17338_v36, %v17289_v44 }
 0x5fb   : > { %v17334_v21 = vpop.f32.mrb[17].mxu1  ;;  %19434 = vst [vmem:[#allocation194_spill] sm:$0xff] %v17414_v48  ;;  %v6614_v27 = vmul.f32 %v17369_v61, %v6406_v43  ;;  %v18443_v24 = vmax.f32 %v17414_v48, 0.0  ;;  %v19439_v44 = vmax.f32 %v17429_v9, 0.0 }
 0x666   : > { %v6477_v62 = vpop.f32.mrb[18].mxu0 }
 0x667   : > { %v6600_v25 = vmul.f32 %v17126_v3, %v6477_v62  ;;  %v6479_v17 = vpop.f32.mrb[19].mxu0  ;;  %v17423_v62 = vadd.f32 %v17336_v58, %v6599_v20  ;;  %v6696_v20 = vadd.f32 %v18437_v10, %v18438_v30  ;;  %v6688_v10 = vadd.f32 %v6687_v4, %v18441_v5 }
 0x668   : > { %v6601_v55 = vmul.f32 %v17126_v3, %v6479_v17  ;;  %v17454_v30 = vadd.f32 %v17402_v15, %v6614_v27  ;;  %v6222_v17 = vadd.f32 %v6221_v16, %v18442_v14  ;;  %v17474_v16 = vadd.f32 %v17344_v7, %v6134_v35 }
 0x669   : > { %v17440_v43 = vadd.f32 %v17336_v58, %v6600_v25  ;;  %v18444_v25 = vmax.f32 %v17423_v62, 0.0  ;;  %v19436_v5 = vmax.f32 %v17411_v32, 0.0 }
 0x66a   : > { %v6483_v50 = vpop.f32.mrb[20].mxu0  ;;  %v17470_v45 = vadd.f32 %v17336_v58, %v6601_v55  ;;  %v19435_v55 = vmax.f32 %v17408_v34, 0.0  ;;  %v6223_v36 = vadd.f32 %v6222_v17, %v19439_v44 }
 0x66b   : > { %v6608_v8 = vmul.f32 %v17132_v49, %v6483_v50  ;;  %v6485_v59 = vpop.f32.mrb[21].mxu0  ;;  %v6615_v50 = vmul.f32 %v17369_v61, %v17334_v21  ;;  %v6689_v14 = vadd.f32 %v6688_v10, %v18444_v25  ;;  %v19438_v25 = vmax.f32 %v17440_v43, 0.0 }
 0x66c   : > { %v6609_v0 = vmul.f32 %v17132_v49, %v6485_v59  ;;  %v6697_v59 = vadd.f32 %v6696_v20, %v18443_v24 }
 0x66d   : > { %v17464_v18 = vadd.f32 %v17346_v47, %v6608_v8  ;;  %v17489_v35 = vadd.f32 %v17402_v15, %v6615_v50  ;;  %v6690_v8 = vadd.f32 %v6689_v14, %v19438_v25  ;;  %v19441_v25 = vmax.f32 %v17454_v30, 0.0 }
 0x66e   : > { %v6489_v4 = vpop.f32.mrb[22].mxu0  ;;  %v17494_v20 = vadd.f32 %v17346_v47, %v6609_v0  ;;  %v17507_v0 = vadd.f32 %v17344_v7, %v6135_v37 }
 0x66f   : > { %v6616_v21 = vmul.f32 %v17369_v61, %v6489_v4  ;;  %v6491_v1 = vpop.f32.mrb[23].mxu0  ;;  %v6705_v4 = vadd.f32 %v19436_v5, %v19435_v55  ;;  %v18447_v5 = vmax.f32 %v17489_v35, 0.0  ;;  %v19442_v17 = vmax.f32 %v17464_v18, 0.0 }
 0x670   : > { %19437 = vst [vmem:[#allocation94_spill] sm:$0xff] %v17494_v20  ;;  %v6617_v24 = vmul.f32 %v17369_v61, %v6491_v1  ;;  %v19440_v1 = vmax.f32 %v17448_v19, 0.0 }
 0x671   : > { %v17501_v55 = vadd.f32 %v17402_v15, %v6616_v21  ;;  %v6706_v21 = vadd.f32 %v6705_v4, %v19441_v25 }
 0x672   : > { %v6560_v10 = vpop.f32.mrb[18].mxu1  ;;  %v6698_v48 = vadd.f32 %v6697_v59, %v19440_v1  ;;  %v17523_v37 = vadd.f32 %v17402_v15, %v6617_v24  ;;  %v19443_v59 = vmax.f32 %v17470_v45, 0.0 }
 0x673   : > { %v6602_v50 = vmul.f32 %v17126_v3, %v6560_v10  ;;  %v6562_v27 = vpop.f32.mrb[19].mxu1 }
 0x674   : > { %v6603_v28 = vmul.f32 %v17126_v3, %v6562_v27  ;;  %v6699_v44 = vadd.f32 %v6698_v48, %v19442_v17  ;;  %v6691_v4 = vadd.f32 %v6690_v8, %v19443_v59  ;;  %v19444_v48 = vmax.f32 %v17461_v11, 0.0 }
 0x675   : > { %v17517_v10 = vadd.f32 %v17336_v58, %v6602_v50  ;;  %v18453_v24 = vmax.f32 %v17523_v37, 0.0 }
 0x676   : > { %v17526_v3 = vadd.f32 %v17336_v58, %v6603_v28  ;;  %v6566_v27 = vpop.f32.mrb[20].mxu1  ;;  %v6224_v17 = vadd.f32 %v6223_v36, %v19444_v48  ;;  %v6707_v28 = vadd.f32 %v6706_v21, %v18447_v5  ;;  %v19447_v36 = vmax.f32 %v17494_v20, 0.0  ;;  %v6830_v20 = vld [vmem:[%s17842_s7 + $0x10] sm:$0xff] }
 0x677   : > { %v18448_v50 = vmax.f32 %v17517_v10, 0.0  ;;  %v6610_v25 = vmul.f32 %v17132_v49, %v6566_v27  ;;  %v6568_v14 = vpop.f32.mrb[21].mxu1  ;;  %v19446_v27 = vmax.f32 %v17474_v16, 0.0  ;;  %v19449_v21 = vmax.f32 %v17501_v55, 0.0 }
 0x678   : > { %v6611_v7 = vmul.f32 %v17132_v49, %v6568_v14  ;;  %v6700_v48 = vadd.f32 %v6699_v44, %v19447_v36  ;;  %v19450_v58 = vmax.f32 %v17526_v3, 0.0 }
 0x679   : > { %v6692_v8 = vadd.f32 %v6691_v4, %v18448_v50  ;;  %v17543_v59 = vadd.f32 %v17346_v47, %v6610_v25  ;;  %v6225_v1 = vadd.f32 %v6224_v17, %v19446_v27  ;;  %v6708_v5 = vadd.f32 %v6707_v28, %v19449_v21  ;;  %v6219_v21 = vpop.xlane.xlu0 %6218 }
 0x67a   : > { %v17551_v49 = vadd.f32 %v17346_v47, %v6611_v7  ;;  %v6572_v14 = vpop.f32.mrb[22].mxu1 }
 0x67b   : > { %19445 = vst [vmem:[#allocation40_spill] sm:$0xff] %v17543_v59  ;;  %v18450_v4 = vmax.f32 %v17543_v59, 0.0  ;;  %v6618_v25 = vmul.f32 %v17369_v61, %v6572_v14  ;;  %v6574_v50 = vpop.f32.mrb[23].mxu1  ;;  %v6693_v17 = vadd.f32 %v6692_v8, %v19450_v58  ;;  %v6709_v36 = vadd.f32 %v6708_v5, %v18453_v24  ;;  %v6720_v5 = vld [vmem:[%s17839_s4] sm:$0xff] }
 0x67c   : > { %19448 = vst [vmem:[#allocation92_spill] sm:$0xff] %v17551_v49  ;;  %v18449_v27 = vmax.f32 %v17551_v49, 0.0  ;;  %v6619_v44 = vmul.f32 %v17369_v61, %v6574_v50  ;;  %v19451_v61 = vmax.f32 %v17507_v0, 0.0  ;;  %7596 = vmatprep.mubr.msk.f32.mxu0 %vm4330_vm2, %v6720_v5  ;;  %v6722_v5 = vld [vmem:[%s17839_s4 + $0x10] sm:$0xff] }
 0x67d   : > { %v6701_v47 = vadd.f32 %v6700_v48, %v18450_v4  ;;  %v17564_v7 = vadd.f32 %v17402_v15, %v6618_v25  ;;  %6694 = vadd.xlane.f32.xlu0 %v6693_v17  ;;  %v6210_v25 = vpop.xlane.xlu1 %6209 }
 0x67e   : > { %v17567_v28 = vadd.f32 %v17402_v15, %v6619_v44  ;;  %v6226_v50 = vadd.f32 %v6225_v1, %v19451_v61 }
 0x67f   : > { %v18452_v14 = vmax.f32 %v17564_v7, 0.0  ;;  %v6702_v58 = vadd.f32 %v6701_v47, %v18449_v27 }
 0x680   : > { %v18451_v8 = vmax.f32 %v17567_v28, 0.0 }
 0x681   : > { %v6710_v48 = vadd.f32 %v6709_v36, %v18452_v14  ;;  %6703 = vadd.xlane.f32.xlu1 %v6702_v58  ;;  %6227 = vadd.xlane.f32.xlu0 %v6226_v50 }
 0x683   : > { %v6711_v15 = vadd.f32 %v6710_v48, %v18451_v8 }
 0x685   : > { %6712 = vadd.xlane.f32.xlu1 %v6711_v15  ;;  %v6721_v15 = vld [vmem:[%s17839_s4 + $0x8] sm:$0xff] }
 0x70a   : > { %v6695_v1 = vpop.xlane.xlu0 %6694 }
 0x70b   : > { %v6714_v17 = vadd.f32 %v6695_v1, %v6210_v25  ;;  %v6725_v25 = vld [vmem:[%s17840_s5 + $0x8] sm:$0xff]  ;;  %v6724_v1 = vld [vmem:[%s17840_s5] sm:$0xff] }
 0x70d   : > { %v6717_v61 = vmul.f32 0.0009765625, %v6714_v17 }
 0x70e   : > { %v6704_v44 = vpop.xlane.xlu1 %6703  ;;  %v6228_v58 = vpop.xlane.xlu0 %6227 }
 0x70f   : > { %v6715_v47 = vadd.f32 %v6704_v44, %v6219_v21  ;;  %v11402_v21 = vmov 0.0  }
 0x710   : > { %7610 = vmatprep.mubr.msk.f32.mxu1 %vm11401_vm12, %v11402_v21 }
 0x711   : > { %v6718_v36 = vmul.f32 0.0009765625, %v6715_v47 }
 0x712   : > { %v6713_v50 = vpop.xlane.xlu1 %6712 }
 0x713   : > { %v8276_v27 = vpack.c.bf16 %v6718_v36, %v6717_v61  ;;  %v6716_v4 = vadd.f32 %v6713_v50, %v6228_v58  ;;  %v6727_v36 = vld [vmem:[%s17840_s5 + $0x18] sm:$0xff]  ;;  %v6726_v58 = vld [vmem:[%s17840_s5 + $0x10] sm:$0xff] }
 0x715   : > { %v6719_v48 = vmul.f32 0.0009765625, %v6716_v4  ;;  %8277 = vmatprep.subr.bf16.mxu0 %v8276_v27  ;;  %v6723_v4 = vld [vmem:[%s17839_s4 + $0x18] sm:$0xff] }
 0x716   : > { %8279 = vmatpush3.bf16.msra.mxu0 %v8276_v27  ;;  %v11400_v27 = vmov 0.0|0.0  }
 0x717   : > { %7594 = vmatprep.subr.mxu0 %v6719_v48  ;;  %8280 = vmatprep.subr.bf16.mxu1 %v11400_v27 }
 0x71a   : > { %7595 = vmatpush3.msra.mxu0 %v6719_v48 }
 0x71b   : > { %7597 = vmatmul.mubr.msk.f32.vlgmr.msra.gmra.mrb[24].mxu0 %vm4330_vm2, %v6721_v15  ;;  %8286 = vmatprep.subr.bf16.mxu0 %v11400_v27 }
 0x71c   : > { %7599 = vmatprep.mubr.msk.f32.mxu0 %vm4330_vm2, %v6722_v5 }
 0x71f   : > { %7600 = vmatmul.mubr.msk.f32.gmra.mrb[26].mxu0 %vm4330_vm2, %v6723_v4 }
 0x720   : > { %7627 = vmatprep.mubr.msk.f32.mxu0 %vm11401_vm12, %v11402_v21 }
 0x7ee   : > { %v7598_v17 = vpop.f32.mrb[24].mxu0 }
 0x7ef   : > { %v6812_v44 = vadd.f32 %v7598_v17, %v6725_v25  ;;  %v6806_v47 = vpop.f32.mrb[25].mxu0  ;;  %v7557_v17 = vld [vmem:[%s17841_s6 + $0x18] sm:$0xff] }
 0x7f0   : > { %v6807_v61 = vadd.f32 %v6806_v47, %v6724_v1  ;;  %v6825_v1 = vld [vmem:[%s17841_s6] sm:$0xff] }
 0x7f1   : > { %v7558_v47 = vld [vmem:[%s17841_s6 + $0x20] sm:$0xff] }
 0x7f2   : > { %v8281_v50 = vpack.c.bf16 %v6812_v44, %v6807_v61  ;;  %v7601_v48 = vpop.f32.mrb[26].mxu0  ;;  %v6826_v44 = vld [vmem:[%s17841_s6 + $0x8] sm:$0xff]  ;;  %v6827_v61 = vld [vmem:[%s17841_s6 + $0x10] sm:$0xff] }
 0x7f3   : > { %v6822_v15 = vadd.f32 %v7601_v48, %v6727_v36  ;;  %v6816_v5 = vpop.f32.mrb[27].mxu0  ;;  %v7559_v36 = vld [vmem:[%s17841_s6 + $0x28] sm:$0xff] }
 0x7f4   : > { %v6817_v4 = vadd.f32 %v6816_v5, %v6726_v58  ;;  %8282 = vmatpush3.bf16.msra.mxu1 %v8281_v50  ;;  %8288 = vmatpush3.bf16.msra.mxu0 %v8281_v50  ;;  %v7560_v58 = vld [vmem:[%s17842_s7 + $0x18] sm:$0xff] }
 0x7f5   : > { %8283 = vmatprep.subr.bf16.mxu1 %v11400_v27  ;;  %8289 = vmatprep.subr.bf16.mxu0 %v11400_v27 }
 0x7f6   : > { %v8284_v25 = vpack.c.bf16 %v6822_v15, %v6817_v4 }
 0x7f8   : > { %8285 = vmatpush3.bf16.msra.mxu1 %v8284_v25  ;;  %8291 = vmatpush3.bf16.msra.mxu0 %v8284_v25 }
 0x7f9   : > { %8292 = vmatprep.subr.bf16.mxu1 %v11400_v27 }
 0x7fb   : > { %7611 = vmatmul.mubr.msk.f32.vlgmr.msra.gmra.mrb[24].mxu1 %vm6831_vm13, %v6825_v1  ;;  %7628 = vmatmul.mubr.msk.f32.vlgmr.msra.gmra.mrb[28].mxu0 %vm6831_vm13, %v7557_v17  ;;  %v7561_v1 = vld [vmem:[%s17842_s7 + $0x20] sm:$0xff] }
 0x7fc   : > { %8294 = vmatpush3.bf16.msra.mxu1 %v8281_v50  ;;  %7613 = vmatprep.mubr.msk.f32.mxu1 %vm11401_vm12, %v11402_v21 }
 0x7fd   : > { %7630 = vmatprep.mubr.msk.f32.mxu0 %vm11401_vm12, %v11402_v21  ;;  %8293 = vmatprep.subr.bf16.mxu1 %v11400_v27  ;;  %v6828_v27 = vld [vmem:[%s17842_s7] sm:$0xff] }
 0x7ff   : > { %7614 = vmatmul.mubr.msk.f32.gmra.mrb[26].mxu1 %vm6831_vm13, %v6826_v44  ;;  %7631 = vmatmul.mubr.msk.f32.gmra.mrb[30].mxu0 %vm6831_vm13, %v7558_v47 }
 0x800   : > { %8295 = vmatpush3.bf16.msra.mxu1 %v8284_v25  ;;  %7616 = vmatprep.mubr.msk.f32.mxu1 %vm11401_vm12, %v11402_v21  ;;  %v6829_v25 = vld [vmem:[%s17842_s7 + $0x8] sm:$0xff] }
 0x803   : > { %7617 = vmatmul.mubr.msk.f32.gmra.mrb[28].mxu1 %vm6831_vm13, %v6827_v61 }
 0x804   : > { %7633 = vmatprep.mubr.msk.f32.mxu1 %vm11401_vm12, %v11402_v21 }
 0x807   : > { %7634 = vmatmul.mubr.msk.f32.vlgmr.msra.gmra.mrb[30].mxu1 %vm6831_vm13, %v7559_v36 }
 0x8ce   : > { %v6907_v50 = vpop.f32.mrb[24].mxu1  ;;  %v7004_v48 = vpop.f32.mrb[28].mxu0 }
 0x8cf   : > { %v6908_v15 = vadd.f32 %v6907_v50, %v6828_v27  ;;  %v7005_v5 = vadd.f32 %v7560_v58, %v7004_v48  ;;  %v7612_v4 = vpop.f32.mrb[25].mxu1  ;;  %v7629_v21 = vpop.f32.mrb[29].mxu0 }
 0x8d1   : > { %v7018_v17 = vmax.f32 %v6908_v15, %v7005_v5 }
 0x8d2   : > { %v6912_v44 = vpop.f32.mrb[26].mxu1  ;;  %v7009_v47 = vpop.f32.mrb[30].mxu0 }
 0x8d3   : > { %v7021_v61 = vsub.f32 %v6908_v15, %v7018_v17  ;;  %v7030_v36 = vsub.f32 %v7005_v5, %v7018_v17  ;;  %v6913_v8 = vadd.f32 %v6912_v44, %v6829_v25  ;;  %v7010_v14 = vadd.f32 %v7561_v1, %v7009_v47  ;;  %v7615_v24 = vpop.f32.mrb[27].mxu1  ;;  %v7632_v27 = vpop.f32.mrb[31].mxu0  ;;  %v7562_v15 = vld [vmem:[%s17842_s7 + $0x28] sm:$0xff] }
 0x8d5   : > { %v7024_v58 = vmul.f32 1.442695, %v7021_v61  ;;  %v7033_v50 = vmul.f32 1.442695, %v7030_v36  ;;  %v7019_v48 = vmax.f32 %v6913_v8, %v7010_v14 }
 0x8d6   : > { %v6917_v4 = vpop.f32.mrb[28].mxu1 }
 0x8d7   : > { %10913 = vpow2.f32 %v7024_v58  ;;  %v7022_v21 = vsub.f32 %v6913_v8, %v7019_v48  ;;  %v7031_v49 = vsub.f32 %v7010_v14, %v7019_v48  ;;  %v7618_v59 = vpop.f32.mrb[29].mxu1  ;;  %v6918_v1 = vadd.f32 %v6917_v4, %v6830_v20 }
 0x8d8   : > { %10915 = vpow2.f32 %v7033_v50 }
 0x8d9   : > { %v7026_v5 = vmul.f32 1.442695, %v7022_v21  ;;  %v7035_v24 = vmul.f32 1.442695, %v7031_v49 }
 0x8da   : > { %v7014_v25 = vpop.f32.mrb[30].mxu1 }
 0x8db   : > { %10917 = vpow2.f32 %v7026_v5  ;;  %v7015_v17 = vadd.f32 %v7562_v15, %v7014_v25  ;;  %v7635_v44 = vpop.f32.mrb[31].mxu1 }
 0x8dc   : > { %10919 = vpow2.f32 %v7035_v24 }
 0x8dd   : > { %v7020_v8 = vmax.f32 %v6918_v1, %v7015_v17 }
 0x8df   : > { %v7023_v14 = vsub.f32 %v6918_v1, %v7020_v8  ;;  %v7032_v59 = vsub.f32 %v7015_v17, %v7020_v8 }
 0x8e1   : > { %v10914_v47 = vpop.eup %10913  ;;  %v7028_v61 = vmul.f32 1.442695, %v7023_v14  ;;  %v7037_v36 = vmul.f32 1.442695, %v7032_v59 }
 0x8e2   : > { %v10916_v27 = vpop.eup %10915 }
 0x8e3   : > { %v7039_v58 = vadd.f32 %v10916_v27, %v10914_v47  ;;  %10921 = vpow2.f32 %v7028_v61 }
 0x8e4   : > { %10923 = vpow2.f32 %v7037_v36  ;;  %v19453_v36 = vmax.f32 %v17154_v57, 0.0 }
 0x8e5   : > { %v10918_v50 = vpop.eup %10917  ;;  %10925 = vrcp.f32 %v7039_v58  ;;  %v19454_v58 = vmax.f32 %v17171_v42, 0.0 }
 0x8e6   : > { %v10920_v48 = vpop.eup %10919 }
 0x8e7   : > { %v7040_v49 = vadd.f32 %v10920_v48, %v10918_v50 }
 0x8e9   : > { %10927 = vrcp.f32 %v7040_v49 }
 0x8ed   : > { %v10922_v21 = vpop.eup %10921 }
 0x8ee   : > { %v10924_v20 = vpop.eup %10923 }
 0x8ef   : > { %v10926_v4 = vpop.eup %10925  ;;  %v7041_v15 = vadd.f32 %v10924_v20, %v10922_v21 }
 0x8f0   : > { %v7045_v5 = vmul.f32 %v10926_v4, %v10914_v47  ;;  %v7087_v24 = vmul.f32 %v10926_v4, %v10916_v27  ;;  %v19452_v47 = vmax.f32 %v17151_v6, 0.0  ;;  %v19457_v4 = vmax.f32 %v17223_v26, 0.0 }
 0x8f1   : > { %10929 = vrcp.f32 %v7041_v15  ;;  %v19459_v6 = vmax.f32 %v17263_v12, 0.0 }
 0x8f2   : > { %7050 = vperm.xlu0 %10911, %v7045_v5   ;;  %v19458_v5 = vmax.f32 %v17255_v22, 0.0 }
 0x8f3   : > { %v10928_v25 = vpop.eup %10927 }
 0x8f4   : > { %v7046_v1 = vmul.f32 %v10928_v25, %v10918_v50  ;;  %v7088_v17 = vmul.f32 %v10928_v25, %v10920_v48  ;;  %v19455_v48 = vmax.f32 %v17195_v13, 0.0 }
 0x8f6   : > { %7092 = vperm.xlu0 %10911, %v7087_v24   ;;  %7055 = vperm.xlu1 %10912, %v7046_v1   ;;  %v19460_v1 = vmax.f32 %v17363_v60, 0.0  ;;  %v19467_v60 = vmax.f32 %v17526_v3, 0.0 }
 0x8fb   : > { %v10930_v44 = vpop.eup %10929 }
 0x8fc   : > { %v7089_v8 = vmul.f32 %v10930_v44, %v10924_v20  ;;  %v7047_v14 = vmul.f32 %v10930_v44, %v10922_v21  ;;  %v19456_v21 = vmax.f32 %v17202_v2, 0.0  ;;  %v19462_v44 = vmax.f32 %v17391_v33, 0.0 }
 0x8fe   : > { %7102 = vperm.xlu0 %10911, %v7089_v8   ;;  %7060 = vperm.xlu1 %10912, %v7047_v14   ;;  %v19463_v8 = vmax.f32 %v17423_v62, 0.0  ;;  %v19464_v14 = vmax.f32 %v17440_v43, 0.0  ;;  %v19468_v43 = vmax.f32 %v17165_v40, 0.0  ;;  %v19474_v40 = vmax.f32 %v17276_v41, 0.0 }
 0x8ff   : > { %v19481_v41 = vmax.f32 %v17523_v37, 0.0 }
 0x902   : > { %7097 = vperm.xlu1 %10912, %v7088_v17   ;;  %v19461_v17 = vmax.f32 %v17366_v46, 0.0 }
 0x971   : > { %v7051_v59 = vpop.permute.xlu0 %7050 }
 0x972   : > { %v7063_v61 = vmul.f32 %v7051_v59, %v19452_v47  ;;  %v7064_v27 = vmul.f32 %v7051_v59, %v19453_v36  ;;  %v7065_v50 = vmul.f32 %v7051_v59, %v19454_v58  ;;  %v7066_v49 = vmul.f32 %v7051_v59, %v19455_v48 }
 0x973   : > { %v7067_v20 = vmul.f32 %v7051_v59, %v19456_v21  ;;  %v7068_v15 = vmul.f32 %v7051_v59, %v19457_v4  ;;  %v7069_v24 = vmul.f32 %v7051_v59, %v19458_v5  ;;  %v7070_v25 = vmul.f32 %v7051_v59, %v19459_v6 }
 0x974   : > { %v19465_v47 = vmax.f32 %v17470_v45, 0.0  ;;  %v19466_v59 = vmax.f32 %v17517_v10, 0.0  ;;  %v19469_v10 = vmax.f32 %v17168_v29, 0.0  ;;  %v19475_v29 = vmax.f32 %v17282_v54, 0.0 }
 0x975   : > { %v7093_v57 = vpop.permute.xlu0 %7092  ;;  %v19482_v54 = vmax.f32 %v17564_v7, 0.0  ;;  %v19488_v7 = vmax.f32 %v17429_v9, 0.0 }
 0x976   : > { %v7105_v42 = vmul.f32 %v7093_v57, %v19460_v1  ;;  %v7106_v13 = vmul.f32 %v7093_v57, %v19461_v17  ;;  %v7107_v2 = vmul.f32 %v7093_v57, %v19462_v44  ;;  %v7108_v26 = vmul.f32 %v7093_v57, %v19463_v8  ;;  %v7056_v1 = vpop.permute.xlu1 %7055 }
 0x977   : > { %v7109_v22 = vmul.f32 %v7093_v57, %v19464_v14  ;;  %v7110_v12 = vmul.f32 %v7093_v57, %v19465_v47  ;;  %v7111_v36 = vmul.f32 %v7093_v57, %v19466_v59  ;;  %v7112_v58 = vmul.f32 %v7093_v57, %v19467_v60 }
 0x978   : > { %v7129_v46 = vadd.f32 %v7105_v42, %v7063_v61  ;;  %v7130_v48 = vadd.f32 %v7106_v13, %v7064_v27  ;;  %v7131_v21 = vadd.f32 %v7107_v2, %v7065_v50  ;;  %v7132_v33 = vadd.f32 %v7108_v26, %v7066_v49 }
 0x979   : > { %v7133_v4 = vadd.f32 %v7109_v22, %v7067_v20  ;;  %v7134_v5 = vadd.f32 %v7110_v12, %v7068_v15  ;;  %v7135_v62 = vadd.f32 %v7111_v36, %v7069_v24  ;;  %v7136_v6 = vadd.f32 %v7112_v58, %v7070_v25 }
 0x97a   : > { %7153 = vst [vmem:[%s17692_s19] sm:$0xff] %v7129_v46  ;;  %7154 = vst [vmem:[%s17692_s19 + $0x8] sm:$0xff] %v7130_v48  ;;  %v7071_v45 = vmul.f32 %v7056_v1, %v19468_v43  ;;  %v7072_v3 = vmul.f32 %v7056_v1, %v19469_v10  ;;  %v19470_v61 = vmax.f32 %v17182_v23, 0.0  ;;  %v19471_v50 = vmax.f32 %v17211_v38, 0.0  ;;  %v19493_v43 = vld [vmem:[#allocation175_spill] sm:$0xff] }
 0x97b   : > { %7155 = vst [vmem:[%s17692_s19 + $0x10] sm:$0xff] %v7131_v21  ;;  %7156 = vst [vmem:[%s17692_s19 + $0x18] sm:$0xff] %v7132_v33  ;;  %v19472_v24 = vmax.f32 %v17231_v52, 0.0  ;;  %v19473_v57 = vmax.f32 %v17249_v31, 0.0  ;;  %v7077_v17 = vmul.f32 %v7056_v1, %v19474_v40  ;;  %v7078_v13 = vmul.f32 %v7056_v1, %v19475_v29  ;;  %v19499_v29 = vld [vmem:[#allocation94_spill] sm:$0xff] }
 0x97c   : > { %7157 = vst [vmem:[%s17692_s19 + $0x20] sm:$0xff] %v7133_v4  ;;  %7158 = vst [vmem:[%s17692_s19 + $0x28] sm:$0xff] %v7134_v5  ;;  %v7073_v27 = vmul.f32 %v7056_v1, %v19470_v61  ;;  %v7074_v49 = vmul.f32 %v7056_v1, %v19471_v50  ;;  %v19476_v23 = vmax.f32 %v17408_v34, 0.0  ;;  %v19477_v38 = vmax.f32 %v17411_v32, 0.0  ;;  %v19495_v50 = vld [vmem:[#allocation194_spill] sm:$0xff] }
 0x97d   : > { %7159 = vst [vmem:[%s17692_s19 + $0x30] sm:$0xff] %v7135_v62  ;;  %7160 = vst [vmem:[%s17692_s19 + $0x38] sm:$0xff] %v7136_v6  ;;  %v7103_v20 = vpop.permute.xlu0 %7102  ;;  %v7061_v15 = vpop.permute.xlu1 %7060  ;;  %v7075_v25 = vmul.f32 %v7056_v1, %v19472_v24  ;;  %v7076_v42 = vmul.f32 %v7056_v1, %v19473_v57  ;;  %v19478_v8 = vmax.f32 %v17454_v30, 0.0  ;;  %v19479_v52 = vmax.f32 %v17489_v35, 0.0 }
 0x97e   : > { %v7121_v44 = vmul.f32 %v7103_v20, %v19476_v23  ;;  %v7122_v2 = vmul.f32 %v7103_v20, %v19477_v38  ;;  %v19480_v31 = vmax.f32 %v17501_v55, 0.0  ;;  %v7126_v47 = vmul.f32 %v7103_v20, %v19481_v41  ;;  %v19501_v38 = vld [vmem:[#allocation40_spill] sm:$0xff] }
 0x97f   : > { %v7123_v26 = vmul.f32 %v7103_v20, %v19478_v8  ;;  %v7124_v14 = vmul.f32 %v7103_v20, %v19479_v52  ;;  %v7127_v12 = vmul.f32 %v7103_v20, %v19482_v54  ;;  %v19483_v34 = vmax.f32 %v17567_v28, 0.0 }
 0x980   : > { %v7125_v22 = vmul.f32 %v7103_v20, %v19480_v31  ;;  %v19484_v32 = vmax.f32 %v17353_v39, 0.0  ;;  %v19485_v30 = vmax.f32 %v17356_v63, 0.0  ;;  %v19486_v35 = vmax.f32 %v17372_v53, 0.0 }
 0x981   : > { %v7128_v59 = vmul.f32 %v7103_v20, %v19483_v34  ;;  %v19487_v58 = vmax.f32 %v17377_v51, 0.0  ;;  %v7083_v46 = vmul.f32 %v7061_v15, %v19488_v7  ;;  %v19489_v28 = vmax.f32 %v17461_v11, 0.0  ;;  %v7098_v33 = vpop.permute.xlu1 %7097 }
 0x982   : > { %v7079_v36 = vmul.f32 %v7061_v15, %v19484_v32  ;;  %v7080_v60 = vmul.f32 %v7061_v15, %v19485_v30  ;;  %v7081_v55 = vmul.f32 %v7061_v15, %v19486_v35  ;;  %v19490_v48 = vmax.f32 %v17474_v16, 0.0 }
 0x983   : > { %v7082_v37 = vmul.f32 %v7061_v15, %v19487_v58  ;;  %v7084_v39 = vmul.f32 %v7061_v15, %v19489_v28  ;;  %v19491_v53 = vmax.f32 %v17507_v0, 0.0  ;;  %v7149_v62 = vadd.f32 %v7125_v22, %v7083_v46 }
 0x984   : > { %v7085_v63 = vmul.f32 %v7061_v15, %v19490_v48  ;;  %v7145_v4 = vadd.f32 %v7121_v44, %v7079_v36  ;;  %v7146_v51 = vadd.f32 %v7122_v2, %v7080_v60  ;;  %v7147_v5 = vadd.f32 %v7123_v26, %v7081_v55 }
 0x985   : > { %v7086_v21 = vmul.f32 %v7061_v15, %v19491_v53  ;;  %v7148_v9 = vadd.f32 %v7124_v14, %v7082_v37  ;;  %v7150_v11 = vadd.f32 %v7126_v47, %v7084_v39  ;;  %v19492_v16 = vmax.f32 %v17380_v56, 0.0  ;;  %7173 = vst [vmem:[%s17692_s19 + $0xa0] sm:$0xff] %v7149_v62 }
 0x986   : > { %v7151_v6 = vadd.f32 %v7127_v12, %v7085_v63  ;;  %7169 = vst [vmem:[%s17692_s19 + $0x80] sm:$0xff] %v7145_v4  ;;  %7170 = vst [vmem:[%s17692_s19 + $0x88] sm:$0xff] %v7146_v51  ;;  %v19494_v10 = vmax.f32 %v19493_v43, 0.0  ;;  %v19496_v20 = vmax.f32 %v19495_v50, 0.0  ;;  %v19497_v24 = vmax.f32 %v17448_v19, 0.0  ;;  %v19503_v19 = vld [vmem:[#allocation92_spill] sm:$0xff] }
 0x987   : > { %v7152_v1 = vadd.f32 %v7128_v59, %v7086_v21  ;;  %7171 = vst [vmem:[%s17692_s19 + $0x90] sm:$0xff] %v7147_v5  ;;  %7172 = vst [vmem:[%s17692_s19 + $0x98] sm:$0xff] %v7148_v9  ;;  %v7113_v0 = vmul.f32 %v7098_v33, %v19492_v16  ;;  %v19498_v40 = vmax.f32 %v17464_v18, 0.0  ;;  %v19500_v23 = vmax.f32 %v19499_v29, 0.0 }
 0x988   : > { %v7114_v61 = vmul.f32 %v7098_v33, %v19494_v10  ;;  %v7115_v15 = vmul.f32 %v7098_v33, %v19496_v20  ;;  %v7116_v57 = vmul.f32 %v7098_v33, %v19497_v24  ;;  %7174 = vst [vmem:[%s17692_s19 + $0xa8] sm:$0xff] %v7150_v11  ;;  %7175 = vst [vmem:[%s17692_s19 + $0xb0] sm:$0xff] %v7151_v6  ;;  %v19502_v2 = vmax.f32 %v19501_v38, 0.0 }
 0x989   : > { %7176 = vst [vmem:[%s17692_s19 + $0xb8] sm:$0xff] %v7152_v1  ;;  %v7117_v56 = vmul.f32 %v7098_v33, %v19498_v40  ;;  %v7118_v44 = vmul.f32 %v7098_v33, %v19500_v23  ;;  %v19504_v26 = vmax.f32 %v19503_v19, 0.0  ;;  %v7137_v14 = vadd.f32 %v7113_v0, %v7071_v45 }
 0x98a   : > { %v7119_v8 = vmul.f32 %v7098_v33, %v19502_v2  ;;  %v7138_v31 = vadd.f32 %v7114_v61, %v7072_v3  ;;  %v7139_v18 = vadd.f32 %v7115_v15, %v7073_v27  ;;  %v7140_v22 = vadd.f32 %v7116_v57, %v7074_v49 }
 0x98b   : > { %v7120_v52 = vmul.f32 %v7098_v33, %v19504_v26  ;;  %v7141_v41 = vadd.f32 %v7117_v56, %v7075_v25  ;;  %v7142_v47 = vadd.f32 %v7118_v44, %v7076_v42  ;;  %7161 = vst [vmem:[%s17692_s19 + $0x40] sm:$0xff] %v7137_v14 }
 0x98c   : > { %v7143_v54 = vadd.f32 %v7119_v8, %v7077_v17  ;;  %7162 = vst [vmem:[%s17692_s19 + $0x48] sm:$0xff] %v7138_v31  ;;  %7163 = vst [vmem:[%s17692_s19 + $0x50] sm:$0xff] %v7139_v18 }
 0x98d   : > { %v7144_v12 = vadd.f32 %v7120_v52, %v7078_v13  ;;  %7164 = vst [vmem:[%s17692_s19 + $0x58] sm:$0xff] %v7140_v22  ;;  %7165 = vst [vmem:[%s17692_s19 + $0x60] sm:$0xff] %v7141_v41 }
 0x98e   : > { %7166 = vst [vmem:[%s17692_s19 + $0x68] sm:$0xff] %v7142_v47  ;;  %7167 = vst [vmem:[%s17692_s19 + $0x70] sm:$0xff] %v7143_v54 }
 0x98f   : > { %7168 = vst [vmem:[%s17692_s19 + $0x78] sm:$0xff] %v7144_v12 }
 0x990   : > { %11340 = shalt.err (!%p11337_p3)
}
 0x991   : > { %s11341_s10 = scalar_lea.hbm %s17779_s23, 3072  ;;  %s11345_s20 = scalar_lea.hbm %s17843_s8, 6144 }
 0x992   : > { %p11342_p4 = scmp.ne.s32.totalorder %s17779_s23, %s11341_s10  ;;  %p11346_p9 = scmp.lt.u32.totalorder %s17779_s23, %s17843_s8 }
 0x993   : > { %p11347_p10 = scmp.lt.u32.totalorder %s11345_s20, %s11341_s10  ;;  %p11349_p12 = scmp.lt.u32.totalorder %s11341_s10, %s17779_s23 }
 0x994   : > { %p11343_p7 = pnand %p11342_p4, %p11488_p5 }
 0x995   : > { %p11348_p11 = por %p11347_p10, %p11346_p9 }
 0x996   : > { %p11344_p8 = pneg %p11343_p7 }
 0x997   : > { %p11350_p13 = por %p11349_p12, %p11348_p11 }
 0x999   : > { %p11351_p0 = pnand %p11350_p13, %p11344_p8 }
 0x99b   : > { %11354 = shalt.err (!%p11351_p0)
}
 0x99c   : > { %s11404_s18 = smov 1024  }
 0x99d   : > { %8299 = dma.vmem_to_hbm [thread:$0]  (%p11488_p5), %s17781_s21, 3072, %s17779_s23, %s17793_s17, %s11404_s18, %s11404_s18, %s11397_s12  }
 0x99e PF: > { %p8305_p1 = scmp.ge.s32.totalorder %s11389_s30, 2  ;;  %s7206_s24 = sand.u32 1, %s11377_s27  }
 0x99f   : > { %s7207_s25 = scalar_lea.sflag [#allocation3], %s7206_s24 }
 0x9a0   : > { %p8302_p2 = pnand %p8305_p1, %p11492_p6 }
 0x9a2   : > { %11372 = dma.done.wait (!%p8302_p2), %s7207_s25, 3072  }
 0x9a3   : > { %11374 = vsyncadd (!%p8302_p2), %s7207_s25, 4294964224  ;;  %p18_p3 = scmp.ge.s32.totalorder %s11475_s11, 4   ;;  %s19505_s27 = smov %s11381_s28 }
 0x9a4   : > { %s19506_s28 = smov %s11385_s29  ;;  %s19507_s29 = smov %s11486_s14 }
 0x9a5   : > { %s19508_s30 = smov %s11475_s11  ;;  %20 = sbr.rel (!%p18_p3) target bundleno = 3 (0x3), region = 92 }
 0x9ac   :  { %7212 = vsyncpa [#allocation3], 1 }
 0x9ad   :  { %7214 = vsyncpa [#allocation3 + $0x1], 1 }

</bundles_post_ra>
